<compile_context>
chip_gen: v5e
topology: v5e:2x2
jax: 0.10.0
libtpu: 0.0.40
codegen_flags: <defaults>
</compile_context>

<pallas_src>
import functools

import jax
import jax.numpy as jnp
from jax.experimental import pallas as pl
from jax.experimental.pallas import tpu as pltpu

EPS = 1e-5      # torch.nn.BatchNorm2d default eps
LANE = 128      # FC output padded to one lane group for a dense store


def _round_up(x, m):
    return (x + m - 1) // m * m


def _make_kernel(N, H, W, Cin, Cmid, B, NB):
    """Fused single-pass forward kernel, closed over static shape parameters."""
    Wp = W + 2                  # padded scanline width
    Rv = H * Wp                 # conv-output rows per image (2 garbage cols / scanline)
    K9 = 9 * Cin                # packed contraction size of the 3x3 conv matmul
    N_pad = NB * B
    inv_count = 1.0 / float(N * H * W)   # biased (training-mode) batch statistics
    inv_hw = 1.0 / float(H * W)

    def kernel(x_ref, wconv_ref, bconv_ref, gamma_ref, beta_ref,
               wfc_ref, bfc_ref, out_ref, conv_cache, sum_ref, ssq_ref):
        i = pl.program_id(0)                        # image-block index

        @pl.when(i == 0)
        def _init():
            sum_ref[...] = jnp.zeros_like(sum_ref)
            ssq_ref[...] = jnp.zeros_like(ssq_ref)

        # Column-validity mask, built in-kernel: row r = (h, w') is real iff w' < W.
        col = jax.lax.broadcasted_iota(jnp.int32, (Rv, 1), 0) % Wp
        col_mask = (col < W).astype(jnp.float32)

        n_valid = jnp.minimum(B, N - i * B)         # real images in this block

        wk = wconv_ref[...]                         # (9*Cin, Cmid) packed conv weight
        bconv = bconv_ref[...]                      # (1, Cmid) f32

        # ---- edge0 'conv': per-image packed 3x3 conv, cached for the finalize ----
        # Per-image processing (static unroll) bounds live vreg ranges to one
        # image's tiles.  TODO(synk): row-chunk the stats accumulation once the
        # evolved DNA grows H*W / Cmid beyond what ~64 vregs can hold.
        for b in range(B):
            patches = jnp.concatenate(
                [x_ref[b, pl.ds(kh * Wp + kw, Rv), :]
                 for kh in range(3) for kw in range(3)], axis=1)       # (Rv, 9*Cin)
            conv = jnp.dot(patches, wk, preferred_element_type=jnp.float32) + bconv
            conv_cache[i * B + b] = conv            # f32, resident across the grid
            img_ok = (b < n_valid).astype(jnp.float32)
            cm = conv * (col_mask * img_ok)
            sum_ref[...] += jnp.sum(cm, axis=0, keepdims=True)
            ssq_ref[...] += jnp.sum(cm * cm, axis=0, keepdims=True)

        # ---- vertex1 'bn_relu' + vertex2 'Global Pooling' + Linear: once ----
        @pl.when(i == NB - 1)
        def _finalize():
            mean = sum_ref[...] * inv_count
            var = ssq_ref[...] * inv_count - mean * mean
            scale = gamma_ref[...] * jax.lax.rsqrt(var + EPS)   # hoisted: computed once
            shift = beta_ref[...] - mean * scale
            rows = []
            # TODO(synk): switch to a fori_loop + pooled VMEM scratch (and an HBM
            # conv intermediate) once N_pad * Rv * Cmid no longer fits VMEM.
            for n in range(N_pad):
                act = jnp.maximum(conv_cache[n] * scale + shift, 0.0) * col_mask
                rows.append(jnp.sum(act, axis=0, keepdims=True) * inv_hw)
            pooled = jnp.concatenate(rows, axis=0)              # (N_pad, Cmid)
            out_ref[...] = (jnp.dot(pooled, wfc_ref[...],
                                    preferred_element_type=jnp.float32)
                            + bfc_ref[...])         # one lane/sublane-dense store

    return kernel


def _vmem_limit_bytes(need_bytes):
    """Explicit scoped-VMEM limit, scaled to the generation's physical VMEM."""
    try:
        phys = int(pltpu.get_tpu_info().vmem_capacity_bytes)
    except Exception:
        phys = 64 << 20                 # v7x-safe assumption
    limit = max(2 * need_bytes + (4 << 20), 32 << 20)
    return int(min(limit, phys * 3 // 4))


@functools.partial(jax.jit, static_argnames=("compute_dtype",))
def model_forward(x_nchw, params, compute_dtype=jnp.bfloat16):
    """Pallas forward. x_nchw: (N, C_in, H, W) float32 -> (N, N_CLASSES)."""
    N, Cin, H, W = x_nchw.shape
    wconv = params["wconv"]             # (Cmid, Cin, 3, 3)  torch OIHW
    bconv = params["bconv"]             # (Cmid,)
    gamma = params["gamma"]             # (Cmid,)
    beta = params["beta"]               # (Cmid,)
    wfc = params["wfc"]                 # (NCLS, Cmid)       torch Linear weight
    bfc = params["bfc"]                 # (NCLS,)
    Cmid = wconv.shape[0]
    NCLS = wfc.shape[0]
    NCLS_PAD = _round_up(NCLS, LANE)

    Wp = W + 2
    Rv = H * Wp
    R = _round_up((H + 2) * Wp + 2, 8)  # +2 rows of slack for the (kh=2, kw=2) shift
    K9 = 9 * Cin

    itemsize = jnp.dtype(compute_dtype).itemsize
    # Per-step image batch under an ~8 MiB double-buffered input budget
    # (the Cin lane dim pads to 128 in VMEM).
    in_img_bytes = R * LANE * itemsize
    B = int(max(1, min(N, (8 << 20) // (2 * in_img_bytes))))
    NB = -(-N // B)
    N_pad = NB * B

    # Static VMEM need: double-buffered input blocks + full-batch f32 conv cache
    # (lane-padded) + weights + output.
    cache_bytes = N_pad * Rv * LANE * 4
    need = (2 * B * in_img_bytes + cache_bytes + (K9 + 3) * LANE * 4
            + (Cmid + 1) * NCLS_PAD * 4 + 2 * N_pad * NCLS_PAD * 4)

    # ---- layout glue: one pass over the input, no im2col blow-up ----
    xpad = jnp.pad(x_nchw, ((0, N_pad - N), (0, 0), (1, 1), (1, 1)))   # batch + "same" pad
    xpad = jnp.transpose(xpad, (0, 2, 3, 1))                            # NHWC
    x_rows = xpad.reshape(N_pad, (H + 2) * Wp, Cin)
    x_rows = jnp.pad(x_rows, ((0, 0), (0, R - (H + 2) * Wp), (0, 0)))
    x_rows = x_rows.astype(compute_dtype)
    # TODO(synk): for tiny Cin a lane-dense (spatial-on-lanes) layout would improve
    # the HBM->VMEM DMA further; channels-last is kept because it becomes efficient
    # as soon as the evolved DNA grows Cin/Cmid toward >=64.

    # Conv weight packed to (9*Cin, Cmid); row index = (kh*3 + kw)*Cin + cin,
    # matching the in-kernel patch concatenation order.
    wconv_mat = jnp.transpose(wconv, (2, 3, 1, 0)).reshape(K9, Cmid).astype(compute_dtype)

    # FC weights padded to a lane-dense (Cmid, 128) slab (kept in f32).
    wfc_mat = jnp.pad(wfc.T.astype(jnp.float32), ((0, 0), (0, NCLS_PAD - NCLS)))
    bfc_pad = jnp.pad(bfc.astype(jnp.float32), (0, NCLS_PAD - NCLS)).reshape(1, NCLS_PAD)

    kernel = _make_kernel(N, H, W, Cin, Cmid, B, NB)

    cost = pl.CostEstimate(
        flops=2 * N_pad * Rv * K9 * Cmid + 2 * N_pad * Cmid * NCLS_PAD,
        transcendentals=Cmid,
        bytes_accessed=(N_pad * R * Cin * itemsize          # input read ONCE
                        + K9 * Cmid * itemsize              # conv weight
                        + 3 * Cmid * 4                      # bias / gamma / beta
                        + (Cmid + 1) * NCLS_PAD * 4         # fc weight + bias
                        + N_pad * NCLS_PAD * 4),            # output
    )

    out = pl.pallas_call(
        kernel,
        out_shape=jax.ShapeDtypeStruct((N_pad, NCLS_PAD), jnp.float32),
        grid=(NB,),                                          # one axis: image blocks
        in_specs=[
            pl.BlockSpec((B, R, Cin), lambda i: (i, 0, 0)),          # B images / step
            pl.BlockSpec((K9, Cmid), lambda i: (0, 0)),              # packed conv weight
            pl.BlockSpec((1, Cmid), lambda i: (0, 0)),               # conv bias
            pl.BlockSpec((1, Cmid), lambda i: (0, 0)),               # bn gamma
            pl.BlockSpec((1, Cmid), lambda i: (0, 0)),               # bn beta
            pl.BlockSpec((Cmid, NCLS_PAD), lambda i: (0, 0)),        # fc weight
            pl.BlockSpec((1, NCLS_PAD), lambda i: (0, 0)),           # fc bias
        ],
        out_specs=pl.BlockSpec((N_pad, NCLS_PAD), lambda i: (0, 0)),  # resident output
        scratch_shapes=[
            pltpu.VMEM((N_pad, Rv, Cmid), jnp.float32),   # conv cache (single pass)
            pltpu.VMEM((1, Cmid), jnp.float32),           # BN channel sum
            pltpu.VMEM((1, Cmid), jnp.float32),           # BN channel sum of squares
        ],
        compiler_params=pltpu.CompilerParams(
            # The image-block axis carries the BN-statistics dependency (shared
            # scratch accumulators + resident output), so it stays "arbitrary".
            # TODO(synk): per-core partial BN sums + a combine step would let this
            # axis be "parallel" across v7x's two TensorCores.
            dimension_semantics=("arbitrary",),
            vmem_limit_bytes=_vmem_limit_bytes(need),
        ),
        cost_estimate=cost,
    )(x_rows, wconv_mat,
      bconv.reshape(1, Cmid).astype(jnp.float32),
      gamma.reshape(1, Cmid).astype(jnp.float32),
      beta.reshape(1, Cmid).astype(jnp.float32),
      wfc_mat, bfc_pad)

    return out[:N, :NCLS]


def reference_forward(x, params):
    """Pure-JAX reference replicating the PyTorch semantics (for checking)."""
    conv = jax.lax.conv_general_dilated(
        x, params["wconv"], window_strides=(1, 1), padding=((1, 1), (1, 1)),
        dimension_numbers=("NCHW", "OIHW", "NCHW"))
    conv = conv + params["bconv"][None, :, None, None]
    mean = jnp.mean(conv, axis=(0, 2, 3), keepdims=True)
    var = jnp.mean((conv - mean) ** 2, axis=(0, 2, 3), keepdims=True)
    act = (conv - mean) * jax.lax.rsqrt(var + EPS)
    act = act * params["gamma"][None, :, None, None] + params["beta"][None, :, None, None]
    act = jnp.maximum(act, 0.0)
    pooled = jnp.mean(act, axis=(2, 3))
    return pooled @ params["wfc"].T + params["bfc"]


if __name__ == "__main__":
    # small shapes consistent with the module (NCHW conv input, N_CLASSES = 10)
    N, Cin, H, W = 2, 4, 16, 16
    Cmid, NCLS = 8, 10

    key = jax.random.PRNGKey(0)
    kx, kw, kb, kg, kbe, kwf, kbf = jax.random.split(key, 7)
    x = jax.random.normal(kx, (N, Cin, H, W), jnp.float32)
    params = dict(
        wconv=0.1 * jax.random.normal(kw, (Cmid, Cin, 3, 3), jnp.float32),
        bconv=0.1 * jax.random.normal(kb, (Cmid,), jnp.float32),
        gamma=1.0 + 0.1 * jax.random.normal(kg, (Cmid,), jnp.float32),
        beta=0.1 * jax.random.normal(kbe, (Cmid,), jnp.float32),
        wfc=0.1 * jax.random.normal(kwf, (NCLS, Cmid), jnp.float32),
        bfc=0.1 * jax.random.normal(kbf, (NCLS,), jnp.float32),
    )

    ref = reference_forward(x, params)

    # f32 conv operands: tight check against the f32 reference
    out_f32 = jax.block_until_ready(model_forward(x, params, compute_dtype=jnp.float32))
    assert out_f32.shape == (N, NCLS)
    assert jnp.allclose(out_f32, ref, rtol=1e-3, atol=1e-3), (out_f32, ref)

    # default path: bf16 conv operands on the MXU (f32 accumulation / BN / FC)
    out = jax.block_until_ready(model_forward(x, params))
    assert out.shape == (N, NCLS)
    assert jnp.allclose(out, ref, rtol=5e-2, atol=5e-2), (out, ref)

    print("KERNEL_OK")
</pallas_src>

<mosaic_0001>
module attributes {stable_mosaic.version = 11 : i64} {
  func.func @kernel(%arg0: i32, %arg1: memref<2x328x4xf32, #tpu.memory_space<vmem>>, %arg2: memref<36x8xf32, #tpu.memory_space<vmem>>, %arg3: memref<1x8xf32, #tpu.memory_space<vmem>>, %arg4: memref<1x8xf32, #tpu.memory_space<vmem>>, %arg5: memref<1x8xf32, #tpu.memory_space<vmem>>, %arg6: memref<8x128xf32, #tpu.memory_space<vmem>>, %arg7: memref<1x128xf32, #tpu.memory_space<vmem>>, %arg8: memref<2x128xf32, #tpu.memory_space<vmem>>, %arg9: memref<2x288x8xf32, #tpu.memory_space<vmem>>, %arg10: memref<1x8xf32, #tpu.memory_space<vmem>>, %arg11: memref<1x8xf32, #tpu.memory_space<vmem>>) attributes {dimension_semantics = [#tpu.dimension_semantics<arbitrary>], iteration_bounds = array<i64: 1>, scalar_prefetch = 0 : i64, scratch_operands = 3 : i64, tpu.core_type = #tpu.core_type<tc>, window_params = [{transform_indices = @transform_0, window_bounds = array<i64: 2, 328, 4>}, {pipeline_mode = #tpu.pipeline_mode<synchronous>, transform_indices = @transform_1, window_bounds = array<i64: 36, 8>}, {pipeline_mode = #tpu.pipeline_mode<synchronous>, transform_indices = @transform_2, window_bounds = array<i64: 1, 8>}, {pipeline_mode = #tpu.pipeline_mode<synchronous>, transform_indices = @transform_3, window_bounds = array<i64: 1, 8>}, {pipeline_mode = #tpu.pipeline_mode<synchronous>, transform_indices = @transform_4, window_bounds = array<i64: 1, 8>}, {pipeline_mode = #tpu.pipeline_mode<synchronous>, transform_indices = @transform_5, window_bounds = array<i64: 8, 128>}, {pipeline_mode = #tpu.pipeline_mode<synchronous>, transform_indices = @transform_6, window_bounds = array<i64: 1, 128>}, {pipeline_mode = #tpu.pipeline_mode<synchronous>, transform_indices = @transform_7, window_bounds = array<i64: 2, 128>}]} {
    %c0_i32 = arith.constant 0 : i32
    %0 = arith.cmpi eq, %arg0, %c0_i32 : i32
    %1 = arith.extui %0 : i1 to i32
    %c0_i32_0 = arith.constant 0 : i32
    %2 = arith.cmpi ne, %1, %c0_i32_0 : i32
    scf.if %2 {
      %cst_89 = arith.constant 0.000000e+00 : f32
      %124 = vector.broadcast %cst_89 : f32 to vector<1x8xf32>
      %c0_90 = arith.constant 0 : index
      %c0_91 = arith.constant 0 : index
      %125 = vector.load %arg10[%c0_90, %c0_91] : memref<1x8xf32, #tpu.memory_space<vmem>>, vector<1x8xf32>
      tpu.vector_store %arg10[%c0_90, %c0_91], %124 {strides = array<i32>} : memref<1x8xf32, #tpu.memory_space<vmem>>, vector<1x8xf32>,
      %cst_92 = arith.constant 0.000000e+00 : f32
      %126 = vector.broadcast %cst_92 : f32 to vector<1x8xf32>
      %c0_93 = arith.constant 0 : index
      %c0_94 = arith.constant 0 : index
      %127 = vector.load %arg11[%c0_93, %c0_94] : memref<1x8xf32, #tpu.memory_space<vmem>>, vector<1x8xf32>
      tpu.vector_store %arg11[%c0_93, %c0_94], %126 {strides = array<i32>} : memref<1x8xf32, #tpu.memory_space<vmem>>, vector<1x8xf32>,
    } else {
    }
    %3 = tpu.iota {dimensions = array<i32: 0>} : vector<288x1xi32>
    %c18_i32 = arith.constant 18 : i32
    %c0_i32_1 = arith.constant 0 : i32
    %4 = arith.cmpi eq, %c18_i32, %c0_i32_1 : i32
    %c1_i32 = arith.constant 1 : i32
    %5 = arith.select %4, %c1_i32, %c18_i32 : i32
    %6 = vector.broadcast %5 : i32 to vector<288x1xi32>
    %7 = arith.remsi %3, %6 : vector<288x1xi32>
    %c0_i32_2 = arith.constant 0 : i32
    %8 = vector.broadcast %c0_i32_2 : i32 to vector<288x1xi32>
    %9 = arith.cmpi ne, %7, %8 : vector<288x1xi32>
    %c0_i32_3 = arith.constant 0 : i32
    %10 = vector.broadcast %c0_i32_3 : i32 to vector<288x1xi32>
    %11 = arith.cmpi slt, %7, %10 : vector<288x1xi32>
    %c0_i32_4 = arith.constant 0 : i32
    %12 = arith.cmpi slt, %5, %c0_i32_4 : i32
    %13 = vector.broadcast %12 : i1 to vector<288x1xi1>
    %14 = vector.broadcast %13 : vector<288x1xi1> to vector<288x1xi1>
    %15 = arith.xori %11, %14 : vector<288x1xi1>
    %16 = arith.andi %15, %9 : vector<288x1xi1>
    %17 = vector.broadcast %5 : i32 to vector<288x1xi32>
    %18 = arith.addi %7, %17 : vector<288x1xi32>
    %19 = arith.select %16, %18, %7 : vector<288x1xi1>, vector<288x1xi32>
    %c16_i32 = arith.constant 16 : i32
    %20 = vector.broadcast %c16_i32 : i32 to vector<288x1xi32>
    %21 = arith.cmpi slt, %19, %20 : vector<288x1xi32>
    %22 = arith.extui %21 : vector<288x1xi1> to vector<288x1xi32>
    %23 = arith.sitofp %22 : vector<288x1xi32> to vector<288x1xf32>
    %c2_i32 = arith.constant 2 : i32
    %24 = arith.muli %arg0, %c2_i32 : i32
    %c2_i32_5 = arith.constant 2 : i32
    %25 = arith.subi %c2_i32_5, %24 : i32
    %c2_i32_6 = arith.constant 2 : i32
    %26 = arith.minsi %c2_i32_6, %25 : i32
    %c0 = arith.constant 0 : index
    %c0_7 = arith.constant 0 : index
    %27 = vector.load %arg2[%c0, %c0_7] : memref<36x8xf32, #tpu.memory_space<vmem>>, vector<36x8xf32>
    %c0_8 = arith.constant 0 : index
    %c0_9 = arith.constant 0 : index
    %28 = vector.load %arg3[%c0_8, %c0_9] : memref<1x8xf32, #tpu.memory_space<vmem>>, vector<1x8xf32>
    %c0_10 = arith.constant 0 : index
    %c0_11 = arith.constant 0 : index
    %c0_12 = arith.constant 0 : index
    %29 = vector.load %arg1[%c0_10, %c0_11, %c0_12] : memref<2x328x4xf32, #tpu.memory_space<vmem>>, vector<1x288x4xf32>
    %30 = vector.shape_cast %29 : vector<1x288x4xf32> to vector<288x4xf32>
    %c0_13 = arith.constant 0 : index
    %c1 = arith.constant 1 : index
    %c0_14 = arith.constant 0 : index
    %31 = vector.load %arg1[%c0_13, %c1, %c0_14] : memref<2x328x4xf32, #tpu.memory_space<vmem>>, vector<1x288x4xf32>
    %32 = vector.shape_cast %31 : vector<1x288x4xf32> to vector<288x4xf32>
    %c0_15 = arith.constant 0 : index
    %c2 = arith.constant 2 : index
    %c0_16 = arith.constant 0 : index
    %33 = vector.load %arg1[%c0_15, %c2, %c0_16] : memref<2x328x4xf32, #tpu.memory_space<vmem>>, vector<1x288x4xf32>
    %34 = vector.shape_cast %33 : vector<1x288x4xf32> to vector<288x4xf32>
    %c0_17 = arith.constant 0 : index
    %c18 = arith.constant 18 : index
    %c0_18 = arith.constant 0 : index
    %35 = vector.load %arg1[%c0_17, %c18, %c0_18] : memref<2x328x4xf32, #tpu.memory_space<vmem>>, vector<1x288x4xf32>
    %36 = vector.shape_cast %35 : vector<1x288x4xf32> to vector<288x4xf32>
    %c0_19 = arith.constant 0 : index
    %c19 = arith.constant 19 : index
    %c0_20 = arith.constant 0 : index
    %37 = vector.load %arg1[%c0_19, %c19, %c0_20] : memref<2x328x4xf32, #tpu.memory_space<vmem>>, vector<1x288x4xf32>
    %38 = vector.shape_cast %37 : vector<1x288x4xf32> to vector<288x4xf32>
    %c0_21 = arith.constant 0 : index
    %c20 = arith.constant 20 : index
    %c0_22 = arith.constant 0 : index
    %39 = vector.load %arg1[%c0_21, %c20, %c0_22] : memref<2x328x4xf32, #tpu.memory_space<vmem>>, vector<1x288x4xf32>
    %40 = vector.shape_cast %39 : vector<1x288x4xf32> to vector<288x4xf32>
    %c0_23 = arith.constant 0 : index
    %c36 = arith.constant 36 : index
    %c0_24 = arith.constant 0 : index
    %41 = vector.load %arg1[%c0_23, %c36, %c0_24] : memref<2x328x4xf32, #tpu.memory_space<vmem>>, vector<1x288x4xf32>
    %42 = vector.shape_cast %41 : vector<1x288x4xf32> to vector<288x4xf32>
    %c0_25 = arith.constant 0 : index
    %c37 = arith.constant 37 : index
    %c0_26 = arith.constant 0 : index
    %43 = vector.load %arg1[%c0_25, %c37, %c0_26] : memref<2x328x4xf32, #tpu.memory_space<vmem>>, vector<1x288x4xf32>
    %44 = vector.shape_cast %43 : vector<1x288x4xf32> to vector<288x4xf32>
    %c0_27 = arith.constant 0 : index
    %c38 = arith.constant 38 : index
    %c0_28 = arith.constant 0 : index
    %45 = vector.load %arg1[%c0_27, %c38, %c0_28] : memref<2x328x4xf32, #tpu.memory_space<vmem>>, vector<1x288x4xf32>
    %46 = vector.shape_cast %45 : vector<1x288x4xf32> to vector<288x4xf32>
    %47 = tpu.concatenate %30, %32, %34, %36, %38, %40, %42, %44, %46 in 1 : vector<288x4xf32>, vector<288x4xf32>, vector<288x4xf32>, vector<288x4xf32>, vector<288x4xf32>, vector<288x4xf32>, vector<288x4xf32>, vector<288x4xf32>, vector<288x4xf32> -> vector<288x36xf32>
    %cst = arith.constant dense<0.000000e+00> : vector<288x8xf32>
    %48 = tpu.matmul %47, %27, %cst {dimension_numbers = #tpu.dot_dimension_numbers<[1], [0], [0], [1], [0, 0, 1, 1], [], []>} : vector<288x36xf32>, vector<36x8xf32>, vector<288x8xf32> -> vector<288x8xf32>
    %49 = vector.broadcast %28 : vector<1x8xf32> to vector<288x8xf32>
    %50 = arith.addf %48, %49 : vector<288x8xf32>
    %c2_i32_29 = arith.constant 2 : i32
    %51 = arith.muli %arg0, %c2_i32_29 : i32
    %c0_i32_30 = arith.constant 0 : i32
    %52 = arith.addi %51, %c0_i32_30 : i32
    %53 = arith.index_cast %52 : i32 to index
    %c0_31 = arith.constant 0 : index
    %c0_32 = arith.constant 0 : index
    %54 = vector.load %arg9[%53, %c0_31, %c0_32] : memref<2x288x8xf32, #tpu.memory_space<vmem>>, vector<1x288x8xf32>
    %55 = vector.shape_cast %54 : vector<1x288x8xf32> to vector<288x8xf32>
    %56 = vector.shape_cast %50 : vector<288x8xf32> to vector<1x288x8xf32>
    tpu.vector_store %arg9[%53, %c0_31, %c0_32], %56 {strides = array<i32>} : memref<2x288x8xf32, #tpu.memory_space<vmem>>, vector<1x288x8xf32>,
    %c0_i32_33 = arith.constant 0 : i32
    %57 = arith.cmpi sgt, %26, %c0_i32_33 : i32
    %58 = arith.extui %57 : i1 to i32
    %59 = arith.sitofp %58 : i32 to f32
    %60 = vector.broadcast %59 : f32 to vector<288x1xf32>
    %61 = arith.mulf %23, %60 : vector<288x1xf32>
    %62 = vector.broadcast %61 : vector<288x1xf32> to vector<288x8xf32>
    %63 = arith.mulf %50, %62 : vector<288x8xf32>
    %c0_34 = arith.constant 0 : index
    %c0_35 = arith.constant 0 : index
    %64 = vector.load %arg10[%c0_34, %c0_35] : memref<1x8xf32, #tpu.memory_space<vmem>>, vector<1x8xf32>
    %cst_36 = arith.constant dense<0.000000e+00> : vector<8xf32>
    %65 = vector.multi_reduction <add>, %63, %cst_36 [0] : vector<288x8xf32> to vector<8xf32>
    %66 = vector.shape_cast %65 : vector<8xf32> to vector<1x8xf32>
    %67 = arith.addf %64, %66 : vector<1x8xf32>
    %c0_37 = arith.constant 0 : index
    %c0_38 = arith.constant 0 : index
    %68 = vector.load %arg10[%c0_37, %c0_38] : memref<1x8xf32, #tpu.memory_space<vmem>>, vector<1x8xf32>
    tpu.vector_store %arg10[%c0_37, %c0_38], %67 {strides = array<i32>} : memref<1x8xf32, #tpu.memory_space<vmem>>, vector<1x8xf32>,
    %c0_39 = arith.constant 0 : index
    %c0_40 = arith.constant 0 : index
    %69 = vector.load %arg11[%c0_39, %c0_40] : memref<1x8xf32, #tpu.memory_space<vmem>>, vector<1x8xf32>
    %70 = arith.mulf %63, %63 : vector<288x8xf32>
    %cst_41 = arith.constant dense<0.000000e+00> : vector<8xf32>
    %71 = vector.multi_reduction <add>, %70, %cst_41 [0] : vector<288x8xf32> to vector<8xf32>
    %72 = vector.shape_cast %71 : vector<8xf32> to vector<1x8xf32>
    %73 = arith.addf %69, %72 : vector<1x8xf32>
    %c0_42 = arith.constant 0 : index
    %c0_43 = arith.constant 0 : index
    %74 = vector.load %arg11[%c0_42, %c0_43] : memref<1x8xf32, #tpu.memory_space<vmem>>, vector<1x8xf32>
    tpu.vector_store %arg11[%c0_42, %c0_43], %73 {strides = array<i32>} : memref<1x8xf32, #tpu.memory_space<vmem>>, vector<1x8xf32>,
    %c1_44 = arith.constant 1 : index
    %c0_45 = arith.constant 0 : index
    %c0_46 = arith.constant 0 : index
    %75 = vector.load %arg1[%c1_44, %c0_45, %c0_46] : memref<2x328x4xf32, #tpu.memory_space<vmem>>, vector<1x288x4xf32>
    %76 = vector.shape_cast %75 : vector<1x288x4xf32> to vector<288x4xf32>
    %c1_47 = arith.constant 1 : index
    %c1_48 = arith.constant 1 : index
    %c0_49 = arith.constant 0 : index
    %77 = vector.load %arg1[%c1_47, %c1_48, %c0_49] : memref<2x328x4xf32, #tpu.memory_space<vmem>>, vector<1x288x4xf32>
    %78 = vector.shape_cast %77 : vector<1x288x4xf32> to vector<288x4xf32>
    %c1_50 = arith.constant 1 : index
    %c2_51 = arith.constant 2 : index
    %c0_52 = arith.constant 0 : index
    %79 = vector.load %arg1[%c1_50, %c2_51, %c0_52] : memref<2x328x4xf32, #tpu.memory_space<vmem>>, vector<1x288x4xf32>
    %80 = vector.shape_cast %79 : vector<1x288x4xf32> to vector<288x4xf32>
    %c1_53 = arith.constant 1 : index
    %c18_54 = arith.constant 18 : index
    %c0_55 = arith.constant 0 : index
    %81 = vector.load %arg1[%c1_53, %c18_54, %c0_55] : memref<2x328x4xf32, #tpu.memory_space<vmem>>, vector<1x288x4xf32>
    %82 = vector.shape_cast %81 : vector<1x288x4xf32> to vector<288x4xf32>
    %c1_56 = arith.constant 1 : index
    %c19_57 = arith.constant 19 : index
    %c0_58 = arith.constant 0 : index
    %83 = vector.load %arg1[%c1_56, %c19_57, %c0_58] : memref<2x328x4xf32, #tpu.memory_space<vmem>>, vector<1x288x4xf32>
    %84 = vector.shape_cast %83 : vector<1x288x4xf32> to vector<288x4xf32>
    %c1_59 = arith.constant 1 : index
    %c20_60 = arith.constant 20 : index
    %c0_61 = arith.constant 0 : index
    %85 = vector.load %arg1[%c1_59, %c20_60, %c0_61] : memref<2x328x4xf32, #tpu.memory_space<vmem>>, vector<1x288x4xf32>
    %86 = vector.shape_cast %85 : vector<1x288x4xf32> to vector<288x4xf32>
    %c1_62 = arith.constant 1 : index
    %c36_63 = arith.constant 36 : index
    %c0_64 = arith.constant 0 : index
    %87 = vector.load %arg1[%c1_62, %c36_63, %c0_64] : memref<2x328x4xf32, #tpu.memory_space<vmem>>, vector<1x288x4xf32>
    %88 = vector.shape_cast %87 : vector<1x288x4xf32> to vector<288x4xf32>
    %c1_65 = arith.constant 1 : index
    %c37_66 = arith.constant 37 : index
    %c0_67 = arith.constant 0 : index
    %89 = vector.load %arg1[%c1_65, %c37_66, %c0_67] : memref<2x328x4xf32, #tpu.memory_space<vmem>>, vector<1x288x4xf32>
    %90 = vector.shape_cast %89 : vector<1x288x4xf32> to vector<288x4xf32>
    %c1_68 = arith.constant 1 : index
    %c38_69 = arith.constant 38 : index
    %c0_70 = arith.constant 0 : index
    %91 = vector.load %arg1[%c1_68, %c38_69, %c0_70] : memref<2x328x4xf32, #tpu.memory_space<vmem>>, vector<1x288x4xf32>
    %92 = vector.shape_cast %91 : vector<1x288x4xf32> to vector<288x4xf32>
    %93 = tpu.concatenate %76, %78, %80, %82, %84, %86, %88, %90, %92 in 1 : vector<288x4xf32>, vector<288x4xf32>, vector<288x4xf32>, vector<288x4xf32>, vector<288x4xf32>, vector<288x4xf32>, vector<288x4xf32>, vector<288x4xf32>, vector<288x4xf32> -> vector<288x36xf32>
    %cst_71 = arith.constant dense<0.000000e+00> : vector<288x8xf32>
    %94 = tpu.matmul %93, %27, %cst_71 {dimension_numbers = #tpu.dot_dimension_numbers<[1], [0], [0], [1], [0, 0, 1, 1], [], []>} : vector<288x36xf32>, vector<36x8xf32>, vector<288x8xf32> -> vector<288x8xf32>
    %95 = vector.broadcast %28 : vector<1x8xf32> to vector<288x8xf32>
    %96 = arith.addf %94, %95 : vector<288x8xf32>
    %c2_i32_72 = arith.constant 2 : i32
    %97 = arith.muli %arg0, %c2_i32_72 : i32
    %c1_i32_73 = arith.constant 1 : i32
    %98 = arith.addi %97, %c1_i32_73 : i32
    %99 = arith.index_cast %98 : i32 to index
    %c0_74 = arith.constant 0 : index
    %c0_75 = arith.constant 0 : index
    %100 = vector.load %arg9[%99, %c0_74, %c0_75] : memref<2x288x8xf32, #tpu.memory_space<vmem>>, vector<1x288x8xf32>
    %101 = vector.shape_cast %100 : vector<1x288x8xf32> to vector<288x8xf32>
    %102 = vector.shape_cast %96 : vector<288x8xf32> to vector<1x288x8xf32>
    tpu.vector_store %arg9[%99, %c0_74, %c0_75], %102 {strides = array<i32>} : memref<2x288x8xf32, #tpu.memory_space<vmem>>, vector<1x288x8xf32>,
    %c1_i32_76 = arith.constant 1 : i32
    %103 = arith.cmpi sgt, %26, %c1_i32_76 : i32
    %104 = arith.extui %103 : i1 to i32
    %105 = arith.sitofp %104 : i32 to f32
    %106 = vector.broadcast %105 : f32 to vector<288x1xf32>
    %107 = arith.mulf %23, %106 : vector<288x1xf32>
    %108 = vector.broadcast %107 : vector<288x1xf32> to vector<288x8xf32>
    %109 = arith.mulf %96, %108 : vector<288x8xf32>
    %c0_77 = arith.constant 0 : index
    %c0_78 = arith.constant 0 : index
    %110 = vector.load %arg10[%c0_77, %c0_78] : memref<1x8xf32, #tpu.memory_space<vmem>>, vector<1x8xf32>
    %cst_79 = arith.constant dense<0.000000e+00> : vector<8xf32>
    %111 = vector.multi_reduction <add>, %109, %cst_79 [0] : vector<288x8xf32> to vector<8xf32>
    %112 = vector.shape_cast %111 : vector<8xf32> to vector<1x8xf32>
    %113 = arith.addf %110, %112 : vector<1x8xf32>
    %c0_80 = arith.constant 0 : index
    %c0_81 = arith.constant 0 : index
    %114 = vector.load %arg10[%c0_80, %c0_81] : memref<1x8xf32, #tpu.memory_space<vmem>>, vector<1x8xf32>
    tpu.vector_store %arg10[%c0_80, %c0_81], %113 {strides = array<i32>} : memref<1x8xf32, #tpu.memory_space<vmem>>, vector<1x8xf32>,
    %c0_82 = arith.constant 0 : index
    %c0_83 = arith.constant 0 : index
    %115 = vector.load %arg11[%c0_82, %c0_83] : memref<1x8xf32, #tpu.memory_space<vmem>>, vector<1x8xf32>
    %116 = arith.mulf %109, %109 : vector<288x8xf32>
    %cst_84 = arith.constant dense<0.000000e+00> : vector<8xf32>
    %117 = vector.multi_reduction <add>, %116, %cst_84 [0] : vector<288x8xf32> to vector<8xf32>
    %118 = vector.shape_cast %117 : vector<8xf32> to vector<1x8xf32>
    %119 = arith.addf %115, %118 : vector<1x8xf32>
    %c0_85 = arith.constant 0 : index
    %c0_86 = arith.constant 0 : index
    %120 = vector.load %arg11[%c0_85, %c0_86] : memref<1x8xf32, #tpu.memory_space<vmem>>, vector<1x8xf32>
    tpu.vector_store %arg11[%c0_85, %c0_86], %119 {strides = array<i32>} : memref<1x8xf32, #tpu.memory_space<vmem>>, vector<1x8xf32>,
    %c0_i32_87 = arith.constant 0 : i32
    %121 = arith.cmpi eq, %arg0, %c0_i32_87 : i32
    %122 = arith.extui %121 : i1 to i32
    %c0_i32_88 = arith.constant 0 : i32
    %123 = arith.cmpi ne, %122, %c0_i32_88 : i32
    scf.if %123 {
      %c0_89 = arith.constant 0 : index
      %c0_90 = arith.constant 0 : index
      %124 = vector.load %arg10[%c0_89, %c0_90] : memref<1x8xf32, #tpu.memory_space<vmem>>, vector<1x8xf32>
      %cst_91 = arith.constant 0.001953125 : f32
      %125 = vector.broadcast %cst_91 : f32 to vector<1x8xf32>
      %126 = arith.mulf %124, %125 : vector<1x8xf32>
      %c0_92 = arith.constant 0 : index
      %c0_93 = arith.constant 0 : index
      %127 = vector.load %arg11[%c0_92, %c0_93] : memref<1x8xf32, #tpu.memory_space<vmem>>, vector<1x8xf32>
      %cst_94 = arith.constant 0.001953125 : f32
      %128 = vector.broadcast %cst_94 : f32 to vector<1x8xf32>
      %129 = arith.mulf %127, %128 : vector<1x8xf32>
      %130 = arith.mulf %126, %126 : vector<1x8xf32>
      %131 = arith.subf %129, %130 : vector<1x8xf32>
      %c0_95 = arith.constant 0 : index
      %c0_96 = arith.constant 0 : index
      %132 = vector.load %arg4[%c0_95, %c0_96] : memref<1x8xf32, #tpu.memory_space<vmem>>, vector<1x8xf32>
      %cst_97 = arith.constant 9.99999974E-6 : f32
      %133 = vector.broadcast %cst_97 : f32 to vector<1x8xf32>
      %134 = arith.addf %131, %133 : vector<1x8xf32>
      %135 = math.rsqrt %134 : vector<1x8xf32>
      %136 = arith.mulf %132, %135 : vector<1x8xf32>
      %c0_98 = arith.constant 0 : index
      %c0_99 = arith.constant 0 : index
      %137 = vector.load %arg5[%c0_98, %c0_99] : memref<1x8xf32, #tpu.memory_space<vmem>>, vector<1x8xf32>
      %138 = arith.mulf %126, %136 : vector<1x8xf32>
      %139 = arith.subf %137, %138 : vector<1x8xf32>
      %c0_100 = arith.constant 0 : index
      %c0_101 = arith.constant 0 : index
      %c0_102 = arith.constant 0 : index
      %140 = vector.load %arg9[%c0_100, %c0_101, %c0_102] : memref<2x288x8xf32, #tpu.memory_space<vmem>>, vector<1x288x8xf32>
      %141 = vector.shape_cast %140 : vector<1x288x8xf32> to vector<288x8xf32>
      %142 = vector.broadcast %136 : vector<1x8xf32> to vector<288x8xf32>
      %143 = arith.mulf %141, %142 : vector<288x8xf32>
      %144 = vector.broadcast %139 : vector<1x8xf32> to vector<288x8xf32>
      %145 = arith.addf %143, %144 : vector<288x8xf32>
      %cst_103 = arith.constant 0.000000e+00 : f32
      %146 = vector.broadcast %cst_103 : f32 to vector<288x8xf32>
      %147 = arith.maximumf %145, %146 : vector<288x8xf32>
      %148 = vector.broadcast %23 : vector<288x1xf32> to vector<288x8xf32>
      %149 = arith.mulf %147, %148 : vector<288x8xf32>
      %cst_104 = arith.constant dense<0.000000e+00> : vector<8xf32>
      %150 = vector.multi_reduction <add>, %149, %cst_104 [0] : vector<288x8xf32> to vector<8xf32>
      %151 = vector.shape_cast %150 : vector<8xf32> to vector<1x8xf32>
      %cst_105 = arith.constant 3.906250e-03 : f32
      %152 = vector.broadcast %cst_105 : f32 to vector<1x8xf32>
      %153 = arith.mulf %151, %152 : vector<1x8xf32>
      %c1_106 = arith.constant 1 : index
      %c0_107 = arith.constant 0 : index
      %c0_108 = arith.constant 0 : index
      %154 = vector.load %arg9[%c1_106, %c0_107, %c0_108] : memref<2x288x8xf32, #tpu.memory_space<vmem>>, vector<1x288x8xf32>
      %155 = vector.shape_cast %154 : vector<1x288x8xf32> to vector<288x8xf32>
      %156 = vector.broadcast %136 : vector<1x8xf32> to vector<288x8xf32>
      %157 = arith.mulf %155, %156 : vector<288x8xf32>
      %158 = vector.broadcast %139 : vector<1x8xf32> to vector<288x8xf32>
      %159 = arith.addf %157, %158 : vector<288x8xf32>
      %cst_109 = arith.constant 0.000000e+00 : f32
      %160 = vector.broadcast %cst_109 : f32 to vector<288x8xf32>
      %161 = arith.maximumf %159, %160 : vector<288x8xf32>
      %162 = vector.broadcast %23 : vector<288x1xf32> to vector<288x8xf32>
      %163 = arith.mulf %161, %162 : vector<288x8xf32>
      %cst_110 = arith.constant dense<0.000000e+00> : vector<8xf32>
      %164 = vector.multi_reduction <add>, %163, %cst_110 [0] : vector<288x8xf32> to vector<8xf32>
      %165 = vector.shape_cast %164 : vector<8xf32> to vector<1x8xf32>
      %cst_111 = arith.constant 3.906250e-03 : f32
      %166 = vector.broadcast %cst_111 : f32 to vector<1x8xf32>
      %167 = arith.mulf %165, %166 : vector<1x8xf32>
      %168 = tpu.concatenate %153, %167 in 0 : vector<1x8xf32>, vector<1x8xf32> -> vector<2x8xf32>
      %c0_112 = arith.constant 0 : index
      %c0_113 = arith.constant 0 : index
      %169 = vector.load %arg6[%c0_112, %c0_113] : memref<8x128xf32, #tpu.memory_space<vmem>>, vector<8x128xf32>
      %cst_114 = arith.constant dense<0.000000e+00> : vector<2x128xf32>
      %170 = tpu.matmul %168, %169, %cst_114 {dimension_numbers = #tpu.dot_dimension_numbers<[1], [0], [0], [1], [0, 0, 1, 1], [], []>} : vector<2x8xf32>, vector<8x128xf32>, vector<2x128xf32> -> vector<2x128xf32>
      %c0_115 = arith.constant 0 : index
      %c0_116 = arith.constant 0 : index
      %171 = vector.load %arg7[%c0_115, %c0_116] : memref<1x128xf32, #tpu.memory_space<vmem>>, vector<1x128xf32>
      %172 = vector.broadcast %171 : vector<1x128xf32> to vector<2x128xf32>
      %173 = arith.addf %170, %172 : vector<2x128xf32>
      %c0_117 = arith.constant 0 : index
      %c0_118 = arith.constant 0 : index
      %174 = vector.load %arg8[%c0_117, %c0_118] : memref<2x128xf32, #tpu.memory_space<vmem>>, vector<2x128xf32>
      tpu.vector_store %arg8[%c0_117, %c0_118], %173 {strides = array<i32>} : memref<2x128xf32, #tpu.memory_space<vmem>>, vector<2x128xf32>,
    } else {
    }
    return
  }
  func.func @transform_0(%arg0: i32) -> (i32, i32, i32) {
    %c0_i32 = arith.constant 0 : i32
    %c0_i32_0 = arith.constant 0 : i32
    %c0_i32_1 = arith.constant 0 : i32
    return %arg0, %c0_i32, %c0_i32_0 : i32, i32, i32
  }
  func.func @transform_1(%arg0: i32) -> (i32, i32) {
    %c0_i32 = arith.constant 0 : i32
    %c0_i32_0 = arith.constant 0 : i32
    %c0_i32_1 = arith.constant 0 : i32
    return %c0_i32, %c0_i32_0 : i32, i32
  }
  func.func @transform_2(%arg0: i32) -> (i32, i32) {
    %c0_i32 = arith.constant 0 : i32
    %c0_i32_0 = arith.constant 0 : i32
    %c0_i32_1 = arith.constant 0 : i32
    return %c0_i32, %c0_i32_0 : i32, i32
  }
  func.func @transform_3(%arg0: i32) -> (i32, i32) {
    %c0_i32 = arith.constant 0 : i32
    %c0_i32_0 = arith.constant 0 : i32
    %c0_i32_1 = arith.constant 0 : i32
    return %c0_i32, %c0_i32_0 : i32, i32
  }
  func.func @transform_4(%arg0: i32) -> (i32, i32) {
    %c0_i32 = arith.constant 0 : i32
    %c0_i32_0 = arith.constant 0 : i32
    %c0_i32_1 = arith.constant 0 : i32
    return %c0_i32, %c0_i32_0 : i32, i32
  }
  func.func @transform_5(%arg0: i32) -> (i32, i32) {
    %c0_i32 = arith.constant 0 : i32
    %c0_i32_0 = arith.constant 0 : i32
    %c0_i32_1 = arith.constant 0 : i32
    return %c0_i32, %c0_i32_0 : i32, i32
  }
  func.func @transform_6(%arg0: i32) -> (i32, i32) {
    %c0_i32 = arith.constant 0 : i32
    %c0_i32_0 = arith.constant 0 : i32
    %c0_i32_1 = arith.constant 0 : i32
    return %c0_i32, %c0_i32_0 : i32, i32
  }
  func.func @transform_7(%arg0: i32) -> (i32, i32) {
    %c0_i32 = arith.constant 0 : i32
    %c0_i32_0 = arith.constant 0 : i32
    %c0_i32_1 = arith.constant 0 : i32
    return %c0_i32, %c0_i32_0 : i32, i32
  }
}

</mosaic_0001>

<bundles_post_ra>
// kernel: model_forward.1
= control target key start
LH: loop header
LB: loop body
LE: loop exit
PB: predicated region body
PF: predicated region fallthrough
CT: control target
= control target key end

     0   :  { %s6828_s30 = smov 4   ;;  %s13848_s0 = inlined_call_operand.vmem [shape: f32[2,328,4], index: 0, kind: input, shape index: {}]   ;;  %s13849_s1 = inlined_call_operand.vmem [shape: f32[36,8], index: 1, kind: input, shape index: {}]   ;;  %s13850_s2 = inlined_call_operand.vmem [shape: f32[1,8], index: 2, kind: input, shape index: {}]   ;;  %s13851_s3 = inlined_call_operand.vmem [shape: f32[1,8], index: 3, kind: input, shape index: {}]   ;;  %s13852_s4 = inlined_call_operand.vmem [shape: f32[1,8], index: 4, kind: input, shape index: {}]   ;;  %s13853_s5 = inlined_call_operand.vmem [shape: f32[8,128], index: 5, kind: input, shape index: {}]   ;;  %s13854_s6 = inlined_call_operand.vmem [shape: f32[1,128], index: 6, kind: input, shape index: {}]   ;;  %s13855_s7 = inlined_call_operand.hbm [shape: f32[2,128], index: 7, kind: output, shape index: {}]  }
   0x1   :  { %v1453_v0 = vld [vmem:[%s13848_s0 + $0x21] sm:$0xff]  ;;  %v1451_v1 = vld [vmem:[%s13848_s0 + $0x11] sm:$0xff]  ;;  %v1454_v3 = vld [vmem:[%s13848_s0 + $0x29] sm:$0xff] }
   0x2   :  { %v1449_v2 = vld [vmem:[%s13848_s0 + $0x1] sm:$0xff]  ;;  %1713 = vrot.lane.b32.xlu2 %v1453_v0, %s6828_s30  ;;  %1709 = vrot.lane.b32.xlu1 %v1451_v1, %s6828_s30  ;;  %v1452_v4 = vld [vmem:[%s13848_s0 + $0x19] sm:$0xff] }
   0x3   :  { %1705 = vrot.lane.b32.xlu0 %v1449_v2, %s6828_s30 }
   0x4   :  { %12 = vsyncpa [#allocation6], 0  ;;  %v1450_v5 = vld [vmem:[%s13848_s0 + $0x9] sm:$0xff]  ;;  %v1457_v6 = vld [vmem:[%s13848_s0 + $0x41] sm:$0xff]  ;;  %s6829_s14 = smov 8   ;;  %s6830_s18 = smov 12  }
   0x5   :  { %v1456_v7 = vld [vmem:[%s13848_s0 + $0x39] sm:$0xff]  ;;  %v1455_v8 = vld [vmem:[%s13848_s0 + $0x31] sm:$0xff]  ;;  %v1458_v11 = vld [vmem:[%s13848_s0 + $0x49] sm:$0xff]  ;;  %s6831_s29 = smov 16   ;;  %s6832_s25 = smov 20   ;;  %vm3161_vm0 = vcmask 1043456  }
   0x6   :  { %v1460_v9 = vld [vmem:[%s13848_s0 + $0x59] sm:$0xff]  ;;  %v1459_v10 = vld [vmem:[%s13848_s0 + $0x51] sm:$0xff]  ;;  %v1462_v13 = vld [vmem:[%s13848_s0 + $0x69] sm:$0xff]  ;;  %s6833_s19 = smov 24   ;;  %s6834_s10 = smov 28   ;;  %vm2753_vm1 = vcmask 31744  }
   0x7   :  { %v1463_v12 = vld [vmem:[%s13848_s0 + $0x71] sm:$0xff]  ;;  %v1461_v14 = vld [vmem:[%s13848_s0 + $0x61] sm:$0xff]  ;;  %v1466_v15 = vld [vmem:[%s13848_s0 + $0x89] sm:$0xff]  ;;  %s6835_s22 = smov 32   ;;  %vm2790_vm2 = vcmask 64512   ;;  %vm2827_vm3 = vcmask 97280  }
   0x8   :  { %v1465_v16 = vld [vmem:[%s13848_s0 + $0x81] sm:$0xff]  ;;  %v1464_v17 = vld [vmem:[%s13848_s0 + $0x79] sm:$0xff]  ;;  %v1467_v20 = vld [vmem:[%s13848_s0 + $0x91] sm:$0xff]  ;;  %vm2864_vm4 = vcmask 130048   ;;  %vm2901_vm5 = vcmask 162816   ;;  %vm2938_vm6 = vcmask 195584  }
   0x9   :  { %v1469_v18 = vld [vmem:[%s13848_s0 + $0xa1] sm:$0xff]  ;;  %v1468_v19 = vld [vmem:[%s13848_s0 + $0x99] sm:$0xff]  ;;  %v1471_v22 = vld [vmem:[%s13848_s0 + $0xb1] sm:$0xff]  ;;  %vm2975_vm7 = vcmask 228352   ;;  %vm13870_vm8 = vcmask 293888   ;;  %vm13891_vm9 = vcmask 261120  }
   0xa   :  { %1715 = vrot.lane.b32.xlu2 %v1454_v3, %s6828_s30  ;;  %1711 = vrot.lane.b32.xlu1 %v1452_v4, %s6828_s30  ;;  %v1472_v21 = vld [vmem:[%s13848_s0 + $0xb9] sm:$0xff]  ;;  %v1470_v23 = vld [vmem:[%s13848_s0 + $0xa9] sm:$0xff]  ;;  %s6838_s20 = smov [#allocation5]  }
   0xb   :  { %1707 = vrot.lane.b32.xlu0 %v1450_v5, %s6828_s30  ;;  %v1475_v24 = vld [vmem:[%s13848_s0 + $0xd1] sm:$0xff]  ;;  %v1474_v25 = vld [vmem:[%s13848_s0 + $0xc9] sm:$0xff]  ;;  %v1473_v26 = vld [vmem:[%s13848_s0 + $0xc1] sm:$0xff]  ;;  %s6358_s21 = sshll.u32 %s6838_s20, 4  ;;  %s6359_s21 = int_to_ptr.vmem [resolvable:$true] %s6358_s21 }
   0xc   :  { %v1478_v27 = vld [vmem:[%s13848_s0 + $0xe9] sm:$0xff]  ;;  %v1477_v28 = vld [vmem:[%s13848_s0 + $0xe1] sm:$0xff]  ;;  %v1476_v29 = vld [vmem:[%s13848_s0 + $0xd9] sm:$0xff] }
   0xd   :  { %v1481_v30 = vld [vmem:[%s13848_s0 + $0x101] sm:$0xff]  ;;  %v1480_v31 = vld [vmem:[%s13848_s0 + $0xf9] sm:$0xff]  ;;  %v1479_v32 = vld [vmem:[%s13848_s0 + $0xf1] sm:$0xff] }
   0xe   :  { %v1484_v33 = vld [vmem:[%s13848_s0 + $0x119] sm:$0xff]  ;;  %v1483_v34 = vld [vmem:[%s13848_s0 + $0x111] sm:$0xff]  ;;  %v1482_v35 = vld [vmem:[%s13848_s0 + $0x109] sm:$0xff] }
   0xf   :  { %v7028_v37 = vld [vmem:[%s13848_s0 + $0x12] sm:$0xff]  ;;  %v1486_v38 = vld [vmem:[%s13848_s0 + $0xa] sm:$0xff]  ;;  %v1485_v39 = vld [vmem:[%s13848_s0 + $0x2] sm:$0xff] }
  0x10   :  { %v7045_v41 = vld [vmem:[%s13848_s0 + $0x2a] sm:$0xff]  ;;  %v7050_v42 = vld [vmem:[%s13848_s0 + $0x22] sm:$0xff]  ;;  %v7055_v43 = vld [vmem:[%s13848_s0 + $0x1a] sm:$0xff] }
  0x11   :  { %v7068_v45 = vld [vmem:[%s13848_s0 + $0x42] sm:$0xff]  ;;  %v7073_v46 = vld [vmem:[%s13848_s0 + $0x3a] sm:$0xff]  ;;  %v7078_v47 = vld [vmem:[%s13848_s0 + $0x32] sm:$0xff] }
  0x12   :  { %1721 = vrot.lane.b32.xlu2 %v1457_v6, %s6828_s30  ;;  %1719 = vrot.lane.b32.xlu1 %v1456_v7, %s6828_s30  ;;  %v7095_v51 = vld [vmem:[%s13848_s0 + $0x5a] sm:$0xff]  ;;  %v7100_v52 = vld [vmem:[%s13848_s0 + $0x52] sm:$0xff] }
  0x13   :  { %1717 = vrot.lane.b32.xlu0 %v1455_v8, %s6828_s30  ;;  %v7105_v53 = vld [vmem:[%s13848_s0 + $0x4a] sm:$0xff]  ;;  %v7122_v57 = vld [vmem:[%s13848_s0 + $0x72] sm:$0xff]  ;;  %v7132_v59 = vld [vmem:[%s13848_s0 + $0x62] sm:$0xff] }
  0x14   :  { %v7127_v58 = vld [vmem:[%s13848_s0 + $0x6a] sm:$0xff]  ;;  %v7154_v0 = vld [vmem:[%s13848_s0 + $0x82] sm:$0xff]  ;;  %v7159_v1 = vld [vmem:[%s13848_s0 + $0x7a] sm:$0xff] }
  0x15   :  { %v7149_v63 = vld [vmem:[%s13848_s0 + $0x8a] sm:$0xff]  ;;  %v7176_v5 = vld [vmem:[%s13848_s0 + $0xa2] sm:$0xff]  ;;  %v7181_v6 = vld [vmem:[%s13848_s0 + $0x9a] sm:$0xff] }
  0x16   :  { %v7186_v7 = vld [vmem:[%s13848_s0 + $0x92] sm:$0xff] }
  0x1a   :  { %1727 = vrot.lane.b32.xlu2 %v1460_v9, %s6828_s30  ;;  %1725 = vrot.lane.b32.xlu1 %v1459_v10, %s6828_s30 }
  0x1b   :  { %1723 = vrot.lane.b32.xlu0 %v1458_v11, %s6828_s30  ;;  %v7203_v11 = vld [vmem:[%s13848_s0 + $0xba] sm:$0xff] }
  0x22   :  { %1733 = vrot.lane.b32.xlu2 %v1463_v12, %s6828_s30  ;;  %1731 = vrot.lane.b32.xlu1 %v1462_v13, %s6828_s30  ;;  %v7208_v12 = vld [vmem:[%s13848_s0 + $0xb2] sm:$0xff]  ;;  %v7213_v13 = vld [vmem:[%s13848_s0 + $0xaa] sm:$0xff] }
  0x23   :  { %1729 = vrot.lane.b32.xlu0 %v1461_v14, %s6828_s30 }
  0x2a   :  { %1739 = vrot.lane.b32.xlu2 %v1466_v15, %s6828_s30  ;;  %1737 = vrot.lane.b32.xlu1 %v1465_v16, %s6828_s30 }
  0x2b   :  { %1735 = vrot.lane.b32.xlu0 %v1464_v17, %s6828_s30  ;;  %v7230_v17 = vld [vmem:[%s13848_s0 + $0xd2] sm:$0xff] }
  0x32   :  { %1745 = vrot.lane.b32.xlu2 %v1469_v18, %s6828_s30  ;;  %1743 = vrot.lane.b32.xlu1 %v1468_v19, %s6828_s30  ;;  %v7235_v18 = vld [vmem:[%s13848_s0 + $0xca] sm:$0xff]  ;;  %v7240_v19 = vld [vmem:[%s13848_s0 + $0xc2] sm:$0xff] }
  0x33   :  { %1741 = vrot.lane.b32.xlu0 %v1467_v20, %s6828_s30 }
  0x3a   :  { %1751 = vrot.lane.b32.xlu2 %v1472_v21, %s6828_s30  ;;  %1749 = vrot.lane.b32.xlu1 %v1471_v22, %s6828_s30 }
  0x3b   :  { %1747 = vrot.lane.b32.xlu0 %v1470_v23, %s6828_s30  ;;  %v7257_v23 = vld [vmem:[%s13848_s0 + $0xea] sm:$0xff] }
  0x42   :  { %1757 = vrot.lane.b32.xlu2 %v1475_v24, %s6828_s30  ;;  %1755 = vrot.lane.b32.xlu1 %v1474_v25, %s6828_s30  ;;  %v7262_v24 = vld [vmem:[%s13848_s0 + $0xe2] sm:$0xff]  ;;  %v7267_v25 = vld [vmem:[%s13848_s0 + $0xda] sm:$0xff] }
  0x43   :  { %1753 = vrot.lane.b32.xlu0 %v1473_v26, %s6828_s30 }
  0x4a   :  { %1763 = vrot.lane.b32.xlu2 %v1478_v27, %s6828_s30  ;;  %1761 = vrot.lane.b32.xlu1 %v1477_v28, %s6828_s30 }
  0x4b   :  { %1759 = vrot.lane.b32.xlu0 %v1476_v29, %s6828_s30  ;;  %v7284_v29 = vld [vmem:[%s13848_s0 + $0x102] sm:$0xff] }
  0x52   :  { %1769 = vrot.lane.b32.xlu2 %v1481_v30, %s6828_s30  ;;  %1767 = vrot.lane.b32.xlu1 %v1480_v31, %s6828_s30  ;;  %v7289_v30 = vld [vmem:[%s13848_s0 + $0xfa] sm:$0xff]  ;;  %v7294_v31 = vld [vmem:[%s13848_s0 + $0xf2] sm:$0xff] }
  0x53   :  { %1765 = vrot.lane.b32.xlu0 %v1479_v32, %s6828_s30 }
  0x5a   :  { %1775 = vrot.lane.b32.xlu2 %v1484_v33, %s6828_s30  ;;  %1773 = vrot.lane.b32.xlu1 %v1483_v34, %s6828_s30 }
  0x5b   :  { %1771 = vrot.lane.b32.xlu0 %v1482_v35, %s6828_s30  ;;  %v7311_v35 = vld [vmem:[%s13848_s0 + $0x11a] sm:$0xff] }
  0x5c   :  { %v7023_v36 = vpop.permute.xlu2 %1713 }
  0x62   :  { %1853 = vrot.lane.b32.xlu2 %v7028_v37, %s6829_s14  ;;  %1851 = vrot.lane.b32.xlu1 %v1486_v38, %s6829_s14  ;;  %v7316_v38 = vld [vmem:[%s13848_s0 + $0x112] sm:$0xff] }
  0x63   :  { %1849 = vrot.lane.b32.xlu0 %v1485_v39, %s6829_s14  ;;  %v7321_v39 = vld [vmem:[%s13848_s0 + $0x10a] sm:$0xff] }
  0x64   :  { %v7040_v40 = vpop.permute.xlu2 %1715 }
  0x6a   :  { %1859 = vrot.lane.b32.xlu2 %v7045_v41, %s6829_s14  ;;  %1857 = vrot.lane.b32.xlu1 %v7050_v42, %s6829_s14 }
  0x6b   :  { %1855 = vrot.lane.b32.xlu0 %v7055_v43, %s6829_s14 }
  0x6c   :  { %v7063_v44 = vpop.permute.xlu2 %1721 }
  0x72   :  { %1865 = vrot.lane.b32.xlu2 %v7068_v45, %s6829_s14  ;;  %1863 = vrot.lane.b32.xlu1 %v7073_v46, %s6829_s14 }
  0x73   :  { %1861 = vrot.lane.b32.xlu0 %v7078_v47, %s6829_s14 }
  0x74   :  { %v7086_v48 = vpop.permute.xlu2 %1727  ;;  %v7088_v49 = vpop.permute.xlu1 %1709 }
  0x75   :  { %v7090_v50 = vpop.permute.xlu0 %1705 }
  0x7a   :  { %1871 = vrot.lane.b32.xlu2 %v7095_v51, %s6829_s14  ;;  %1869 = vrot.lane.b32.xlu1 %v7100_v52, %s6829_s14 }
  0x7b   :  { %1867 = vrot.lane.b32.xlu0 %v7105_v53, %s6829_s14 }
  0x7c   :  { %v7113_v54 = vpop.permute.xlu2 %1733  ;;  %v7115_v55 = vpop.permute.xlu1 %1711 }
  0x7d   :  { %v7117_v56 = vpop.permute.xlu0 %1707 }
  0x82   :  { %1877 = vrot.lane.b32.xlu2 %v7122_v57, %s6829_s14  ;;  %1875 = vrot.lane.b32.xlu1 %v7127_v58, %s6829_s14 }
  0x83   :  { %1873 = vrot.lane.b32.xlu0 %v7132_v59, %s6829_s14 }
  0x84   :  { %v7140_v60 = vpop.permute.xlu2 %1739  ;;  %v7142_v61 = vpop.permute.xlu1 %1719 }
  0x85   :  { %13938 = vst [vmem:[#allocation8_spill] sm:$0xff] %v7140_v60  ;;  %v7144_v62 = vpop.permute.xlu0 %1717 }
  0x86   :  { %13939 = vst [vmem:[#allocation9_spill] sm:$0xff] %v7142_v61 }
  0x87   :  { %13940 = vst [vmem:[#allocation10_spill] sm:$0xff] %v7144_v62  ;;  %v8003_v62 = vld [vmem:[%s13848_s0 + $0x11c] sm:$0xff] }
  0x8a   :  { %1883 = vrot.lane.b32.xlu2 %v7149_v63, %s6829_s14  ;;  %1881 = vrot.lane.b32.xlu1 %v7154_v0, %s6829_s14 }
  0x8b   :  { %1879 = vrot.lane.b32.xlu0 %v7159_v1, %s6829_s14 }
  0x8c   :  { %v7167_v2 = vpop.permute.xlu2 %1745  ;;  %v7169_v3 = vpop.permute.xlu1 %1725 }
  0x8d   :  { %13941 = vst [vmem:[#allocation11_spill] sm:$0xff] %v7167_v2  ;;  %v7171_v4 = vpop.permute.xlu0 %1723  ;;  %v7998_v2 = vld [vmem:[%s13848_s0 + $0x124] sm:$0xff] }
  0x8e   :  { %13942 = vst [vmem:[#allocation12_spill] sm:$0xff] %v7169_v3  ;;  %v7976_v3 = vld [vmem:[%s13848_s0 + $0x104] sm:$0xff] }
  0x8f   :  { %13943 = vst [vmem:[#allocation13_spill] sm:$0xff] %v7171_v4  ;;  %v7971_v4 = vld [vmem:[%s13848_s0 + $0x10c] sm:$0xff] }
  0x92   :  { %1889 = vrot.lane.b32.xlu2 %v7176_v5, %s6829_s14  ;;  %1887 = vrot.lane.b32.xlu1 %v7181_v6, %s6829_s14 }
  0x93   :  { %1885 = vrot.lane.b32.xlu0 %v7186_v7, %s6829_s14 }
  0x94   :  { %v7194_v8 = vpop.permute.xlu2 %1751  ;;  %v7196_v9 = vpop.permute.xlu1 %1731 }
  0x95   :  { %13944 = vst [vmem:[#allocation14_spill] sm:$0xff] %v7194_v8  ;;  %v7198_v10 = vpop.permute.xlu0 %1729  ;;  %v7949_v8 = vld [vmem:[%s13848_s0 + $0xec] sm:$0xff] }
  0x96   :  { %13945 = vst [vmem:[#allocation15_spill] sm:$0xff] %v7196_v9  ;;  %v7944_v9 = vld [vmem:[%s13848_s0 + $0xf4] sm:$0xff] }
  0x97   :  { %13946 = vst [vmem:[#allocation16_spill] sm:$0xff] %v7198_v10  ;;  %v7939_v10 = vld [vmem:[%s13848_s0 + $0xfc] sm:$0xff] }
  0x9a   :  { %1895 = vrot.lane.b32.xlu2 %v7203_v11, %s6829_s14  ;;  %1893 = vrot.lane.b32.xlu1 %v7208_v12, %s6829_s14 }
  0x9b   :  { %1891 = vrot.lane.b32.xlu0 %v7213_v13, %s6829_s14 }
  0x9c   :  { %v7221_v14 = vpop.permute.xlu2 %1757  ;;  %v7223_v15 = vpop.permute.xlu1 %1737 }
  0x9d   :  { %13947 = vst [vmem:[#allocation17_spill] sm:$0xff] %v7221_v14  ;;  %v7225_v16 = vpop.permute.xlu0 %1735  ;;  %v7922_v14 = vld [vmem:[%s13848_s0 + $0xd4] sm:$0xff] }
  0x9e   :  { %13948 = vst [vmem:[#allocation18_spill] sm:$0xff] %v7223_v15  ;;  %v7917_v15 = vld [vmem:[%s13848_s0 + $0xdc] sm:$0xff] }
  0x9f   :  { %13949 = vst [vmem:[#allocation19_spill] sm:$0xff] %v7225_v16  ;;  %v7912_v16 = vld [vmem:[%s13848_s0 + $0xe4] sm:$0xff] }
  0xa2   :  { %1901 = vrot.lane.b32.xlu2 %v7230_v17, %s6829_s14  ;;  %1899 = vrot.lane.b32.xlu1 %v7235_v18, %s6829_s14 }
  0xa3   :  { %1897 = vrot.lane.b32.xlu0 %v7240_v19, %s6829_s14 }
  0xa4   :  { %v7248_v20 = vpop.permute.xlu2 %1763  ;;  %v7250_v21 = vpop.permute.xlu1 %1743 }
  0xa5   :  { %13950 = vst [vmem:[#allocation20_spill] sm:$0xff] %v7248_v20  ;;  %v7252_v22 = vpop.permute.xlu0 %1741  ;;  %v7895_v20 = vld [vmem:[%s13848_s0 + $0xbc] sm:$0xff] }
  0xa6   :  { %13951 = vst [vmem:[#allocation21_spill] sm:$0xff] %v7250_v21  ;;  %v7890_v21 = vld [vmem:[%s13848_s0 + $0xc4] sm:$0xff] }
  0xa7   :  { %13952 = vst [vmem:[#allocation22_spill] sm:$0xff] %v7252_v22  ;;  %v7885_v22 = vld [vmem:[%s13848_s0 + $0xcc] sm:$0xff] }
  0xaa   :  { %1907 = vrot.lane.b32.xlu2 %v7257_v23, %s6829_s14  ;;  %1905 = vrot.lane.b32.xlu1 %v7262_v24, %s6829_s14 }
  0xab   :  { %1903 = vrot.lane.b32.xlu0 %v7267_v25, %s6829_s14 }
  0xac   :  { %v7275_v26 = vpop.permute.xlu2 %1769  ;;  %v7277_v27 = vpop.permute.xlu1 %1749 }
  0xad   :  { %13953 = vst [vmem:[#allocation23_spill] sm:$0xff] %v7275_v26  ;;  %v7279_v28 = vpop.permute.xlu0 %1747 }
  0xae   :  { %13954 = vst [vmem:[#allocation24_spill] sm:$0xff] %v7277_v27 }
  0xaf   :  { %13955 = vst [vmem:[#allocation25_spill] sm:$0xff] %v7279_v28 }
  0xb2   :  { %1913 = vrot.lane.b32.xlu2 %v7284_v29, %s6829_s14  ;;  %1911 = vrot.lane.b32.xlu1 %v7289_v30, %s6829_s14 }
  0xb3   :  { %1909 = vrot.lane.b32.xlu0 %v7294_v31, %s6829_s14 }
  0xb4   :  { %v7302_v32 = vpop.permute.xlu2 %1775  ;;  %v7304_v33 = vpop.permute.xlu1 %1755 }
  0xb5   :  { %13956 = vst [vmem:[#allocation26_spill] sm:$0xff] %v7302_v32  ;;  %v7306_v34 = vpop.permute.xlu0 %1753 }
  0xb6   :  { %13957 = vst [vmem:[#allocation27_spill] sm:$0xff] %v7304_v33 }
  0xb7   :  { %13958 = vst [vmem:[#allocation28_spill] sm:$0xff] %v7306_v34 }
  0xba   :  { %1919 = vrot.lane.b32.xlu2 %v7311_v35, %s6829_s14  ;;  %1917 = vrot.lane.b32.xlu1 %v7316_v38, %s6829_s14 }
  0xbb   :  { %1915 = vrot.lane.b32.xlu0 %v7321_v39, %s6829_s14 }
  0xbc   :  { %v7329_v34 = vpop.permute.xlu2 %1853  ;;  %v7331_v33 = vpop.permute.xlu1 %1761 }
  0xbd   :  { %13959 = vst [vmem:[#allocation29_spill] sm:$0xff] %v7331_v33  ;;  %v7333_v32 = vpop.permute.xlu0 %1759  ;;  %v7868_v33 = vld [vmem:[%s13848_s0 + $0xa4] sm:$0xff] }
  0xbe   :  { %13960 = vst [vmem:[#allocation30_spill] sm:$0xff] %v7333_v32  ;;  %v7863_v32 = vld [vmem:[%s13848_s0 + $0xac] sm:$0xff] }
  0xc2   :  { %1963 = vrot.lane.b32.xlu2 %v7050_v42, %s6830_s18  ;;  %1961 = vrot.lane.b32.xlu1 %v7055_v43, %s6830_s18 }
  0xc3   :  { %1959 = vrot.lane.b32.xlu0 %v7028_v37, %s6830_s18 }
  0xc4   :  { %v7341_v28 = vpop.permute.xlu2 %1859  ;;  %v7343_v27 = vpop.permute.xlu1 %1767 }
  0xc5   :  { %13961 = vst [vmem:[#allocation31_spill] sm:$0xff] %v7341_v28  ;;  %v7345_v26 = vpop.permute.xlu0 %1765 }
  0xc6   :  { %13962 = vst [vmem:[#allocation32_spill] sm:$0xff] %v7343_v27  ;;  %v7858_v27 = vld [vmem:[%s13848_s0 + $0xb4] sm:$0xff] }
  0xc7   :  { %13963 = vst [vmem:[#allocation33_spill] sm:$0xff] %v7345_v26  ;;  %v7831_v26 = vld [vmem:[%s13848_s0 + $0x9c] sm:$0xff] }
  0xca   :  { %1969 = vrot.lane.b32.xlu2 %v7073_v46, %s6830_s18  ;;  %1967 = vrot.lane.b32.xlu1 %v7078_v47, %s6830_s18 }
  0xcb   :  { %1965 = vrot.lane.b32.xlu0 %v7045_v41, %s6830_s18 }
  0xcc   :  { %v7353_v42 = vpop.permute.xlu2 %1865  ;;  %v7355_v43 = vpop.permute.xlu1 %1773 }
  0xcd   :  { %13964 = vst [vmem:[#allocation34_spill] sm:$0xff] %v7353_v42  ;;  %v7357_v37 = vpop.permute.xlu0 %1771 }
  0xce   :  { %13965 = vst [vmem:[#allocation35_spill] sm:$0xff] %v7355_v43  ;;  %v7809_v43 = vld [vmem:[%s13848_s0 + $0x7c] sm:$0xff] }
  0xcf   :  { %13966 = vst [vmem:[#allocation36_spill] sm:$0xff] %v7357_v37  ;;  %v7804_v37 = vld [vmem:[%s13848_s0 + $0x84] sm:$0xff] }
  0xd2   :  { %1975 = vrot.lane.b32.xlu2 %v7100_v52, %s6830_s18  ;;  %1973 = vrot.lane.b32.xlu1 %v7105_v53, %s6830_s18 }
  0xd3   :  { %1971 = vrot.lane.b32.xlu0 %v7068_v45, %s6830_s18 }
  0xd4   :  { %v7365_v46 = vpop.permute.xlu2 %1871  ;;  %v7367_v47 = vpop.permute.xlu1 %1851 }
  0xd5   :  { %13967 = vst [vmem:[#allocation37_spill] sm:$0xff] %v7365_v46  ;;  %v7369_v41 = vpop.permute.xlu0 %1849 }
  0xda   :  { %1981 = vrot.lane.b32.xlu2 %v7127_v58, %s6830_s18  ;;  %1979 = vrot.lane.b32.xlu1 %v7132_v59, %s6830_s18 }
  0xdb   :  { %1977 = vrot.lane.b32.xlu0 %v7095_v51, %s6830_s18 }
  0xdc   :  { %v7377_v52 = vpop.permute.xlu2 %1877  ;;  %v7379_v53 = vpop.permute.xlu1 %1857 }
  0xdd   :  { %13968 = vst [vmem:[#allocation38_spill] sm:$0xff] %v7377_v52  ;;  %v7381_v45 = vpop.permute.xlu0 %1855 }
  0xe2   :  { %1987 = vrot.lane.b32.xlu2 %v7154_v0, %s6830_s18  ;;  %1985 = vrot.lane.b32.xlu1 %v7159_v1, %s6830_s18 }
  0xe3   :  { %1983 = vrot.lane.b32.xlu0 %v7122_v57, %s6830_s18 }
  0xe4   :  { %v7389_v58 = vpop.permute.xlu2 %1883  ;;  %v7391_v59 = vpop.permute.xlu1 %1863 }
  0xe5   :  { %13969 = vst [vmem:[#allocation39_spill] sm:$0xff] %v7389_v58  ;;  %v7393_v51 = vpop.permute.xlu0 %1861  ;;  %v7787_v58 = vld [vmem:[%s13848_s0 + $0x5c] sm:$0xff] }
  0xe6   :  { %13970 = vst [vmem:[#allocation40_spill] sm:$0xff] %v7391_v59  ;;  %v7782_v59 = vld [vmem:[%s13848_s0 + $0x64] sm:$0xff] }
  0xe7   :  { %13971 = vst [vmem:[#allocation41_spill] sm:$0xff] %v7393_v51  ;;  %v7841_v51 = vld [vmem:[%s13848_s0 + $0x8c] sm:$0xff] }
  0xea   :  { %1993 = vrot.lane.b32.xlu2 %v7181_v6, %s6830_s18  ;;  %1991 = vrot.lane.b32.xlu1 %v7186_v7, %s6830_s18 }
  0xeb   :  { %1989 = vrot.lane.b32.xlu0 %v7149_v63, %s6830_s18 }
  0xec   :  { %v7401_v0 = vpop.permute.xlu2 %1889  ;;  %v7403_v1 = vpop.permute.xlu1 %1869 }
  0xed   :  { %13972 = vst [vmem:[#allocation42_spill] sm:$0xff] %v7401_v0  ;;  %v7405_v57 = vpop.permute.xlu0 %1867  ;;  %v7777_v0 = vld [vmem:[%s13848_s0 + $0x6c] sm:$0xff] }
  0xee   :  { %13973 = vst [vmem:[#allocation43_spill] sm:$0xff] %v7403_v1  ;;  %v7760_v1 = vld [vmem:[%s13848_s0 + $0x44] sm:$0xff] }
  0xef   :  { %13974 = vst [vmem:[#allocation44_spill] sm:$0xff] %v7405_v57  ;;  %v7755_v57 = vld [vmem:[%s13848_s0 + $0x4c] sm:$0xff] }
  0xf2   :  { %1999 = vrot.lane.b32.xlu2 %v7208_v12, %s6830_s18  ;;  %1997 = vrot.lane.b32.xlu1 %v7213_v13, %s6830_s18 }
  0xf3   :  { %1995 = vrot.lane.b32.xlu0 %v7176_v5, %s6830_s18 }
  0xf4   :  { %v7413_v6 = vpop.permute.xlu2 %1895  ;;  %v7415_v7 = vpop.permute.xlu1 %1875 }
  0xf5   :  { %13975 = vst [vmem:[#allocation45_spill] sm:$0xff] %v7413_v6  ;;  %v7417_v63 = vpop.permute.xlu0 %1873  ;;  %v7750_v6 = vld [vmem:[%s13848_s0 + $0x54] sm:$0xff] }
  0xf6   :  { %13976 = vst [vmem:[#allocation46_spill] sm:$0xff] %v7415_v7  ;;  %v7728_v7 = vld [vmem:[%s13848_s0 + $0x34] sm:$0xff] }
  0xf7   :  { %13977 = vst [vmem:[#allocation47_spill] sm:$0xff] %v7417_v63  ;;  %v1554_v63 = vld [vmem:[%s13848_s0 + $0x10b] sm:$0xff] }
  0xfa   :  { %2005 = vrot.lane.b32.xlu2 %v7235_v18, %s6830_s18  ;;  %2003 = vrot.lane.b32.xlu1 %v7240_v19, %s6830_s18 }
  0xfb   :  { %2001 = vrot.lane.b32.xlu0 %v7203_v11, %s6830_s18 }
  0xfc   :  { %v7425_v12 = vpop.permute.xlu2 %1901  ;;  %v7427_v13 = vpop.permute.xlu1 %1881 }
  0xfd   :  { %13978 = vst [vmem:[#allocation48_spill] sm:$0xff] %v7425_v12  ;;  %v7429_v5 = vpop.permute.xlu0 %1879  ;;  %v1542_v12 = vld [vmem:[%s13848_s0 + $0xab] sm:$0xff] }
  0xfe   :  { %13979 = vst [vmem:[#allocation49_spill] sm:$0xff] %v7427_v13  ;;  %v1539_v13 = vld [vmem:[%s13848_s0 + $0x93] sm:$0xff] }
  0xff   :  { %13980 = vst [vmem:[#allocation50_spill] sm:$0xff] %v7429_v5  ;;  %v1540_v5 = vld [vmem:[%s13848_s0 + $0x9b] sm:$0xff] }
 0x102   :  { %2011 = vrot.lane.b32.xlu2 %v7262_v24, %s6830_s18  ;;  %2009 = vrot.lane.b32.xlu1 %v7267_v25, %s6830_s18 }
 0x103   :  { %2007 = vrot.lane.b32.xlu0 %v7230_v17, %s6830_s18 }
 0x104   :  { %v7437_v18 = vpop.permute.xlu2 %1907  ;;  %v7439_v19 = vpop.permute.xlu1 %1887 }
 0x105   :  { %13981 = vst [vmem:[#allocation51_spill] sm:$0xff] %v7437_v18  ;;  %v7441_v11 = vpop.permute.xlu0 %1885  ;;  %v1537_v18 = vld [vmem:[%s13848_s0 + $0x83] sm:$0xff] }
 0x106   :  { %13982 = vst [vmem:[#allocation52_spill] sm:$0xff] %v7439_v19  ;;  %v1536_v19 = vld [vmem:[%s13848_s0 + $0x7b] sm:$0xff] }
 0x107   :  { %13983 = vst [vmem:[#allocation53_spill] sm:$0xff] %v7441_v11  ;;  %v7836_v11 = vld [vmem:[%s13848_s0 + $0x94] sm:$0xff] }
 0x10a   :  { %2017 = vrot.lane.b32.xlu2 %v7289_v30, %s6830_s18  ;;  %2015 = vrot.lane.b32.xlu1 %v7294_v31, %s6830_s18 }
 0x10b   :  { %2013 = vrot.lane.b32.xlu0 %v7257_v23, %s6830_s18 }
 0x10c   :  { %v7449_v24 = vpop.permute.xlu2 %1913  ;;  %v7451_v25 = vpop.permute.xlu1 %1893 }
 0x10d   :  { %13984 = vst [vmem:[#allocation54_spill] sm:$0xff] %v7449_v24  ;;  %v7453_v17 = vpop.permute.xlu0 %1891  ;;  %v1530_v24 = vld [vmem:[%s13848_s0 + $0x4b] sm:$0xff] }
 0x10e   :  { %13985 = vst [vmem:[#allocation55_spill] sm:$0xff] %v7451_v25  ;;  %v1522_v25 = vld [vmem:[%s13848_s0 + $0x12a] sm:$0xff] }
 0x10f   :  { %13986 = vst [vmem:[#allocation56_spill] sm:$0xff] %v7453_v17  ;;  %v1527_v17 = vld [vmem:[%s13848_s0 + $0x33] sm:$0xff] }
 0x112   :  { %2023 = vrot.lane.b32.xlu2 %v7316_v38, %s6830_s18  ;;  %2021 = vrot.lane.b32.xlu1 %v7321_v39, %s6830_s18  ;;  %v1521_v38 = vld [vmem:[%s13848_s0 + $0x122] sm:$0xff] }
 0x113   :  { %2019 = vrot.lane.b32.xlu0 %v7284_v29, %s6830_s18 }
 0x114   :  { %v7461_v30 = vpop.permute.xlu2 %1919  ;;  %v7463_v31 = vpop.permute.xlu1 %1899 }
 0x115   :  { %13987 = vst [vmem:[#allocation57_spill] sm:$0xff] %v7461_v30  ;;  %v7465_v23 = vpop.permute.xlu0 %1897  ;;  %v1524_v30 = vld [vmem:[%s13848_s0 + $0x1b] sm:$0xff] }
 0x116   :  { %13988 = vst [vmem:[#allocation58_spill] sm:$0xff] %v7463_v31  ;;  %v1525_v31 = vld [vmem:[%s13848_s0 + $0x23] sm:$0xff] }
 0x117   :  { %13989 = vst [vmem:[#allocation59_spill] sm:$0xff] %v7465_v23 }
 0x11a   :  { %2029 = vrot.lane.b32.xlu2 %v1522_v25, %s6830_s18  ;;  %2027 = vrot.lane.b32.xlu1 %v1521_v38, %s6830_s18  ;;  %v1523_v25 = vld [vmem:[%s13848_s0 + $0x13] sm:$0xff] }
 0x11b   :  { %2025 = vrot.lane.b32.xlu0 %v7311_v35, %s6830_s18 }
 0x11c   :  { %v7477_v29 = vpop.permute.xlu2 %1963  ;;  %v7479_v39 = vpop.permute.xlu1 %1905 }
 0x11d   :  { %13990 = vst [vmem:[#allocation60_spill] sm:$0xff] %v7479_v39  ;;  %v7481_v23 = vpop.permute.xlu0 %1903  ;;  %v1528_v39 = vld [vmem:[%s13848_s0 + $0x3b] sm:$0xff] }
 0x11e   :  { %13991 = vst [vmem:[#allocation61_spill] sm:$0xff] %v7481_v23 }
 0x122   :  { %2107 = vrot.lane.b32.xlu2 %v1525_v31, %s6831_s29  ;;  %2105 = vrot.lane.b32.xlu1 %v1524_v30, %s6831_s29  ;;  %v1526_v30 = vld [vmem:[%s13848_s0 + $0x2b] sm:$0xff] }
 0x123   :  { %2103 = vrot.lane.b32.xlu0 %v1523_v25, %s6831_s29 }
 0x124   :  { %v7495_v35 = vpop.permute.xlu2 %1969  ;;  %v7497_v38 = vpop.permute.xlu1 %1911 }
 0x125   :  { %13992 = vst [vmem:[#allocation62_spill] sm:$0xff] %v7495_v35  ;;  %v7499_v23 = vpop.permute.xlu0 %1909  ;;  %v7993_v35 = vld [vmem:[%s13848_s0 + $0x12c] sm:$0xff] }
 0x126   :  { %13993 = vst [vmem:[#allocation63_spill] sm:$0xff] %v7497_v38  ;;  %v1531_v38 = vld [vmem:[%s13848_s0 + $0x53] sm:$0xff] }
 0x127   :  { %13994 = vst [vmem:[#allocation64_spill] sm:$0xff] %v7499_v23 }
 0x12a   :  { %2113 = vrot.lane.b32.xlu2 %v1528_v39, %s6831_s29  ;;  %2111 = vrot.lane.b32.xlu1 %v1527_v17, %s6831_s29  ;;  %v1529_v17 = vld [vmem:[%s13848_s0 + $0x43] sm:$0xff] }
 0x12b   :  { %2109 = vrot.lane.b32.xlu0 %v1526_v30, %s6831_s29 }
 0x12c   :  { %v7513_v31 = vpop.permute.xlu2 %1975  ;;  %v7515_v25 = vpop.permute.xlu1 %1917 }
 0x12d   :  { %13995 = vst [vmem:[#allocation65_spill] sm:$0xff] %v7513_v31  ;;  %v7517_v23 = vpop.permute.xlu0 %1915  ;;  %v1533_v31 = vld [vmem:[%s13848_s0 + $0x63] sm:$0xff] }
 0x12e   :  { %13996 = vst [vmem:[#allocation66_spill] sm:$0xff] %v7515_v25  ;;  %v1534_v25 = vld [vmem:[%s13848_s0 + $0x6b] sm:$0xff] }
 0x12f   :  { %13997 = vst [vmem:[#allocation67_spill] sm:$0xff] %v7517_v23 }
 0x132   :  { %2119 = vrot.lane.b32.xlu2 %v1531_v38, %s6831_s29  ;;  %2117 = vrot.lane.b32.xlu1 %v1530_v24, %s6831_s29  ;;  %v1532_v24 = vld [vmem:[%s13848_s0 + $0x5b] sm:$0xff] }
 0x133   :  { %2115 = vrot.lane.b32.xlu0 %v1529_v17, %s6831_s29 }
 0x134   :  { %v7531_v39 = vpop.permute.xlu2 %1981  ;;  %v7533_v30 = vpop.permute.xlu1 %1961 }
 0x135   :  { %13998 = vst [vmem:[#allocation68_spill] sm:$0xff] %v7531_v39  ;;  %v7535_v23 = vpop.permute.xlu0 %1959 }
 0x13a   :  { %2125 = vrot.lane.b32.xlu2 %v1534_v25, %s6831_s29  ;;  %2123 = vrot.lane.b32.xlu1 %v1533_v31, %s6831_s29  ;;  %v1535_v31 = vld [vmem:[%s13848_s0 + $0x73] sm:$0xff] }
 0x13b   :  { %2121 = vrot.lane.b32.xlu0 %v1532_v24, %s6831_s29 }
 0x13c   :  { %v7549_v38 = vpop.permute.xlu2 %1987  ;;  %v7551_v17 = vpop.permute.xlu1 %1967 }
 0x13d   :  { %13999 = vst [vmem:[#allocation69_spill] sm:$0xff] %v7549_v38  ;;  %v7553_v39 = vpop.permute.xlu0 %1965 }
 0x142   :  { %2131 = vrot.lane.b32.xlu2 %v1537_v18, %s6831_s29  ;;  %2129 = vrot.lane.b32.xlu1 %v1536_v19, %s6831_s29  ;;  %v1538_v18 = vld [vmem:[%s13848_s0 + $0x8b] sm:$0xff] }
 0x143   :  { %2127 = vrot.lane.b32.xlu0 %v1535_v31, %s6831_s29 }
 0x144   :  { %v7567_v25 = vpop.permute.xlu2 %1993  ;;  %v7569_v24 = vpop.permute.xlu1 %1973 }
 0x145   :  { %14000 = vst [vmem:[#allocation70_spill] sm:$0xff] %v7567_v25  ;;  %v7571_v38 = vpop.permute.xlu0 %1971 }
 0x146   :  { %14001 = vst [vmem:[#allocation71_spill] sm:$0xff] %v7569_v24  ;;  %v1543_v24 = vld [vmem:[%s13848_s0 + $0xb3] sm:$0xff] }
 0x147   :  { %14002 = vst [vmem:[#allocation72_spill] sm:$0xff] %v7571_v38 }
 0x14a   :  { %2137 = vrot.lane.b32.xlu2 %v1540_v5, %s6831_s29  ;;  %2135 = vrot.lane.b32.xlu1 %v1539_v13, %s6831_s29  ;;  %v1541_v13 = vld [vmem:[%s13848_s0 + $0xa3] sm:$0xff] }
 0x14b   :  { %2133 = vrot.lane.b32.xlu0 %v1538_v18, %s6831_s29 }
 0x14c   :  { %v7585_v19 = vpop.permute.xlu2 %1999  ;;  %v7587_v31 = vpop.permute.xlu1 %1979 }
 0x14d   :  { %14003 = vst [vmem:[#allocation73_spill] sm:$0xff] %v7585_v19  ;;  %v7589_v25 = vpop.permute.xlu0 %1977  ;;  %v1545_v19 = vld [vmem:[%s13848_s0 + $0xc3] sm:$0xff] }
 0x14e   :  { %14004 = vst [vmem:[#allocation74_spill] sm:$0xff] %v7587_v31  ;;  %v1546_v31 = vld [vmem:[%s13848_s0 + $0xcb] sm:$0xff] }
 0x14f   :  { %14005 = vst [vmem:[#allocation75_spill] sm:$0xff] %v7589_v25 }
 0x152   :  { %2143 = vrot.lane.b32.xlu2 %v1543_v24, %s6831_s29  ;;  %2141 = vrot.lane.b32.xlu1 %v1542_v12, %s6831_s29  ;;  %v1544_v12 = vld [vmem:[%s13848_s0 + $0xbb] sm:$0xff] }
 0x153   :  { %2139 = vrot.lane.b32.xlu0 %v1541_v13, %s6831_s29 }
 0x154   :  { %v7603_v5 = vpop.permute.xlu2 %2005  ;;  %v7605_v18 = vpop.permute.xlu1 %1985 }
 0x155   :  { %14006 = vst [vmem:[#allocation76_spill] sm:$0xff] %v7603_v5  ;;  %v7607_v25 = vpop.permute.xlu0 %1983  ;;  %v1548_v5 = vld [vmem:[%s13848_s0 + $0xdb] sm:$0xff] }
 0x156   :  { %14007 = vst [vmem:[#allocation77_spill] sm:$0xff] %v7605_v18  ;;  %v1549_v18 = vld [vmem:[%s13848_s0 + $0xe3] sm:$0xff] }
 0x157   :  { %14008 = vst [vmem:[#allocation78_spill] sm:$0xff] %v7607_v25 }
 0x15a   :  { %2149 = vrot.lane.b32.xlu2 %v1546_v31, %s6831_s29  ;;  %2147 = vrot.lane.b32.xlu1 %v1545_v19, %s6831_s29  ;;  %v1547_v19 = vld [vmem:[%s13848_s0 + $0xd3] sm:$0xff] }
 0x15b   :  { %2145 = vrot.lane.b32.xlu0 %v1544_v12, %s6831_s29 }
 0x15c   :  { %v7621_v24 = vpop.permute.xlu2 %2011  ;;  %v7623_v13 = vpop.permute.xlu1 %1991 }
 0x15d   :  { %14009 = vst [vmem:[#allocation79_spill] sm:$0xff] %v7621_v24  ;;  %v7625_v25 = vpop.permute.xlu0 %1989  ;;  %v1551_v24 = vld [vmem:[%s13848_s0 + $0xf3] sm:$0xff] }
 0x15e   :  { %14010 = vst [vmem:[#allocation80_spill] sm:$0xff] %v7623_v13  ;;  %v1552_v13 = vld [vmem:[%s13848_s0 + $0xfb] sm:$0xff] }
 0x15f   :  { %14011 = vst [vmem:[#allocation81_spill] sm:$0xff] %v7625_v25 }
 0x162   :  { %2155 = vrot.lane.b32.xlu2 %v1549_v18, %s6831_s29  ;;  %2153 = vrot.lane.b32.xlu1 %v1548_v5, %s6831_s29  ;;  %v1550_v5 = vld [vmem:[%s13848_s0 + $0xeb] sm:$0xff] }
 0x163   :  { %2151 = vrot.lane.b32.xlu0 %v1547_v19, %s6831_s29 }
 0x164   :  { %v7639_v31 = vpop.permute.xlu2 %2017  ;;  %v7641_v12 = vpop.permute.xlu1 %1997 }
 0x165   :  { %14012 = vst [vmem:[#allocation82_spill] sm:$0xff] %v7639_v31  ;;  %v7643_v25 = vpop.permute.xlu0 %1995 }
 0x166   :  { %14013 = vst [vmem:[#allocation83_spill] sm:$0xff] %v7641_v12  ;;  %v1555_v12 = vld [vmem:[%s13848_s0 + $0x113] sm:$0xff] }
 0x167   :  { %14014 = vst [vmem:[#allocation84_spill] sm:$0xff] %v7643_v25  ;;  %v7814_v25 = vld [vmem:[%s13848_s0 + $0x74] sm:$0xff] }
 0x16a   :  { %2161 = vrot.lane.b32.xlu2 %v1552_v13, %s6831_s29  ;;  %2159 = vrot.lane.b32.xlu1 %v1551_v24, %s6831_s29  ;;  %v1553_v24 = vld [vmem:[%s13848_s0 + $0x103] sm:$0xff] }
 0x16b   :  { %2157 = vrot.lane.b32.xlu0 %v1550_v5, %s6831_s29 }
 0x16c   :  { %v7657_v18 = vpop.permute.xlu2 %2023  ;;  %v7659_v19 = vpop.permute.xlu1 %2003 }
 0x16d   :  { %14015 = vst [vmem:[#allocation85_spill] sm:$0xff] %v7657_v18  ;;  %v7661_v31 = vpop.permute.xlu0 %2001  ;;  %v1557_v18 = vld [vmem:[%s13848_s0 + $0x123] sm:$0xff] }
 0x16e   :  { %14016 = vst [vmem:[#allocation86_spill] sm:$0xff] %v7659_v19  ;;  %v1558_v19 = vld [vmem:[%s13848_s0 + $0x12b] sm:$0xff] }
 0x16f   :  { %14017 = vst [vmem:[#allocation87_spill] sm:$0xff] %v7661_v31 }
 0x172   :  { %2167 = vrot.lane.b32.xlu2 %v1555_v12, %s6831_s29  ;;  %2165 = vrot.lane.b32.xlu1 %v1554_v63, %s6831_s29  ;;  %v1556_v63 = vld [vmem:[%s13848_s0 + $0x11b] sm:$0xff] }
 0x173   :  { %2163 = vrot.lane.b32.xlu0 %v1553_v24, %s6831_s29 }
 0x174   :  { %v7675_v13 = vpop.permute.xlu2 %2029  ;;  %v7677_v5 = vpop.permute.xlu1 %2009 }
 0x175   :  { %14018 = vst [vmem:[#allocation88_spill] sm:$0xff] %v7675_v13  ;;  %v7679_v31 = vpop.permute.xlu0 %2007  ;;  %v1560_v13 = vld [vmem:[%s13848_s0 + $0x1c] sm:$0xff] }
 0x176   :  { %14019 = vst [vmem:[#allocation89_spill] sm:$0xff] %v7677_v5  ;;  %v7702_v5 = vld [vmem:[%s13848_s0 + $0x24] sm:$0xff] }
 0x177   :  { %14020 = vst [vmem:[#allocation90_spill] sm:$0xff] %v7679_v31 }
 0x17a   :  { %2173 = vrot.lane.b32.xlu2 %v1558_v19, %s6831_s29  ;;  %2171 = vrot.lane.b32.xlu1 %v1557_v18, %s6831_s29  ;;  %v1559_v18 = vld [vmem:[%s13848_s0 + $0x14] sm:$0xff] }
 0x17b   :  { %2169 = vrot.lane.b32.xlu0 %v1556_v63, %s6831_s29 }
 0x17c   :  { %v7693_v12 = vpop.permute.xlu2 %2107  ;;  %v7695_v24 = vpop.permute.xlu1 %2015 }
 0x17d   :  { %14021 = vst [vmem:[#allocation91_spill] sm:$0xff] %v7695_v24  ;;  %v7697_v31 = vpop.permute.xlu0 %2013  ;;  %v7723_v24 = vld [vmem:[%s13848_s0 + $0x3c] sm:$0xff] }
 0x17e   :  { %14022 = vst [vmem:[#allocation92_spill] sm:$0xff] %v7697_v31 }
 0x182   :  { %2251 = vrot.lane.b32.xlu2 %v7702_v5, %s6832_s25  ;;  %2249 = vrot.lane.b32.xlu1 %v1560_v13, %s6832_s25  ;;  %v7733_v13 = vld [vmem:[%s13848_s0 + $0x2c] sm:$0xff] }
 0x183   :  { %2247 = vrot.lane.b32.xlu0 %v1559_v18, %s6832_s25 }
 0x184   :  { %v7714_v19 = vpop.permute.xlu2 %2113  ;;  %v7716_v63 = vpop.permute.xlu1 %2021 }
 0x185   :  { %14023 = vst [vmem:[#allocation93_spill] sm:$0xff] %v7714_v19  ;;  %v7718_v31 = vpop.permute.xlu0 %2019  ;;  %v7966_v19 = vld [vmem:[%s13848_s0 + $0x114] sm:$0xff] }
 0x186   :  { %14024 = vst [vmem:[#allocation94_spill] sm:$0xff] %v7716_v63 }
 0x187   :  { %14025 = vst [vmem:[#allocation95_spill] sm:$0xff] %v7718_v31 }
 0x18a   :  { %2257 = vrot.lane.b32.xlu2 %v7723_v24, %s6832_s25  ;;  %2255 = vrot.lane.b32.xlu1 %v7728_v7, %s6832_s25 }
 0x18b   :  { %2253 = vrot.lane.b32.xlu0 %v7733_v13, %s6832_s25 }
 0x18c   :  { %v7741_v18 = vpop.permute.xlu2 %2119  ;;  %v7743_v31 = vpop.permute.xlu1 %2027 }
 0x18d   :  { %14026 = vst [vmem:[#allocation96_spill] sm:$0xff] %v7741_v18  ;;  %v7745_v63 = vpop.permute.xlu0 %2025 }
 0x18e   :  { %14027 = vst [vmem:[#allocation97_spill] sm:$0xff] %v7743_v31 }
 0x18f   :  { %14028 = vst [vmem:[#allocation98_spill] sm:$0xff] %v7745_v63 }
 0x192   :  { %2263 = vrot.lane.b32.xlu2 %v7750_v6, %s6832_s25  ;;  %2261 = vrot.lane.b32.xlu1 %v7755_v57, %s6832_s25 }
 0x193   :  { %2259 = vrot.lane.b32.xlu0 %v7760_v1, %s6832_s25 }
 0x194   :  { %v7768_v63 = vpop.permute.xlu2 %2125  ;;  %v7770_v31 = vpop.permute.xlu1 %2105 }
 0x195   :  { %14029 = vst [vmem:[#allocation99_spill] sm:$0xff] %v7768_v63  ;;  %v7772_v18 = vpop.permute.xlu0 %2103 }
 0x19a   :  { %2269 = vrot.lane.b32.xlu2 %v7777_v0, %s6832_s25  ;;  %2267 = vrot.lane.b32.xlu1 %v7782_v59, %s6832_s25 }
 0x19b   :  { %2265 = vrot.lane.b32.xlu0 %v7787_v58, %s6832_s25 }
 0x19c   :  { %v7795_v63 = vpop.permute.xlu2 %2131  ;;  %v7797_v52 = vpop.permute.xlu1 %2111 }
 0x19d   :  { %14030 = vst [vmem:[#allocation100_spill] sm:$0xff] %v7795_v63  ;;  %v7799_v46 = vpop.permute.xlu0 %2109 }
 0x1a2   :  { %2275 = vrot.lane.b32.xlu2 %v7804_v37, %s6832_s25  ;;  %2273 = vrot.lane.b32.xlu1 %v7809_v43, %s6832_s25 }
 0x1a3   :  { %2271 = vrot.lane.b32.xlu0 %v7814_v25, %s6832_s25 }
 0x1a4   :  { %v7822_v63 = vpop.permute.xlu2 %2137  ;;  %v7824_v38 = vpop.permute.xlu1 %2117 }
 0x1a5   :  { %14031 = vst [vmem:[#allocation101_spill] sm:$0xff] %v7822_v63  ;;  %v7826_v42 = vpop.permute.xlu0 %2115 }
 0x1a6   :  { %14032 = vst [vmem:[#allocation102_spill] sm:$0xff] %v7824_v38 }
 0x1a7   :  { %14033 = vst [vmem:[#allocation103_spill] sm:$0xff] %v7826_v42 }
 0x1aa   :  { %2281 = vrot.lane.b32.xlu2 %v7831_v26, %s6832_s25  ;;  %2279 = vrot.lane.b32.xlu1 %v7836_v11, %s6832_s25 }
 0x1ab   :  { %2277 = vrot.lane.b32.xlu0 %v7841_v51, %s6832_s25 }
 0x1ac   :  { %v7849_v63 = vpop.permute.xlu2 %2143  ;;  %v7851_v38 = vpop.permute.xlu1 %2123 }
 0x1ad   :  { %14034 = vst [vmem:[#allocation104_spill] sm:$0xff] %v7849_v63  ;;  %v7853_v42 = vpop.permute.xlu0 %2121 }
 0x1ae   :  { %14035 = vst [vmem:[#allocation105_spill] sm:$0xff] %v7851_v38 }
 0x1af   :  { %14036 = vst [vmem:[#allocation106_spill] sm:$0xff] %v7853_v42 }
 0x1b2   :  { %2287 = vrot.lane.b32.xlu2 %v7858_v27, %s6832_s25  ;;  %2285 = vrot.lane.b32.xlu1 %v7863_v32, %s6832_s25 }
 0x1b3   :  { %2283 = vrot.lane.b32.xlu0 %v7868_v33, %s6832_s25 }
 0x1b4   :  { %v7876_v38 = vpop.permute.xlu2 %2149  ;;  %v7878_v42 = vpop.permute.xlu1 %2129 }
 0x1b5   :  { %14037 = vst [vmem:[#allocation107_spill] sm:$0xff] %v7876_v38  ;;  %v7880_v63 = vpop.permute.xlu0 %2127 }
 0x1b6   :  { %14038 = vst [vmem:[#allocation108_spill] sm:$0xff] %v7878_v42 }
 0x1b7   :  { %14039 = vst [vmem:[#allocation109_spill] sm:$0xff] %v7880_v63 }
 0x1ba   :  { %2293 = vrot.lane.b32.xlu2 %v7885_v22, %s6832_s25  ;;  %2291 = vrot.lane.b32.xlu1 %v7890_v21, %s6832_s25 }
 0x1bb   :  { %2289 = vrot.lane.b32.xlu0 %v7895_v20, %s6832_s25 }
 0x1bc   :  { %v7903_v63 = vpop.permute.xlu2 %2155  ;;  %v7905_v42 = vpop.permute.xlu1 %2135 }
 0x1bd   :  { %14040 = vst [vmem:[#allocation110_spill] sm:$0xff] %v7903_v63  ;;  %v7907_v38 = vpop.permute.xlu0 %2133 }
 0x1be   :  { %14041 = vst [vmem:[#allocation111_spill] sm:$0xff] %v7905_v42 }
 0x1bf   :  { %14042 = vst [vmem:[#allocation112_spill] sm:$0xff] %v7907_v38 }
 0x1c2   :  { %2299 = vrot.lane.b32.xlu2 %v7912_v16, %s6832_s25  ;;  %2297 = vrot.lane.b32.xlu1 %v7917_v15, %s6832_s25 }
 0x1c3   :  { %2295 = vrot.lane.b32.xlu0 %v7922_v14, %s6832_s25 }
 0x1c4   :  { %v7930_v38 = vpop.permute.xlu2 %2161  ;;  %v7932_v42 = vpop.permute.xlu1 %2141 }
 0x1c5   :  { %14043 = vst [vmem:[#allocation113_spill] sm:$0xff] %v7930_v38  ;;  %v7934_v63 = vpop.permute.xlu0 %2139 }
 0x1c6   :  { %14044 = vst [vmem:[#allocation114_spill] sm:$0xff] %v7932_v42 }
 0x1c7   :  { %14045 = vst [vmem:[#allocation115_spill] sm:$0xff] %v7934_v63 }
 0x1ca   :  { %2305 = vrot.lane.b32.xlu2 %v7939_v10, %s6832_s25  ;;  %2303 = vrot.lane.b32.xlu1 %v7944_v9, %s6832_s25 }
 0x1cb   :  { %2301 = vrot.lane.b32.xlu0 %v7949_v8, %s6832_s25 }
 0x1cc   :  { %v7957_v38 = vpop.permute.xlu2 %2167  ;;  %v7959_v42 = vpop.permute.xlu1 %2147 }
 0x1cd   :  { %14046 = vst [vmem:[#allocation116_spill] sm:$0xff] %v7957_v38  ;;  %v7961_v63 = vpop.permute.xlu0 %2145 }
 0x1ce   :  { %14047 = vst [vmem:[#allocation117_spill] sm:$0xff] %v7959_v42 }
 0x1cf   :  { %14048 = vst [vmem:[#allocation118_spill] sm:$0xff] %v7961_v63 }
 0x1d2   :  { %2311 = vrot.lane.b32.xlu2 %v7966_v19, %s6832_s25  ;;  %2309 = vrot.lane.b32.xlu1 %v7971_v4, %s6832_s25 }
 0x1d3   :  { %2307 = vrot.lane.b32.xlu0 %v7976_v3, %s6832_s25 }
 0x1d4   :  { %v7984_v42 = vpop.permute.xlu2 %2173  ;;  %v7986_v38 = vpop.permute.xlu1 %2153 }
 0x1d5   :  { %14049 = vst [vmem:[#allocation119_spill] sm:$0xff] %v7984_v42  ;;  %v7988_v63 = vpop.permute.xlu0 %2151 }
 0x1d6   :  { %14050 = vst [vmem:[#allocation120_spill] sm:$0xff] %v7986_v38 }
 0x1d7   :  { %14051 = vst [vmem:[#allocation121_spill] sm:$0xff] %v7988_v63 }
 0x1da   :  { %2317 = vrot.lane.b32.xlu2 %v7993_v35, %s6832_s25  ;;  %2315 = vrot.lane.b32.xlu1 %v7998_v2, %s6832_s25 }
 0x1db   :  { %2313 = vrot.lane.b32.xlu0 %v8003_v62, %s6832_s25 }
 0x1dc   :  { %v8011_v63 = vpop.permute.xlu2 %2251  ;;  %v8013_v38 = vpop.permute.xlu1 %2159 }
 0x1dd   :  { %14052 = vst [vmem:[#allocation122_spill] sm:$0xff] %v8013_v38  ;;  %v8015_v42 = vpop.permute.xlu0 %2157  ;;  %v1647_v38 = vld [vmem:[%s13848_s0 + $0x96] sm:$0xff] }
 0x1de   :  { %14053 = vst [vmem:[#allocation123_spill] sm:$0xff] %v8015_v42 }
 0x1e2   :  { %2361 = vrot.lane.b32.xlu2 %v7728_v7, %s6833_s19  ;;  %2359 = vrot.lane.b32.xlu1 %v7733_v13, %s6833_s19 }
 0x1e3   :  { %2357 = vrot.lane.b32.xlu0 %v7702_v5, %s6833_s19 }
 0x1e4   :  { %v8023_v61 = vpop.permute.xlu2 %2257  ;;  %v8025_v28 = vpop.permute.xlu1 %2165 }
 0x1e5   :  { %14054 = vst [vmem:[#allocation124_spill] sm:$0xff] %v8025_v28  ;;  %v8027_v60 = vpop.permute.xlu0 %2163 }
 0x1e6   :  { %14055 = vst [vmem:[#allocation125_spill] sm:$0xff] %v8027_v60  ;;  %v1629_v60 = vld [vmem:[%s13848_s0 + $0x125] sm:$0xff] }
 0x1ea   :  { %2367 = vrot.lane.b32.xlu2 %v7755_v57, %s6833_s19  ;;  %2365 = vrot.lane.b32.xlu1 %v7760_v1, %s6833_s19 }
 0x1eb   :  { %2363 = vrot.lane.b32.xlu0 %v7723_v24, %s6833_s19 }
 0x1ec   :  { %v8035_v7 = vpop.permute.xlu2 %2263  ;;  %v8037_v13 = vpop.permute.xlu1 %2171 }
 0x1ed   :  { %14056 = vst [vmem:[#allocation126_spill] sm:$0xff] %v8037_v13  ;;  %v8039_v5 = vpop.permute.xlu0 %2169  ;;  %v1619_v13 = vld [vmem:[%s13848_s0 + $0xd5] sm:$0xff] }
 0x1ee   :  { %14057 = vst [vmem:[#allocation127_spill] sm:$0xff] %v8039_v5  ;;  %v1620_v5 = vld [vmem:[%s13848_s0 + $0xdd] sm:$0xff] }
 0x1f2   :  { %2373 = vrot.lane.b32.xlu2 %v7782_v59, %s6833_s19  ;;  %2371 = vrot.lane.b32.xlu1 %v7787_v58, %s6833_s19 }
 0x1f3   :  { %2369 = vrot.lane.b32.xlu0 %v7750_v6, %s6833_s19 }
 0x1f4   :  { %v8047_v57 = vpop.permute.xlu2 %2269  ;;  %v8049_v1 = vpop.permute.xlu1 %2249 }
 0x1f5   :  { %14058 = vst [vmem:[#allocation128_spill] sm:$0xff] %v8047_v57  ;;  %v8051_v24 = vpop.permute.xlu0 %2247 }
 0x1fa   :  { %2379 = vrot.lane.b32.xlu2 %v7809_v43, %s6833_s19  ;;  %2377 = vrot.lane.b32.xlu1 %v7814_v25, %s6833_s19 }
 0x1fb   :  { %2375 = vrot.lane.b32.xlu0 %v7777_v0, %s6833_s19 }
 0x1fc   :  { %v8059_v59 = vpop.permute.xlu2 %2275  ;;  %v8061_v58 = vpop.permute.xlu1 %2255 }
 0x1fd   :  { %14059 = vst [vmem:[#allocation129_spill] sm:$0xff] %v8059_v59  ;;  %v8063_v6 = vpop.permute.xlu0 %2253  ;;  %v1616_v59 = vld [vmem:[%s13848_s0 + $0xbd] sm:$0xff] }
 0x202   :  { %2385 = vrot.lane.b32.xlu2 %v7836_v11, %s6833_s19  ;;  %2383 = vrot.lane.b32.xlu1 %v7841_v51, %s6833_s19 }
 0x203   :  { %2381 = vrot.lane.b32.xlu0 %v7804_v37, %s6833_s19 }
 0x204   :  { %v8071_v43 = vpop.permute.xlu2 %2281  ;;  %v8073_v25 = vpop.permute.xlu1 %2261 }
 0x205   :  { %14060 = vst [vmem:[#allocation130_spill] sm:$0xff] %v8071_v43  ;;  %v8075_v0 = vpop.permute.xlu0 %2259  ;;  %v1617_v43 = vld [vmem:[%s13848_s0 + $0xc5] sm:$0xff] }
 0x20a   :  { %2391 = vrot.lane.b32.xlu2 %v7863_v32, %s6833_s19  ;;  %2389 = vrot.lane.b32.xlu1 %v7868_v33, %s6833_s19 }
 0x20b   :  { %2387 = vrot.lane.b32.xlu0 %v7831_v26, %s6833_s19 }
 0x20c   :  { %v8083_v11 = vpop.permute.xlu2 %2287  ;;  %v8085_v51 = vpop.permute.xlu1 %2267 }
 0x20d   :  { %14061 = vst [vmem:[#allocation131_spill] sm:$0xff] %v8083_v11  ;;  %v8087_v37 = vpop.permute.xlu0 %2265  ;;  %v6480_v11 = vld [vmem:[%s13848_s0 + $0x151] sm:$0xff] }
 0x20e   :  { %14062 = vst [vmem:[#allocation132_spill] sm:$0xff] %v8085_v51  ;;  %v1643_v51 = vld [vmem:[%s13848_s0 + $0x76] sm:$0xff] }
 0x20f   :  { %14063 = vst [vmem:[#allocation133_spill] sm:$0xff] %v8087_v37  ;;  %v1652_v37 = vld [vmem:[%s13848_s0 + $0xbe] sm:$0xff] }
 0x212   :  { %2397 = vrot.lane.b32.xlu2 %v7890_v21, %s6833_s19  ;;  %2395 = vrot.lane.b32.xlu1 %v7895_v20, %s6833_s19 }
 0x213   :  { %2393 = vrot.lane.b32.xlu0 %v7858_v27, %s6833_s19 }
 0x214   :  { %v8095_v32 = vpop.permute.xlu2 %2293  ;;  %v8097_v33 = vpop.permute.xlu1 %2273 }
 0x215   :  { %14064 = vst [vmem:[#allocation134_spill] sm:$0xff] %v8095_v32  ;;  %v8099_v26 = vpop.permute.xlu0 %2271  ;;  %v1613_v32 = vld [vmem:[%s13848_s0 + $0xa5] sm:$0xff] }
 0x216   :  { %14065 = vst [vmem:[#allocation135_spill] sm:$0xff] %v8097_v33  ;;  %v1614_v33 = vld [vmem:[%s13848_s0 + $0xad] sm:$0xff] }
 0x217   :  { %14066 = vst [vmem:[#allocation136_spill] sm:$0xff] %v8099_v26  ;;  %v1611_v26 = vld [vmem:[%s13848_s0 + $0x95] sm:$0xff] }
 0x21a   :  { %2403 = vrot.lane.b32.xlu2 %v7917_v15, %s6833_s19  ;;  %2401 = vrot.lane.b32.xlu1 %v7922_v14, %s6833_s19 }
 0x21b   :  { %2399 = vrot.lane.b32.xlu0 %v7885_v22, %s6833_s19 }
 0x21c   :  { %v8107_v21 = vpop.permute.xlu2 %2299  ;;  %v8109_v20 = vpop.permute.xlu1 %2279 }
 0x21d   :  { %14067 = vst [vmem:[#allocation137_spill] sm:$0xff] %v8107_v21  ;;  %v8111_v27 = vpop.permute.xlu0 %2277 }
 0x21e   :  { %14068 = vst [vmem:[#allocation138_spill] sm:$0xff] %v8109_v20  ;;  %v1607_v20 = vld [vmem:[%s13848_s0 + $0x75] sm:$0xff] }
 0x21f   :  { %14069 = vst [vmem:[#allocation139_spill] sm:$0xff] %v8111_v27  ;;  %v1604_v27 = vld [vmem:[%s13848_s0 + $0x5d] sm:$0xff] }
 0x222   :  { %2409 = vrot.lane.b32.xlu2 %v7944_v9, %s6833_s19  ;;  %2407 = vrot.lane.b32.xlu1 %v7949_v8, %s6833_s19 }
 0x223   :  { %2405 = vrot.lane.b32.xlu0 %v7912_v16, %s6833_s19 }
 0x224   :  { %v8119_v15 = vpop.permute.xlu2 %2305  ;;  %v8121_v14 = vpop.permute.xlu1 %2285 }
 0x225   :  { %14070 = vst [vmem:[#allocation140_spill] sm:$0xff] %v8119_v15  ;;  %v8123_v22 = vpop.permute.xlu0 %2283  ;;  %v1601_v15 = vld [vmem:[%s13848_s0 + $0x45] sm:$0xff] }
 0x22a   :  { %2415 = vrot.lane.b32.xlu2 %v7971_v4, %s6833_s19  ;;  %2413 = vrot.lane.b32.xlu1 %v7976_v3, %s6833_s19 }
 0x22b   :  { %2411 = vrot.lane.b32.xlu0 %v7939_v10, %s6833_s19 }
 0x22c   :  { %v8131_v9 = vpop.permute.xlu2 %2311  ;;  %v8133_v8 = vpop.permute.xlu1 %2291 }
 0x22d   :  { %14071 = vst [vmem:[#allocation141_spill] sm:$0xff] %v8131_v9  ;;  %v8135_v16 = vpop.permute.xlu0 %2289  ;;  %v1596_v9 = vld [vmem:[%s13848_s0 + $0x13c] sm:$0xff] }
 0x22e   :  { %14072 = vst [vmem:[#allocation142_spill] sm:$0xff] %v8133_v8  ;;  %v1631_v8 = vld [vmem:[%s13848_s0 + $0x135] sm:$0xff] }
 0x22f   :  { %14073 = vst [vmem:[#allocation143_spill] sm:$0xff] %v8135_v16  ;;  %v1649_v16 = vld [vmem:[%s13848_s0 + $0xa6] sm:$0xff] }
 0x232   :  { %2421 = vrot.lane.b32.xlu2 %v7998_v2, %s6833_s19  ;;  %2419 = vrot.lane.b32.xlu1 %v8003_v62, %s6833_s19  ;;  %v1595_v2 = vld [vmem:[%s13848_s0 + $0x134] sm:$0xff] }
 0x233   :  { %2417 = vrot.lane.b32.xlu0 %v7966_v19, %s6833_s19 }
 0x234   :  { %v8143_v4 = vpop.permute.xlu2 %2317  ;;  %v8145_v3 = vpop.permute.xlu1 %2297 }
 0x235   :  { %14074 = vst [vmem:[#allocation144_spill] sm:$0xff] %v8143_v4  ;;  %v8147_v10 = vpop.permute.xlu0 %2295  ;;  %v1599_v4 = vld [vmem:[%s13848_s0 + $0x35] sm:$0xff] }
 0x236   :  { %14075 = vst [vmem:[#allocation145_spill] sm:$0xff] %v8145_v3 }
 0x237   :  { %14076 = vst [vmem:[#allocation146_spill] sm:$0xff] %v8147_v10  ;;  %v1598_v10 = vld [vmem:[%s13848_s0 + $0x2d] sm:$0xff] }
 0x23a   :  { %2427 = vrot.lane.b32.xlu2 %v1596_v9, %s6833_s19  ;;  %2425 = vrot.lane.b32.xlu1 %v1595_v2, %s6833_s19  ;;  %v1597_v9 = vld [vmem:[%s13848_s0 + $0x25] sm:$0xff] }
 0x23b   :  { %2423 = vrot.lane.b32.xlu0 %v7993_v35, %s6833_s19 }
 0x23c   :  { %v8159_v62 = vpop.permute.xlu2 %2361  ;;  %v8161_v19 = vpop.permute.xlu1 %2303 }
 0x23d   :  { %14077 = vst [vmem:[#allocation147_spill] sm:$0xff] %v8161_v19  ;;  %v8163_v3 = vpop.permute.xlu0 %2301  ;;  %v1602_v19 = vld [vmem:[%s13848_s0 + $0x4d] sm:$0xff] }
 0x23e   :  { %14078 = vst [vmem:[#allocation148_spill] sm:$0xff] %v8163_v3 }
 0x242   :  { %2505 = vrot.lane.b32.xlu2 %v1599_v4, %s6834_s10  ;;  %2503 = vrot.lane.b32.xlu1 %v1598_v10, %s6834_s10  ;;  %v1600_v4 = vld [vmem:[%s13848_s0 + $0x3d] sm:$0xff] }
 0x243   :  { %2501 = vrot.lane.b32.xlu0 %v1597_v9, %s6834_s10 }
 0x244   :  { %v8177_v35 = vpop.permute.xlu2 %2367  ;;  %v8179_v2 = vpop.permute.xlu1 %2309 }
 0x245   :  { %14079 = vst [vmem:[#allocation149_spill] sm:$0xff] %v8179_v2  ;;  %v8181_v3 = vpop.permute.xlu0 %2307  ;;  %v1605_v2 = vld [vmem:[%s13848_s0 + $0x65] sm:$0xff] }
 0x246   :  { %14080 = vst [vmem:[#allocation150_spill] sm:$0xff] %v8181_v3 }
 0x24a   :  { %2511 = vrot.lane.b32.xlu2 %v1602_v19, %s6834_s10  ;;  %2509 = vrot.lane.b32.xlu1 %v1601_v15, %s6834_s10  ;;  %v1603_v15 = vld [vmem:[%s13848_s0 + $0x55] sm:$0xff] }
 0x24b   :  { %2507 = vrot.lane.b32.xlu0 %v1600_v4, %s6834_s10 }
 0x24c   :  { %v8195_v10 = vpop.permute.xlu2 %2373  ;;  %v8197_v9 = vpop.permute.xlu1 %2315 }
 0x24d   :  { %14081 = vst [vmem:[#allocation151_spill] sm:$0xff] %v8195_v10  ;;  %v8199_v3 = vpop.permute.xlu0 %2313 }
 0x24e   :  { %14082 = vst [vmem:[#allocation152_spill] sm:$0xff] %v8197_v9  ;;  %v1608_v9 = vld [vmem:[%s13848_s0 + $0x7d] sm:$0xff] }
 0x24f   :  { %14083 = vst [vmem:[#allocation153_spill] sm:$0xff] %v8199_v3 }
 0x252   :  { %2517 = vrot.lane.b32.xlu2 %v1605_v2, %s6834_s10  ;;  %2515 = vrot.lane.b32.xlu1 %v1604_v27, %s6834_s10  ;;  %v1606_v27 = vld [vmem:[%s13848_s0 + $0x6d] sm:$0xff] }
 0x253   :  { %2513 = vrot.lane.b32.xlu0 %v1603_v15, %s6834_s10 }
 0x254   :  { %v8213_v19 = vpop.permute.xlu2 %2379  ;;  %v8215_v4 = vpop.permute.xlu1 %2359 }
 0x255   :  { %14084 = vst [vmem:[#allocation154_spill] sm:$0xff] %v8213_v19  ;;  %v8217_v3 = vpop.permute.xlu0 %2357  ;;  %v1610_v19 = vld [vmem:[%s13848_s0 + $0x8d] sm:$0xff] }
 0x25a   :  { %2523 = vrot.lane.b32.xlu2 %v1608_v9, %s6834_s10  ;;  %2521 = vrot.lane.b32.xlu1 %v1607_v20, %s6834_s10  ;;  %v1609_v20 = vld [vmem:[%s13848_s0 + $0x85] sm:$0xff] }
 0x25b   :  { %2519 = vrot.lane.b32.xlu0 %v1606_v27, %s6834_s10 }
 0x25c   :  { %v8231_v2 = vpop.permute.xlu2 %2385  ;;  %v8233_v15 = vpop.permute.xlu1 %2365 }
 0x25d   :  { %14085 = vst [vmem:[#allocation155_spill] sm:$0xff] %v8231_v2  ;;  %v8235_v21 = vpop.permute.xlu0 %2363 }
 0x262   :  { %2529 = vrot.lane.b32.xlu2 %v1611_v26, %s6834_s10  ;;  %2527 = vrot.lane.b32.xlu1 %v1610_v19, %s6834_s10  ;;  %v1612_v26 = vld [vmem:[%s13848_s0 + $0x9d] sm:$0xff] }
 0x263   :  { %2525 = vrot.lane.b32.xlu0 %v1609_v20, %s6834_s10 }
 0x264   :  { %v8249_v9 = vpop.permute.xlu2 %2391  ;;  %v8251_v27 = vpop.permute.xlu1 %2371 }
 0x265   :  { %14086 = vst [vmem:[#allocation156_spill] sm:$0xff] %v8249_v9  ;;  %v8253_v2 = vpop.permute.xlu0 %2369 }
 0x26a   :  { %2535 = vrot.lane.b32.xlu2 %v1614_v33, %s6834_s10  ;;  %2533 = vrot.lane.b32.xlu1 %v1613_v32, %s6834_s10  ;;  %v1615_v32 = vld [vmem:[%s13848_s0 + $0xb5] sm:$0xff] }
 0x26b   :  { %2531 = vrot.lane.b32.xlu0 %v1612_v26, %s6834_s10 }
 0x26c   :  { %v8267_v19 = vpop.permute.xlu2 %2397  ;;  %v8269_v20 = vpop.permute.xlu1 %2377 }
 0x26d   :  { %14087 = vst [vmem:[#allocation157_spill] sm:$0xff] %v8267_v19  ;;  %v8271_v9 = vpop.permute.xlu0 %2375  ;;  %v1410_v19 = vld [vmem:[%s13849_s1 + $0x18] sm:$0xff] }
 0x26e   :  { %14088 = vst [vmem:[#allocation158_spill] sm:$0xff] %v8269_v20  ;;  %v1628_v20 = vld [vmem:[%s13848_s0 + $0x11d] sm:$0xff] }
 0x26f   :  { %14089 = vst [vmem:[#allocation159_spill] sm:$0xff] %v8271_v9  ;;  %v1650_v9 = vld [vmem:[%s13848_s0 + $0xae] sm:$0xff] }
 0x272   :  { %2541 = vrot.lane.b32.xlu2 %v1617_v43, %s6834_s10  ;;  %2539 = vrot.lane.b32.xlu1 %v1616_v59, %s6834_s10  ;;  %v1618_v59 = vld [vmem:[%s13848_s0 + $0xcd] sm:$0xff] }
 0x273   :  { %2537 = vrot.lane.b32.xlu0 %v1615_v32, %s6834_s10 }
 0x274   :  { %v8285_v33 = vpop.permute.xlu2 %2403  ;;  %v8287_v26 = vpop.permute.xlu1 %2383 }
 0x275   :  { %14090 = vst [vmem:[#allocation160_spill] sm:$0xff] %v8285_v33  ;;  %v8289_v57 = vpop.permute.xlu0 %2381  ;;  %v1622_v33 = vld [vmem:[%s13848_s0 + $0xed] sm:$0xff] }
 0x276   :  { %14091 = vst [vmem:[#allocation161_spill] sm:$0xff] %v8287_v26 }
 0x277   :  { %14092 = vst [vmem:[#allocation162_spill] sm:$0xff] %v8289_v57  ;;  %v1623_v57 = vld [vmem:[%s13848_s0 + $0xf5] sm:$0xff] }
 0x27a   :  { %2547 = vrot.lane.b32.xlu2 %v1620_v5, %s6834_s10  ;;  %2545 = vrot.lane.b32.xlu1 %v1619_v13, %s6834_s10  ;;  %v1621_v13 = vld [vmem:[%s13848_s0 + $0xe5] sm:$0xff] }
 0x27b   :  { %2543 = vrot.lane.b32.xlu0 %v1618_v59, %s6834_s10 }
 0x27c   :  { %v8303_v43 = vpop.permute.xlu2 %2409  ;;  %v8305_v32 = vpop.permute.xlu1 %2389 }
 0x27d   :  { %14093 = vst [vmem:[#allocation163_spill] sm:$0xff] %v8303_v43  ;;  %v8307_v26 = vpop.permute.xlu0 %2387  ;;  %v1625_v43 = vld [vmem:[%s13848_s0 + $0x105] sm:$0xff] }
 0x27e   :  { %14094 = vst [vmem:[#allocation164_spill] sm:$0xff] %v8305_v32  ;;  %v1626_v32 = vld [vmem:[%s13848_s0 + $0x10d] sm:$0xff] }
 0x27f   :  { %14095 = vst [vmem:[#allocation165_spill] sm:$0xff] %v8307_v26 }
 0x282   :  { %2553 = vrot.lane.b32.xlu2 %v1623_v57, %s6834_s10  ;;  %2551 = vrot.lane.b32.xlu1 %v1622_v33, %s6834_s10  ;;  %v1624_v57 = vld [vmem:[%s13848_s0 + $0xfd] sm:$0xff] }
 0x283   :  { %2549 = vrot.lane.b32.xlu0 %v1621_v13, %s6834_s10 }
 0x284   :  { %v8321_v5 = vpop.permute.xlu2 %2415  ;;  %v8323_v59 = vpop.permute.xlu1 %2395 }
 0x285   :  { %14096 = vst [vmem:[#allocation166_spill] sm:$0xff] %v8321_v5  ;;  %v8325_v26 = vpop.permute.xlu0 %2393 }
 0x28a   :  { %2559 = vrot.lane.b32.xlu2 %v1626_v32, %s6834_s10  ;;  %2557 = vrot.lane.b32.xlu1 %v1625_v43, %s6834_s10  ;;  %v1627_v43 = vld [vmem:[%s13848_s0 + $0x115] sm:$0xff] }
 0x28b   :  { %2555 = vrot.lane.b32.xlu0 %v1624_v57, %s6834_s10 }
 0x28c   :  { %v8339_v33 = vpop.permute.xlu2 %2421  ;;  %v8341_v13 = vpop.permute.xlu1 %2401 }
 0x28d   :  { %14097 = vst [vmem:[#allocation167_spill] sm:$0xff] %v8339_v33  ;;  %v8343_v5 = vpop.permute.xlu0 %2399 }
 0x28e   :  { %14098 = vst [vmem:[#allocation168_spill] sm:$0xff] %v8341_v13  ;;  %v1632_v13 = vld [vmem:[%s13848_s0 + $0x13d] sm:$0xff] }
 0x28f   :  { %14099 = vst [vmem:[#allocation169_spill] sm:$0xff] %v8343_v5  ;;  %v1646_v5 = vld [vmem:[%s13848_s0 + $0x8e] sm:$0xff] }
 0x292   :  { %2565 = vrot.lane.b32.xlu2 %v1629_v60, %s6834_s10  ;;  %2563 = vrot.lane.b32.xlu1 %v1628_v20, %s6834_s10  ;;  %v1630_v60 = vld [vmem:[%s13848_s0 + $0x12d] sm:$0xff] }
 0x293   :  { %2561 = vrot.lane.b32.xlu0 %v1627_v43, %s6834_s10 }
 0x294   :  { %v8357_v32 = vpop.permute.xlu1 %2407  ;;  %v8359_v57 = vpop.permute.xlu2 %2427 }
 0x295   :  { %14100 = vst [vmem:[#allocation170_spill] sm:$0xff] %v8357_v32  ;;  %v8361_v33 = vpop.permute.xlu0 %2405  ;;  %v1635_v32 = vld [vmem:[%s13848_s0 + $0x36] sm:$0xff] }
 0x296   :  { %14101 = vst [vmem:[#allocation171_spill] sm:$0xff] %v8359_v57 }
 0x297   :  { %14102 = vst [vmem:[#allocation172_spill] sm:$0xff] %v8361_v33  ;;  %v1634_v33 = vld [vmem:[%s13848_s0 + $0x2e] sm:$0xff] }
 0x29a   :  { %2571 = vrot.lane.b32.xlu2 %v1632_v13, %s6834_s10  ;;  %2569 = vrot.lane.b32.xlu1 %v1631_v8, %s6834_s10  ;;  %v1633_v8 = vld [vmem:[%s13848_s0 + $0x26] sm:$0xff] }
 0x29b   :  { %2567 = vrot.lane.b32.xlu0 %v1630_v60, %s6834_s10 }
 0x29c   :  { %v8375_v20 = vpop.permute.xlu1 %2413  ;;  %v8379_v57 = vpop.permute.xlu2 %2505 }
 0x29d   :  { %14103 = vst [vmem:[#allocation173_spill] sm:$0xff] %v8375_v20  ;;  %v8377_v43 = vpop.permute.xlu0 %2411  ;;  %v1637_v20 = vld [vmem:[%s13848_s0 + $0x46] sm:$0xff] }
 0x29e   :  { %14104 = vst [vmem:[#allocation174_spill] sm:$0xff] %v8377_v43  ;;  %v1638_v43 = vld [vmem:[%s13848_s0 + $0x4e] sm:$0xff] }
 0x2a2   :  { %2649 = vrot.lane.b32.xlu2 %v1635_v32, %s6835_s22  ;;  %2647 = vrot.lane.b32.xlu1 %v1634_v33, %s6835_s22  ;;  %v1636_v32 = vld [vmem:[%s13848_s0 + $0x3e] sm:$0xff] }
 0x2a3   :  { %2645 = vrot.lane.b32.xlu0 %v1633_v8, %s6835_s22 }
 0x2a4   :  { %v8393_v13 = vpop.permute.xlu1 %2419  ;;  %v8406_v28 = vpop.permute.xlu2 %2511 }
 0x2a5   :  { %14105 = vst [vmem:[#allocation175_spill] sm:$0xff] %v8393_v13  ;;  %v8395_v60 = vpop.permute.xlu0 %2417  ;;  %v1641_v13 = vld [vmem:[%s13848_s0 + $0x66] sm:$0xff] }
 0x2a6   :  { %14106 = vst [vmem:[#allocation176_spill] sm:$0xff] %v8395_v60  ;;  %v1640_v60 = vld [vmem:[%s13848_s0 + $0x5e] sm:$0xff] }
 0x2aa   :  { %2655 = vrot.lane.b32.xlu2 %v1638_v43, %s6835_s22  ;;  %2653 = vrot.lane.b32.xlu1 %v1637_v20, %s6835_s22  ;;  %v1639_v43 = vld [vmem:[%s13848_s0 + $0x56] sm:$0xff] }
 0x2ab   :  { %2651 = vrot.lane.b32.xlu0 %v1636_v32, %s6835_s22 }
 0x2ac   :  { %v8411_v33 = vpop.permute.xlu1 %2425  ;;  %v8426_v20 = vpop.permute.xlu2 %2517 }
 0x2ad   :  { %14107 = vst [vmem:[#allocation177_spill] sm:$0xff] %v8411_v33  ;;  %v8413_v8 = vpop.permute.xlu0 %2423  ;;  %v1644_v33 = vld [vmem:[%s13848_s0 + $0x7e] sm:$0xff] }
 0x2ae   :  { %14108 = vst [vmem:[#allocation178_spill] sm:$0xff] %v8413_v8 }
 0x2af   :  { %14109 = vst [vmem:[#allocation179_spill] sm:$0xff] %v8426_v20 }
 0x2b2   :  { %2661 = vrot.lane.b32.xlu2 %v1641_v13, %s6835_s22  ;;  %2659 = vrot.lane.b32.xlu1 %v1640_v60, %s6835_s22  ;;  %v1642_v13 = vld [vmem:[%s13848_s0 + $0x6e] sm:$0xff] }
 0x2b3   :  { %2657 = vrot.lane.b32.xlu0 %v1639_v43, %s6835_s22 }
 0x2b4   :  { %v8429_v32 = vpop.permute.xlu1 %2503  ;;  %v8447_v43 = vpop.permute.xlu2 %2523 }
 0x2b5   :  { %v8431_v8 = vpop.permute.xlu0 %2501  ;;  %14110 = vst [vmem:[#allocation180_spill] sm:$0xff] %v8447_v43 }
 0x2ba   :  { %2667 = vrot.lane.b32.xlu2 %v1644_v33, %s6835_s22  ;;  %2665 = vrot.lane.b32.xlu1 %v1643_v51, %s6835_s22  ;;  %v1645_v51 = vld [vmem:[%s13848_s0 + $0x86] sm:$0xff] }
 0x2bb   :  { %2663 = vrot.lane.b32.xlu0 %v1642_v13, %s6835_s22 }
 0x2bc   :  { %v8445_v60 = vpop.permute.xlu1 %2509  ;;  %v8467_v43 = vpop.permute.xlu2 %2529 }
 0x2bd   :  { %v8449_v42 = vpop.permute.xlu0 %2507  ;;  %14111 = vst [vmem:[#allocation181_spill] sm:$0xff] %v8467_v43  ;;  %v1653_v43 = vld [vmem:[%s13848_s0 + $0xc6] sm:$0xff] }
 0x2c2   :  { %2673 = vrot.lane.b32.xlu2 %v1647_v38, %s6835_s22  ;;  %2671 = vrot.lane.b32.xlu1 %v1646_v5, %s6835_s22  ;;  %v1648_v38 = vld [vmem:[%s13848_s0 + $0x9e] sm:$0xff] }
 0x2c3   :  { %2669 = vrot.lane.b32.xlu0 %v1645_v51, %s6835_s22 }
 0x2c4   :  { %v8463_v33 = vpop.permute.xlu1 %2515  ;;  %v8494_v20 = vpop.permute.xlu2 %2535 }
 0x2c5   :  { %v8465_v13 = vpop.permute.xlu0 %2513  ;;  %14114 = vst [vmem:[#allocation184_spill] sm:$0xff] %v8494_v20 }
 0x2ca   :  { %2679 = vrot.lane.b32.xlu2 %v1650_v9, %s6835_s22  ;;  %2677 = vrot.lane.b32.xlu1 %v1649_v16, %s6835_s22  ;;  %v1651_v9 = vld [vmem:[%s13848_s0 + $0xb6] sm:$0xff] }
 0x2cb   :  { %2675 = vrot.lane.b32.xlu0 %v1648_v38, %s6835_s22 }
 0x2cc   :  { %v8481_v5 = vpop.permute.xlu1 %2521 }
 0x2cd   :  { %14112 = vst [vmem:[#allocation182_spill] sm:$0xff] %v8481_v5  ;;  %v8483_v51 = vpop.permute.xlu0 %2519  ;;  %v1656_v5 = vld [vmem:[%s13848_s0 + $0xde] sm:$0xff] }
 0x2ce   :  { %14113 = vst [vmem:[#allocation183_spill] sm:$0xff] %v8483_v51  ;;  %v1655_v51 = vld [vmem:[%s13848_s0 + $0xd6] sm:$0xff] }
 0x2d2   :  { %2685 = vrot.lane.b32.xlu2 %v1653_v43, %s6835_s22  ;;  %2683 = vrot.lane.b32.xlu1 %v1652_v37, %s6835_s22  ;;  %v1654_v43 = vld [vmem:[%s13848_s0 + $0xce] sm:$0xff]  ;;  %v8514_v37 = vpop.permute.xlu2 %2541 }
 0x2d3   :  { %2681 = vrot.lane.b32.xlu0 %v1651_v9, %s6835_s22  ;;  %14117 = vst [vmem:[#allocation187_spill] sm:$0xff] %v8514_v37  ;;  %v1661_v37 = vld [vmem:[%s13848_s0 + $0x106] sm:$0xff] }
 0x2d4   :  { %v8499_v16 = vpop.permute.xlu1 %2527 }
 0x2d5   :  { %14115 = vst [vmem:[#allocation185_spill] sm:$0xff] %v8499_v16  ;;  %v8501_v38 = vpop.permute.xlu0 %2525  ;;  %v1659_v16 = vld [vmem:[%s13848_s0 + $0xf6] sm:$0xff] }
 0x2d6   :  { %14116 = vst [vmem:[#allocation186_spill] sm:$0xff] %v8501_v38  ;;  %v1658_v38 = vld [vmem:[%s13848_s0 + $0xee] sm:$0xff] }
 0x2da   :  { %2691 = vrot.lane.b32.xlu2 %v1656_v5, %s6835_s22  ;;  %2689 = vrot.lane.b32.xlu1 %v1655_v51, %s6835_s22  ;;  %v1657_v5 = vld [vmem:[%s13848_s0 + $0xe6] sm:$0xff] }
 0x2db   :  { %2687 = vrot.lane.b32.xlu0 %v1654_v43, %s6835_s22  ;;  %v8535_v43 = vpop.permute.xlu2 %2547 }
 0x2dc   :  { %v8517_v9 = vpop.permute.xlu1 %2533  ;;  %14120 = vst [vmem:[#allocation190_spill] sm:$0xff] %v8535_v43  ;;  %v1411_v43 = vld [vmem:[%s13849_s1 + $0x20] sm:$0xf] }
 0x2dd   :  { %14118 = vst [vmem:[#allocation188_spill] sm:$0xff] %v8517_v9  ;;  %v8519_v20 = vpop.permute.xlu0 %2531  ;;  %v1662_v9 = vld [vmem:[%s13848_s0 + $0x10e] sm:$0xff]  ;;  %6406 = vmatpush.msk.msra.mxu0 %vm3161_vm0, %v1411_v43  ;;  %6737 = vmatpush.msk.msra.mxu3 %vm3161_vm0, %v1411_v43 }
 0x2de   :  { %14119 = vst [vmem:[#allocation189_spill] sm:$0xff] %v8519_v20  ;;  %6699 = vmatpush.msk.msra.mxu1 %vm3161_vm0, %v1411_v43  ;;  %6742 = vmatpush.msk.msra.mxu2 %vm3161_vm0, %v1411_v43  ;;  %v1408_v43 = vld [vmem:[%s13849_s1 + $0x8] sm:$0xff] }
 0x2df   :  { %3177 = vmatpush.msra.mxu0 %v1410_v19  ;;  %6738 = vmatpush.msra.mxu3 %v1410_v19 }
 0x2e0   :  { %5350 = vmatpush.msra.mxu1 %v1410_v19  ;;  %6743 = vmatpush.msra.mxu2 %v1410_v19  ;;  %v1407_v19 = vld [vmem:[%s13849_s1] sm:$0xff] }
 0x2e2   :  { %2697 = vrot.lane.b32.xlu2 %v1659_v16, %s6835_s22  ;;  %2695 = vrot.lane.b32.xlu1 %v1658_v38, %s6835_s22  ;;  %v1660_v16 = vld [vmem:[%s13848_s0 + $0xfe] sm:$0xff] }
 0x2e3   :  { %2693 = vrot.lane.b32.xlu0 %v1657_v5, %s6835_s22 }
 0x2e4   :  { %v8533_v51 = vpop.permute.xlu1 %2539 }
 0x2e5   :  { %v8537_v20 = vpop.permute.xlu0 %2537 }
 0x2ea   :  { %2703 = vrot.lane.b32.xlu2 %v1662_v9, %s6835_s22  ;;  %2701 = vrot.lane.b32.xlu1 %v1661_v37, %s6835_s22  ;;  %v8561_v9 = vpop.permute.xlu2 %2553  ;;  %v1665_v37 = vld [vmem:[%s13848_s0 + $0x126] sm:$0xff] }
 0x2eb   :  { %2699 = vrot.lane.b32.xlu0 %v1660_v16, %s6835_s22  ;;  %14123 = vst [vmem:[#allocation193_spill] sm:$0xff] %v8561_v9  ;;  %v1664_v16 = vld [vmem:[%s13848_s0 + $0x11e] sm:$0xff] }
 0x2ec   :  { %v8551_v38 = vpop.permute.xlu1 %2545 }
 0x2ed   :  { %14121 = vst [vmem:[#allocation191_spill] sm:$0xff] %v8551_v38  ;;  %v8553_v5 = vpop.permute.xlu0 %2543  ;;  %v1663_v38 = vld [vmem:[%s13848_s0 + $0x116] sm:$0xff] }
 0x2ee   :  { %14122 = vst [vmem:[#allocation192_spill] sm:$0xff] %v8553_v5  ;;  %v1409_v5 = vld [vmem:[%s13849_s1 + $0x10] sm:$0xff] }
 0x2ef   :  { %3178 = vmatpush.msra.mxu0 %v1409_v5  ;;  %6739 = vmatpush.msra.mxu3 %v1409_v5 }
 0x2f0   :  { %5351 = vmatpush.msra.mxu1 %v1409_v5  ;;  %6744 = vmatpush.msra.mxu2 %v1409_v5 }
 0x2f1   :  { %3179 = vmatpush.msra.mxu0 %v1408_v43  ;;  %6740 = vmatpush.msra.mxu3 %v1408_v43 }
 0x2f2   :  { %2709 = vrot.lane.b32.xlu2 %v1665_v37, %s6835_s22  ;;  %2707 = vrot.lane.b32.xlu1 %v1664_v16, %s6835_s22  ;;  %v1667_v37 = vld [vmem:[%s13848_s0 + $0x136] sm:$0xff]  ;;  %v1666_v16 = vld [vmem:[%s13848_s0 + $0x12e] sm:$0xff] }
 0x2f3   :  { %2705 = vrot.lane.b32.xlu0 %v1663_v38, %s6835_s22  ;;  %5352 = vmatpush.msra.mxu1 %v1408_v43  ;;  %v1668_v38 = vld [vmem:[%s13848_s0 + $0x13e] sm:$0xff] }
 0x2f4   :  { %v8581_v9 = vpop.permute.xlu1 %2551  ;;  %3180 = vmatpush.msra.mxu0 %v1407_v19  ;;  %6745 = vmatpush.msra.mxu2 %v1408_v43  ;;  %v6481_v43 = vld [vmem:[%s13848_s0 + $0x159] sm:$0xff] }
 0x2f5   :  { %14124 = vst [vmem:[#allocation194_spill] sm:$0xff] %v8581_v9  ;;  %v8583_v10 = vpop.permute.xlu0 %2549  ;;  %6741 = vmatpush.msra.mxu3 %v1407_v19  ;;  %5353 = vmatpush.msra.mxu1 %v1407_v19  ;;  %v8597_v9 = vpop.permute.xlu2 %2559 }
 0x2f6   :  { %14125 = vst [vmem:[#allocation195_spill] sm:$0xff] %v8583_v10  ;;  %6746 = vmatpush.msra.mxu2 %v1407_v19  ;;  %v6479_v19 = vld [vmem:[%s13848_s0 + $0x149] sm:$0xff] }
 0x2f7   :  { %14126 = vst [vmem:[#allocation196_spill] sm:$0xff] %v8597_v9  ;;  %v6484_v9 = vld [vmem:[%s13848_s0 + $0x171] sm:$0xff] }
 0x2fa   :  { %2715 = vrot.lane.b32.xlu2 %v1668_v38, %s6835_s22  ;;  %2713 = vrot.lane.b32.xlu1 %v1667_v37, %s6835_s22 }
 0x2fb   :  { %2711 = vrot.lane.b32.xlu0 %v1666_v16, %s6835_s22 }
 0x2fc   :  { %v8602_v5 = vpop.permute.xlu1 %2557 }
 0x2fd   :  { %14127 = vst [vmem:[#allocation197_spill] sm:$0xff] %v8602_v5  ;;  %v8604_v10 = vpop.permute.xlu0 %2555  ;;  %v8617_v38 = vpop.permute.xlu2 %2565  ;;  %v6483_v5 = vld [vmem:[%s13848_s0 + $0x169] sm:$0xff] }
 0x2fe   :  { %14128 = vst [vmem:[#allocation198_spill] sm:$0xff] %v8604_v10  ;;  %v14171_v10 = vld [vmem:[#allocation72_spill] sm:$0xff] }
 0x2ff   :  { %14129 = vst [vmem:[#allocation199_spill] sm:$0xff] %v8617_v38 }
 0x302   :  { %3898 = vrot.lane.b32.xlu2 %v6481_v43, %s6828_s30  ;;  %3896 = vrot.lane.b32.xlu1 %v6480_v11, %s6828_s30  ;;  %v6482_v11 = vld [vmem:[%s13848_s0 + $0x161] sm:$0xff] }
 0x303   :  { %3894 = vrot.lane.b32.xlu0 %v6479_v19, %s6828_s30  ;;  %v1413_v43 = vld [vmem:[%s13848_s0] sm:$0xff] }
 0x304   :  { %v8620_v37 = vpop.permute.xlu1 %2563 }
 0x305   :  { %14130 = vst [vmem:[#allocation200_spill] sm:$0xff] %v8620_v37  ;;  %v8622_v16 = vpop.permute.xlu0 %2561  ;;  %v8641_v38 = vpop.permute.xlu2 %2571 }
 0x306   :  { %14131 = vst [vmem:[#allocation201_spill] sm:$0xff] %v8622_v16  ;;  %v2754_v16 = vsel %vm2753_vm1, %v1413_v43, %v7090_v50 }
 0x307   :  { %14133 = vst [vmem:[#allocation203_spill] sm:$0xff] %v8641_v38  ;;  %v6485_v38 = vld [vmem:[%s13848_s0 + $0x179] sm:$0xff] }
 0x30a   :  { %3904 = vrot.lane.b32.xlu2 %v6484_v9, %s6828_s30  ;;  %3902 = vrot.lane.b32.xlu1 %v6483_v5, %s6828_s30  ;;  %v6487_v9 = vld [vmem:[%s13848_s0 + $0x189] sm:$0xff]  ;;  %v6486_v5 = vld [vmem:[%s13848_s0 + $0x181] sm:$0xff] }
 0x30b   :  { %3900 = vrot.lane.b32.xlu0 %v6482_v11, %s6828_s30  ;;  %v2791_v11 = vsel %vm2790_vm2, %v2754_v16, %v7369_v41  ;;  %v1414_v16 = vld [vmem:[%s13848_s0 + $0x8] sm:$0xff] }
 0x30c   :  { %v8639_v19 = vpop.permute.xlu1 %2569  ;;  %v2828_v50 = vsel %vm2827_vm3, %v2791_v11, %v7535_v23 }
 0x30d   :  { %14132 = vst [vmem:[#allocation202_spill] sm:$0xff] %v8639_v19  ;;  %v8643_v37 = vpop.permute.xlu0 %2567  ;;  %v2865_v43 = vsel %vm2864_vm4, %v2828_v50, %v7772_v18  ;;  %v2650_v11 = vpop.permute.xlu2 %2649  ;;  %v6489_v50 = vld [vmem:[%s13848_s0 + $0x199] sm:$0xff] }
 0x30e   :  { %14134 = vst [vmem:[#allocation204_spill] sm:$0xff] %v8643_v37  ;;  %v2902_v41 = vsel %vm2901_vm5, %v2865_v43, %v8051_v24  ;;  %v6488_v43 = vld [vmem:[%s13848_s0 + $0x191] sm:$0xff] }
 0x30f   :  { %v2939_v23 = vsel %vm2938_vm6, %v2902_v41, %v8217_v3  ;;  %v6490_v3 = vld [vmem:[%s13848_s0 + $0x1a1] sm:$0xff]  ;;  %v14168_v37 = vld [vmem:[#allocation53_spill] sm:$0xff] }
 0x312   :  { %3910 = vrot.lane.b32.xlu2 %v6487_v9, %s6828_s30  ;;  %3908 = vrot.lane.b32.xlu1 %v6486_v5, %s6828_s30  ;;  %v2976_v9 = vsel %vm2975_vm7, %v2939_v23, %v8431_v8 }
 0x313   :  { %3906 = vrot.lane.b32.xlu0 %v6485_v38, %s6828_s30  ;;  %v2755_v38 = vsel %vm2753_vm1, %v1414_v16, %v7117_v56 }
 0x314   :  { %v2648_v18 = vpop.permute.xlu1 %2647  ;;  %v2792_v8 = vsel %vm2790_vm2, %v2755_v38, %v7367_v47  ;;  %v1415_v47 = vld [vmem:[%s13848_s0 + $0x10] sm:$0xff] }
 0x315   :  { %v2646_v5 = vpop.permute.xlu0 %2645  ;;  %v2829_v56 = vsel %vm2827_vm3, %v2792_v8, %v7533_v30 }
 0x316   :  { %v3013_v24 = vsel %vm13891_vm9, %v2976_v9, %v2646_v5  ;;  %v2866_v41 = vsel %vm2864_vm4, %v2829_v56, %v7770_v31 }
 0x317   :  { %6407 = vmatmul.msk.f32.vlgmr.msra.gmra.mxu0 %vm13870_vm8, %v3013_v24  ;;  %v2903_v16 = vsel %vm2901_vm5, %v2866_v41, %v8049_v1  ;;  %v2756_v1 = vsel %vm2753_vm1, %v1415_v47, %v7088_v49  ;;  %v6493_v24 = vld [vmem:[%s13848_s0 + $0x1b9] sm:$0xff]  ;;  %v6496_v41 = vld [vmem:[%s13848_s0 + $0x1d1] sm:$0xff] }
 0x318   :  { %v2940_v23 = vsel %vm2938_vm6, %v2903_v16, %v8215_v4  ;;  %v6492_v4 = vld [vmem:[%s13848_s0 + $0x1b1] sm:$0xff]  ;;  %v2793_v38 = vsel %vm2790_vm2, %v2756_v1, %v7329_v34 }
 0x319   :  { %v2977_v31 = vsel %vm2975_vm7, %v2940_v23, %v8429_v32  ;;  %v6491_v32 = vld [vmem:[%s13848_s0 + $0x1a9] sm:$0xff]  ;;  %v2830_v49 = vsel %vm2827_vm3, %v2793_v38, %v7477_v29  ;;  %v1416_v34 = vld [vmem:[%s13848_s0 + $0x18] sm:$0xff] }
 0x31a   :  { %3916 = vrot.lane.b32.xlu2 %v6490_v3, %s6828_s30  ;;  %3914 = vrot.lane.b32.xlu1 %v6489_v50, %s6828_s30  ;;  %v3014_v5 = vsel %vm13891_vm9, %v2977_v31, %v2648_v18  ;;  %v8724_v18 = vpop.permute.xlu2 %2655  ;;  %v2867_v3 = vsel %vm2864_vm4, %v2830_v49, %v7693_v12  ;;  %v1418_v38 = vld [vmem:[%s13848_s0 + $0x28] sm:$0xff] }
 0x31b   :  { %3912 = vrot.lane.b32.xlu0 %v6488_v43, %s6828_s30  ;;  %v2904_v50 = vsel %vm2901_vm5, %v2867_v3, %v8011_v63  ;;  %v2757_v63 = vsel %vm2753_vm1, %v1416_v34, %v7115_v55  ;;  %v1430_v49 = vld [vmem:[%s13848_s0 + $0x88] sm:$0xff]  ;;  %v1420_v3 = vld [vmem:[%s13848_s0 + $0x38] sm:$0xff]  ;;  %v1433_v34 = vld [vmem:[%s13848_s0 + $0xa0] sm:$0xff] }
 0x31c   :  { %v8703_v30 = vpop.permute.xlu1 %2653  ;;  %v2941_v29 = vsel %vm2938_vm6, %v2904_v50, %v8159_v62  ;;  %v6495_v62 = vld [vmem:[%s13848_s0 + $0x1c9] sm:$0xff] }
 0x31d   :  { %v2652_v9 = vpop.permute.xlu0 %2651  ;;  %v2978_v12 = vsel %vm2975_vm7, %v2941_v29, %v8379_v57  ;;  %v2794_v57 = vsel %vm2790_vm2, %v2757_v63, %v7381_v45  ;;  %v1417_v45 = vld [vmem:[%s13848_s0 + $0x20] sm:$0xff]  ;;  %v1423_v29 = vld [vmem:[%s13848_s0 + $0x50] sm:$0xff] }
 0x31e   :  { %v3015_v56 = vsel %vm13891_vm9, %v2978_v12, %v2650_v11  ;;  %v6494_v11 = vld [vmem:[%s13848_s0 + $0x1c1] sm:$0xff]  ;;  %v2831_v55 = vsel %vm2827_vm3, %v2794_v57, %v7553_v39  ;;  %v2758_v1 = vsel %vm2753_vm1, %v1417_v45, %v7023_v36 }
 0x31f   :  { %6408 = vmatmul.msk.f32.gmra.mxu0 %vm13870_vm8, %v3014_v5  ;;  %v2868_v16 = vsel %vm2864_vm4, %v2831_v55, %v7799_v46  ;;  %v1425_v55 = vld [vmem:[%s13848_s0 + $0x60] sm:$0xff] }
 0x320   :  { %v2905_v47 = vsel %vm2901_vm5, %v2868_v16, %v8063_v6  ;;  %v14138_v45 = vld [vmem:[#allocation8_spill] sm:$0xff] }
 0x321   :  { %v2942_v39 = vsel %vm2938_vm6, %v2905_v47, %v8235_v21  ;;  %v6498_v21 = vld [vmem:[%s13848_s0 + $0x1e1] sm:$0xff] }
 0x322   :  { %3922 = vrot.lane.b32.xlu2 %v6493_v24, %s6828_s30  ;;  %3920 = vrot.lane.b32.xlu1 %v6492_v4, %s6828_s30  ;;  %v8767_v23 = vpop.permute.xlu2 %2661  ;;  %v2979_v46 = vsel %vm2975_vm7, %v2942_v39, %v8449_v42  ;;  %v6499_v24 = vld [vmem:[%s13848_s0 + $0x1e9] sm:$0xff]  ;;  %v2795_v42 = vsel %vm2790_vm2, %v2758_v1, %v7379_v53  ;;  %v1421_v53 = vld [vmem:[%s13848_s0 + $0x40] sm:$0xff]  ;;  %v8879_v39 = vsel %vm2753_vm1, %v1430_v49, %v14138_v45 }
 0x323   :  { %3918 = vrot.lane.b32.xlu0 %v6491_v32, %s6828_s30  ;;  %v3016_v6 = vsel %vm13891_vm9, %v2979_v46, %v2652_v9  ;;  %v6497_v9 = vld [vmem:[%s13848_s0 + $0x1d9] sm:$0xff]  ;;  %v2832_v36 = vsel %vm2827_vm3, %v2795_v42, %v7551_v17  ;;  %v6502_v47 = vld [vmem:[%s13848_s0 + $0x201] sm:$0xff]  ;;  %v1439_v46 = vld [vmem:[%s13848_s0 + $0xd0] sm:$0xff] }
 0x324   :  { %v8738_v8 = vpop.permute.xlu1 %2659  ;;  %v2869_v4 = vsel %vm2864_vm4, %v2832_v36, %v7797_v52  ;;  %v1424_v32 = vld [vmem:[%s13848_s0 + $0x58] sm:$0xff]  ;;  %v1427_v52 = vld [vmem:[%s13848_s0 + $0x70] sm:$0xff]  ;;  %v14144_v49 = vld [vmem:[#allocation12_spill] sm:$0xff] }
 0x325   :  { %v8742_v43 = vpop.permute.xlu0 %2657  ;;  %v2906_v17 = vsel %vm2901_vm5, %v2869_v4, %v8061_v58  ;;  %v1419_v58 = vld [vmem:[%s13848_s0 + $0x30] sm:$0xff]  ;;  %v14139_v1 = vld [vmem:[#allocation31_spill] sm:$0xff] }
 0x326   :  { %v2943_v50 = vsel %vm2938_vm6, %v2906_v17, %v8233_v15  ;;  %v1422_v15 = vld [vmem:[%s13848_s0 + $0x48] sm:$0xff]  ;;  %v14141_v42 = vld [vmem:[#allocation10_spill] sm:$0xff]  ;;  %v14142_v36 = vld [vmem:[#allocation11_spill] sm:$0xff] }
 0x327   :  { %6409 = vmatmul.msk.f32.gmra.mxu0 %vm13870_vm8, %v3015_v56  ;;  %v2980_v12 = vsel %vm2975_vm7, %v2943_v50, %v8445_v60  ;;  %v2759_v60 = vsel %vm2753_vm1, %v1418_v38, %v7040_v40  ;;  %v6501_v40 = vld [vmem:[%s13848_s0 + $0x1f9] sm:$0xff]  ;;  %v8900_v4 = vsel %vm2753_vm1, %v1433_v34, %v14142_v36  ;;  %v14145_v50 = vld [vmem:[#allocation13_spill] sm:$0xff] }
 0x328   :  { %v3017_v57 = vsel %vm13891_vm9, %v2980_v12, %v8703_v30  ;;  %v8875_v30 = vsel %vm2753_vm1, %v1427_v52, %v7113_v54  ;;  %v6500_v54 = vld [vmem:[%s13848_s0 + $0x1f1] sm:$0xff]  ;;  %v1445_v12 = vld [vmem:[%s13848_s0 + $0x100] sm:$0xff] }
 0x329   :  { %v1428_v38 = vld [vmem:[%s13848_s0 + $0x78] sm:$0xff]  ;;  %v1431_v34 = vld [vmem:[%s13848_s0 + $0x90] sm:$0xff] }
 0x32a   :  { %3928 = vrot.lane.b32.xlu2 %v6496_v41, %s6828_s30  ;;  %3926 = vrot.lane.b32.xlu1 %v6495_v62, %s6828_s30  ;;  %v8836_v56 = vpop.permute.xlu2 %2667  ;;  %v1436_v41 = vld [vmem:[%s13848_s0 + $0xb8] sm:$0xff]  ;;  %v1426_v62 = vld [vmem:[%s13848_s0 + $0x68] sm:$0xff] }
 0x32b   :  { %3924 = vrot.lane.b32.xlu0 %v6494_v11, %s6828_s30  ;;  %14135 = vst [vmem:[#allocation205_spill] sm:$0xff] %v8836_v56  ;;  %v8855_v11 = vsel %vm2753_vm1, %v1421_v53, %v7063_v44  ;;  %v8871_v44 = vsel %vm2753_vm1, %v1424_v32, %v7086_v48  ;;  %v2796_v48 = vsel %vm2790_vm2, %v2759_v60, %v14139_v1  ;;  %v1442_v53 = vld [vmem:[%s13848_s0 + $0xe8] sm:$0xff]  ;;  %v1432_v32 = vld [vmem:[%s13848_s0 + $0x98] sm:$0xff] }
 0x32c   :  { %v8777_v31 = vpop.permute.xlu1 %2665  ;;  %v14143_v17 = vld [vmem:[#allocation62_spill] sm:$0xff] }
 0x32d   :  { %v8779_v5 = vpop.permute.xlu0 %2663  ;;  %v2833_v52 = vsel %vm2827_vm3, %v2796_v48, %v14143_v17  ;;  %v14149_v48 = vld [vmem:[#allocation16_spill] sm:$0xff]  ;;  %v14151_v36 = vld [vmem:[#allocation18_spill] sm:$0xff] }
 0x32f   :  { %6410 = vmatmul.msk.f32.gmra.mxu0 %vm13870_vm8, %v3016_v6  ;;  %v1429_v6 = vld [vmem:[%s13848_s0 + $0x80] sm:$0xff] }
 0x330   :  { %v8961_v17 = vsel %vm2753_vm1, %v1429_v6, %v14151_v36  ;;  %v14158_v36 = vld [vmem:[#allocation24_spill] sm:$0xff] }
 0x332   :  { %3934 = vrot.lane.b32.xlu2 %v6499_v24, %s6828_s30  ;;  %3932 = vrot.lane.b32.xlu1 %v6498_v21, %s6828_s30  ;;  %v14140_v24 = vld [vmem:[#allocation9_spill] sm:$0xff] }
 0x333   :  { %3930 = vrot.lane.b32.xlu0 %v6497_v9, %s6828_s30  ;;  %v8894_v21 = vsel %vm2753_vm1, %v1420_v3, %v14140_v24  ;;  %v2760_v9 = vsel %vm2753_vm1, %v1419_v58, %v14141_v42  ;;  %v8915_v3 = vsel %vm2753_vm1, %v1423_v29, %v14144_v49  ;;  %v8919_v58 = vsel %vm2753_vm1, %v1422_v15, %v14145_v50  ;;  %v14147_v29 = vld [vmem:[#allocation14_spill] sm:$0xff]  ;;  %v14148_v15 = vld [vmem:[#allocation15_spill] sm:$0xff]  ;;  %v1438_v50 = vld [vmem:[%s13848_s0 + $0xc8] sm:$0xff] }
 0x334   :  { %v8860_v16 = vpop.permute.xlu1 %2671  ;;  %v8933_v45 = vsel %vm2753_vm1, %v1436_v41, %v14147_v29  ;;  %v8937_v1 = vsel %vm2753_vm1, %v1426_v62, %v14148_v15  ;;  %v8941_v24 = vsel %vm2753_vm1, %v1425_v55, %v14149_v48  ;;  %v1435_v42 = vld [vmem:[%s13848_s0 + $0xb0] sm:$0xff]  ;;  %v1448_v41 = vld [vmem:[%s13848_s0 + $0x118] sm:$0xff] }
 0x335   :  { %v8838_v63 = vpop.permute.xlu0 %2669  ;;  %14137 = vst [vmem:[#allocation207_spill] sm:$0xff] %v8860_v16  ;;  %v14155_v29 = vld [vmem:[#allocation22_spill] sm:$0xff] }
 0x336   :  { %14136 = vst [vmem:[#allocation206_spill] sm:$0xff] %v8838_v63  ;;  %v2772_v15 = vsel %vm2753_vm1, %v1431_v34, %v14155_v29  ;;  %v1440_v48 = vld [vmem:[%s13848_s0 + $0xd8] sm:$0xff]  ;;  %v14159_v34 = vld [vmem:[#allocation25_spill] sm:$0xff] }
 0x337   :  { %6411 = vmatmul.msk.f32.gmra.mxu0 %vm13870_vm8, %v3017_v57  ;;  %v14146_v57 = vld [vmem:[#allocation93_spill] sm:$0xff]  ;;  %v2809_v19 = vsel %vm2790_vm2, %v2772_v15, %v14168_v37  ;;  %v14173_v15 = vld [vmem:[#allocation35_spill] sm:$0xff] }
 0x338   :  { %v2870_v60 = vsel %vm2864_vm4, %v2833_v52, %v14146_v57  ;;  %v14152_v52 = vld [vmem:[#allocation19_spill] sm:$0xff] }
 0x339   :  { %v2907_v62 = vsel %vm2901_vm5, %v2870_v60, %v8023_v61  ;;  %v8965_v49 = vsel %vm2753_vm1, %v1428_v38, %v14152_v52  ;;  %v1437_v61 = vld [vmem:[%s13848_s0 + $0xc0] sm:$0xff]  ;;  %v14154_v38 = vld [vmem:[#allocation21_spill] sm:$0xff]  ;;  %v9002_v52 = vsel %vm2753_vm1, %v1435_v42, %v14158_v36 }
 0x33a   :  { %3940 = vrot.lane.b32.xlu2 %v6502_v47, %s6828_s30  ;;  %3938 = vrot.lane.b32.xlu1 %v6501_v40, %s6828_s30  ;;  %v1434_v47 = vld [vmem:[%s13848_s0 + $0xa8] sm:$0xff]  ;;  %v2944_v6 = vsel %vm2938_vm6, %v2907_v62, %v8177_v35  ;;  %v8984_v60 = vsel %vm2753_vm1, %v1432_v32, %v14154_v38  ;;  %v14157_v62 = vld [vmem:[#allocation23_spill] sm:$0xff]  ;;  %v1443_v38 = vld [vmem:[%s13848_s0 + $0xf0] sm:$0xff] }
 0x33b   :  { %3936 = vrot.lane.b32.xlu0 %v6500_v54, %s6828_s30  ;;  %v14150_v40 = vld [vmem:[#allocation17_spill] sm:$0xff]  ;;  %v14153_v54 = vld [vmem:[#allocation20_spill] sm:$0xff]  ;;  %v2981_v35 = vsel %vm2975_vm7, %v2944_v6, %v8406_v28  ;;  %v2786_v32 = vsel %vm2753_vm1, %v1445_v12, %v14157_v62  ;;  %v14160_v6 = vld [vmem:[#allocation26_spill] sm:$0xff] }
 0x33c   :  { %v8957_v55 = vsel %vm2753_vm1, %v1439_v46, %v14150_v40  ;;  %v1441_v46 = vld [vmem:[%s13848_s0 + $0xe0] sm:$0xff]  ;;  %v8980_v57 = vsel %vm2753_vm1, %v1442_v53, %v14153_v54  ;;  %v1444_v40 = vld [vmem:[%s13848_s0 + $0xf8] sm:$0xff]  ;;  %v9006_v54 = vsel %vm2753_vm1, %v1434_v47, %v14159_v34  ;;  %v3018_v28 = vsel %vm13891_vm9, %v2981_v35, %v8724_v18  ;;  %v14163_v47 = vld [vmem:[#allocation29_spill] sm:$0xff]  ;;  %v9032_v35 = vpop.permute.xlu2 %2673  ;;  %v9072_v37 = vpop.permute.xlu1 %2677 }
 0x33d   :  { %v8996_v53 = vpop.permute.xlu0 %2675  ;;  %v9015_v29 = vsel %vm2753_vm1, %v1448_v41, %v14160_v6  ;;  %v14161_v12 = vld [vmem:[#allocation27_spill] sm:$0xff]  ;;  %v14162_v42 = vld [vmem:[#allocation28_spill] sm:$0xff]  ;;  %v9027_v34 = vsel %vm2753_vm1, %v1441_v46, %v14163_v47  ;;  %v1447_v18 = vld [vmem:[%s13848_s0 + $0x110] sm:$0xff]  ;;  %14164 = vst [vmem:[#allocation31_spill] sm:$0xff] %v9032_v35 }
 0x33e   :  { %14156 = vst [vmem:[#allocation8_spill] sm:$0xff] %v8996_v53  ;;  %v9019_v62 = vsel %vm2753_vm1, %v1438_v50, %v14161_v12  ;;  %v9023_v36 = vsel %vm2753_vm1, %v1437_v61, %v14162_v42  ;;  %v6505_v41 = vld [vmem:[%s13848_s0 + $0x219] sm:$0xff]  ;;  %v6504_v50 = vld [vmem:[%s13848_s0 + $0x211] sm:$0xff]  ;;  %v14166_v6 = vld [vmem:[#allocation32_spill] sm:$0xff]  ;;  %v9076_v16 = vsel %vm2753_vm1, %v1447_v18, %v14173_v15 }
 0x33f   :  { %6412 = vmatmul.msk.f32.gmra.mxu0 %vm13870_vm8, %v3018_v28  ;;  %v14165_v61 = vld [vmem:[#allocation30_spill] sm:$0xff]  ;;  %v9047_v12 = vsel %vm2753_vm1, %v1444_v40, %v14166_v6  ;;  %v1446_v28 = vld [vmem:[%s13848_s0 + $0x108] sm:$0xff]  ;;  %v14174_v63 = vld [vmem:[#allocation103_spill] sm:$0xff] }
 0x340   :  { %v9043_v46 = vsel %vm2753_vm1, %v1440_v48, %v14165_v61  ;;  %v14167_v42 = vld [vmem:[#allocation41_spill] sm:$0xff]  ;;  %v14170_v40 = vld [vmem:[#allocation34_spill] sm:$0xff] }
 0x341   :  { %v2797_v47 = vsel %vm2790_vm2, %v2760_v9, %v14167_v42  ;;  %v6503_v53 = vld [vmem:[%s13848_s0 + $0x209] sm:$0xff]  ;;  %v9066_v6 = vsel %vm2790_vm2, %v8855_v11, %v14170_v40 }
 0x342   :  { %v14169_v48 = vld [vmem:[#allocation33_spill] sm:$0xff]  ;;  %v2834_v35 = vsel %vm2827_vm3, %v2797_v47, %v14171_v10  ;;  %v14172_v9 = vld [vmem:[#allocation84_spill] sm:$0xff]  ;;  %3946 = vrot.lane.b32.xlu2 %v6505_v41, %s6828_s30  ;;  %3944 = vrot.lane.b32.xlu1 %v6504_v50, %s6828_s30  ;;  %v14179_v50 = vld [vmem:[#allocation39_spill] sm:$0xff] }
 0x343   :  { %v9061_v61 = vsel %vm2753_vm1, %v1443_v38, %v14169_v48  ;;  %v2846_v42 = vsel %vm2827_vm3, %v2809_v19, %v14172_v9  ;;  %v2871_v38 = vsel %vm2864_vm4, %v2834_v35, %v14174_v63  ;;  %v14175_v48 = vld [vmem:[#allocation115_spill] sm:$0xff]  ;;  %v14176_v10 = vld [vmem:[#allocation36_spill] sm:$0xff]  ;;  %v14177_v19 = vld [vmem:[#allocation37_spill] sm:$0xff]  ;;  %3942 = vrot.lane.b32.xlu0 %v6503_v53, %s6828_s30 }
 0x344   :  { %v2883_v56 = vsel %vm2864_vm4, %v2846_v42, %v14175_v48  ;;  %v2787_v11 = vsel %vm2753_vm1, %v1446_v28, %v14176_v10  ;;  %v9089_v47 = vsel %vm2790_vm2, %v8871_v44, %v14177_v19  ;;  %v2908_v18 = vsel %vm2901_vm5, %v2871_v38, %v8075_v0  ;;  %v14178_v35 = vld [vmem:[#allocation38_spill] sm:$0xff]  ;;  %v14180_v0 = vld [vmem:[#allocation40_spill] sm:$0xff]  ;;  %v14182_v42 = vld [vmem:[#allocation43_spill] sm:$0xff] }
 0x345   :  { %v2920_v63 = vsel %vm2901_vm5, %v2883_v56, %v8123_v22  ;;  %v2805_v41 = vsel %vm2790_vm2, %v8875_v30, %v14178_v35  ;;  %v2808_v28 = vsel %vm2790_vm2, %v8879_v39, %v14179_v50  ;;  %v2945_v44 = vsel %vm2938_vm6, %v2908_v18, %v8253_v2  ;;  %v14181_v56 = vld [vmem:[#allocation42_spill] sm:$0xff]  ;;  %v2682_v9 = vpop.permute.xlu0 %2681  ;;  %v14184_v38 = vld [vmem:[#allocation45_spill] sm:$0xff]  ;;  %v14186_v10 = vld [vmem:[#allocation47_spill] sm:$0xff] }
 0x346   :  { %v2957_v40 = vsel %vm2938_vm6, %v2920_v63, %v8325_v26  ;;  %v2798_v22 = vsel %vm2790_vm2, %v8894_v21, %v14180_v0  ;;  %v2811_v53 = vsel %vm2790_vm2, %v8900_v4, %v14181_v56  ;;  %v2982_v30 = vsel %vm2975_vm7, %v2945_v44, %v8465_v13  ;;  %v14183_v26 = vld [vmem:[#allocation44_spill] sm:$0xff]  ;;  %v14185_v48 = vld [vmem:[#allocation46_spill] sm:$0xff]  ;;  %v14188_v19 = vld [vmem:[#allocation49_spill] sm:$0xff] }
 0x347   :  { %v2994_v39 = vsel %vm2975_vm7, %v2957_v40, %v8537_v20  ;;  %v2801_v2 = vsel %vm2790_vm2, %v8915_v3, %v14182_v42  ;;  %v2800_v15 = vsel %vm2790_vm2, %v8919_v58, %v14183_v26  ;;  %v3019_v21 = vsel %vm13891_vm9, %v2982_v30, %v8742_v43  ;;  %v6508_v43 = vld [vmem:[%s13848_s0 + $0x231] sm:$0xff]  ;;  %v6507_v58 = vld [vmem:[%s13848_s0 + $0x229] sm:$0xff]  ;;  %v6506_v44 = vld [vmem:[%s13848_s0 + $0x221] sm:$0xff] }
 0x348   :  { %v3031_v4 = vsel %vm13891_vm9, %v2994_v39, %v2682_v9  ;;  %v2814_v13 = vsel %vm2790_vm2, %v8933_v45, %v14184_v38  ;;  %v2804_v20 = vsel %vm2790_vm2, %v8937_v1, %v14185_v48  ;;  %v2803_v3 = vsel %vm2790_vm2, %v8941_v24, %v14186_v10  ;;  %6413 = vmatmul.msk.f32.gmra.mxu0 %vm13870_vm8, %v3019_v21  ;;  %v14187_v45 = vld [vmem:[#allocation48_spill] sm:$0xff]  ;;  %v14189_v18 = vld [vmem:[#allocation50_spill] sm:$0xff]  ;;  %v14191_v40 = vld [vmem:[#allocation51_spill] sm:$0xff]  ;;  %v9166_v9 = vpop.permute.xlu2 %2679 }
 0x349   :  { %6425 = vmatmul.msk.f32.vlgmr.msra.gmra.mxu3 %vm13870_vm8, %v3031_v4  ;;  %v2817_v1 = vsel %vm2790_vm2, %v8957_v55, %v14187_v45  ;;  %v2807_v24 = vsel %vm2790_vm2, %v8961_v17, %v14188_v19  ;;  %v2806_v63 = vsel %vm2790_vm2, %v8965_v49, %v14189_v18  ;;  %v14190_v35 = vld [vmem:[#allocation52_spill] sm:$0xff]  ;;  %v2820_v55 = vsel %vm2790_vm2, %v8980_v57, %v14191_v40  ;;  %v14192_v0 = vld [vmem:[#allocation54_spill] sm:$0xff]  ;;  %v14193_v17 = vld [vmem:[#allocation71_spill] sm:$0xff]  ;;  %v2684_v45 = vpop.permute.xlu1 %2683 }
 0x34a   :  { %v2810_v50 = vsel %vm2790_vm2, %v8984_v60, %v14190_v35  ;;  %v2823_v56 = vsel %vm2790_vm2, %v2786_v32, %v14192_v0  ;;  %v2835_v30 = vsel %vm2827_vm3, %v2798_v22, %v14193_v17  ;;  %v14194_v39 = vld [vmem:[#allocation83_spill] sm:$0xff]  ;;  %v14196_v26 = vld [vmem:[#allocation102_spill] sm:$0xff]  ;;  %3952 = vrot.lane.b32.xlu2 %v6508_v43, %s6828_s30  ;;  %3950 = vrot.lane.b32.xlu1 %v6507_v58, %s6828_s30  ;;  %v14198_v32 = vld [vmem:[#allocation56_spill] sm:$0xff] }
 0x34b   :  { %v2847_v49 = vsel %vm2827_vm3, %v2810_v50, %v14194_v39  ;;  %v14195_v60 = vld [vmem:[#allocation55_spill] sm:$0xff]  ;;  %v2872_v21 = vsel %vm2864_vm4, %v2835_v30, %v14196_v26  ;;  %v14197_v4 = vld [vmem:[#allocation114_spill] sm:$0xff]  ;;  %v2812_v22 = vsel %vm2790_vm2, %v9006_v54, %v14198_v32  ;;  %v14199_v38 = vld [vmem:[#allocation57_spill] sm:$0xff]  ;;  %3948 = vrot.lane.b32.xlu0 %v6506_v44, %s6828_s30 }
 0x34c   :  { %v2813_v42 = vsel %vm2790_vm2, %v9002_v52, %v14195_v60  ;;  %v2884_v57 = vsel %vm2864_vm4, %v2847_v49, %v14197_v4  ;;  %v2826_v48 = vsel %vm2790_vm2, %v9015_v29, %v14199_v38  ;;  %v2909_v52 = vsel %vm2901_vm5, %v2872_v21, %v8073_v25  ;;  %v14200_v43 = vld [vmem:[#allocation58_spill] sm:$0xff]  ;;  %v14201_v19 = vld [vmem:[#allocation59_spill] sm:$0xff]  ;;  %v14202_v18 = vld [vmem:[#allocation60_spill] sm:$0xff] }
 0x34d   :  { %v2921_v10 = vsel %vm2901_vm5, %v2884_v57, %v8121_v14  ;;  %v2816_v58 = vsel %vm2790_vm2, %v9019_v62, %v14200_v43  ;;  %v2815_v54 = vsel %vm2790_vm2, %v9023_v36, %v14201_v19  ;;  %v2946_v29 = vsel %vm2938_vm6, %v2909_v52, %v8251_v27  ;;  %v14203_v35 = vld [vmem:[#allocation61_spill] sm:$0xff]  ;;  %v14204_v44 = vld [vmem:[#allocation63_spill] sm:$0xff]  ;;  %v14205_v40 = vld [vmem:[#allocation64_spill] sm:$0xff] }
 0x34e   :  { %v2958_v25 = vsel %vm2938_vm6, %v2921_v10, %v8323_v59  ;;  %v2819_v14 = vsel %vm2790_vm2, %v9027_v34, %v14202_v18  ;;  %v2818_v50 = vsel %vm2790_vm2, %v9043_v46, %v14203_v35  ;;  %v2983_v62 = vsel %vm2975_vm7, %v2946_v29, %v8463_v33  ;;  %v14206_v46 = vld [vmem:[#allocation65_spill] sm:$0xff]  ;;  %v14207_v17 = vld [vmem:[#allocation66_spill] sm:$0xff]  ;;  %v14208_v30 = vld [vmem:[#allocation67_spill] sm:$0xff] }
 0x34f   :  { %v2995_v36 = vsel %vm2975_vm7, %v2958_v25, %v8533_v51  ;;  %v2822_v27 = vsel %vm2790_vm2, %v9047_v12, %v14204_v44  ;;  %v2821_v59 = vsel %vm2790_vm2, %v9061_v61, %v14205_v40  ;;  %v3020_v34 = vsel %vm13891_vm9, %v2983_v62, %v8738_v8  ;;  %v6511_v8 = vld [vmem:[%s13848_s0 + $0x249] sm:$0xff]  ;;  %v6510_v61 = vld [vmem:[%s13848_s0 + $0x241] sm:$0xff]  ;;  %v6509_v4 = vld [vmem:[%s13848_s0 + $0x239] sm:$0xff] }
 0x350   :  { %v3032_v0 = vsel %vm13891_vm9, %v2995_v36, %v2684_v45  ;;  %v2836_v33 = vsel %vm2827_vm3, %v9066_v6, %v14206_v46  ;;  %v2825_v51 = vsel %vm2790_vm2, %v9076_v16, %v14207_v17  ;;  %v2824_v12 = vsel %vm2790_vm2, %v2787_v11, %v14208_v30  ;;  %6414 = vmatmul.msk.f32.gmra.mxu0 %vm13870_vm8, %v3020_v34  ;;  %v14209_v6 = vld [vmem:[#allocation68_spill] sm:$0xff]  ;;  %v14210_v16 = vld [vmem:[#allocation69_spill] sm:$0xff]  ;;  %v14211_v11 = vld [vmem:[#allocation70_spill] sm:$0xff]  ;;  %v2686_v62 = vpop.permute.xlu2 %2685 }
 0x351   :  { %6426 = vmatmul.msk.f32.gmra.mxu3 %vm13870_vm8, %v3032_v0  ;;  %v2839_v39 = vsel %vm2827_vm3, %v9089_v47, %v14209_v6  ;;  %v2842_v49 = vsel %vm2827_vm3, %v2805_v41, %v14210_v16  ;;  %v2845_v60 = vsel %vm2827_vm3, %v2808_v28, %v14211_v11  ;;  %v14212_v26 = vld [vmem:[#allocation73_spill] sm:$0xff]  ;;  %v14213_v57 = vld [vmem:[#allocation74_spill] sm:$0xff]  ;;  %v14214_v38 = vld [vmem:[#allocation75_spill] sm:$0xff] }
 0x352   :  { %v2848_v21 = vsel %vm2827_vm3, %v2811_v53, %v14212_v26  ;;  %v2838_v32 = vsel %vm2827_vm3, %v2801_v2, %v14213_v57  ;;  %v2837_v52 = vsel %vm2827_vm3, %v2800_v15, %v14214_v38  ;;  %v14215_v47 = vld [vmem:[#allocation76_spill] sm:$0xff]  ;;  %v14216_v41 = vld [vmem:[#allocation77_spill] sm:$0xff]  ;;  %v14217_v28 = vld [vmem:[#allocation78_spill] sm:$0xff]  ;;  %3958 = vrot.lane.b32.xlu2 %v6511_v8, %s6828_s30  ;;  %3956 = vrot.lane.b32.xlu1 %v6510_v61, %s6828_s30 }
 0x353   :  { %v2851_v10 = vsel %vm2827_vm3, %v2814_v13, %v14215_v47  ;;  %v2841_v45 = vsel %vm2827_vm3, %v2804_v20, %v14216_v41  ;;  %v2840_v43 = vsel %vm2827_vm3, %v2803_v3, %v14217_v28  ;;  %v14218_v53 = vld [vmem:[#allocation96_spill] sm:$0xff]  ;;  %v14220_v2 = vld [vmem:[#allocation79_spill] sm:$0xff]  ;;  %3954 = vrot.lane.b32.xlu0 %v6509_v4, %s6828_s30  ;;  %v14223_v36 = vld [vmem:[#allocation81_spill] sm:$0xff] }
 0x354   :  { %v2873_v19 = vsel %vm2864_vm4, %v2836_v33, %v14218_v53  ;;  %v14219_v29 = vld [vmem:[#allocation104_spill] sm:$0xff]  ;;  %v2854_v15 = vsel %vm2827_vm3, %v2817_v1, %v14220_v2  ;;  %v14222_v3 = vld [vmem:[#allocation131_spill] sm:$0xff]  ;;  %v2843_v44 = vsel %vm2827_vm3, %v2806_v63, %v14223_v36  ;;  %v14224_v40 = vld [vmem:[#allocation82_spill] sm:$0xff] }
 0x355   :  { %v2885_v25 = vsel %vm2864_vm4, %v2848_v21, %v14219_v29  ;;  %v14221_v13 = vld [vmem:[#allocation80_spill] sm:$0xff]  ;;  %v2910_v20 = vsel %vm2901_vm5, %v2873_v19, %v8035_v7  ;;  %v2857_v34 = vsel %vm2827_vm3, %v2820_v55, %v14224_v40  ;;  %v14225_v0 = vld [vmem:[#allocation151_spill] sm:$0xff]  ;;  %v14226_v46 = vld [vmem:[#allocation157_spill] sm:$0xff]  ;;  %v34_v29 = vlaneseq }
 0x356   :  { %v2844_v18 = vsel %vm2827_vm3, %v2807_v24, %v14221_v13  ;;  %v2922_v35 = vsel %vm2901_vm5, %v2885_v25, %v14222_v3  ;;  %v2947_v1 = vsel %vm2938_vm6, %v2910_v20, %v14225_v0  ;;  %v14227_v33 = vld [vmem:[#allocation85_spill] sm:$0xff]  ;;  %v14228_v17 = vld [vmem:[#allocation86_spill] sm:$0xff]  ;;  %v14229_v8 = vld [vmem:[#allocation179_spill] sm:$0xff] }
 0x357   :  { %v2959_v24 = vsel %vm2938_vm6, %v2922_v35, %v14226_v46  ;;  %v2860_v7 = vsel %vm2827_vm3, %v2823_v56, %v14227_v33  ;;  %v2850_v30 = vsel %vm2827_vm3, %v2813_v42, %v14228_v17  ;;  %v2984_v61 = vsel %vm2975_vm7, %v2947_v1, %v14229_v8  ;;  %v14230_v6 = vld [vmem:[#allocation187_spill] sm:$0xff]  ;;  %v14232_v11 = vld [vmem:[#allocation88_spill] sm:$0xff]  ;;  %v14233_v4 = vld [vmem:[#allocation89_spill] sm:$0xff]  ;;  %v2688_v17 = vpop.permute.xlu0 %2687 }
 0x358   :  { %v2996_v63 = vsel %vm2975_vm7, %v2959_v24, %v14230_v6  ;;  %v14231_v16 = vld [vmem:[#allocation87_spill] sm:$0xff]  ;;  %v2863_v26 = vsel %vm2827_vm3, %v2826_v48, %v14232_v11  ;;  %v3021_v21 = vsel %vm13891_vm9, %v2984_v61, %v8767_v23  ;;  %v2853_v42 = vsel %vm2827_vm3, %v2816_v58, %v14233_v4  ;;  %v14234_v57 = vld [vmem:[#allocation90_spill] sm:$0xff]  ;;  %v14236_v48 = vld [vmem:[#allocation92_spill] sm:$0xff] }
 0x359   :  { %v2849_v55 = vsel %vm2827_vm3, %v2812_v22, %v14231_v16  ;;  %v3033_v56 = vsel %vm13891_vm9, %v2996_v63, %v2686_v62  ;;  %v2852_v38 = vsel %vm2827_vm3, %v2815_v54, %v14234_v57  ;;  %v14235_v47 = vld [vmem:[#allocation91_spill] sm:$0xff]  ;;  %6415 = vmatmul.msk.f32.gmra.mxu0 %vm13870_vm8, %v3021_v21  ;;  %v2855_v58 = vsel %vm2827_vm3, %v2818_v50, %v14236_v48  ;;  %v14237_v28 = vld [vmem:[#allocation94_spill] sm:$0xff]  ;;  %v14239_v25 = vld [vmem:[#allocation97_spill] sm:$0xff] }
 0x35a   :  { %v2856_v41 = vsel %vm2827_vm3, %v2819_v14, %v14235_v47  ;;  %6427 = vmatmul.msk.f32.gmra.mxu3 %vm13870_vm8, %v3033_v56  ;;  %v6514_v22 = vld [vmem:[%s13848_s0 + $0x261] sm:$0xff]  ;;  %v6513_v23 = vld [vmem:[%s13848_s0 + $0x259] sm:$0xff]  ;;  %v2859_v54 = vsel %vm2827_vm3, %v2822_v27, %v14237_v28  ;;  %v6512_v19 = vld [vmem:[%s13848_s0 + $0x251] sm:$0xff]  ;;  %v9320_v2 = vsel %vm2827_vm3, %v2825_v51, %v14239_v25 }
 0x35b   :  { %v14238_v53 = vld [vmem:[#allocation95_spill] sm:$0xff]  ;;  %v14240_v13 = vld [vmem:[#allocation98_spill] sm:$0xff]  ;;  %v14242_v3 = vld [vmem:[#allocation100_spill] sm:$0xff]  ;;  %3964 = vrot.lane.b32.xlu2 %v6514_v22, %s6828_s30  ;;  %3962 = vrot.lane.b32.xlu1 %v6513_v23, %s6828_s30 }
 0x35c   :  { %v9313_v14 = vsel %vm2827_vm3, %v2821_v59, %v14238_v53  ;;  %v9324_v20 = vsel %vm2827_vm3, %v2824_v12, %v14240_v13  ;;  %v14241_v50 = vld [vmem:[#allocation99_spill] sm:$0xff]  ;;  %v9332_v59 = vsel %vm2864_vm4, %v2842_v49, %v14242_v3  ;;  %v14243_v35 = vld [vmem:[#allocation101_spill] sm:$0xff]  ;;  %v14244_v36 = vld [vmem:[#allocation106_spill] sm:$0xff]  ;;  %v9344_v12 = vshrl.u32 %v34_v29, 7  ;;  %3960 = vrot.lane.b32.xlu0 %v6512_v19, %s6828_s30  ;;  %s6360_s30 = sshll.u32 %s13855_s7, 4  ;;  %s6361_s30 = int_to_ptr.hbm [resolvable:$true] %s6360_s30 }
 0x35d   :  { %v9328_v27 = vsel %vm2864_vm4, %v2839_v39, %v14241_v50  ;;  %v9336_v62 = vsel %vm2864_vm4, %v2845_v60, %v14243_v35  ;;  %v2874_v51 = vsel %vm2864_vm4, %v2837_v52, %v14244_v36  ;;  %v14245_v40 = vld [vmem:[#allocation118_spill] sm:$0xff]  ;;  %v14246_v39 = vld [vmem:[#allocation105_spill] sm:$0xff]  ;;  %v14247_v1 = vld [vmem:[#allocation107_spill] sm:$0xff]  ;;  %v9408_v50 = vpop.permute.xlu2 %2691 }
 0x35e   :  { %v2886_v0 = vsel %vm2864_vm4, %v2849_v55, %v14245_v40  ;;  %v2875_v49 = vsel %vm2864_vm4, %v2838_v32, %v14246_v39  ;;  %v9350_v46 = vsel %vm2864_vm4, %v2851_v10, %v14247_v1  ;;  %v14248_v60 = vld [vmem:[#allocation133_spill] sm:$0xff]  ;;  %v14249_v52 = vld [vmem:[#allocation143_spill] sm:$0xff]  ;;  %v14250_v8 = vld [vmem:[#allocation108_spill] sm:$0xff]  ;;  %v74_v16 = vand.u32 65535, %v9344_v12 }
 0x35f   :  { %v2911_v24 = vsel %vm2901_vm5, %v2874_v51, %v14248_v60  ;;  %v2923_v33 = vsel %vm2901_vm5, %v2886_v0, %v14249_v52  ;;  %v9359_v61 = vsel %vm2864_vm4, %v2841_v45, %v14250_v8  ;;  %v14251_v6 = vld [vmem:[#allocation159_spill] sm:$0xff]  ;;  %v14252_v63 = vld [vmem:[#allocation169_spill] sm:$0xff]  ;;  %v14254_v21 = vld [vmem:[#allocation110_spill] sm:$0xff]  ;;  %v75_v48 = vshrl.u32 %v9344_v12, 16 }
 0x360   :  { %v2948_v32 = vsel %vm2938_vm6, %v2911_v24, %v14251_v6  ;;  %v2960_v10 = vsel %vm2938_vm6, %v2923_v33, %v14252_v63  ;;  %v14253_v55 = vld [vmem:[#allocation109_spill] sm:$0xff]  ;;  %v9372_v56 = vsel %vm2864_vm4, %v2854_v15, %v14254_v21  ;;  %v14255_v4 = vld [vmem:[#allocation183_spill] sm:$0xff]  ;;  %v14256_v57 = vld [vmem:[#allocation192_spill] sm:$0xff]  ;;  %v9382_v28 = vmul.u32 58254, %v74_v16 }
 0x361   :  { %v9368_v11 = vsel %vm2864_vm4, %v2840_v43, %v14253_v55  ;;  %v2985_v45 = vsel %vm2975_vm7, %v2948_v32, %v14255_v4  ;;  %v2997_v47 = vsel %vm2975_vm7, %v2960_v10, %v14256_v57  ;;  %v14257_v43 = vld [vmem:[#allocation111_spill] sm:$0xff]  ;;  %v14258_v15 = vld [vmem:[#allocation112_spill] sm:$0xff]  ;;  %v14259_v29 = vld [vmem:[#allocation113_spill] sm:$0xff]  ;;  %v77_v3 = vmul.u32 14564, %v74_v16  ;;  %v2690_v10 = vpop.permute.xlu1 %2689 }
 0x362   :  { %v3022_v22 = vsel %vm13891_vm9, %v2985_v45, %v8779_v5  ;;  %v3034_v23 = vsel %vm13891_vm9, %v2997_v47, %v2688_v17  ;;  %v9386_v53 = vsel %vm2864_vm4, %v2844_v18, %v14257_v43  ;;  %v9390_v19 = vsel %vm2864_vm4, %v2843_v44, %v14258_v15  ;;  %v6517_v5 = vld [vmem:[%s13848_s0 + $0x15a] sm:$0xff]  ;;  %v6516_v18 = vld [vmem:[%s13848_s0 + $0x152] sm:$0xff]  ;;  %v14260_v13 = vld [vmem:[#allocation116_spill] sm:$0xff] }
 0x363   :  { %v9394_v25 = vsel %vm2864_vm4, %v2857_v34, %v14259_v29  ;;  %6416 = vmatmul.msk.f32.gmra.mxu0 %vm13870_vm8, %v3022_v22  ;;  %6428 = vmatmul.msk.f32.gmra.mxu3 %vm13870_vm8, %v3034_v23  ;;  %v9406_v44 = vsel %vm2864_vm4, %v2860_v7, %v14260_v13  ;;  %v6515_v34 = vld [vmem:[%s13848_s0 + $0x14a] sm:$0xff]  ;;  %v9413_v35 = vmul.u32 14564, %v75_v48  ;;  %v81_v36 = vshll.u32 %v9382_v28, 16  ;;  %v14262_v0 = vld [vmem:[#allocation119_spill] sm:$0xff]  ;;  %v14265_v52 = vld [vmem:[#allocation122_spill] sm:$0xff] }
 0x364   :  { %v14261_v51 = vld [vmem:[#allocation117_spill] sm:$0xff]  ;;  %v9420_v39 = vsel %vm2864_vm4, %v2863_v26, %v14262_v0  ;;  %v14263_v7 = vld [vmem:[#allocation120_spill] sm:$0xff]  ;;  %v9432_v33 = vsel %vm2864_vm4, %v2856_v41, %v14265_v52  ;;  %v14266_v17 = vld [vmem:[#allocation123_spill] sm:$0xff]  ;;  %4042 = vrot.lane.b32.xlu2 %v6517_v5, %s6829_s14  ;;  %4040 = vrot.lane.b32.xlu1 %v6516_v18, %s6829_s14  ;;  %v2694_v0 = vpop.permute.xlu0 %2693 }
 0x365   :  { %v2887_v40 = vsel %vm2864_vm4, %v2850_v30, %v14261_v51  ;;  %v9424_v1 = vsel %vm2864_vm4, %v2853_v42, %v14263_v7  ;;  %v14264_v60 = vld [vmem:[#allocation121_spill] sm:$0xff]  ;;  %v9436_v8 = vsel %vm2864_vm4, %v2855_v58, %v14266_v17  ;;  %v14267_v30 = vld [vmem:[#allocation132_spill] sm:$0xff]  ;;  %v14270_v41 = vld [vmem:[#allocation158_spill] sm:$0xff]  ;;  %4038 = vrot.lane.b32.xlu0 %v6515_v34, %s6829_s14  ;;  %v9452_v58 = vadd.s32 8, %v9344_v12 }
 0x366   :  { %v9428_v24 = vsel %vm2864_vm4, %v2852_v38, %v14264_v60  ;;  %v2912_v26 = vsel %vm2901_vm5, %v2875_v49, %v14267_v30  ;;  %v14268_v42 = vld [vmem:[#allocation124_spill] sm:$0xff]  ;;  %v14269_v38 = vld [vmem:[#allocation142_spill] sm:$0xff]  ;;  %v87_v4 = vadd.s32 %v81_v36, %v77_v3  ;;  %v14273_v45 = vld [vmem:[#allocation191_spill] sm:$0xff]  ;;  %vm9461_vm10 = vc.u32 %v77_v3, %v81_v36 }
 0x367   :  { %v9444_v6 = vsel %vm2864_vm4, %v2859_v54, %v14268_v42  ;;  %v2924_v32 = vsel %vm2901_vm5, %v2887_v40, %v14269_v38  ;;  %v2949_v63 = vsel %vm2938_vm6, %v2912_v26, %v14270_v41  ;;  %v14271_v49 = vld [vmem:[#allocation168_spill] sm:$0xff]  ;;  %v14272_v55 = vld [vmem:[#allocation182_spill] sm:$0xff]  ;;  %v83_v54 = vshll.u32 %v9413_v35, 16  ;;  %v14276_v23 = vld [vmem:[#allocation125_spill] sm:$0xff] }
 0x368   :  { %v2961_v16 = vsel %vm2938_vm6, %v2924_v32, %v14271_v49  ;;  %v2986_v21 = vsel %vm2975_vm7, %v2949_v63, %v14272_v55  ;;  %v103_v22 = vand.u32 65535, %v9452_v58  ;;  %v9469_v43 = vsel %vm2864_vm4, %v9313_v14, %v14276_v23  ;;  %v14277_v18 = vld [vmem:[#allocation126_spill] sm:$0xff]  ;;  %v14278_v34 = vld [vmem:[#allocation127_spill] sm:$0xff]  ;;  %v9493_v14 = vld [vmem:[%s13848_s0 + $0x16a] sm:$0xff]  ;;  %v9535_v49 = vpop.permute.xlu2 %2697 }
 0x369   :  { %v2998_v57 = vsel %vm2975_vm7, %v2961_v16, %v14273_v45  ;;  %v3023_v15 = vsel %vm13891_vm9, %v2986_v21, %v8777_v31  ;;  %v104_v5 = vshrl.u32 %v9452_v58, 16  ;;  %v9478_v13 = vsel %vm2864_vm4, %v9320_v2, %v14277_v18  ;;  %v6520_v31 = vld [vmem:[%s13848_s0 + $0x172] sm:$0xff]  ;;  %v14285_v63 = vld [vmem:[#allocation135_spill] sm:$0xff]  ;;  %v14287_v16 = vld [vmem:[#allocation160_spill] sm:$0xff] }
 0x36a   :  { %v3035_v29 = vsel %vm13891_vm9, %v2998_v57, %v2690_v10  ;;  %v9483_v3 = vsel %vm2864_vm4, %v9324_v20, %v14278_v34  ;;  %v80_v2 = vmul.u32 58254, %v75_v48  ;;  %v9495_v36 = vmul.u32 58254, %v103_v22  ;;  %v9500_v20 = vld [vmem:[%s13848_s0 + $0x162] sm:$0xff]  ;;  %v14282_v17 = vld [vmem:[#allocation129_spill] sm:$0xff]  ;;  %v14283_v26 = vld [vmem:[#allocation130_spill] sm:$0xff] }
 0x36b   :  { %6417 = vmatmul.msk.f32.gmra.mxu0 %vm13870_vm8, %v3023_v15  ;;  %6429 = vmatmul.msk.f32.gmra.mxu3 %vm13870_vm8, %v3035_v29  ;;  %v13856_v51 = vmov 0   ;;  %vm9505_vm11 = vc.u32 %v87_v4, %v83_v54  ;;  %v106_v7 = vmul.u32 14564, %v103_v22  ;;  %v9509_v60 = vmul.u32 14564, %v104_v5  ;;  %v14281_v48 = vld [vmem:[#allocation128_spill] sm:$0xff]  ;;  %v14284_v32 = vld [vmem:[#allocation134_spill] sm:$0xff]  ;;  %v14292_v15 = vld [vmem:[#allocation137_spill] sm:$0xff] }
 0x36c   :  { %v86_v40 = vsel %vm9461_vm10, 1, %v13856_v51  ;;  %v2913_v52 = vsel %vm2901_vm5, %v9328_v27, %v14281_v48  ;;  %v9517_v30 = vsel %vm2901_vm5, %v9332_v59, %v14282_v17  ;;  %v9522_v42 = vsel %vm2901_vm5, %v9336_v62, %v14283_v26  ;;  %v14286_v10 = vld [vmem:[#allocation154_spill] sm:$0xff]  ;;  %4048 = vrot.lane.b32.xlu2 %v6520_v31, %s6829_s14  ;;  %4046 = vrot.lane.b32.xlu1 %v9493_v14, %s6829_s14  ;;  %v14288_v55 = vld [vmem:[#allocation180_spill] sm:$0xff]  ;;  %v9568_v31 = vpop.permute.xlu1 %2695 }
 0x36d   :  { %v110_v38 = vshll.u32 %v9495_v36, 16  ;;  %v2925_v41 = vsel %vm2901_vm5, %v9350_v46, %v14284_v32  ;;  %v9531_v27 = vsel %vm2901_vm5, %v9359_v61, %v14285_v63  ;;  %v2950_v59 = vsel %vm2938_vm6, %v2913_v52, %v14286_v10  ;;  %4044 = vrot.lane.b32.xlu0 %v9500_v20, %s6829_s14  ;;  %v14291_v22 = vld [vmem:[#allocation136_spill] sm:$0xff]  ;;  %v14293_v18 = vld [vmem:[#allocation190_spill] sm:$0xff] }
 0x36e   :  { %v9541_v62 = vadd.s32 16, %v9344_v12  ;;  %v2962_v46 = vsel %vm2938_vm6, %v2925_v41, %v14287_v16  ;;  %v2987_v61 = vsel %vm2975_vm7, %v2950_v59, %v14288_v55  ;;  %v88_v21 = vadd.s32 %v86_v40, %v80_v2  ;;  %v14294_v2 = vld [vmem:[#allocation205_spill] sm:$0xff]  ;;  %v14295_v17 = vld [vmem:[#allocation138_spill] sm:$0xff]  ;;  %v14298_v16 = vld [vmem:[#allocation139_spill] sm:$0xff] }
 0x36f   :  { %v90_v54 = vsel %vm9505_vm11, 1, %v13856_v51  ;;  %v112_v4 = vshll.u32 %v9509_v60, 16  ;;  %vm9553_vm12 = vc.u32 %v106_v7, %v110_v38  ;;  %v116_v57 = vadd.s32 %v110_v38, %v106_v7  ;;  %v6523_v26 = vld [vmem:[%s13848_s0 + $0x18a] sm:$0xff]  ;;  %v6521_v32 = vld [vmem:[%s13848_s0 + $0x17a] sm:$0xff] }
 0x370   :  { %v132_v47 = vand.u32 65535, %v9541_v62  ;;  %v2914_v23 = vsel %vm2901_vm5, %v9368_v11, %v14291_v22  ;;  %v9564_v29 = vsel %vm2901_vm5, %v9372_v56, %v14292_v15  ;;  %v2999_v34 = vsel %vm2975_vm7, %v2962_v46, %v14293_v18  ;;  %v14299_v46 = vld [vmem:[#allocation140_spill] sm:$0xff]  ;;  %v14302_v45 = vld [vmem:[#allocation162_spill] sm:$0xff] }
 0x371   :  { %v3024_v40 = vsel %vm13891_vm9, %v2987_v61, %v14294_v2  ;;  %v3036_v7 = vsel %vm13891_vm9, %v2999_v34, %v9408_v50  ;;  %v109_v48 = vmul.u32 58254, %v104_v5  ;;  %v133_v11 = vshrl.u32 %v9541_v62, 16  ;;  %v6522_v50 = vld [vmem:[%s13848_s0 + $0x182] sm:$0xff]  ;;  %v14300_v61 = vld [vmem:[#allocation141_spill] sm:$0xff]  ;;  %v14304_v22 = vld [vmem:[#allocation186_spill] sm:$0xff] }
 0x372   :  { %v9575_v52 = vmul.u32 58254, %v132_v47  ;;  %v9580_v56 = vsel %vm2901_vm5, %v9386_v53, %v14295_v17  ;;  %v82_v5 = vshrl.u32 %v9382_v28, 16  ;;  %v92_v38 = vadd.s32 %v90_v54, %v88_v21  ;;  %v14301_v54 = vld [vmem:[#allocation146_spill] sm:$0xff]  ;;  %v14308_v17 = vld [vmem:[#allocation145_spill] sm:$0xff] }
 0x373   :  { %6418 = vmatmul.msk.f32.gmra.mxu0 %vm13870_vm8, %v3024_v40  ;;  %6430 = vmatmul.msk.f32.gmra.mxu3 %vm13870_vm8, %v3036_v7  ;;  %v115_v53 = vsel %vm9553_vm12, 1, %v13856_v51  ;;  %vm9597_vm13 = vc.u32 %v116_v57, %v112_v4  ;;  %v135_v63 = vmul.u32 14564, %v132_v47  ;;  %v9601_v10 = vmul.u32 14564, %v133_v11  ;;  %v14303_v47 = vld [vmem:[#allocation172_spill] sm:$0xff] }
 0x374   :  { %v139_v59 = vshll.u32 %v9575_v52, 16  ;;  %v9607_v28 = vsel %vm2901_vm5, %v9390_v19, %v14298_v16  ;;  %v9612_v55 = vsel %vm2901_vm5, %v9394_v25, %v14299_v46  ;;  %v9617_v21 = vsel %vm2901_vm5, %v9406_v44, %v14300_v61  ;;  %4054 = vrot.lane.b32.xlu2 %v6523_v26, %s6829_s14  ;;  %4052 = vrot.lane.b32.xlu1 %v6522_v50, %s6829_s14  ;;  %v14309_v50 = vld [vmem:[#allocation195_spill] sm:$0xff]  ;;  %v9664_v46 = vpop.permute.xlu1 %2701  ;;  %v14312_v61 = vld [vmem:[#allocation148_spill] sm:$0xff] }
 0x375   :  { %v2926_v4 = vsel %vm2901_vm5, %v9428_v24, %v14301_v54  ;;  %v2951_v57 = vsel %vm2938_vm6, %v2914_v23, %v14302_v45  ;;  %v117_v25 = vadd.s32 %v115_v53, %v109_v48  ;;  %4050 = vrot.lane.b32.xlu0 %v6521_v32, %s6829_s14  ;;  %v84_v44 = vshrl.u32 %v9413_v35, 16  ;;  %v9635_v23 = vpop.permute.xlu2 %2703  ;;  %v14307_v48 = vld [vmem:[#allocation144_spill] sm:$0xff]  ;;  %v14311_v16 = vld [vmem:[#allocation147_spill] sm:$0xff] }
 0x376   :  { %v2963_v19 = vsel %vm2938_vm6, %v2926_v4, %v14303_v47  ;;  %v2988_v15 = vsel %vm2975_vm7, %v2951_v57, %v14304_v22  ;;  %v93_v18 = vadd.s32 %v92_v38, %v82_v5  ;;  %v119_v24 = vsel %vm9597_vm13, 1, %v13856_v51  ;;  %v14310_v38 = vld [vmem:[#allocation206_spill] sm:$0xff]  ;;  %v14313_v4 = vld [vmem:[#allocation149_spill] sm:$0xff]  ;;  %v9689_v57 = vpop.permute.xlu0 %2699 }
 0x377   :  { %v141_v34 = vshll.u32 %v9601_v10, 16  ;;  %vm9638_vm14 = vc.u32 %v135_v63, %v139_v59  ;;  %v145_v40 = vadd.s32 %v139_v59, %v135_v63  ;;  %v9643_v7 = vadd.s32 24, %v9344_v12  ;;  %v6524_v47 = vld [vmem:[%s13848_s0 + $0x192] sm:$0xff] }
 0x378   :  { %v9648_v35 = vsel %vm2901_vm5, %v9420_v39, %v14307_v48  ;;  %v2927_v26 = vsel %vm2901_vm5, %v9424_v1, %v14308_v17  ;;  %v3000_v5 = vsel %vm2975_vm7, %v2963_v19, %v14309_v50  ;;  %v3025_v53 = vsel %vm13891_vm9, %v2988_v15, %v14310_v38  ;;  %v6526_v1 = vld [vmem:[%s13848_s0 + $0x1a2] sm:$0xff] }
 0x379   :  { %v3037_v32 = vsel %vm13891_vm9, %v3000_v5, %v2694_v0  ;;  %v111_v41 = vshrl.u32 %v9495_v36, 16  ;;  %v121_v63 = vadd.s32 %v119_v24, %v117_v25  ;;  %v138_v59 = vmul.u32 58254, %v133_v11  ;;  %v6525_v36 = vld [vmem:[%s13848_s0 + $0x19a] sm:$0xff]  ;;  %v14317_v5 = vld [vmem:[#allocation185_spill] sm:$0xff] }
 0x37a   :  { %v9662_v39 = vsel %vm2901_vm5, %v9432_v33, %v14311_v16  ;;  %v144_v0 = vsel %vm9638_vm14, 1, %v13856_v51  ;;  %v161_v33 = vand.u32 65535, %v9643_v7  ;;  %v162_v11 = vshrl.u32 %v9643_v7, 16  ;;  %v14314_v25 = vld [vmem:[#allocation150_spill] sm:$0xff] }
 0x37b   :  { %6419 = vmatmul.msk.f32.gmra.mxu0 %vm13870_vm8, %v3025_v53  ;;  %6431 = vmatmul.msk.f32.gmra.mxu3 %vm13870_vm8, %v3037_v32  ;;  %v9682_v54 = vsel %vm2901_vm5, %v9436_v8, %v14312_v61  ;;  %v9687_v45 = vsel %vm2901_vm5, %v9444_v6, %v14313_v4  ;;  %v94_v19 = vadd.s32 %v93_v18, %v84_v44  ;;  %v14315_v6 = vld [vmem:[#allocation161_spill] sm:$0xff]  ;;  %v113_v44 = vshrl.u32 %v9509_v60, 16  ;;  %v14318_v32 = vld [vmem:[#allocation194_spill] sm:$0xff]  ;;  %v14320_v61 = vld [vmem:[#allocation155_spill] sm:$0xff] }
 0x37c   :  { %vm147_vm15 = vc.u32 %v145_v40, %v141_v34  ;;  %v9697_v22 = vsel %vm2901_vm5, %v9469_v43, %v14314_v25  ;;  %v164_v8 = vmul.u32 14564, %v161_v33  ;;  %v9699_v15 = vmul.u32 58254, %v161_v33  ;;  %4060 = vrot.lane.b32.xlu2 %v6526_v1, %s6829_s14  ;;  %4058 = vrot.lane.b32.xlu1 %v6525_v36, %s6829_s14  ;;  %v6529_v4 = vld [vmem:[%s13848_s0 + $0x1ba] sm:$0xff]  ;;  %v14322_v25 = vld [vmem:[#allocation164_spill] sm:$0xff] }
 0x37d   :  { %v9701_v24 = vmul.u32 14564, %v162_v11  ;;  %v2952_v2 = vsel %vm2938_vm6, %v9531_v27, %v14315_v6  ;;  %v122_v18 = vadd.s32 %v121_v63, %v111_v41  ;;  %v146_v34 = vadd.s32 %v144_v0, %v138_v59  ;;  %4056 = vrot.lane.b32.xlu0 %v6524_v47, %s6829_s14  ;;  %v14316_v27 = vld [vmem:[#allocation170_spill] sm:$0xff]  ;;  %v14319_v63 = vld [vmem:[#allocation207_spill] sm:$0xff]  ;;  %v9724_v1 = vpop.permute.xlu2 %2709  ;;  %v6527_v6 = vld [vmem:[%s13848_s0 + $0x1aa] sm:$0xff] }
 0x37e   :  { %v148_v43 = vsel %vm147_vm15, 1, %v13856_v51  ;;  %v168_v40 = vshll.u32 %v9699_v15, 16  ;;  %v9714_v17 = vadd.s32 32, %v9344_v12  ;;  %v2964_v50 = vsel %vm2938_vm6, %v2927_v26, %v14316_v27 }
 0x37f   :  { %v170_v48 = vshll.u32 %v9701_v24, 16  ;;  %v2989_v38 = vsel %vm2975_vm7, %v2952_v2, %v14317_v5  ;;  %v95_v60 = vshrl.u32 %v94_v19, 4  ;;  %v167_v53 = vmul.u32 58254, %v162_v11  ;;  %v14321_v19 = vld [vmem:[#allocation163_spill] sm:$0xff] }
 0x380   :  { %v3001_v41 = vsel %vm2975_vm7, %v2964_v50, %v14318_v32  ;;  %v3026_v59 = vsel %vm13891_vm9, %v2989_v38, %v14319_v63  ;;  %vm172_vm0 = vc.u32 %v164_v8, %v168_v40  ;;  %v174_v16 = vadd.s32 %v168_v40, %v164_v8  ;;  %v14325_v63 = vld [vmem:[#allocation181_spill] sm:$0xff] }
 0x381   :  { %v3038_v36 = vsel %vm13891_vm9, %v3001_v41, %v9568_v31  ;;  %v123_v0 = vadd.s32 %v122_v18, %v113_v44  ;;  %v140_v26 = vshrl.u32 %v9575_v52, 16  ;;  %v150_v33 = vadd.s32 %v148_v43, %v146_v34  ;;  %v6528_v31 = vld [vmem:[%s13848_s0 + $0x1b2] sm:$0xff]  ;;  %v9751_v18 = vpop.permute.xlu1 %2707 }
 0x382   :  { %v2953_v11 = vsel %vm2938_vm6, %v9517_v30, %v14320_v61  ;;  %v173_v47 = vsel %vm172_vm0, 1, %v13856_v51  ;;  %vm176_vm10 = vc.u32 %v174_v16, %v170_v48  ;;  %v190_v52 = vand.u32 65535, %v9714_v17  ;;  %v14327_v61 = vld [vmem:[#allocation31_spill] sm:$0xff] }
 0x383   :  { %6420 = vmatmul.msk.f32.gmra.mxu0 %vm13870_vm8, %v3026_v59  ;;  %6432 = vmatmul.msk.f32.gmra.mxu3 %vm13870_vm8, %v3038_v36  ;;  %v2965_v30 = vsel %vm2938_vm6, %v9564_v29, %v14321_v19  ;;  %v2955_v8 = vsel %vm2938_vm6, %v9580_v56, %v14322_v25  ;;  %v96_v2 = vmul.u32 18, %v95_v60  ;;  %v175_v44 = vadd.s32 %v173_v47, %v167_v53  ;;  %v14323_v29 = vld [vmem:[#allocation165_spill] sm:$0xff]  ;;  %v9760_v56 = vpop.permute.xlu0 %2705 }
 0x384   :  { %v177_v34 = vsel %vm176_vm10, 1, %v13856_v51  ;;  %v191_v43 = vshrl.u32 %v9714_v17, 16  ;;  %v193_v40 = vmul.u32 14564, %v190_v52  ;;  %v9755_v48 = vmul.u32 58254, %v190_v52  ;;  %4066 = vrot.lane.b32.xlu2 %v6529_v4, %s6829_s14  ;;  %4064 = vrot.lane.b32.xlu1 %v6528_v31, %s6829_s14  ;;  %v14324_v60 = vld [vmem:[#allocation173_spill] sm:$0xff]  ;;  %v14328_v52 = vld [vmem:[#allocation174_spill] sm:$0xff] }
 0x385   :  { %v2954_v27 = vsel %vm2938_vm6, %v9607_v28, %v14323_v29  ;;  %v124_v50 = vshrl.u32 %v123_v0, 4  ;;  %v142_v5 = vshrl.u32 %v9601_v10, 16  ;;  %v151_v38 = vadd.s32 %v150_v33, %v140_v26  ;;  %4062 = vrot.lane.b32.xlu0 %v6527_v6, %s6829_s14  ;;  %v14326_v0 = vld [vmem:[#allocation193_spill] sm:$0xff] }
 0x386   :  { %v2967_v53 = vsel %vm2938_vm6, %v9662_v39, %v14324_v60  ;;  %v9769_v32 = vmul.u32 14564, %v191_v43  ;;  %v197_v28 = vshll.u32 %v9755_v48, 16  ;;  %v9773_v41 = vadd.s32 40, %v9344_v12  ;;  %v6532_v19 = vld [vmem:[%s13848_s0 + $0x1d2] sm:$0xff] }
 0x387   :  { %v2990_v59 = vsel %vm2975_vm7, %v2953_v11, %v14325_v63  ;;  %v9778_v16 = vsub.s32 %v9344_v12, %v96_v2  ;;  %v169_v10 = vshrl.u32 %v9699_v15, 16  ;;  %v179_v36 = vadd.s32 %v177_v34, %v175_v44  ;;  %v14329_v2 = vld [vmem:[#allocation188_spill] sm:$0xff]  ;;  %v9803_v44 = vpop.permute.xlu2 %2715 }
 0x388   :  { %v3002_v39 = vsel %vm2975_vm7, %v2965_v30, %v14326_v0  ;;  %v196_v26 = vmul.u32 58254, %v191_v43  ;;  %v199_v33 = vshll.u32 %v9769_v32, 16  ;;  %vm201_vm11 = vc.u32 %v193_v40, %v197_v28  ;;  %v6531_v30 = vld [vmem:[%s13848_s0 + $0x1ca] sm:$0xff]  ;;  %v6530_v34 = vld [vmem:[%s13848_s0 + $0x1c2] sm:$0xff]  ;;  %v14331_v0 = vld [vmem:[#allocation198_spill] sm:$0xff] }
 0x389   :  { %v3027_v4 = vsel %vm13891_vm9, %v2990_v59, %v14327_v61  ;;  %v3039_v31 = vsel %vm13891_vm9, %v3002_v39, %v9535_v49  ;;  %v125_v11 = vmul.u32 18, %v124_v50  ;;  %v152_v47 = vadd.s32 %v151_v38, %v142_v5  ;;  %v9822_v63 = vpop.permute.xlu1 %2713 }
 0x38a   :  { %v2966_v15 = vsel %vm2938_vm6, %v9682_v54, %v14328_v52  ;;  %v202_v49 = vsel %vm201_vm11, 1, %v13856_v51  ;;  %v203_v25 = vadd.s32 %v197_v28, %v193_v40  ;;  %v219_v6 = vand.u32 65535, %v9773_v41 }
 0x38b   :  { %6421 = vmatmul.msk.f32.gmra.mxu0 %vm13870_vm8, %v3027_v4  ;;  %6433 = vmatmul.msk.f32.gmra.mxu3 %vm13870_vm8, %v3039_v31  ;;  %v2992_v54 = vsel %vm2975_vm7, %v2955_v8, %v14329_v2  ;;  %vm1115_vm12 = vcmp.ne.s32.totalorder %v9778_v16, 0  ;;  %v171_v43 = vshrl.u32 %v9701_v24, 16  ;;  %v180_v29 = vadd.s32 %v179_v36, %v169_v10  ;;  %v14330_v24 = vld [vmem:[#allocation189_spill] sm:$0xff] }
 0x38c   :  { %v204_v50 = vadd.s32 %v202_v49, %v196_v26  ;;  %vm205_vm13 = vc.u32 %v203_v25, %v199_v33  ;;  %v220_v40 = vshrl.u32 %v9773_v41, 16  ;;  %v9811_v5 = vmul.u32 58254, %v219_v6  ;;  %4072 = vrot.lane.b32.xlu2 %v6532_v19, %s6829_s14  ;;  %4070 = vrot.lane.b32.xlu1 %v6531_v30, %s6829_s14  ;;  %v14332_v26 = vld [vmem:[#allocation8_spill] sm:$0xff] }
 0x38d   :  { %vm1151_vm14 = vcmp.lt.s32.totalorder %v9778_v16, 0  ;;  %v9817_v8 = vsub.s32 %v9452_v58, %v125_v11  ;;  %v153_v38 = vshrl.u32 %v152_v47, 4  ;;  %v206_v60 = vsel %vm205_vm13, 1, %v13856_v51  ;;  %4068 = vrot.lane.b32.xlu0 %v6530_v34, %s6829_s14  ;;  %v9830_v58 = vpop.permute.xlu0 %2711  ;;  %v6535_v49 = vld [vmem:[%s13848_s0 + $0x1ea] sm:$0xff] }
 0x38e   :  { %v2991_v28 = vsel %vm2975_vm7, %v2954_v27, %v14330_v24  ;;  %v222_v59 = vmul.u32 14564, %v219_v6  ;;  %v9825_v10 = vmul.u32 14564, %v220_v40  ;;  %v226_v36 = vshll.u32 %v9811_v5, 16  ;;  %vm9844_vm15 = vmand %vm1151_vm14, %vm1115_vm12  ;;  %v6533_v6 = vld [vmem:[%s13848_s0 + $0x1da] sm:$0xff] }
 0x38f   :  { %v3003_v39 = vsel %vm2975_vm7, %v2966_v15, %v14331_v0  ;;  %v3028_v33 = vsel %vm13891_vm9, %v2991_v28, %v14332_v26  ;;  %v1223_v61 = vadd.s32 18, %v9778_v16  ;;  %v9836_v27 = vadd.s32 48, %v9344_v12  ;;  %v9885_v24 = vpop.permute.xlu2 %3898 }
 0x390   :  { %v3040_v4 = vsel %vm13891_vm9, %v3003_v39, %v9689_v57  ;;  %v181_v11 = vadd.s32 %v180_v29, %v171_v43  ;;  %v198_v47 = vshrl.u32 %v9755_v48, 16  ;;  %v208_v52 = vadd.s32 %v206_v60, %v204_v50  ;;  %v14335_v57 = vld [vmem:[#allocation197_spill] sm:$0xff]  ;;  %v6534_v48 = vld [vmem:[%s13848_s0 + $0x1e2] sm:$0xff]  ;;  %v9873_v29 = vld [vmem:[%s13850_s2] ss:$0 sm:$0xff] }
 0x391   :  { %vm1116_vm0 = vcmp.ne.s32.totalorder %v9817_v8, 0  ;;  %vm1152_vm10 = vcmp.lt.s32.totalorder %v9817_v8, 0  ;;  %v154_v15 = vmul.u32 18, %v153_v38  ;;  %v228_v19 = vshll.u32 %v9825_v10, 16 }
 0x392   :  { %v3004_v30 = vsel %vm2975_vm7, %v2967_v53, %v14335_v57  ;;  %vm230_vm11 = vc.u32 %v222_v59, %v226_v36  ;;  %v232_v25 = vadd.s32 %v226_v36, %v222_v59  ;;  %v1259_v53 = vsel %vm9844_vm15, %v1223_v61, %v9778_v16  ;;  %vm9879_vm12 = vmand %vm1152_vm10, %vm1116_vm0  ;;  %v9909_v61 = vpop.permute.xlu1 %3896 }
 0x393   :  { %6422 = vmatmul.msk.f32.gmra.mxu0 %vm13870_vm8, %v3028_v33  ;;  %6434 = vmatmul.msk.f32.gmra.mxu3 %vm13870_vm8, %v3040_v4  ;;  %v1224_v2 = vadd.s32 18, %v9817_v8  ;;  %v225_v34 = vmul.u32 58254, %v220_v40  ;;  %v248_v43 = vand.u32 65535, %v9836_v27  ;;  %v182_v38 = vshrl.u32 %v181_v11, 4 }
 0x394   :  { %v200_v16 = vshrl.u32 %v9769_v32, 16  ;;  %v209_v60 = vadd.s32 %v208_v52, %v198_v47  ;;  %v231_v40 = vsel %vm230_vm11, 1, %v13856_v51  ;;  %4078 = vrot.lane.b32.xlu2 %v6535_v49, %s6829_s14  ;;  %4076 = vrot.lane.b32.xlu1 %v6534_v48, %s6829_s14  ;;  %v3029_v28 = vsel %vm13891_vm9, %v2992_v54, %v9072_v37  ;;  %v3182_v26 = vpop.f32.mrf.mxu0  ;;  %v6538_v49 = vld [vmem:[%s13848_s0 + $0x202] sm:$0xff] }
 0x395   :  { %v9892_v59 = vsub.s32 %v9541_v62, %v154_v15  ;;  %vm234_vm13 = vc.u32 %v232_v25, %v228_v19  ;;  %v249_v36 = vshrl.u32 %v9836_v27, 16  ;;  %4074 = vrot.lane.b32.xlu0 %v6533_v6, %s6829_s14  ;;  %vm9896_vm14 = vcmp.lt.s32.totalorder %v1259_v53, 16  ;;  %v14340_v15 = vld [vmem:[#allocation152_spill] sm:$0xff]  ;;  %v6536_v6 = vld [vmem:[%s13848_s0 + $0x1f2] sm:$0xff] }
 0x396   :  { %v3041_v0 = vsel %vm13891_vm9, %v3004_v30, %v9664_v46  ;;  %v9902_v39 = vmul.u32 58254, %v248_v43  ;;  %v1260_v37 = vsel %vm9879_vm12, %v1224_v2, %v9817_v8  ;;  %v233_v62 = vadd.s32 %v231_v40, %v225_v34  ;;  %v9913_v46 = vpop.permute.xlu0 %3894  ;;  %v14347_v40 = vld [vmem:[#allocation166_spill] sm:$0xff] }
 0x397   :  { %v251_v54 = vmul.u32 14564, %v248_v43  ;;  %v9907_v33 = vmul.u32 14564, %v249_v36  ;;  %v3183_v4 = vadd.f32 %v9873_v29, %v3182_v26  ;;  %v183_v31 = vmul.u32 18, %v182_v38  ;;  %v14342_v43 = vld [vmem:[#allocation156_spill] sm:$0xff] }
 0x398   :  { %v210_v11 = vadd.s32 %v209_v60, %v200_v16  ;;  %v235_v47 = vsel %vm234_vm13, 1, %v13856_v51  ;;  %vm1117_vm15 = vcmp.ne.s32.totalorder %v9892_v59, 0  ;;  %vm1153_vm0 = vcmp.lt.s32.totalorder %v9892_v59, 0 }
 0x399   :  { %v255_v8 = vshll.u32 %v9902_v39, 16  ;;  %v257_v52 = vshll.u32 %v9907_v33, 16  ;;  %v9922_v19 = vsel %vm2901_vm5, %v9478_v13, %v14340_v15  ;;  %v13858_v57 = vmov 0.0   ;;  %3292 = vst.msk [vmem:[#allocation2] sm:$0xff] %vm2790_vm2, %v3183_v4  ;;  %v6537_v13 = vld [vmem:[%s13848_s0 + $0x1fa] sm:$0xff]  ;;  %vm9954_vm12 = vmand %vm1153_vm0, %vm1117_vm15 }
 0x39a   :  { %v9927_v30 = vsel %vm9896_vm14, 1.0, %v13858_v57  ;;  %v1225_v48 = vadd.s32 18, %v9892_v59  ;;  %v254_v25 = vmul.u32 58254, %v249_v36  ;;  %v227_v53 = vshrl.u32 %v9811_v5, 16 }
 0x39b   :  { %14341 = vst [vmem:[#allocation9_spill] sm:$0xff] %v9927_v30  ;;  %6423 = vmatmul.msk.f32.gmra.mxu0 %vm13870_vm8, %v3029_v28  ;;  %6435 = vmatmul.msk.f32.gmra.mxu3 %vm13870_vm8, %v3041_v0  ;;  %v237_v2 = vadd.s32 %v235_v47, %v233_v62  ;;  %vm259_vm10 = vc.u32 %v251_v54, %v255_v8  ;;  %vm9946_vm11 = vcmp.lt.s32.totalorder %v1260_v37, 16  ;;  %v211_v60 = vshrl.u32 %v210_v11, 4  ;;  %v14348_v28 = vld [vmem:[#allocation184_spill] sm:$0xff]  ;;  %v9974_v62 = vpop.permute.xlu2 %3904 }
 0x39c   :  { %v261_v34 = vadd.s32 %v255_v8, %v251_v54  ;;  %v2956_v50 = vsel %vm2938_vm6, %v9522_v42, %v14342_v43  ;;  %v9959_v5 = vsub.s32 %v9643_v7, %v183_v31  ;;  %v2968_v42 = vsel %vm2938_vm6, %v9612_v55, %v14347_v40  ;;  %4084 = vrot.lane.b32.xlu2 %v6538_v49, %s6829_s14  ;;  %v14349_v0 = vld [vmem:[#allocation196_spill] sm:$0xff]  ;;  %v3185_v31 = vpop.f32.mrf.mxu0 }
 0x39d   :  { %v2993_v36 = vsel %vm2975_vm7, %v2956_v50, %v14348_v28  ;;  %4082 = vrot.lane.b32.xlu1 %v6537_v13, %s6829_s14  ;;  %v260_v32 = vsel %vm259_vm10, 1, %v13856_v51  ;;  %v3005_v26 = vsel %vm2975_vm7, %v2968_v42, %v14349_v0  ;;  %v3368_v7 = vmul.f32 %v9927_v30, %v3183_v4  ;;  %4080 = vrot.lane.b32.xlu0 %v6536_v6, %s6829_s14  ;;  %v14352_v6 = vld [vmem:[#allocation176_spill] sm:$0xff]  ;;  %v14357_v28 = vld [vmem:[#allocation201_spill] sm:$0xff] }
 0x39e   :  { %vm263_vm13 = vc.u32 %v261_v34, %v257_v52  ;;  %v262_v37 = vadd.s32 %v260_v32, %v254_v25  ;;  %14350 = vst [vmem:[#allocation10_spill] sm:$0xff] %v9974_v62  ;;  %v9979_v54 = vsel %vm9946_vm11, 1.0, %v13858_v57  ;;  %v1261_v11 = vsel %vm9954_vm12, %v1225_v48, %v9892_v59  ;;  %v9993_v59 = vpop.permute.xlu1 %3902  ;;  %v6539_v34 = vld [vmem:[%s13848_s0 + $0x20a] sm:$0xff] }
 0x39f   :  { %v264_v55 = vsel %vm263_vm13, 1, %v13856_v51  ;;  %14351 = vst [vmem:[#allocation11_spill] sm:$0xff] %v9979_v54  ;;  %v229_v47 = vshrl.u32 %v9825_v10, 16  ;;  %v238_v4 = vadd.s32 %v237_v2, %v227_v53  ;;  %v3186_v8 = vadd.f32 %v9873_v29, %v3185_v31  ;;  %v10009_v2 = vpop.permute.xlu0 %3900 }
 0x3a0   :  { %vm1118_vm14 = vcmp.ne.s32.totalorder %v9959_v5, 0  ;;  %vm1154_vm15 = vcmp.lt.s32.totalorder %v9959_v5, 0  ;;  %v212_v52 = vmul.u32 18, %v211_v60  ;;  %v3030_v15 = vsel %vm13891_vm9, %v2993_v36, %v9166_v9  ;;  %v6541_v9 = vld [vmem:[%s13848_s0 + $0x21a] sm:$0xff] }
 0x3a1   :  { %v3042_v49 = vsel %vm13891_vm9, %v3005_v26, %v9635_v23  ;;  %v256_v13 = vshrl.u32 %v9902_v39, 16  ;;  %v266_v25 = vadd.s32 %v264_v55, %v262_v37  ;;  %v3486_v10 = vmul.f32 %v3368_v7, %v3368_v7  ;;  %3293 = vst.msk [vmem:[#allocation2 + $0x8] sm:$0xff] %vm2790_vm2, %v3186_v8  ;;  %v6540_v23 = vld [vmem:[%s13848_s0 + $0x212] sm:$0xff]  ;;  %vm10022_vm10 = vmand %vm1154_vm15, %vm1118_vm14 }
 0x3a2   :  { %v3369_v48 = vmul.f32 %v9979_v54, %v3186_v8  ;;  %v1226_v39 = vadd.s32 18, %v9959_v5  ;;  %v2969_v53 = vsel %vm2938_vm6, %v9697_v22, %v14352_v6  ;;  %vm10014_vm0 = vcmp.lt.s32.totalorder %v1261_v11, 16  ;;  %v6542_v6 = vld [vmem:[%s13848_s0 + $0x222] sm:$0xff] }
 0x3a3   :  { %6424 = vmatmul.msk.f32.gmra.mxu0 %vm13870_vm8, %v3030_v15  ;;  %6436 = vmatmul.msk.f32.gmra.mxu3 %vm13870_vm8, %v3042_v49  ;;  %v239_v38 = vadd.s32 %v238_v4, %v229_v47  ;;  %v10027_v22 = vadd.s32 56, %v9344_v12  ;;  %v3405_v16 = vsel %vm2790_vm2, %v3368_v7, 0.0  ;;  %v10032_v42 = vsub.s32 %v9714_v17, %v212_v52  ;;  %v14359_v15 = vld [vmem:[#allocation153_spill] sm:$0xff]  ;;  %v14360_v49 = vld [vmem:[#allocation167_spill] sm:$0xff] }
 0x3a4   :  { %v3406_v60 = vsel %vm2790_vm2, %v3369_v48, 0.0  ;;  %v3487_v40 = vmul.f32 %v3369_v48, %v3369_v48  ;;  %v3006_v36 = vsel %vm2975_vm7, %v2969_v53, %v14357_v28  ;;  %4090 = vrot.lane.b32.xlu2 %v6541_v9, %s6829_s14  ;;  %v258_v0 = vshrl.u32 %v9907_v33, 16  ;;  %v3188_v11 = vpop.f32.mrf.mxu0  ;;  %v14362_v9 = vld [vmem:[#allocation175_spill] sm:$0xff] }
 0x3a5   :  { %v3407_v32 = vadd.f32 %v3406_v60, %v3405_v16  ;;  %4088 = vrot.lane.b32.xlu1 %v6540_v23, %s6829_s14  ;;  %v267_v26 = vadd.s32 %v266_v25, %v256_v13  ;;  %v3522_v37 = vsel %vm2790_vm2, %v3486_v10, 0.0  ;;  %4086 = vrot.lane.b32.xlu0 %v6539_v34, %s6829_s14  ;;  %v10045_v17 = vsel %vm10014_vm0, 1.0, %v13858_v57  ;;  %v10066_v25 = vpop.permute.xlu2 %3910  ;;  %v14367_v16 = vld [vmem:[#allocation177_spill] sm:$0xff] }
 0x3a6   :  { %v3523_v7 = vsel %vm2790_vm2, %v3487_v40, 0.0  ;;  %14358 = vst [vmem:[#allocation62_spill] sm:$0xff] %v10045_v17  ;;  %v1262_v55 = vsel %vm10022_vm10, %v1226_v39, %v9959_v5  ;;  %v240_v47 = vshrl.u32 %v239_v38, 4  ;;  %v10051_v33 = vadd.s32 144, %v9344_v12  ;;  %v10106_v40 = vpop.permute.xlu1 %3908 }
 0x3a7   :  { %v3524_v31 = vadd.f32 %v3523_v7, %v3522_v37  ;;  %v277_v4 = vand.u32 65535, %v10027_v22  ;;  %v3189_v8 = vadd.f32 %v9873_v29, %v3188_v11  ;;  %vm1119_vm11 = vcmp.ne.s32.totalorder %v10032_v42, 0  ;;  %14361 = vst [vmem:[#allocation12_spill] sm:$0xff] %v10066_v25 }
 0x3a8   :  { %vm1155_vm12 = vcmp.lt.s32.totalorder %v10032_v42, 0  ;;  %v278_v52 = vshrl.u32 %v10027_v22, 16  ;;  %v10061_v5 = vsel %vm2901_vm5, %v9483_v3, %v14359_v15  ;;  %v2971_v13 = vsel %vm2938_vm6, %v9617_v21, %v14360_v49  ;;  %v6544_v3 = vld [vmem:[%s13848_s0 + $0x232] sm:$0xff]  ;;  %v6543_v21 = vld [vmem:[%s13848_s0 + $0x22a] sm:$0xff]  ;;  %14368 = vst [vmem:[#allocation13_spill] sm:$0xff] %v10106_v40 }
 0x3a9   :  { %v3043_v10 = vsel %vm13891_vm9, %v3006_v36, %v9760_v56  ;;  %v268_v48 = vadd.s32 %v267_v26, %v258_v0  ;;  %v2970_v23 = vsel %vm2938_vm6, %v9687_v45, %v14362_v9  ;;  %3294 = vst.msk [vmem:[#allocation2 + $0x10] sm:$0xff] %vm2790_vm2, %v3189_v8  ;;  %v3370_v39 = vmul.f32 %v10045_v17, %v3189_v8  ;;  %vm10094_vm14 = vmand %vm1155_vm12, %vm1119_vm11  ;;  %v10111_v26 = vpop.permute.xlu0 %3906 }
 0x3aa   :  { %vm10082_vm13 = vcmp.lt.s32.totalorder %v1262_v55, 16  ;;  %v1227_v45 = vadd.s32 18, %v10032_v42  ;;  %v241_v34 = vmul.u32 18, %v240_v47  ;;  %v596_v43 = vand.u32 65535, %v10051_v33  ;;  %14369 = vst [vmem:[#allocation93_spill] sm:$0xff] %v10111_v26 }
 0x3ab   :  { %6437 = vmatmul.msk.f32.gmra.mxu3 %vm13870_vm8, %v3043_v10  ;;  %v280_v50 = vmul.u32 14564, %v277_v4  ;;  %v10099_v38 = vmul.u32 58254, %v277_v4  ;;  %v10104_v60 = vsel %vm2938_vm6, %v9922_v19, %v14367_v16  ;;  %v3408_v28 = vsel %vm2790_vm2, %v3370_v39, 0.0  ;;  %v6545_v16 = vld [vmem:[%s13848_s0 + $0x23a] sm:$0xff] }
 0x3ac   :  { %v3488_v36 = vmul.f32 %v3370_v39, %v3370_v39  ;;  %v10109_v0 = vmul.u32 14564, %v278_v52  ;;  %v3409_v37 = vadd.f32 %v3408_v28, %v3407_v32  ;;  %4096 = vrot.lane.b32.xlu2 %v6544_v3, %s6829_s14  ;;  %v10118_v7 = vsel %vm10082_vm13, 1.0, %v13858_v57  ;;  %v3191_v15 = vpop.f32.mrf.mxu0 }
 0x3ad   :  { %4094 = vrot.lane.b32.xlu1 %v6543_v21, %s6829_s14  ;;  %14370 = vst [vmem:[#allocation14_spill] sm:$0xff] %v10118_v7  ;;  %v269_v19 = vshrl.u32 %v268_v48, 4  ;;  %v284_v55 = vshll.u32 %v10099_v38, 16  ;;  %4092 = vrot.lane.b32.xlu0 %v6542_v6, %s6829_s14  ;;  %v1263_v32 = vsel %vm10094_vm14, %v1227_v45, %v10032_v42  ;;  %v597_v47 = vshrl.u32 %v10051_v33, 16  ;;  %v14371_v48 = vld [vmem:[#allocation200_spill] sm:$0xff]  ;;  %v14372_v21 = vld [vmem:[#allocation199_spill] sm:$0xff] }
 0x3ae   :  { %v3525_v11 = vsel %vm2790_vm2, %v3488_v36, 0.0  ;;  %v283_v4 = vmul.u32 58254, %v278_v52  ;;  %v10128_v49 = vsub.s32 %v9773_v41, %v241_v34  ;;  %v10130_v10 = vmul.u32 58254, %v596_v43  ;;  %v6547_v45 = vld [vmem:[%s13848_s0 + $0x24a] sm:$0xff]  ;;  %v10154_v34 = vpop.permute.xlu2 %3916 }
 0x3af   :  { %v3526_v8 = vadd.f32 %v3525_v11, %v3524_v31  ;;  %vm288_vm15 = vc.u32 %v280_v50, %v284_v55  ;;  %v3007_v9 = vsel %vm2975_vm7, %v2970_v23, %v14371_v48  ;;  %v3192_v39 = vadd.f32 %v9873_v29, %v3191_v15  ;;  %14375 = vst [vmem:[#allocation15_spill] sm:$0xff] %v10154_v34  ;;  %v10173_v15 = vpop.permute.xlu1 %3914 }
 0x3b0   :  { %v286_v3 = vshll.u32 %v10109_v0, 16  ;;  %v289_v42 = vsel %vm288_vm15, 1, %v13856_v51  ;;  %v3008_v52 = vsel %vm2975_vm7, %v2971_v13, %v14372_v21  ;;  %v3044_v31 = vsel %vm13891_vm9, %v3007_v9, %v9751_v18  ;;  %v6546_v13 = vld [vmem:[%s13848_s0 + $0x242] sm:$0xff]  ;;  %14376 = vst [vmem:[#allocation16_spill] sm:$0xff] %v10173_v15 }
 0x3b1   :  { %vm10141_vm0 = vcmp.lt.s32.totalorder %v1263_v32, 16  ;;  %v270_v56 = vmul.u32 18, %v269_v19  ;;  %3295 = vst.msk [vmem:[#allocation2 + $0x18] sm:$0xff] %vm2790_vm2, %v3192_v39  ;;  %v3371_v23 = vmul.f32 %v10118_v7, %v3192_v39  ;;  %v599_v18 = vmul.u32 14564, %v596_v43  ;;  %v10191_v39 = vpop.permute.xlu0 %3912 }
 0x3b2   :  { %v290_v6 = vadd.s32 %v284_v55, %v280_v50  ;;  %v291_v53 = vadd.s32 %v289_v42, %v283_v4  ;;  %vm1120_vm10 = vcmp.ne.s32.totalorder %v10128_v49, 0  ;;  %vm1156_vm11 = vcmp.lt.s32.totalorder %v10128_v49, 0  ;;  %14380 = vst [vmem:[#allocation18_spill] sm:$0xff] %v10191_v39 }
 0x3b3   :  { %6438 = vmatmul.msk.f32.gmra.mxu3 %vm13870_vm8, %v3044_v31  ;;  %v10161_v28 = vmul.u32 14564, %v597_v47  ;;  %v603_v36 = vshll.u32 %v10130_v10, 16  ;;  %v3410_v19 = vsel %vm2790_vm2, %v3371_v23, 0.0  ;;  %v3489_v11 = vmul.f32 %v3371_v23, %v3371_v23  ;;  %vm10186_vm13 = vmand %vm1156_vm11, %vm1120_vm10 }
 0x3b4   :  { %v285_v43 = vshrl.u32 %v10099_v38, 16  ;;  %vm292_vm12 = vc.u32 %v290_v6, %v286_v3  ;;  %v3411_v50 = vadd.f32 %v3410_v19, %v3409_v37  ;;  %4102 = vrot.lane.b32.xlu2 %v6547_v45, %s6829_s14  ;;  %v1228_v55 = vadd.s32 18, %v10128_v49  ;;  %v3194_v42 = vpop.f32.mrf.mxu0  ;;  %v14383_v6 = vld [vmem:[#allocation178_spill] sm:$0xff] }
 0x3b5   :  { %4100 = vrot.lane.b32.xlu1 %v6546_v13, %s6829_s14  ;;  %v10170_v32 = vsub.s32 %v9836_v27, %v270_v56  ;;  %v293_v4 = vsel %vm292_vm12, 1, %v13856_v51  ;;  %v3527_v48 = vsel %vm2790_vm2, %v3489_v11, 0.0  ;;  %4098 = vrot.lane.b32.xlu0 %v6545_v16, %s6829_s14  ;;  %v10180_v38 = vsel %vm10141_vm0, 1.0, %v13858_v57  ;;  %v6548_v11 = vld [vmem:[%s13848_s0 + $0x252] sm:$0xff] }
 0x3b6   :  { %14377 = vst [vmem:[#allocation17_spill] sm:$0xff] %v10180_v38  ;;  %v287_v37 = vshrl.u32 %v10109_v0, 16  ;;  %v295_v9 = vadd.s32 %v293_v4, %v291_v53  ;;  %v3528_v3 = vadd.f32 %v3527_v48, %v3526_v8  ;;  %v605_v21 = vshll.u32 %v10161_v28, 16 }
 0x3b7   :  { %vm10194_vm14 = vc.u32 %v599_v18, %v603_v36  ;;  %v609_v41 = vadd.s32 %v603_v36, %v599_v18  ;;  %v3195_v56 = vadd.f32 %v9873_v29, %v3194_v42  ;;  %v3045_v23 = vsel %vm13891_vm9, %v3008_v52, %v9724_v1  ;;  %v14385_v36 = vld [vmem:[#allocation204_spill] sm:$0xff] }
 0x3b8   :  { %v602_v45 = vmul.u32 58254, %v597_v47  ;;  %v296_v13 = vadd.s32 %v295_v9, %v285_v43  ;;  %v1264_v0 = vsel %vm10186_vm13, %v1228_v55, %v10128_v49  ;;  %vm1121_vm15 = vcmp.ne.s32.totalorder %v10170_v32, 0  ;;  %v6550_v47 = vld [vmem:[%s13848_s0 + $0x262] sm:$0xff]  ;;  %v6549_v49 = vld [vmem:[%s13848_s0 + $0x25a] sm:$0xff] }
 0x3b9   :  { %vm1157_vm0 = vcmp.lt.s32.totalorder %v10170_v32, 0  ;;  %v10207_v8 = vadd.s32 64, %v9344_v12  ;;  %v2972_v18 = vsel %vm2938_vm6, %v10061_v5, %v14383_v6  ;;  %3296 = vst.msk [vmem:[#allocation2 + $0x20] sm:$0xff] %vm2790_vm2, %v3195_v56  ;;  %v3372_v1 = vmul.f32 %v10180_v38, %v3195_v56  ;;  %v14384_v5 = vld [vmem:[#allocation202_spill] sm:$0xff] }
 0x3ba   :  { %v608_v52 = vsel %vm10194_vm14, 1, %v13856_v51  ;;  %v297_v53 = vadd.s32 %v296_v13, %v287_v37  ;;  %v3010_v16 = vsel %vm2975_vm7, %v10104_v60, %v14384_v5  ;;  %v3009_v19 = vsel %vm2975_vm7, %v2972_v18, %v14385_v36  ;;  %vm10242_vm12 = vmand %vm1157_vm0, %vm1121_vm15  ;;  %v10246_v37 = vpop.permute.xlu2 %3922 }
 0x3bb   :  { %6439 = vmatmul.msk.f32.gmra.mxu3 %vm13870_vm8, %v3045_v23  ;;  %v1229_v43 = vadd.s32 18, %v10170_v32  ;;  %vm611_vm10 = vc.u32 %v609_v41, %v605_v21  ;;  %v3412_v55 = vsel %vm2790_vm2, %v3372_v1, 0.0  ;;  %v3490_v4 = vmul.f32 %v3372_v1, %v3372_v1  ;;  %14390 = vst [vmem:[#allocation19_spill] sm:$0xff] %v10246_v37  ;;  %v10268_v1 = vpop.permute.xlu1 %3920 }
 0x3bc   :  { %vm10234_vm11 = vcmp.lt.s32.totalorder %v1264_v0, 16  ;;  %v298_v27 = vshrl.u32 %v297_v53, 4  ;;  %v3413_v9 = vadd.f32 %v3412_v55, %v3411_v50  ;;  %4108 = vrot.lane.b32.xlu2 %v6550_v47, %s6829_s14  ;;  %v610_v42 = vadd.s32 %v608_v52, %v602_v45  ;;  %v3197_v45 = vpop.f32.mrf.mxu0  ;;  %14392 = vst [vmem:[#allocation21_spill] sm:$0xff] %v10268_v1  ;;  %v10276_v53 = vpop.permute.xlu0 %3918 }
 0x3bd   :  { %4106 = vrot.lane.b32.xlu1 %v6549_v49, %s6829_s14  ;;  %v10251_v21 = vadd.s32 152, %v9344_v12  ;;  %v306_v31 = vand.u32 65535, %v10207_v8  ;;  %v3529_v41 = vsel %vm2790_vm2, %v3490_v4, 0.0  ;;  %4104 = vrot.lane.b32.xlu0 %v6548_v11, %s6829_s14  ;;  %v612_v56 = vsel %vm611_vm10, 1, %v13856_v51  ;;  %14393 = vst [vmem:[#allocation22_spill] sm:$0xff] %v10276_v53 }
 0x3be   :  { %v299_v23 = vmul.u32 18, %v298_v27  ;;  %v307_v13 = vshrl.u32 %v10207_v8, 16  ;;  %v3530_v50 = vadd.f32 %v3529_v41, %v3528_v3  ;;  %v10261_v0 = vsel %vm10234_vm11, 1.0, %v13858_v57  ;;  %v6762_v41 = vld [vmem:[%s13848_s0 + $0x15a] sm:$0xff] }
 0x3bf   :  { %14391 = vst [vmem:[#allocation20_spill] sm:$0xff] %v10261_v0  ;;  %v1265_v6 = vsel %vm10242_vm12, %v1229_v43, %v10170_v32  ;;  %v10266_v18 = vmul.u32 58254, %v306_v31  ;;  %v3198_v47 = vadd.f32 %v9873_v29, %v3197_v45  ;;  %v3046_v49 = vsel %vm13891_vm9, %v3009_v19, %v9830_v58 }
 0x3c0   :  { %v3047_v3 = vsel %vm13891_vm9, %v3010_v16, %v9822_v63  ;;  %v300_v52 = vsub.s32 %v10027_v22, %v299_v23  ;;  %v604_v5 = vshrl.u32 %v10130_v10, 16  ;;  %v614_v36 = vadd.s32 %v612_v56, %v610_v42 }
 0x3c1   :  { %v625_v32 = vand.u32 65535, %v10251_v21  ;;  %v10280_v11 = vmul.u32 14564, %v307_v13  ;;  %3297 = vst.msk [vmem:[#allocation2 + $0x28] sm:$0xff] %vm2790_vm2, %v3198_v47  ;;  %v3373_v43 = vmul.f32 %v10261_v0, %v3198_v47  ;;  %vm10285_vm13 = vcmp.lt.s32.totalorder %v1265_v6, 16 }
 0x3c2   :  { %v606_v63 = vshrl.u32 %v10161_v28, 16  ;;  %v309_v22 = vmul.u32 14564, %v306_v31  ;;  %vm1122_vm14 = vcmp.ne.s32.totalorder %v300_v52, 0  ;;  %vm1158_vm15 = vcmp.lt.s32.totalorder %v300_v52, 0  ;;  %v10316_v56 = vpop.permute.xlu2 %3928 }
 0x3c3   :  { %6440 = vmatmul.msk.f32.gmra.mxu3 %vm13870_vm8, %v3046_v49  ;;  %v626_v10 = vshrl.u32 %v10251_v21, 16  ;;  %v313_v16 = vshll.u32 %v10266_v18, 16  ;;  %v3414_v19 = vsel %vm2790_vm2, %v3373_v43, 0.0  ;;  %v3491_v55 = vmul.f32 %v3373_v43, %v3373_v43  ;;  %vm10312_vm0 = vmand %vm1158_vm15, %vm1122_vm14  ;;  %14399 = vst [vmem:[#allocation24_spill] sm:$0xff] %v10316_v56 }
 0x3c4   :  { %v312_v4 = vmul.u32 58254, %v307_v13  ;;  %v315_v48 = vshll.u32 %v10280_v11, 16  ;;  %v3415_v60 = vadd.f32 %v3414_v19, %v3413_v9  ;;  %4152 = vrot.lane.b32.xlu2 %v9493_v14, %s6830_s18  ;;  %v615_v28 = vadd.s32 %v614_v36, %v604_v5 }
 0x3c5   :  { %4150 = vrot.lane.b32.xlu1 %v9500_v20, %s6830_s18  ;;  %v1230_v27 = vadd.s32 18, %v300_v52  ;;  %v10298_v42 = vmul.u32 58254, %v625_v32  ;;  %v3531_v31 = vsel %vm2790_vm2, %v3491_v55, 0.0  ;;  %4148 = vrot.lane.b32.xlu0 %v6762_v41, %s6830_s18  ;;  %v10308_v9 = vsel %vm10285_vm13, 1.0, %v13858_v57  ;;  %v3200_v13 = vpop.f32.mrf.mxu0  ;;  %v10335_v55 = vpop.permute.xlu1 %3926 }
 0x3c6   :  { %14396 = vst [vmem:[#allocation23_spill] sm:$0xff] %v10308_v9  ;;  %vm317_vm10 = vc.u32 %v309_v22, %v313_v16  ;;  %v319_v20 = vadd.s32 %v313_v16, %v309_v22  ;;  %v3532_v23 = vadd.f32 %v3531_v31, %v3530_v50  ;;  %v10320_v45 = vmul.u32 14564, %v626_v10  ;;  %v14400_v16 = vld [vmem:[#allocation171_spill] sm:$0xff]  ;;  %v10349_v31 = vpop.permute.xlu0 %3924 }
 0x3c7   :  { %v318_v6 = vsel %vm317_vm10, 1, %v13856_v51  ;;  %v10324_v47 = vadd.s32 160, %v9344_v12  ;;  %v3201_v49 = vadd.f32 %v9873_v29, %v3200_v13  ;;  %v314_v5 = vshrl.u32 %v10266_v18, 16  ;;  %14401 = vst [vmem:[#allocation25_spill] sm:$0xff] %v10335_v55 }
 0x3c8   :  { %v320_v36 = vadd.s32 %v318_v6, %v312_v4  ;;  %vm321_vm11 = vc.u32 %v319_v20, %v315_v48  ;;  %v1266_v43 = vsel %vm10312_vm0, %v1230_v27, %v300_v52  ;;  %v628_v50 = vmul.u32 14564, %v625_v32  ;;  %v6589_v52 = vld [vmem:[%s13848_s0 + $0x15c] sm:$0xff]  ;;  %14403 = vst [vmem:[#allocation26_spill] sm:$0xff] %v10349_v31 }
 0x3c9   :  { %v632_v58 = vshll.u32 %v10298_v42, 16  ;;  %v322_v22 = vsel %vm321_vm11, 1, %v13856_v51  ;;  %v2974_v19 = vsel %vm2938_vm6, %v9648_v35, %v14400_v16  ;;  %3298 = vst.msk [vmem:[#allocation2 + $0x30] sm:$0xff] %vm2790_vm2, %v3201_v49  ;;  %v3374_v18 = vmul.f32 %v10308_v9, %v3201_v49  ;;  %v6553_v32 = vld [vmem:[%s13848_s0 + $0x15b] sm:$0xff] }
 0x3ca   :  { %v316_v4 = vshrl.u32 %v10280_v11, 16  ;;  %v324_v48 = vadd.s32 %v322_v22, %v320_v36  ;;  %v14402_v35 = vld [vmem:[#allocation203_spill] sm:$0xff]  ;;  %v616_v41 = vadd.s32 %v615_v28, %v606_v63  ;;  %v634_v14 = vshll.u32 %v10320_v45, 16 }
 0x3cb   :  { %6441 = vmatmul.msk.f32.gmra.mxu3 %vm13870_vm8, %v3047_v3  ;;  %v3011_v27 = vsel %vm2975_vm7, %v2974_v19, %v14402_v35  ;;  %v3416_v3 = vsel %vm2790_vm2, %v3374_v18, 0.0  ;;  %v3492_v20 = vmul.f32 %v3374_v18, %v3374_v18  ;;  %vm10353_vm12 = vcmp.lt.s32.totalorder %v1266_v43, 16 }
 0x3cc   :  { %v325_v6 = vadd.s32 %v324_v48, %v314_v5  ;;  %v3417_v49 = vadd.f32 %v3416_v3, %v3415_v60  ;;  %v3236_v16 = vpop.f32.mrf.mxu3  ;;  %4436 = vrot.lane.b32.xlu2 %v6589_v52, %s6832_s25  ;;  %vm10359_vm13 = vc.u32 %v628_v50, %v632_v58  ;;  %v638_v63 = vadd.s32 %v632_v58, %v628_v50  ;;  %v6763_v60 = vld [vmem:[%s13848_s0 + $0x172] sm:$0xff]  ;;  %v10390_v48 = vpop.permute.xlu2 %3934 }
 0x3cd   :  { %4292 = vrot.lane.b32.xlu1 %v6553_v32, %s6831_s29  ;;  %v654_v28 = vand.u32 65535, %v10324_v47  ;;  %v3533_v36 = vsel %vm2790_vm2, %v3492_v20, 0.0  ;;  %v10366_v43 = vadd.f32 %v9873_v29, %v3236_v16  ;;  %4154 = vrot.lane.b32.xlu0 %v6763_v60, %s6830_s18  ;;  %v10373_v22 = vadd.s32 72, %v9344_v12  ;;  %v3203_v58 = vpop.f32.mrf.mxu0  ;;  %14409 = vst [vmem:[#allocation28_spill] sm:$0xff] %v10390_v48  ;;  %v10412_v16 = vld [vmem:[%s13848_s0 + $0x16c] sm:$0xff] }
 0x3ce   :  { %v326_v5 = vadd.s32 %v325_v6, %v316_v4  ;;  %v3534_v19 = vadd.f32 %v3533_v36, %v3532_v23  ;;  %v617_v18 = vshrl.u32 %v616_v41, 4  ;;  %v10378_v50 = vsel %vm10353_vm12, 1.0, %v13858_v57 }
 0x3cf   :  { %14408 = vst [vmem:[#allocation27_spill] sm:$0xff] %v10378_v50  ;;  %v631_v52 = vmul.u32 58254, %v626_v10  ;;  %v3204_v32 = vadd.f32 %v9873_v29, %v3203_v58  ;;  %v3048_v4 = vsel %vm13891_vm9, %v3011_v27, %v9803_v44  ;;  %v637_v23 = vsel %vm10359_vm13, 1, %v13856_v51  ;;  %v6663_v44 = vld [vmem:[%s13848_s0 + $0x16e] sm:$0xff] }
 0x3d0   :  { %3310 = vst.msk [vmem:[#allocation2 + $0x90] sm:$0xff] %vm2790_vm2, %v10366_v43  ;;  %vm10392_vm14 = vc.u32 %v638_v63, %v634_v14  ;;  %v327_v41 = vshrl.u32 %v326_v5, 4  ;;  %v655_v10 = vshrl.u32 %v10324_v47, 16  ;;  %v10397_v3 = vmul.u32 58254, %v654_v28  ;;  %v6627_v27 = vld [vmem:[%s13848_s0 + $0x16d] sm:$0xff]  ;;  %v10414_v63 = vpop.permute.xlu1 %3932 }
 0x3d1   :  { %3299 = vst.msk [vmem:[#allocation2 + $0x38] sm:$0xff] %vm2790_vm2, %v3204_v32  ;;  %v3375_v20 = vmul.f32 %v10378_v50, %v3204_v32  ;;  %v335_v14 = vand.u32 65535, %v10373_v22  ;;  %v618_v13 = vmul.u32 18, %v617_v18  ;;  %v639_v6 = vadd.s32 %v637_v23, %v631_v52  ;;  %v10420_v32 = vpop.permute.xlu0 %3930 }
 0x3d2   :  { %v328_v11 = vmul.u32 18, %v327_v41  ;;  %14412 = vst [vmem:[#allocation29_spill] sm:$0xff] %v10414_v63  ;;  %v641_v5 = vsel %vm10392_vm14, 1, %v13856_v51  ;;  %v657_v58 = vmul.u32 14564, %v654_v28  ;;  %v10425_v23 = vmul.u32 14564, %v655_v10 }
 0x3d3   :  { %6442 = vmatmul.msk.f32.gmra.mxu3 %vm13870_vm8, %v3048_v4  ;;  %v3418_v36 = vsel %vm2790_vm2, %v3375_v20, 0.0  ;;  %v3493_v60 = vmul.f32 %v3375_v20, %v3375_v20  ;;  %14413 = vst [vmem:[#allocation30_spill] sm:$0xff] %v10420_v32  ;;  %v661_v41 = vshll.u32 %v10397_v3, 16  ;;  %v10435_v28 = vmul.u32 58254, %v335_v14 }
 0x3d4   :  { %v3419_v18 = vadd.f32 %v3418_v36, %v3417_v49  ;;  %v3239_v52 = vpop.f32.mrf.mxu3  ;;  %4834 = vrot.lane.b32.xlu2 %v6663_v44, %s6835_s22  ;;  %v329_v4 = vsub.s32 %v10207_v8, %v328_v11  ;;  %v336_v49 = vshrl.u32 %v10373_v22, 16  ;;  %v633_v11 = vshrl.u32 %v10298_v42, 16  ;;  %v10449_v42 = vld [vmem:[%s13848_s0 + $0x174] sm:$0xff] }
 0x3d5   :  { %4690 = vrot.lane.b32.xlu1 %v6627_v27, %s6834_s10  ;;  %v3535_v20 = vsel %vm2790_vm2, %v3493_v60, 0.0  ;;  %v10430_v35 = vadd.f32 %v9873_v29, %v3239_v52  ;;  %4546 = vrot.lane.b32.xlu0 %v10412_v16, %s6833_s19  ;;  %v643_v36 = vadd.s32 %v641_v5, %v639_v6  ;;  %v663_v51 = vshll.u32 %v10425_v23, 16  ;;  %v6590_v6 = vld [vmem:[%s13848_s0 + $0x164] sm:$0xff] }
 0x3d6   :  { %v3536_v44 = vadd.f32 %v3535_v20, %v3534_v19  ;;  %vm1123_vm15 = vcmp.ne.s32.totalorder %v329_v4, 0  ;;  %vm1159_vm0 = vcmp.lt.s32.totalorder %v329_v4, 0  ;;  %v1231_v8 = vadd.s32 18, %v329_v4  ;;  %v3206_v27 = vpop.f32.mrf.mxu0 }
 0x3d7   :  { %3311 = vst.msk [vmem:[#allocation2 + $0x98] sm:$0xff] %vm2790_vm2, %v10430_v35  ;;  %vm1195_vm10 = vmand %vm1159_vm0, %vm1123_vm15  ;;  %v3207_v60 = vadd.f32 %v9873_v29, %v3206_v27  ;;  %v667_v57 = vadd.s32 %v661_v41, %v657_v58  ;;  %v338_v32 = vmul.u32 14564, %v335_v14  ;;  %v10443_v19 = vsub.s32 %v10051_v33, %v618_v13 }
 0x3d8   :  { %v1267_v52 = vsel %vm1195_vm10, %v1231_v8, %v329_v4  ;;  %vm665_vm12 = vc.u32 %v657_v58, %v661_v41  ;;  %v340_v5 = vmul.u32 14564, %v336_v49  ;;  %v10454_v4 = vpop.permute.xlu2 %3940  ;;  %v635_v14 = vshrl.u32 %v10320_v45, 16  ;;  %v6554_v58 = vld [vmem:[%s13848_s0 + $0x163] sm:$0xff]  ;;  %v10473_v1 = vpop.permute.xlu1 %3938 }
 0x3d9   :  { %vm1303_vm11 = vcmp.lt.s32.totalorder %v1267_v52, 16  ;;  %3300 = vst.msk [vmem:[#allocation2 + $0x40] sm:$0xff] %vm2790_vm2, %v3207_v60  ;;  %v14415_v33 = vmov 0.0   ;;  %v341_v41 = vmul.u32 58254, %v336_v49  ;;  %v342_v20 = vshll.u32 %v10435_v28, 16 }
 0x3da   :  { %14414 = vst [vmem:[#allocation32_spill] sm:$0xff] %v10454_v4  ;;  %v10458_v13 = vsel %vm1303_vm11, 1.0, %v14415_v33  ;;  %v644_v8 = vadd.s32 %v643_v36, %v633_v11  ;;  %v660_v52 = vmul.u32 58254, %v655_v10  ;;  %v344_v56 = vshll.u32 %v340_v5, 16 }
 0x3db   :  { %14416 = vst [vmem:[#allocation41_spill] sm:$0xff] %v10458_v13  ;;  %v3376_v27 = vmul.f32 %v10458_v13, %v3207_v60  ;;  %v14417_v55 = vmov 0   ;;  %vm10466_vm13 = vc.u32 %v667_v57, %v663_v51  ;;  %vm346_vm14 = vc.u32 %v338_v32, %v342_v20  ;;  %v10481_v57 = vpop.permute.xlu0 %3936 }
 0x3dc   :  { %v666_v31 = vsel %vm665_vm12, 1, %v14417_v55  ;;  %4548 = vrot.lane.b32.xlu2 %v10449_v42, %s6833_s19  ;;  %v348_v49 = vadd.s32 %v342_v20, %v338_v32  ;;  %14420 = vst [vmem:[#allocation53_spill] sm:$0xff] %v10473_v1  ;;  %v347_v51 = vsel %vm346_vm14, 1, %v14417_v55  ;;  %v645_v20 = vadd.s32 %v644_v8, %v635_v14  ;;  %v6555_v14 = vld [vmem:[%s13848_s0 + $0x16b] sm:$0xff] }
 0x3dd   :  { %v3242_v45 = vpop.f32.mrf.mxu3  ;;  %4438 = vrot.lane.b32.xlu1 %v6590_v6, %s6832_s25  ;;  %v3420_v11 = vsel %vm2790_vm2, %v3376_v27, 0.0  ;;  %v3494_v10 = vmul.f32 %v3376_v27, %v3376_v27  ;;  %4294 = vrot.lane.b32.xlu0 %v6554_v58, %s6831_s29  ;;  %14421 = vst [vmem:[#allocation33_spill] sm:$0xff] %v10481_v57  ;;  %v343_v6 = vshrl.u32 %v10435_v28, 16  ;;  %v349_v13 = vadd.s32 %v347_v51, %v341_v41 }
 0x3de   :  { %v10477_v36 = vadd.f32 %v9873_v29, %v3242_v45  ;;  %v10483_v60 = vadd.f32 %v3420_v11, %v3419_v18  ;;  %vm350_vm15 = vc.u32 %v348_v49, %v344_v56  ;;  %v668_v18 = vadd.s32 %v666_v31, %v660_v52 }
 0x3df   :  { %v3537_v53 = vsel %vm2790_vm2, %v3494_v10, 0.0  ;;  %v351_v27 = vsel %vm350_vm15, 1, %v14417_v55  ;;  %v345_v11 = vshrl.u32 %v340_v5, 16  ;;  %v670_v56 = vsel %vm10466_vm13, 1, %v14417_v55 }
 0x3e0   :  { %v3209_v32 = vpop.f32.mrf.mxu0  ;;  %3312 = vst.msk [vmem:[#allocation2 + $0xa0] sm:$0xff] %vm2790_vm2, %v10477_v36  ;;  %v10493_v45 = vadd.f32 %v3537_v53, %v3536_v44  ;;  %v353_v50 = vadd.s32 %v351_v27, %v349_v13  ;;  %v10501_v28 = vadd.s32 168, %v9344_v12  ;;  %v6664_v53 = vld [vmem:[%s13848_s0 + $0x176] sm:$0xff]  ;;  %v10510_v31 = vadd.s32 80, %v9344_v12  ;;  %v10519_v8 = vpop.permute.xlu2 %3946 }
 0x3e1   :  { %v10491_v58 = vadd.f32 %v9873_v29, %v3209_v32  ;;  %vm1133_vm0 = vcmp.ne.s32.totalorder %v10443_v19, 0  ;;  %v6628_v44 = vld [vmem:[%s13848_s0 + $0x175] sm:$0xff]  ;;  %vm1169_vm10 = vcmp.lt.s32.totalorder %v10443_v19, 0  ;;  %v646_v5 = vshrl.u32 %v645_v20, 4  ;;  %14422 = vst [vmem:[#allocation34_spill] sm:$0xff] %v10519_v8 }
 0x3e2   :  { %v354_v37 = vadd.s32 %v353_v50, %v343_v6  ;;  %v683_v13 = vand.u32 65535, %v10501_v28  ;;  %v684_v41 = vshrl.u32 %v10501_v28, 16  ;;  %v662_v52 = vshrl.u32 %v10397_v3, 16  ;;  %vm10546_vm11 = vmand %vm1169_vm10, %vm1133_vm0 }
 0x3e3   :  { %3301 = vst.msk [vmem:[#allocation2 + $0x48] sm:$0xff] %vm2790_vm2, %v10491_v58  ;;  %v672_v49 = vadd.s32 %v670_v56, %v668_v18  ;;  %v364_v50 = vand.u32 65535, %v10510_v31  ;;  %v365_v27 = vshrl.u32 %v10510_v31, 16  ;;  %v10535_v18 = vadd.s32 18, %v10443_v19 }
 0x3e4   :  { %v355_v10 = vadd.s32 %v354_v37, %v345_v11  ;;  %4296 = vrot.lane.b32.xlu2 %v6555_v14, %s6831_s29  ;;  %v686_v6 = vmul.u32 14564, %v683_v13  ;;  %v10525_v32 = vmul.u32 58254, %v683_v13  ;;  %v10527_v20 = vmul.u32 14564, %v684_v41  ;;  %v10538_v14 = vpop.permute.xlu1 %3944 }
 0x3e5   :  { %4836 = vrot.lane.b32.xlu1 %v6664_v53, %s6835_s22  ;;  %4692 = vrot.lane.b32.xlu0 %v6628_v44, %s6834_s10  ;;  %v647_v11 = vmul.u32 18, %v646_v5  ;;  %14423 = vst [vmem:[#allocation72_spill] sm:$0xff] %v10538_v14  ;;  %v10540_v53 = vpop.permute.xlu0 %3942  ;;  %v664_v44 = vshrl.u32 %v10425_v23, 16  ;;  %v368_v5 = vmul.u32 58254, %v364_v50  ;;  %v10554_v34 = vmul.u32 14564, %v365_v27 }
 0x3e6   :  { %v3245_v51 = vpop.f32.mrf.mxu3  ;;  %v356_v8 = vshrl.u32 %v355_v10, 4  ;;  %v690_v56 = vshll.u32 %v10525_v32, 16  ;;  %14424 = vst [vmem:[#allocation84_spill] sm:$0xff] %v10540_v53  ;;  %v692_v10 = vshll.u32 %v10527_v20, 16  ;;  %v689_v9 = vmul.u32 58254, %v684_v41 }
 0x3e7   :  { %v10532_v3 = vadd.f32 %v9873_v29, %v3245_v51  ;;  %v673_v51 = vadd.s32 %v672_v49, %v662_v52  ;;  %v367_v15 = vmul.u32 14564, %v364_v50  ;;  %v371_v4 = vshll.u32 %v368_v5, 16  ;;  %v10565_v52 = vld [vmem:[%s13848_s0 + $0x17c] sm:$0xff] }
 0x3e8   :  { %v357_v13 = vmul.u32 18, %v356_v8  ;;  %vm694_vm12 = vc.u32 %v686_v6, %v690_v56  ;;  %v696_v14 = vadd.s32 %v690_v56, %v686_v6  ;;  %v1277_v23 = vsel %vm10546_vm11, %v10535_v18, %v10443_v19 }
 0x3e9   :  { %3313 = vst.msk [vmem:[#allocation2 + $0xa8] sm:$0xff] %vm2790_vm2, %v10532_v3  ;;  %v695_v8 = vsel %vm694_vm12, 1, %v14417_v55  ;;  %v370_v0 = vmul.u32 58254, %v365_v27  ;;  %v10570_v41 = vsub.s32 %v10251_v21, %v647_v11  ;;  %v674_v19 = vadd.s32 %v673_v51, %v664_v44  ;;  %v10578_v27 = vpop.permute.xlu2 %3952 }
 0x3ea   :  { %v358_v53 = vsub.s32 %v10373_v22, %v357_v13  ;;  %vm698_vm15 = vc.u32 %v696_v14, %v692_v10  ;;  %v3212_v22 = vpop.f32.mrf.mxu0  ;;  %v373_v50 = vshll.u32 %v10554_v34, 16  ;;  %v10574_v6 = vadd.s32 176, %v9344_v12  ;;  %14427 = vst [vmem:[#allocation35_spill] sm:$0xff] %v10578_v27 }
 0x3eb   :  { %v697_v56 = vadd.s32 %v695_v8, %v689_v9  ;;  %vm375_vm10 = vc.u32 %v367_v15, %v371_v4  ;;  %v377_v14 = vadd.s32 %v371_v4, %v367_v15  ;;  %v699_v21 = vsel %vm698_vm15, 1, %v14417_v55 }
 0x3ec   :  { %vm1124_vm13 = vcmp.ne.s32.totalorder %v358_v53, 0  ;;  %vm1160_vm14 = vcmp.lt.s32.totalorder %v358_v53, 0  ;;  %v1232_v49 = vadd.s32 18, %v358_v53  ;;  %v376_v11 = vsel %vm375_vm10, 1, %v14417_v55 }
 0x3ed   :  { %4550 = vrot.lane.b32.xlu1 %v10565_v52, %s6833_s19  ;;  %vm1196_vm0 = vmand %vm1160_vm14, %vm1124_vm13  ;;  %4440 = vrot.lane.b32.xlu0 %v10412_v16, %s6832_s25  ;;  %v10583_v37 = vadd.f32 %v9873_v29, %v3212_v22  ;;  %v372_v13 = vshrl.u32 %v368_v5, 16  ;;  %v378_v10 = vadd.s32 %v376_v11, %v370_v0  ;;  %vm379_vm12 = vc.u32 %v377_v14, %v373_v50  ;;  %v10599_v51 = vpop.permute.xlu0 %3948  ;;  %v10608_v50 = vld [vmem:[%s13850_s2] ss:$0 sm:$0xff] }
 0x3ee   :  { %v1268_v18 = vsel %vm1196_vm0, %v1232_v49, %v358_v53  ;;  %v3248_v16 = vpop.f32.mrf.mxu3  ;;  %v691_v15 = vshrl.u32 %v10525_v32, 16  ;;  %v380_v4 = vsel %vm379_vm12, 1, %v14417_v55  ;;  %v10595_v29 = vadd.s32 88, %v9344_v12  ;;  %v10597_v53 = vpop.permute.xlu1 %3950  ;;  %14430 = vst [vmem:[#allocation36_spill] sm:$0xff] %v10599_v51 }
 0x3ef   :  { %vm1304_vm11 = vcmp.lt.s32.totalorder %v1268_v18, 16  ;;  %3302 = vst.msk [vmem:[#allocation2 + $0x50] sm:$0xff] %vm2790_vm2, %v10583_v37  ;;  %v374_v0 = vshrl.u32 %v10554_v34, 16  ;;  %v382_v5 = vadd.s32 %v380_v4, %v378_v10  ;;  %v712_v8 = vand.u32 65535, %v10574_v6 }
 0x3f0   :  { %v10586_v44 = vsel %vm1304_vm11, 1.0, %v14415_v33  ;;  %14429 = vst [vmem:[#allocation115_spill] sm:$0xff] %v10597_v53  ;;  %v701_v22 = vadd.s32 %v699_v21, %v697_v56  ;;  %v10611_v18 = vadd.f32 %v10608_v50, %v3248_v16  ;;  %vm1134_vm13 = vcmp.ne.s32.totalorder %v10570_v41, 0 }
 0x3f1   :  { %14428 = vst [vmem:[#allocation103_spill] sm:$0xff] %v10586_v44  ;;  %v3377_v9 = vmul.f32 %v10586_v44, %v10491_v58  ;;  %v713_v58 = vshrl.u32 %v10574_v6, 16  ;;  %v383_v14 = vadd.s32 %v382_v5, %v372_v13  ;;  %v10617_v11 = vmul.u32 58254, %v712_v8 }
 0x3f2   :  { %vm1170_vm14 = vcmp.lt.s32.totalorder %v10570_v41, 0  ;;  %v715_v21 = vmul.u32 14564, %v712_v8  ;;  %3314 = vst.msk [vmem:[#allocation2 + $0xb0] sm:$0xff] %vm2790_vm2, %v10611_v18  ;;  %v675_v16 = vshrl.u32 %v674_v19, 4  ;;  %vm1313_vm15 = vcmp.lt.s32.totalorder %v1277_v23, 16 }
 0x3f3   :  { %v3422_v32 = vsel %vm2790_vm2, %v3377_v9, 0.0  ;;  %v3495_v49 = vmul.f32 %v3377_v9, %v3377_v9  ;;  %v10621_v10 = vmul.u32 14564, %v713_v58  ;;  %v384_v4 = vadd.s32 %v383_v14, %v374_v0  ;;  %vm10641_vm0 = vmand %vm1170_vm14, %vm1134_vm13 }
 0x3f4   :  { %v10615_v34 = vadd.f32 %v3422_v32, %v10483_v60  ;;  %v719_v60 = vshll.u32 %v10617_v11, 16  ;;  %v693_v13 = vshrl.u32 %v10527_v20, 16  ;;  %v702_v5 = vadd.s32 %v701_v22, %v691_v15 }
 0x3f5   :  { %v3539_v56 = vsel %vm2790_vm2, %v3495_v49, 0.0  ;;  %v393_v32 = vand.u32 65535, %v10595_v29  ;;  %v10631_v49 = vpop.permute.xlu2 %3958  ;;  %v10634_v8 = vadd.s32 18, %v10570_v41  ;;  %v385_v27 = vshrl.u32 %v384_v4, 4  ;;  %v10651_v51 = vpop.permute.xlu0 %3954 }
 0x3f6   :  { %v10626_v9 = vadd.f32 %v3539_v56, %v10493_v45  ;;  %14431 = vst [vmem:[#allocation37_spill] sm:$0xff] %v10631_v49  ;;  %v394_v19 = vshrl.u32 %v10595_v29, 16  ;;  %v721_v20 = vshll.u32 %v10621_v10, 16  ;;  %vm723_vm10 = vc.u32 %v715_v21, %v719_v60  ;;  %v10649_v53 = vpop.permute.xlu1 %3956 }
 0x3f7   :  { %v725_v23 = vadd.s32 %v719_v60, %v715_v21  ;;  %v10647_v15 = vsel %vm1313_vm15, 1.0, %v14415_v33  ;;  %v676_v0 = vmul.u32 18, %v675_v16  ;;  %v386_v22 = vmul.u32 18, %v385_v27  ;;  %14435 = vst [vmem:[#allocation39_spill] sm:$0xff] %v10649_v53  ;;  %v6556_v27 = vld [vmem:[%s13848_s0 + $0x173] sm:$0xff]  ;;  %v6665_v16 = vld [vmem:[%s13848_s0 + $0x17e] sm:$0xff] }
 0x3f8   :  { %14434 = vst [vmem:[#allocation38_spill] sm:$0xff] %v10647_v15  ;;  %v703_v14 = vadd.s32 %v702_v5, %v693_v13  ;;  %v396_v56 = vmul.u32 14564, %v393_v32  ;;  %v397_v4 = vmul.u32 58254, %v393_v32  ;;  %v398_v49 = vmul.u32 14564, %v394_v19  ;;  %4298 = vrot.lane.b32.xlu1 %v6556_v27, %s6831_s29  ;;  %4838 = vrot.lane.b32.xlu0 %v6665_v16, %s6835_s22 }
 0x3f9   :  { %14436 = vst [vmem:[#allocation40_spill] sm:$0xff] %v10651_v51  ;;  %v387_v21 = vsub.s32 %v10510_v31, %v386_v22  ;;  %v718_v60 = vmul.u32 58254, %v713_v58  ;;  %v724_v39 = vsel %vm723_vm10, 1, %v14417_v55  ;;  %vm10665_vm11 = vc.u32 %v725_v23, %v721_v20  ;;  %v3215_v23 = vpop.f32.mrf.mxu0 }
 0x3fa   :  { %v399_v5 = vmul.u32 58254, %v394_v19  ;;  %v400_v32 = vshll.u32 %v397_v4, 16  ;;  %v402_v44 = vshll.u32 %v398_v49, 16  ;;  %v10672_v31 = vsub.s32 %v10324_v47, %v676_v0 }
 0x3fb   :  { %vm1125_vm12 = vcmp.ne.s32.totalorder %v387_v21, 0  ;;  %vm1161_vm13 = vcmp.lt.s32.totalorder %v387_v21, 0  ;;  %v1233_v58 = vadd.s32 18, %v387_v21  ;;  %v704_v22 = vshrl.u32 %v703_v14, 4 }
 0x3fc   :  { %vm1197_vm14 = vmand %vm1161_vm13, %vm1125_vm12  ;;  %vm404_vm15 = vc.u32 %v396_v56, %v400_v32  ;;  %v406_v20 = vadd.s32 %v400_v32, %v396_v56  ;;  %v10675_v53 = vadd.s32 184, %v9344_v12  ;;  %v726_v51 = vadd.s32 %v724_v39, %v718_v60 }
 0x3fd   :  { %v1269_v19 = vsel %vm1197_vm14, %v1233_v58, %v387_v21  ;;  %v728_v27 = vsel %vm10665_vm11, 1, %v14417_v55  ;;  %v405_v47 = vsel %vm404_vm15, 1, %v14417_v55  ;;  %v401_v0 = vshrl.u32 %v397_v4, 16  ;;  %v10681_v14 = vpop.permute.xlu2 %3964 }
 0x3fe   :  { %vm1305_vm10 = vcmp.lt.s32.totalorder %v1269_v19, 16  ;;  %v407_v16 = vadd.s32 %v405_v47, %v399_v5  ;;  %vm408_vm8 = vc.u32 %v406_v20, %v402_v44  ;;  %14439 = vst [vmem:[#allocation42_spill] sm:$0xff] %v10681_v14  ;;  %vm1135_vm12 = vcmp.ne.s32.totalorder %v10672_v31, 0  ;;  %v10700_v47 = vpop.permute.xlu1 %3962 }
 0x3ff   :  { %v10685_v56 = vsel %vm1305_vm10, 1.0, %v14415_v33  ;;  %v409_v21 = vsel %vm408_vm8, 1, %v14417_v55  ;;  %v10689_v39 = vadd.f32 %v10608_v50, %v3215_v23  ;;  %v705_v60 = vmul.u32 18, %v704_v22  ;;  %14441 = vst [vmem:[#allocation44_spill] sm:$0xff] %v10700_v47 }
 0x400   :  { %14440 = vst [vmem:[#allocation43_spill] sm:$0xff] %v10685_v56  ;;  %v3378_v13 = vmul.f32 %v10685_v56, %v10583_v37  ;;  %v403_v32 = vshrl.u32 %v398_v49, 16  ;;  %v411_v4 = vadd.s32 %v409_v21, %v407_v16  ;;  %v720_v44 = vshrl.u32 %v10617_v11, 16  ;;  %v10702_v37 = vpop.permute.xlu0 %3960 }
 0x401   :  { %v730_v5 = vadd.s32 %v728_v27, %v726_v51  ;;  %3303 = vst.msk [vmem:[#allocation2 + $0x58] sm:$0xff] %vm2790_vm2, %v10689_v39  ;;  %v741_v58 = vand.u32 65535, %v10675_v53  ;;  %v742_v20 = vshrl.u32 %v10675_v53, 16  ;;  %vm1171_vm8 = vcmp.lt.s32.totalorder %v10672_v31, 0 }
 0x402   :  { %v3424_v23 = vsel %vm2790_vm2, %v3378_v13, 0.0  ;;  %v3496_v22 = vmul.f32 %v3378_v13, %v3378_v13  ;;  %v412_v19 = vadd.s32 %v411_v4, %v401_v0  ;;  %14442 = vst [vmem:[#allocation45_spill] sm:$0xff] %v10702_v37  ;;  %v10712_v16 = vsub.s32 %v10501_v28, %v705_v60  ;;  %v3251_v4 = vpop.f32.mrf.mxu3  ;;  %vm10739_vm13 = vmand %vm1171_vm8, %vm1135_vm12 }
 0x403   :  { %v10705_v11 = vadd.f32 %v3424_v23, %v10615_v34  ;;  %v744_v51 = vmul.u32 14564, %v741_v58  ;;  %v10707_v49 = vmul.u32 58254, %v741_v58  ;;  %v10709_v27 = vmul.u32 14564, %v742_v20 }
 0x404   :  { %v3541_v21 = vsel %vm2790_vm2, %v3496_v22, 0.0  ;;  %v722_v13 = vshrl.u32 %v10621_v10, 16  ;;  %v413_v0 = vadd.s32 %v412_v19, %v403_v32  ;;  %v731_v47 = vadd.s32 %v730_v5, %v720_v44  ;;  %v3218_v32 = vpop.f32.mrf.mxu0 }
 0x405   :  { %v10717_v14 = vadd.f32 %v3541_v21, %v10626_v9  ;;  %v748_v34 = vshll.u32 %v10707_v49, 16  ;;  %v750_v58 = vshll.u32 %v10709_v27, 16  ;;  %v10723_v23 = vmul.f32 %v10647_v15, %v10366_v43  ;;  %v10751_v19 = vpop.permute.xlu2 %4042 }
 0x406   :  { %v14443_v28 = vsel %vm10641_vm0, %v10634_v8, %v10570_v41  ;;  %v1243_v9 = vadd.s32 18, %v10672_v31  ;;  %v414_v60 = vshrl.u32 %v413_v0, 4  ;;  %v747_v45 = vmul.u32 58254, %v742_v20  ;;  %v10800_v43 = vpop.permute.xlu1 %4040 }
 0x407   :  { %vm10730_vm11 = vcmp.lt.s32.totalorder %v14443_v28, 16  ;;  %vm752_vm14 = vc.u32 %v744_v51, %v748_v34  ;;  %v754_v44 = vadd.s32 %v748_v34, %v744_v51  ;;  %v10744_v41 = vadd.f32 %v10608_v50, %v3251_v4 }
 0x408   :  { %vm1136_vm0 = vcmp.ne.s32.totalorder %v10712_v16, 0  ;;  %v415_v8 = vmul.u32 18, %v414_v60  ;;  %v753_v5 = vsel %vm752_vm14, 1, %v14417_v55  ;;  %v10749_v22 = vadd.s32 96, %v9344_v12  ;;  %v6630_v60 = vld [vmem:[%s13848_s0 + $0x185] sm:$0xff] }
 0x409   :  { %vm1172_vm15 = vcmp.lt.s32.totalorder %v10712_v16, 0  ;;  %v732_v21 = vadd.s32 %v731_v47, %v722_v13  ;;  %vm10754_vm10 = vc.u32 %v754_v44, %v750_v58  ;;  %3315 = vst.msk [vmem:[#allocation2 + $0xb8] sm:$0xff] %vm2790_vm2, %v10744_v41  ;;  %v10761_v51 = vadd.f32 %v10608_v50, %v3218_v32  ;;  %v10798_v32 = vld [vmem:[%s13848_s0 + $0x184] sm:$0xff]  ;;  %4696 = vrot.lane.b32.xlu1 %v6630_v60, %s6834_s10 }
 0x40a   :  { %v10766_v0 = vsel %vm10730_vm11, 1.0, %v14415_v33  ;;  %v1279_v4 = vsel %vm10739_vm13, %v1243_v9, %v10672_v31  ;;  %v416_v47 = vsub.s32 %v10595_v29, %v415_v8  ;;  %v422_v13 = vand.u32 65535, %v10749_v22  ;;  %vm10785_vm12 = vmand %vm1172_vm15, %vm1136_vm0  ;;  %4552 = vrot.lane.b32.xlu0 %v10798_v32, %s6833_s19 }
 0x40b   :  { %14450 = vst [vmem:[#allocation46_spill] sm:$0xff] %v10766_v0  ;;  %v10775_v34 = vmul.f32 %v10723_v23, %v10723_v23  ;;  %v10778_v58 = vadd.s32 18, %v10712_v16  ;;  %v755_v28 = vadd.s32 %v753_v5, %v747_v45  ;;  %v423_v10 = vshrl.u32 %v10749_v22, 16  ;;  %v10802_v45 = vpop.permute.xlu0 %4038 }
 0x40c   :  { %3304 = vst.msk [vmem:[#allocation2 + $0x60] sm:$0xff] %vm2790_vm2, %v10761_v51  ;;  %vm1126_vm8 = vcmp.ne.s32.totalorder %v416_v47, 0  ;;  %vm1162_vm11 = vcmp.lt.s32.totalorder %v416_v47, 0  ;;  %v1234_v29 = vadd.s32 18, %v416_v47  ;;  %v757_v9 = vsel %vm10754_vm10, 1, %v14417_v55 }
 0x40d   :  { %vm10804_vm13 = vcmp.lt.s32.totalorder %v1279_v4, 16  ;;  %v733_v8 = vshrl.u32 %v732_v21, 4  ;;  %vm1198_vm14 = vmand %vm1162_vm11, %vm1126_vm8  ;;  %v425_v5 = vmul.u32 14564, %v422_v13  ;;  %v426_v20 = vmul.u32 58254, %v422_v13  ;;  %v3254_v21 = vpop.f32.mrf.mxu3 }
 0x40e   :  { %v3387_v15 = vmul.f32 %v10766_v0, %v10430_v35  ;;  %v1270_v37 = vsel %vm1198_vm14, %v1234_v29, %v416_v47  ;;  %v749_v56 = vshrl.u32 %v10707_v49, 16  ;;  %v427_v38 = vmul.u32 14564, %v423_v10 }
 0x40f   :  { %vm1306_vm0 = vcmp.lt.s32.totalorder %v1270_v37, 16  ;;  %v759_v4 = vadd.s32 %v757_v9, %v755_v28  ;;  %v428_v1 = vmul.u32 58254, %v423_v10  ;;  %v429_v7 = vshll.u32 %v426_v20, 16 }
 0x410   :  { %v10817_v13 = vsel %vm10804_vm13, 1.0, %v14415_v33  ;;  %v1280_v60 = vsel %vm10785_vm12, %v10778_v58, %v10712_v16  ;;  %v10824_v35 = vsel %vm1306_vm0, 1.0, %v14415_v33  ;;  %v431_v49 = vshll.u32 %v427_v38, 16  ;;  %v10836_v16 = vpop.permute.xlu2 %4048 }
 0x411   :  { %14455 = vst [vmem:[#allocation47_spill] sm:$0xff] %v10817_v13  ;;  %v734_v47 = vmul.u32 18, %v733_v8  ;;  %v3379_v37 = vmul.f32 %v10824_v35, %v10689_v39  ;;  %vm433_vm15 = vc.u32 %v425_v5, %v429_v7  ;;  %v435_v28 = vadd.s32 %v429_v7, %v425_v5  ;;  %v6445_v7 = vld [vmem:[%s13848_s0 + $0x158] sm:$0xff]  ;;  %v6443_v39 = vld [vmem:[%s13848_s0 + $0x148] sm:$0xff] }
 0x412   :  { %14456 = vst [vmem:[#allocation48_spill] sm:$0xff] %v10824_v35  ;;  %v751_v10 = vshrl.u32 %v10709_v27, 16  ;;  %v434_v29 = vsel %vm433_vm15, 1, %v14417_v55  ;;  %v10831_v9 = vadd.s32 192, %v9344_v12  ;;  %v10834_v31 = vadd.f32 %v10608_v50, %v3254_v21 }
 0x413   :  { %14457 = vst [vmem:[#allocation49_spill] sm:$0xff] %v10836_v16  ;;  %v3426_v58 = vsel %vm2790_vm2, %v3379_v37, 0.0  ;;  %v3497_v44 = vmul.f32 %v3379_v37, %v3379_v37  ;;  %v760_v8 = vadd.s32 %v759_v4, %v749_v56  ;;  %v436_v0 = vadd.s32 %v434_v29, %v428_v1 }
 0x414   :  { %v10846_v27 = vadd.f32 %v3426_v58, %v10705_v11  ;;  %v430_v5 = vshrl.u32 %v426_v20, 16  ;;  %vm437_vm10 = vc.u32 %v435_v28, %v431_v49  ;;  %v770_v21 = vand.u32 65535, %v10831_v9  ;;  %3316 = vst.msk [vmem:[#allocation2 + $0xc0] sm:$0xff] %vm2790_vm2, %v10834_v31  ;;  %v6765_v11 = vld [vmem:[%s13848_s0 + $0x17a] sm:$0xff] }
 0x415   :  { %v3543_v1 = vsel %vm2790_vm2, %v3497_v44, 0.0  ;;  %v432_v56 = vshrl.u32 %v427_v38, 16  ;;  %v438_v4 = vsel %vm437_vm10, 1, %v14417_v55  ;;  %v10854_v37 = vadd.s32 104, %v9344_v12  ;;  %4156 = vrot.lane.b32.xlu0 %v6765_v11, %s6830_s18  ;;  %v10874_v11 = vpop.permute.xlu1 %4046 }
 0x416   :  { %v10861_v20 = vadd.f32 %v3543_v1, %v10717_v14  ;;  %v440_v49 = vadd.s32 %v438_v4, %v436_v0  ;;  %v771_v28 = vshrl.u32 %v10831_v9, 16  ;;  %v10864_v29 = vmul.u32 58254, %v770_v21  ;;  %14458 = vst [vmem:[#allocation50_spill] sm:$0xff] %v10874_v11  ;;  %v10876_v14 = vpop.permute.xlu0 %4044 }
 0x417   :  { %v10868_v38 = vsel %vm2753_vm1, %v6445_v7, %v9885_v24  ;;  %v4942_v58 = vsel %vm2753_vm1, %v6443_v39, %v9913_v46  ;;  %v3505_v44 = vmul.f32 %v3387_v15, %v3387_v15  ;;  %v3388_v35 = vmul.f32 %v10817_v13, %v10477_v36 }
 0x418   :  { %v10880_v0 = vsel %vm2790_vm2, %v10723_v23, 0.0  ;;  %v10884_v1 = vsel %vm2790_vm2, %v10775_v34, 0.0  ;;  %v761_v24 = vadd.s32 %v760_v8, %v751_v10  ;;  %v441_v7 = vadd.s32 %v440_v49, %v430_v5 }
 0x419   :  { %vm1316_vm12 = vcmp.lt.s32.totalorder %v1280_v60, 16  ;;  %v773_v46 = vmul.u32 14564, %v770_v21  ;;  %v777_v39 = vshll.u32 %v10864_v29, 16  ;;  %v451_v36 = vand.u32 65535, %v10854_v37  ;;  %v10912_v21 = vpop.permute.xlu2 %4054 }
 0x41a   :  { %v10890_v4 = vsel %vm2790_vm2, %v4942_v58, %v10802_v45  ;;  %v10893_v13 = vsub.s32 %v10574_v6, %v734_v47  ;;  %v442_v23 = vadd.s32 %v441_v7, %v432_v56  ;;  %v10895_v25 = vmul.u32 14564, %v771_v28  ;;  %14460 = vst [vmem:[#allocation51_spill] sm:$0xff] %v10912_v21 }
 0x41b   :  { %v10898_v34 = vsel %vm2790_vm2, %v3387_v15, 0.0  ;;  %v10901_v60 = vsel %vm2790_vm2, %v3505_v44, 0.0  ;;  %v10904_v10 = vsel %vm2790_vm2, %v3388_v35, 0.0  ;;  %v452_v8 = vshrl.u32 %v10854_v37, 16  ;;  %v3221_v44 = vpop.f32.mrf.mxu0  ;;  %v3257_v15 = vpop.f32.mrf.mxu3 }
 0x41c   :  { %v10907_v5 = vmul.f32 %v3388_v35, %v3388_v35  ;;  %v10910_v45 = vsel %vm1316_vm12, 1.0, %v14415_v33  ;;  %v762_v6 = vshrl.u32 %v761_v24, 4  ;;  %v443_v47 = vshrl.u32 %v442_v23, 4  ;;  %v6557_v24 = vld [vmem:[%s13848_s0 + $0x17b] sm:$0xff] }
 0x41d   :  { %14459 = vst [vmem:[#allocation52_spill] sm:$0xff] %v10910_v45  ;;  %vm10914_vm8 = vc.u32 %v773_v46, %v777_v39  ;;  %v454_v56 = vmul.u32 14564, %v451_v36  ;;  %v455_v49 = vmul.u32 58254, %v451_v36  ;;  %v10918_v58 = vmul.u32 14564, %v452_v8  ;;  %4300 = vrot.lane.b32.xlu1 %v6557_v24, %s6831_s29  ;;  %v6629_v36 = vld [vmem:[%s13848_s0 + $0x17d] sm:$0xff] }
 0x41e   :  { %vm1137_vm11 = vcmp.ne.s32.totalorder %v10893_v13, 0  ;;  %v444_v35 = vmul.u32 18, %v443_v47  ;;  %v779_v7 = vshll.u32 %v10895_v25, 16  ;;  %v783_v17 = vadd.s32 %v777_v39, %v773_v46  ;;  %4694 = vrot.lane.b32.xlu2 %v6629_v36, %s6834_s10  ;;  %v10941_v57 = vpop.permute.xlu0 %4050 }
 0x41f   :  { %vm1173_vm13 = vcmp.lt.s32.totalorder %v10893_v13, 0  ;;  %v776_v23 = vmul.u32 58254, %v771_v28  ;;  %v458_v21 = vshll.u32 %v455_v49, 16  ;;  %v460_v54 = vshll.u32 %v10918_v58, 16  ;;  %v10939_v28 = vpop.permute.xlu1 %4052  ;;  %14464 = vst [vmem:[#allocation71_spill] sm:$0xff] %v10941_v57 }
 0x420   :  { %v445_v47 = vsub.s32 %v10749_v22, %v444_v35  ;;  %v782_v46 = vsel %vm10914_vm8, 1, %v14417_v55  ;;  %v457_v39 = vmul.u32 58254, %v452_v8  ;;  %v10936_v30 = vadd.f32 %v10608_v50, %v3221_v44  ;;  %14463 = vst [vmem:[#allocation54_spill] sm:$0xff] %v10939_v28  ;;  %vm10948_vm0 = vmand %vm1173_vm13, %vm1137_vm11 }
 0x421   :  { %v1245_v24 = vadd.s32 18, %v10893_v13  ;;  %v763_v40 = vmul.u32 18, %v762_v6  ;;  %vm462_vm14 = vc.u32 %v454_v56, %v458_v21  ;;  %v464_v48 = vadd.s32 %v458_v21, %v454_v56 }
 0x422   :  { %vm1127_vm15 = vcmp.ne.s32.totalorder %v445_v47, 0  ;;  %vm1163_vm10 = vcmp.lt.s32.totalorder %v445_v47, 0  ;;  %v1235_v8 = vadd.s32 18, %v445_v47  ;;  %vm785_vm12 = vc.u32 %v783_v17, %v779_v7  ;;  %3305 = vst.msk [vmem:[#allocation2 + $0x68] sm:$0xff] %vm2790_vm2, %v10936_v30 }
 0x423   :  { %vm1199_vm8 = vmand %vm1163_vm10, %vm1127_vm15  ;;  %v784_v6 = vadd.s32 %v782_v46, %v776_v23  ;;  %v463_v21 = vsel %vm462_vm14, 1, %v14417_v55  ;;  %vm466_vm9 = vc.u32 %v464_v48, %v460_v54  ;;  %v10956_v56 = vadd.s32 200, %v9344_v12 }
 0x424   :  { %v1271_v44 = vsel %vm1199_vm8, %v1235_v8, %v445_v47  ;;  %v459_v35 = vshrl.u32 %v455_v49, 16  ;;  %v465_v36 = vadd.s32 %v463_v21, %v457_v39  ;;  %v467_v28 = vsel %vm466_vm9, 1, %v14417_v55  ;;  %v10971_v47 = vpop.permute.xlu2 %4060 }
 0x425   :  { %vm1307_vm11 = vcmp.lt.s32.totalorder %v1271_v44, 16  ;;  %v786_v17 = vsel %vm785_vm12, 1, %v14417_v55  ;;  %v799_v7 = vand.u32 65535, %v10956_v56  ;;  %v10962_v57 = vadd.f32 %v10608_v50, %v3257_v15  ;;  %14468 = vst [vmem:[#allocation55_spill] sm:$0xff] %v10971_v47 }
 0x426   :  { %v1281_v54 = vsel %vm10948_vm0, %v1245_v24, %v10893_v13  ;;  %v10968_v48 = vsel %vm1307_vm11, 1.0, %v14415_v33  ;;  %v469_v23 = vadd.s32 %v467_v28, %v465_v36  ;;  %v800_v49 = vshrl.u32 %v10956_v56, 16  ;;  %4442 = vrot.lane.b32.xlu2 %v10449_v42, %s6832_s25 }
 0x427   :  { %14467 = vst [vmem:[#allocation83_spill] sm:$0xff] %v10968_v48  ;;  %v3380_v46 = vmul.f32 %v10968_v48, %v10761_v51  ;;  %v461_v39 = vshrl.u32 %v10918_v58, 16  ;;  %v10976_v8 = vmul.u32 58254, %v799_v7  ;;  %v10981_v13 = vadd.s32 112, %v9344_v12 }
 0x428   :  { %3317 = vst.msk [vmem:[#allocation2 + $0xc8] sm:$0xff] %vm2790_vm2, %v10962_v57  ;;  %v3389_v28 = vmul.f32 %v10910_v45, %v10532_v3  ;;  %v778_v24 = vshrl.u32 %v10864_v29, 16  ;;  %v788_v22 = vadd.s32 %v786_v17, %v784_v6  ;;  %v470_v15 = vadd.s32 %v469_v23, %v459_v35  ;;  %v11006_v35 = vpop.permute.xlu1 %4058  ;;  %v11008_v17 = vpop.permute.xlu0 %4056 }
 0x429   :  { %vm10988_vm9 = vcmp.lt.s32.totalorder %v1281_v54, 16  ;;  %v10993_v58 = vsub.s32 %v10675_v53, %v763_v40  ;;  %v3428_v21 = vsel %vm2790_vm2, %v3380_v46, 0.0  ;;  %v3498_v44 = vmul.f32 %v3380_v46, %v3380_v46  ;;  %14471 = vst [vmem:[#allocation102_spill] sm:$0xff] %v11006_v35 }
 0x42a   :  { %v10997_v36 = vadd.f32 %v3428_v21, %v10846_v27  ;;  %v802_v3 = vmul.u32 14564, %v799_v7  ;;  %v10999_v29 = vmul.u32 14564, %v800_v49  ;;  %v806_v6 = vshll.u32 %v10976_v8, 16  ;;  %14472 = vst [vmem:[#allocation114_spill] sm:$0xff] %v11008_v17 }
 0x42b   :  { %v11004_v42 = vsel %vm2790_vm2, %v10907_v5, 0.0  ;;  %v3545_v40 = vsel %vm2790_vm2, %v3498_v44, 0.0  ;;  %v471_v53 = vadd.s32 %v470_v15, %v461_v39  ;;  %v480_v54 = vand.u32 65535, %v10981_v13  ;;  %v3224_v15 = vpop.f32.mrf.mxu0 }
 0x42c   :  { %v11013_v27 = vsel %vm2790_vm2, %v3389_v28, 0.0  ;;  %v11016_v7 = vadd.f32 %v3545_v40, %v10861_v20  ;;  %v780_v23 = vshrl.u32 %v10895_v25, 16  ;;  %v789_v46 = vadd.s32 %v788_v22, %v778_v24  ;;  %v11036_v48 = vpop.permute.xlu2 %4066 }
 0x42d   :  { %v3507_v5 = vmul.f32 %v3389_v28, %v3389_v28  ;;  %v11022_v21 = vsel %vm10988_vm9, 1.0, %v14415_v33  ;;  %v472_v45 = vshrl.u32 %v471_v53, 4  ;;  %v481_v39 = vshrl.u32 %v10981_v13, 16  ;;  %14474 = vst [vmem:[#allocation57_spill] sm:$0xff] %v11036_v48  ;;  %v3260_v48 = vpop.f32.mrf.mxu3 }
 0x42e   :  { %14473 = vst [vmem:[#allocation56_spill] sm:$0xff] %v11022_v21  ;;  %vm1138_vm13 = vcmp.ne.s32.totalorder %v10993_v58, 0  ;;  %vm1174_vm14 = vcmp.lt.s32.totalorder %v10993_v58, 0  ;;  %v808_v20 = vshll.u32 %v10999_v29, 16  ;;  %v812_v44 = vadd.s32 %v806_v6, %v802_v3 }
 0x42f   :  { %v11029_v25 = vadd.s32 18, %v10993_v58  ;;  %v473_v28 = vmul.u32 18, %v472_v45  ;;  %vm810_vm0 = vc.u32 %v802_v3, %v806_v6  ;;  %v484_v24 = vmul.u32 58254, %v480_v54  ;;  %vm11041_vm15 = vmand %vm1174_vm14, %vm1138_vm13 }
 0x430   :  { %v790_v22 = vadd.s32 %v789_v46, %v780_v23  ;;  %v483_v51 = vmul.u32 14564, %v480_v54  ;;  %v11031_v40 = vmul.u32 14564, %v481_v39  ;;  %v11034_v53 = vadd.f32 %v10608_v50, %v3224_v15  ;;  %v11068_v17 = vpop.permute.xlu1 %4064 }
 0x431   :  { %v11039_v47 = vsel %vm2790_vm2, %v3507_v5, 0.0  ;;  %v474_v45 = vsub.s32 %v10854_v37, %v473_v28  ;;  %v805_v3 = vmul.u32 58254, %v800_v49  ;;  %v487_v6 = vshll.u32 %v484_v24, 16  ;;  %v6631_v5 = vld [vmem:[%s13848_s0 + $0x18d] sm:$0xff]  ;;  %14479 = vst [vmem:[#allocation58_spill] sm:$0xff] %v11068_v17 }
 0x432   :  { %v811_v54 = vsel %vm810_vm0, 1, %v14417_v55  ;;  %vm11047_vm10 = vc.u32 %v812_v44, %v808_v20  ;;  %v486_v46 = vmul.u32 58254, %v481_v39  ;;  %v489_v15 = vshll.u32 %v11031_v40, 16  ;;  %3306 = vst.msk [vmem:[#allocation2 + $0x70] sm:$0xff] %vm2790_vm2, %v11034_v53  ;;  %v6595_v37 = vld [vmem:[%s13848_s0 + $0x18c] sm:$0xff]  ;;  %4698 = vrot.lane.b32.xlu1 %v6631_v5, %s6834_s10 }
 0x433   :  { %v3390_v49 = vmul.f32 %v11022_v21, %v10611_v18  ;;  %vm1128_vm12 = vcmp.ne.s32.totalorder %v474_v45, 0  ;;  %vm1164_vm8 = vcmp.lt.s32.totalorder %v474_v45, 0  ;;  %v1236_v20 = vadd.s32 18, %v474_v45  ;;  %4554 = vrot.lane.b32.xlu0 %v6595_v37, %s6833_s19  ;;  %v11070_v18 = vpop.permute.xlu0 %4062 }
 0x434   :  { %v1282_v39 = vsel %vm11041_vm15, %v11029_v25, %v10993_v58  ;;  %v791_v44 = vshrl.u32 %v790_v22, 4  ;;  %vm1200_vm11 = vmand %vm1164_vm8, %vm1128_vm12  ;;  %vm491_vm9 = vc.u32 %v483_v51, %v487_v6  ;;  %v493_v28 = vadd.s32 %v487_v6, %v483_v51  ;;  %14480 = vst [vmem:[#allocation59_spill] sm:$0xff] %v11070_v18 }
 0x435   :  { %v1272_v21 = vsel %vm1200_vm11, %v1236_v20, %v474_v45  ;;  %v813_v26 = vadd.s32 %v811_v54, %v805_v3  ;;  %v815_v5 = vsel %vm11047_vm10, 1, %v14417_v55  ;;  %v492_v37 = vsel %vm491_vm9, 1, %v14417_v55  ;;  %v3227_v54 = vpop.f32.mrf.mxu0 }
 0x436   :  { %vm1308_vm13 = vcmp.lt.s32.totalorder %v1272_v21, 16  ;;  %v488_v35 = vshrl.u32 %v484_v24, 16  ;;  %v494_v58 = vadd.s32 %v492_v37, %v486_v46  ;;  %vm495_vm14 = vc.u32 %v493_v28, %v489_v15 }
 0x437   :  { %v11077_v25 = vsel %vm1308_vm13, 1.0, %v14415_v33  ;;  %v496_v22 = vsel %vm495_vm14, 1, %v14417_v55  ;;  %v11081_v51 = vadd.s32 208, %v9344_v12  ;;  %v11084_v45 = vadd.f32 %v10608_v50, %v3260_v48 }
 0x438   :  { %14481 = vst [vmem:[#allocation60_spill] sm:$0xff] %v11077_v25  ;;  %v792_v3 = vmul.u32 18, %v791_v44  ;;  %v3381_v6 = vmul.f32 %v11077_v25, %v10936_v30  ;;  %v807_v21 = vshrl.u32 %v10976_v8, 16  ;;  %v498_v24 = vadd.s32 %v496_v22, %v494_v58  ;;  %v11098_v8 = vpop.permute.xlu2 %4072  ;;  %v11129_v17 = vpop.permute.xlu1 %4070 }
 0x439   :  { %v490_v23 = vshrl.u32 %v11031_v40, 16  ;;  %v828_v46 = vand.u32 65535, %v11081_v51  ;;  %v829_v15 = vshrl.u32 %v11081_v51, 16  ;;  %3318 = vst.msk [vmem:[#allocation2 + $0xd0] sm:$0xff] %vm2790_vm2, %v11084_v45  ;;  %v11095_v48 = vadd.f32 %v10608_v50, %v3227_v54  ;;  %v6766_v54 = vld [vmem:[%s13848_s0 + $0x182] sm:$0xff] }
 0x43a   :  { %v3430_v20 = vsel %vm2790_vm2, %v3381_v6, 0.0  ;;  %v3499_v44 = vmul.f32 %v3381_v6, %v3381_v6  ;;  %v817_v30 = vadd.s32 %v815_v5, %v813_v26  ;;  %v499_v28 = vadd.s32 %v498_v24, %v488_v35  ;;  %14482 = vst [vmem:[#allocation61_spill] sm:$0xff] %v11098_v8 }
 0x43b   :  { %v11101_v37 = vadd.f32 %v3430_v20, %v10997_v36  ;;  %v831_v40 = vmul.u32 14564, %v828_v46  ;;  %v832_v58 = vmul.u32 58254, %v828_v46  ;;  %v833_v22 = vmul.u32 14564, %v829_v15  ;;  %3307 = vst.msk [vmem:[#allocation2 + $0x78] sm:$0xff] %vm2790_vm2, %v11095_v48  ;;  %4158 = vrot.lane.b32.xlu0 %v6766_v54, %s6830_s18 }
 0x43c   :  { %v11110_v26 = vsel %vm2790_vm2, %v3390_v49, 0.0  ;;  %vm11112_vm0 = vcmp.lt.s32.totalorder %v1282_v39, 16  ;;  %v3547_v36 = vsel %vm2790_vm2, %v3499_v44, 0.0  ;;  %v11118_v35 = vadd.s32 120, %v9344_v12  ;;  %14485 = vst [vmem:[#allocation63_spill] sm:$0xff] %v11129_v17  ;;  %v11131_v44 = vpop.permute.xlu0 %4068  ;;  %v6558_v17 = vld [vmem:[%s13848_s0 + $0x183] sm:$0xff] }
 0x43d   :  { %v11121_v6 = vadd.f32 %v3547_v36, %v11016_v7  ;;  %v500_v24 = vadd.s32 %v499_v28, %v490_v23  ;;  %v834_v46 = vmul.u32 58254, %v829_v15  ;;  %v835_v20 = vshll.u32 %v832_v58, 16  ;;  %14486 = vst [vmem:[#allocation64_spill] sm:$0xff] %v11131_v44  ;;  %4302 = vrot.lane.b32.xlu1 %v6558_v17, %s6831_s29  ;;  %v3263_v44 = vpop.f32.mrf.mxu3 }
 0x43e   :  { %v11123_v25 = vmul.f32 %v3390_v49, %v3390_v49  ;;  %v11126_v54 = vsub.s32 %v10831_v9, %v792_v3  ;;  %v809_v39 = vshrl.u32 %v10999_v29, 16  ;;  %v837_v8 = vshll.u32 %v833_v22, 16 }
 0x43f   :  { %v818_v18 = vadd.s32 %v817_v30, %v807_v21  ;;  %v501_v63 = vshrl.u32 %v500_v24, 4  ;;  %vm839_vm15 = vc.u32 %v831_v40, %v835_v20  ;;  %v841_v7 = vadd.s32 %v835_v20, %v831_v40 }
 0x440   :  { %v11136_v23 = vsel %vm11112_vm0, 1.0, %v14415_v33  ;;  %v840_v49 = vsel %vm839_vm15, 1, %v14417_v55  ;;  %v509_v9 = vand.u32 65535, %v11118_v35  ;;  %v510_v29 = vshrl.u32 %v11118_v35, 16  ;;  %v11166_v16 = vpop.permute.xlu1 %4076 }
 0x441   :  { %14487 = vst [vmem:[#allocation65_spill] sm:$0xff] %v11136_v23  ;;  %v502_v3 = vmul.u32 18, %v501_v63  ;;  %v836_v15 = vshrl.u32 %v832_v58, 16  ;;  %v842_v28 = vadd.s32 %v840_v49, %v834_v46  ;;  %vm843_vm10 = vc.u32 %v841_v7, %v837_v8  ;;  %v6666_v7 = vld [vmem:[%s13848_s0 + $0x186] sm:$0xff]  ;;  %v11154_v49 = vpop.permute.xlu2 %4078 }
 0x442   :  { %v844_v21 = vsel %vm843_vm10, 1, %v14417_v55  ;;  %v512_v30 = vmul.u32 14564, %v509_v9  ;;  %v513_v36 = vmul.u32 58254, %v509_v9  ;;  %v11142_v40 = vmul.u32 14564, %v510_v29  ;;  %14488 = vst [vmem:[#allocation66_spill] sm:$0xff] %v11154_v49  ;;  %4840 = vrot.lane.b32.xlu2 %v6666_v7, %s6835_s22 }
 0x443   :  { %vm1139_vm12 = vcmp.ne.s32.totalorder %v11126_v54, 0  ;;  %v819_v5 = vadd.s32 %v818_v18, %v809_v39  ;;  %v503_v24 = vsub.s32 %v10981_v13, %v502_v3  ;;  %v846_v20 = vadd.s32 %v844_v21, %v842_v28  ;;  %14490 = vst [vmem:[#allocation68_spill] sm:$0xff] %v11166_v16 }
 0x444   :  { %v838_v63 = vshrl.u32 %v833_v22, 16  ;;  %v515_v58 = vmul.u32 58254, %v510_v29  ;;  %v516_v46 = vshll.u32 %v513_v36, 16  ;;  %v518_v8 = vshll.u32 %v11142_v40, 16 }
 0x445   :  { %vm1129_vm8 = vcmp.ne.s32.totalorder %v503_v24, 0  ;;  %vm1165_vm11 = vcmp.lt.s32.totalorder %v503_v24, 0  ;;  %v1237_v13 = vadd.s32 18, %v503_v24  ;;  %v11157_v18 = vadd.s32 216, %v9344_v12 }
 0x446   :  { %vm1175_vm9 = vcmp.lt.s32.totalorder %v11126_v54, 0  ;;  %vm1201_vm13 = vmand %vm1165_vm11, %vm1129_vm8  ;;  %v847_v22 = vadd.s32 %v846_v20, %v836_v15  ;;  %vm520_vm14 = vc.u32 %v512_v30, %v516_v46  ;;  %v522_v17 = vadd.s32 %v516_v46, %v512_v30  ;;  %v11168_v15 = vpop.permute.xlu0 %4074 }
 0x447   :  { %v820_v39 = vshrl.u32 %v819_v5, 4  ;;  %v1273_v9 = vsel %vm1201_vm13, %v1237_v13, %v503_v24  ;;  %v517_v29 = vshrl.u32 %v513_v36, 16  ;;  %v521_v3 = vsel %vm520_vm14, 1, %v14417_v55  ;;  %14491 = vst [vmem:[#allocation69_spill] sm:$0xff] %v11168_v15  ;;  %vm11180_vm10 = vmand %vm1175_vm9, %vm1139_vm12 }
 0x448   :  { %vm1309_vm0 = vcmp.lt.s32.totalorder %v1273_v9, 16  ;;  %v848_v28 = vadd.s32 %v847_v22, %v838_v63  ;;  %v523_v21 = vadd.s32 %v521_v3, %v515_v58  ;;  %vm524_vm15 = vc.u32 %v522_v17, %v518_v8  ;;  %v6767_v3 = vld [vmem:[%s13848_s0 + $0x1f2] sm:$0xff] }
 0x449   :  { %v1247_v49 = vadd.s32 18, %v11126_v54  ;;  %v11164_v7 = vsel %vm1309_vm0, 1.0, %v14415_v33  ;;  %v525_v30 = vsel %vm524_vm15, 1, %v14417_v55  ;;  %v857_v36 = vand.u32 65535, %v11157_v18  ;;  %4186 = vrot.lane.b32.xlu1 %v6767_v3, %s6830_s18 }
 0x44a   :  { %14489 = vst [vmem:[#allocation67_spill] sm:$0xff] %v11164_v7  ;;  %v3382_v5 = vmul.f32 %v11164_v7, %v11034_v53  ;;  %v519_v24 = vshrl.u32 %v11142_v40, 16  ;;  %v527_v20 = vadd.s32 %v525_v30, %v523_v21  ;;  %v858_v63 = vshrl.u32 %v11157_v18, 16  ;;  %4444 = vrot.lane.b32.xlu2 %v10565_v52, %s6832_s25  ;;  %v3230_v52 = vpop.f32.mrf.mxu0 }
 0x44b   :  { %v821_v46 = vmul.u32 18, %v820_v39  ;;  %v860_v8 = vmul.u32 14564, %v857_v36  ;;  %v11184_v13 = vmul.u32 58254, %v857_v36  ;;  %v11187_v22 = vadd.f32 %v10608_v50, %v3263_v44 }
 0x44c   :  { %v3432_v53 = vsel %vm2790_vm2, %v3382_v5, 0.0  ;;  %v3500_v40 = vmul.f32 %v3382_v5, %v3382_v5  ;;  %v849_v17 = vshrl.u32 %v848_v28, 4  ;;  %v528_v9 = vadd.s32 %v527_v20, %v517_v29  ;;  %v11213_v5 = vpop.permute.xlu2 %4084 }
 0x44d   :  { %v11195_v21 = vadd.f32 %v3432_v53, %v11101_v37  ;;  %v11197_v39 = vmul.u32 14564, %v858_v63  ;;  %v864_v30 = vshll.u32 %v11184_v13, 16  ;;  %3319 = vst.msk [vmem:[#allocation2 + $0xd8] sm:$0xff] %vm2790_vm2, %v11187_v22  ;;  %v11203_v44 = vadd.s32 128, %v9344_v12 }
 0x44e   :  { %v3391_v29 = vmul.f32 %v11136_v23, %v10744_v41  ;;  %v1283_v37 = vsel %vm11180_vm10, %v1247_v49, %v11126_v54  ;;  %v3549_v28 = vsel %vm2790_vm2, %v3500_v40, 0.0  ;;  %v529_v36 = vadd.s32 %v528_v9, %v519_v24  ;;  %14494 = vst [vmem:[#allocation70_spill] sm:$0xff] %v11213_v5 }
 0x44f   :  { %v11216_v20 = vadd.f32 %v3549_v28, %v11121_v6  ;;  %v863_v53 = vmul.u32 58254, %v858_v63  ;;  %v866_v3 = vshll.u32 %v11197_v39, 16  ;;  %vm868_vm12 = vc.u32 %v860_v8, %v864_v30 }
 0x450   :  { %v11221_v41 = vsel %vm2790_vm2, %v11123_v25, 0.0  ;;  %v11224_v58 = vsub.s32 %v10956_v56, %v821_v46  ;;  %v850_v54 = vmul.u32 18, %v849_v17  ;;  %v530_v49 = vshrl.u32 %v529_v36, 4  ;;  %v11235_v56 = vpop.permute.xlu1 %4082  ;;  %v11237_v46 = vpop.permute.xlu0 %4080 }
 0x451   :  { %v869_v24 = vsel %vm868_vm12, 1, %v14417_v55  ;;  %v870_v40 = vadd.s32 %v864_v30, %v860_v8  ;;  %v538_v6 = vand.u32 65535, %v11203_v44  ;;  %v539_v63 = vshrl.u32 %v11203_v44, 16  ;;  %14495 = vst [vmem:[#allocation73_spill] sm:$0xff] %v11235_v56 }
 0x452   :  { %v11230_v9 = vsel %vm2790_vm2, %v3391_v29, 0.0  ;;  %vm1319_vm8 = vcmp.lt.s32.totalorder %v1283_v37, 16  ;;  %v531_v28 = vmul.u32 18, %v530_v49  ;;  %v11233_v25 = vadd.f32 %v10608_v50, %v3230_v52  ;;  %14496 = vst [vmem:[#allocation74_spill] sm:$0xff] %v11237_v46 }
 0x453   :  { %v3509_v23 = vmul.f32 %v3391_v29, %v3391_v29  ;;  %v871_v17 = vadd.s32 %v869_v24, %v863_v53  ;;  %vm872_vm11 = vc.u32 %v870_v40, %v866_v3  ;;  %v542_v8 = vmul.u32 58254, %v538_v6  ;;  %v6596_v24 = vld [vmem:[%s13848_s0 + $0x194] sm:$0xff] }
 0x454   :  { %v532_v30 = vsub.s32 %v11118_v35, %v531_v28  ;;  %v873_v36 = vsel %vm872_vm11, 1, %v14417_v55  ;;  %v541_v7 = vmul.u32 14564, %v538_v6  ;;  %v543_v15 = vmul.u32 14564, %v539_v63  ;;  %3308 = vst.msk [vmem:[#allocation2 + $0x80] sm:$0xff] %vm2790_vm2, %v11233_v25  ;;  %4556 = vrot.lane.b32.xlu0 %v6596_v24, %s6833_s19  ;;  %v11257_v6 = vpop.permute.xlu2 %4090  ;;  %v3266_v28 = vpop.f32.mrf.mxu3 }
 0x455   :  { %v11244_v50 = vsel %vm1319_vm8, 1.0, %v14415_v33  ;;  %vm1140_vm9 = vcmp.ne.s32.totalorder %v11224_v58, 0  ;;  %v11248_v29 = vsub.s32 %v11081_v51, %v850_v54  ;;  %v545_v37 = vshll.u32 %v542_v8, 16  ;;  %14498 = vst [vmem:[#allocation76_spill] sm:$0xff] %v11257_v6 }
 0x456   :  { %14497 = vst [vmem:[#allocation75_spill] sm:$0xff] %v11244_v50  ;;  %vm1130_vm13 = vcmp.ne.s32.totalorder %v532_v30, 0  ;;  %vm1166_vm14 = vcmp.lt.s32.totalorder %v532_v30, 0  ;;  %v1238_v53 = vadd.s32 18, %v532_v30  ;;  %v544_v35 = vmul.u32 58254, %v539_v63 }
 0x457   :  { %vm1176_vm0 = vcmp.lt.s32.totalorder %v11224_v58, 0  ;;  %vm1202_vm15 = vmand %vm1166_vm14, %vm1130_vm13  ;;  %v865_v3 = vshrl.u32 %v11184_v13, 16  ;;  %v875_v52 = vadd.s32 %v873_v36, %v871_v17  ;;  %v547_v49 = vshll.u32 %v543_v15, 16 }
 0x458   :  { %v1248_v40 = vadd.s32 18, %v11224_v58  ;;  %v1274_v51 = vsel %vm1202_vm15, %v1238_v53, %v532_v30  ;;  %vm549_vm10 = vc.u32 %v541_v7, %v545_v37  ;;  %v551_v54 = vadd.s32 %v545_v37, %v541_v7  ;;  %vm11293_vm14 = vmand %vm1176_vm0, %vm1140_vm9 }
 0x459   :  { %vm1141_vm12 = vcmp.ne.s32.totalorder %v11248_v29, 0  ;;  %vm1310_vm8 = vcmp.lt.s32.totalorder %v1274_v51, 16  ;;  %v867_v13 = vshrl.u32 %v11197_v39, 16  ;;  %v550_v63 = vsel %vm549_vm10, 1, %v14417_v55  ;;  %v11275_v51 = vld [vmem:[%s13850_s2] ss:$0 sm:$0xff] }
 0x45a   :  { %v11263_v17 = vsel %vm1310_vm8, 1.0, %v14415_v33  ;;  %v546_v36 = vshrl.u32 %v542_v8, 16  ;;  %v552_v5 = vadd.s32 %v550_v63, %v544_v35  ;;  %vm553_vm11 = vc.u32 %v551_v54, %v547_v49 }
 0x45b   :  { %14499 = vst [vmem:[#allocation77_spill] sm:$0xff] %v11263_v17  ;;  %vm1177_vm13 = vcmp.lt.s32.totalorder %v11248_v29, 0  ;;  %v3383_v7 = vmul.f32 %v11263_v17, %v11095_v48  ;;  %v876_v30 = vadd.s32 %v875_v52, %v865_v3  ;;  %v554_v37 = vsel %vm553_vm11, 1, %v14417_v55  ;;  %v11282_v52 = vpop.permute.xlu1 %4088 }
 0x45c   :  { %v548_v53 = vshrl.u32 %v543_v15, 16  ;;  %v556_v24 = vadd.s32 %v554_v37, %v552_v5  ;;  %v11270_v39 = vadd.s32 224, %v9344_v12  ;;  %v11278_v8 = vadd.f32 %v11275_v51, %v3266_v28  ;;  %14500 = vst [vmem:[#allocation78_spill] sm:$0xff] %v11282_v52  ;;  %v11284_v15 = vpop.permute.xlu0 %4086  ;;  %vm11313_vm9 = vmand %vm1177_vm13, %vm1141_vm12  ;;  %v11336_v49 = vpop.permute.xlu2 %4096 }
 0x45d   :  { %v1249_v35 = vadd.s32 18, %v11248_v29  ;;  %v3434_v48 = vsel %vm2790_vm2, %v3383_v7, 0.0  ;;  %v3501_v3 = vmul.f32 %v3383_v7, %v3383_v7  ;;  %14501 = vst [vmem:[#allocation96_spill] sm:$0xff] %v11284_v15  ;;  %v11287_v5 = vadd.s32 136, %v9344_v12 }
 0x45e   :  { %v11298_v54 = vadd.f32 %v3434_v48, %v11195_v21  ;;  %v557_v63 = vadd.s32 %v556_v24, %v546_v36  ;;  %v886_v28 = vand.u32 65535, %v11270_v39  ;;  %v887_v7 = vshrl.u32 %v11270_v39, 16  ;;  %3320 = vst.msk [vmem:[#allocation2 + $0xe0] sm:$0xff] %vm2790_vm2, %v11278_v8 }
 0x45f   :  { %v11305_v37 = vsel %vm2790_vm2, %v3509_v23, 0.0  ;;  %v3392_v17 = vmul.f32 %v11244_v50, %v10834_v31  ;;  %v3551_v36 = vsel %vm2790_vm2, %v3501_v3, 0.0  ;;  %v877_v24 = vadd.s32 %v876_v30, %v867_v13  ;;  %14506 = vst [vmem:[#allocation104_spill] sm:$0xff] %v11336_v49  ;;  %v3233_v49 = vpop.f32.mrf.mxu0 }
 0x460   :  { %v11319_v48 = vadd.f32 %v3551_v36, %v11216_v20  ;;  %v558_v6 = vadd.s32 %v557_v63, %v548_v53  ;;  %v889_v23 = vmul.u32 14564, %v886_v28  ;;  %v890_v52 = vmul.u32 58254, %v886_v28  ;;  %v6572_v28 = vld [vmem:[%s13848_s0 + $0x1f3] sm:$0xff] }
 0x461   :  { %v1284_v31 = vsel %vm11293_vm14, %v1248_v40, %v11224_v58  ;;  %v11324_v50 = vmul.u32 14564, %v887_v7  ;;  %v567_v15 = vand.u32 65535, %v11287_v5  ;;  %v568_v56 = vshrl.u32 %v11287_v5, 16  ;;  %4330 = vrot.lane.b32.xlu0 %v6572_v28, %s6831_s29 }
 0x462   :  { %v1285_v13 = vsel %vm11313_vm9, %v1249_v35, %v11248_v29  ;;  %v559_v30 = vshrl.u32 %v558_v6, 4  ;;  %v892_v20 = vmul.u32 58254, %v887_v7  ;;  %v893_v3 = vshll.u32 %v890_v52, 16 }
 0x463   :  { %v11332_v53 = vsel %vm2790_vm2, %v3392_v17, 0.0  ;;  %v11334_v63 = vmul.f32 %v3392_v17, %v3392_v17  ;;  %v878_v58 = vshrl.u32 %v877_v24, 4  ;;  %v895_v40 = vshll.u32 %v11324_v50, 16 }
 0x464   :  { %vm11339_vm0 = vcmp.lt.s32.totalorder %v1284_v31, 16  ;;  %v560_v36 = vmul.u32 18, %v559_v30  ;;  %vm897_vm15 = vc.u32 %v889_v23, %v893_v3  ;;  %v899_v29 = vadd.s32 %v893_v3, %v889_v23  ;;  %v11354_v3 = vpop.permute.xlu0 %4092  ;;  %v11395_v28 = vpop.permute.xlu2 %4102 }
 0x465   :  { %vm11343_vm10 = vcmp.lt.s32.totalorder %v1285_v13, 16  ;;  %v898_v35 = vsel %vm897_vm15, 1, %v14417_v55  ;;  %v571_v17 = vmul.u32 58254, %v567_v15  ;;  %v11348_v7 = vmul.u32 14564, %v568_v56  ;;  %v11352_v13 = vpop.permute.xlu1 %4094  ;;  %14512 = vst [vmem:[#allocation80_spill] sm:$0xff] %v11354_v3 }
 0x466   :  { %v561_v21 = vsub.s32 %v11203_v44, %v560_v36  ;;  %v900_v24 = vadd.s32 %v898_v35, %v892_v20  ;;  %vm901_vm12 = vc.u32 %v899_v29, %v895_v40  ;;  %v570_v31 = vmul.u32 14564, %v567_v15  ;;  %14511 = vst [vmem:[#allocation79_spill] sm:$0xff] %v11352_v13  ;;  %v6668_v36 = vld [vmem:[%s13848_s0 + $0x196] sm:$0xff]  ;;  %v6667_v35 = vld [vmem:[%s13848_s0 + $0x18e] sm:$0xff] }
 0x467   :  { %v879_v46 = vmul.u32 18, %v878_v58  ;;  %v894_v16 = vshrl.u32 %v890_v52, 16  ;;  %v902_v30 = vsel %vm901_vm12, 1, %v14417_v55  ;;  %v574_v23 = vshll.u32 %v571_v17, 16  ;;  %4844 = vrot.lane.b32.xlu1 %v6668_v36, %s6835_s22  ;;  %4842 = vrot.lane.b32.xlu2 %v6667_v35, %s6835_s22  ;;  %14517 = vst [vmem:[#allocation82_spill] sm:$0xff] %v11395_v28 }
 0x468   :  { %v11359_v62 = vsel %vm11339_vm0, 1.0, %v14415_v33  ;;  %vm1131_vm8 = vcmp.ne.s32.totalorder %v561_v21, 0  ;;  %vm1167_vm11 = vcmp.lt.s32.totalorder %v561_v21, 0  ;;  %v573_v44 = vmul.u32 58254, %v568_v56 }
 0x469   :  { %14513 = vst [vmem:[#allocation131_spill] sm:$0xff] %v11359_v62  ;;  %vm11361_vm13 = vmand %vm1167_vm11, %vm1131_vm8  ;;  %v1239_v52 = vadd.s32 18, %v561_v21  ;;  %v896_v20 = vshrl.u32 %v11324_v50, 16  ;;  %v904_v58 = vadd.s32 %v902_v30, %v900_v24  ;;  %v576_v40 = vshll.u32 %v11348_v7, 16 }
 0x46a   :  { %v11376_v56 = vsel %vm11343_vm10, 1.0, %v14415_v33  ;;  %vm578_vm14 = vc.u32 %v570_v31, %v574_v23  ;;  %v580_v29 = vadd.s32 %v574_v23, %v570_v31  ;;  %v11379_v50 = vadd.f32 %v11275_v51, %v3233_v49  ;;  %v3269_v23 = vpop.f32.mrf.mxu3 }
 0x46b   :  { %14516 = vst [vmem:[#allocation81_spill] sm:$0xff] %v11376_v56  ;;  %v11387_v24 = vsub.s32 %v11157_v18, %v879_v46  ;;  %v1275_v6 = vsel %vm11361_vm13, %v1239_v52, %v561_v21  ;;  %v905_v30 = vadd.s32 %v904_v58, %v894_v16  ;;  %v579_v31 = vsel %vm578_vm14, 1, %v14417_v55 }
 0x46c   :  { %vm1311_vm9 = vcmp.lt.s32.totalorder %v1275_v6, 16  ;;  %v575_v49 = vshrl.u32 %v571_v17, 16  ;;  %v581_v36 = vadd.s32 %v579_v31, %v573_v44  ;;  %vm582_vm0 = vc.u32 %v580_v29, %v576_v40  ;;  %3309 = vst.msk [vmem:[#allocation2 + $0x88] sm:$0xff] %vm2790_vm2, %v11379_v50  ;;  %v11431_v31 = vpop.permute.xlu0 %4098 }
 0x46d   :  { %v11398_v18 = vsel %vm1311_vm9, 1.0, %v14415_v33  ;;  %v906_v46 = vadd.s32 %v905_v30, %v896_v20  ;;  %v577_v16 = vshrl.u32 %v11348_v7, 16  ;;  %v583_v21 = vsel %vm582_vm0, 1, %v14417_v55  ;;  %v11429_v30 = vpop.permute.xlu1 %4100  ;;  %14520 = vst [vmem:[#allocation85_spill] sm:$0xff] %v11431_v31 }
 0x46e   :  { %14518 = vst [vmem:[#allocation151_spill] sm:$0xff] %v11398_v18  ;;  %v3384_v15 = vmul.f32 %v11398_v18, %v11233_v25  ;;  %v585_v52 = vadd.s32 %v583_v21, %v581_v36  ;;  %v11405_v17 = vadd.s32 232, %v9344_v12  ;;  %v11408_v44 = vadd.f32 %v11275_v51, %v3269_v23  ;;  %v11436_v23 = vld [vmem:[%s13848_s0 + $0x204] sm:$0xff] }
 0x46f   :  { %v3393_v58 = vmul.f32 %v11359_v62, %v10962_v57  ;;  %v11414_v20 = vmul.f32 %v11376_v56, %v11084_v45  ;;  %v907_v7 = vshrl.u32 %v906_v46, 4  ;;  %v11417_v40 = vadd.s32 240, %v9344_v12  ;;  %14519 = vst [vmem:[#allocation157_spill] sm:$0xff] %v11429_v30  ;;  %4584 = vrot.lane.b32.xlu0 %v11436_v23, %s6833_s19  ;;  %4446 = vrot.lane.b32.xlu2 %v10798_v32, %s6832_s25 }
 0x470   :  { %v3436_v25 = vsel %vm2790_vm2, %v3384_v15, 0.0  ;;  %v3502_v29 = vmul.f32 %v3384_v15, %v3384_v15  ;;  %v586_v35 = vadd.s32 %v585_v52, %v575_v49  ;;  %v915_v6 = vand.u32 65535, %v11405_v17  ;;  %3321 = vst.msk [vmem:[#allocation2 + $0xe8] sm:$0xff] %vm2790_vm2, %v11408_v44 }
 0x471   :  { %vm1142_vm15 = vcmp.ne.s32.totalorder %v11387_v24, 0  ;;  %vm1178_vm10 = vcmp.lt.s32.totalorder %v11387_v24, 0  ;;  %v11426_v57 = vadd.f32 %v3436_v25, %v11298_v54  ;;  %v916_v45 = vshrl.u32 %v11405_v17, 16  ;;  %14521 = vst [vmem:[#allocation86_spill] sm:$0xff] %v11436_v23  ;;  %v6769_v54 = vld [vmem:[%s13848_s0 + $0x18a] sm:$0xff] }
 0x472   :  { %v3553_v49 = vsel %vm2790_vm2, %v3502_v29, 0.0  ;;  %v587_v36 = vadd.s32 %v586_v35, %v577_v16  ;;  %v918_v46 = vmul.u32 14564, %v915_v6  ;;  %v919_v21 = vmul.u32 58254, %v915_v6  ;;  %4160 = vrot.lane.b32.xlu1 %v6769_v54, %s6830_s18  ;;  %vm11456_vm12 = vmand %vm1178_vm10, %vm1142_vm15  ;;  %v3272_v18 = vpop.f32.mrf.mxu3 }
 0x473   :  { %v1250_v15 = vadd.s32 18, %v11387_v24  ;;  %v11447_v52 = vadd.f32 %v3553_v49, %v11319_v48  ;;  %v920_v25 = vmul.u32 14564, %v916_v45  ;;  %v944_v29 = vand.u32 65535, %v11417_v40 }
 0x474   :  { %v908_v35 = vmul.u32 18, %v907_v7  ;;  %v588_v6 = vshrl.u32 %v587_v36, 4  ;;  %v921_v54 = vmul.u32 58254, %v916_v45  ;;  %v922_v56 = vshll.u32 %v919_v21, 16  ;;  %v11477_v45 = vpop.permute.xlu2 %4108 }
 0x475   :  { %v11462_v48 = vsel %vm2790_vm2, %v11334_v63, 0.0  ;;  %v11465_v49 = vsel %vm2790_vm2, %v3393_v58, 0.0  ;;  %v924_v32 = vshll.u32 %v920_v25, 16  ;;  %v945_v62 = vshrl.u32 %v11417_v40, 16  ;;  %14524 = vst [vmem:[#allocation179_spill] sm:$0xff] %v11477_v45 }
 0x476   :  { %v11468_v28 = vmul.f32 %v3393_v58, %v3393_v58  ;;  %v589_v30 = vmul.u32 18, %v588_v6  ;;  %vm926_vm8 = vc.u32 %v918_v46, %v922_v56  ;;  %v928_v31 = vadd.s32 %v922_v56, %v918_v46 }
 0x477   :  { %v11472_v7 = vmul.f32 %v11414_v20, %v11414_v20  ;;  %v1286_v63 = vsel %vm11456_vm12, %v1250_v15, %v11387_v24  ;;  %v927_v36 = vsel %vm926_vm8, 1, %v14417_v55  ;;  %v948_v13 = vmul.u32 58254, %v944_v29 }
 0x478   :  { %v11481_v3 = vsub.s32 %v11270_v39, %v908_v35  ;;  %v590_v58 = vsub.s32 %v11287_v5, %v589_v30  ;;  %v929_v6 = vadd.s32 %v927_v36, %v921_v54  ;;  %vm930_vm11 = vc.u32 %v928_v31, %v924_v32  ;;  %v11492_v30 = vpop.permute.xlu1 %4106  ;;  %v11494_v31 = vpop.permute.xlu0 %4104  ;;  %v6632_v54 = vld [vmem:[%s13848_s0 + $0x195] sm:$0xff] }
 0x479   :  { %v923_v56 = vshrl.u32 %v919_v21, 16  ;;  %v931_v46 = vsel %vm930_vm11, 1, %v14417_v55  ;;  %v947_v23 = vmul.u32 14564, %v944_v29  ;;  %v11485_v11 = vmul.u32 14564, %v945_v62  ;;  %v6682_v21 = vld [vmem:[%s13848_s0 + $0x206] sm:$0xff]  ;;  %4700 = vrot.lane.b32.xlu2 %v6632_v54, %s6834_s10  ;;  %v6770_v29 = vld [vmem:[%s13848_s0 + $0x1fa] sm:$0xff] }
 0x47a   :  { %vm1132_vm13 = vcmp.ne.s32.totalorder %v590_v58, 0  ;;  %vm1168_vm14 = vcmp.lt.s32.totalorder %v590_v58, 0  ;;  %v1240_v24 = vadd.s32 18, %v590_v58  ;;  %v925_v15 = vshrl.u32 %v920_v25, 16  ;;  %v6559_v25 = vld [vmem:[%s13848_s0 + $0x18b] sm:$0xff]  ;;  %4872 = vrot.lane.b32.xlu1 %v6682_v21, %s6835_s22 }
 0x47b   :  { %vm11487_vm9 = vmand %vm1168_vm14, %vm1132_vm13  ;;  %v933_v39 = vadd.s32 %v931_v46, %v929_v6  ;;  %v950_v35 = vmul.u32 58254, %v945_v62  ;;  %v951_v45 = vshll.u32 %v948_v13, 16  ;;  %v953_v5 = vshll.u32 %v11485_v11, 16  ;;  %4304 = vrot.lane.b32.xlu0 %v6559_v25, %s6831_s29 }
 0x47c   :  { %vm11502_vm0 = vcmp.lt.s32.totalorder %v1286_v63, 16  ;;  %vm1143_vm15 = vcmp.ne.s32.totalorder %v11481_v3, 0  ;;  %vm1179_vm10 = vcmp.lt.s32.totalorder %v11481_v3, 0  ;;  %v1276_v62 = vsel %vm11487_vm9, %v1240_v24, %v590_v58 }
 0x47d   :  { %vm1312_vm12 = vcmp.lt.s32.totalorder %v1276_v62, 16  ;;  %v934_v32 = vadd.s32 %v933_v39, %v923_v56  ;;  %vm955_vm8 = vc.u32 %v947_v23, %v951_v45  ;;  %v957_v63 = vadd.s32 %v951_v45, %v947_v23  ;;  %v3275_v56 = vpop.f32.mrf.mxu3  ;;  %vm11537_vm13 = vmand %vm1179_vm10, %vm1143_vm15 }
 0x47e   :  { %v11517_v36 = vsel %vm1312_vm12, 1.0, %v14415_v33  ;;  %v952_v6 = vshrl.u32 %v948_v13, 16  ;;  %v956_v58 = vsel %vm955_vm8, 1, %v14417_v55  ;;  %v11521_v46 = vadd.f32 %v11275_v51, %v3272_v18 }
 0x47f   :  { %14529 = vst [vmem:[#allocation187_spill] sm:$0xff] %v11517_v36  ;;  %v3385_v24 = vmul.f32 %v11517_v36, %v11379_v50  ;;  %v935_v16 = vadd.s32 %v934_v32, %v925_v15  ;;  %v958_v21 = vadd.s32 %v956_v58, %v950_v35  ;;  %vm959_vm11 = vc.u32 %v957_v63, %v953_v5 }
 0x480   :  { %v1251_v23 = vadd.s32 18, %v11481_v3  ;;  %v954_v45 = vshrl.u32 %v11485_v11, 16  ;;  %v960_v39 = vsel %vm959_vm11, 1, %v14417_v55  ;;  %3322 = vst.msk [vmem:[#allocation2 + $0xf0] sm:$0xff] %vm2790_vm2, %v11521_v46  ;;  %v11531_v13 = vadd.s32 248, %v9344_v12  ;;  %v11542_v11 = vpop.permute.xlu2 %4152 }
 0x481   :  { %v3438_v18 = vsel %vm2790_vm2, %v3385_v24, 0.0  ;;  %v3503_v15 = vmul.f32 %v3385_v24, %v3385_v24  ;;  %v936_v35 = vshrl.u32 %v935_v16, 4  ;;  %v962_v5 = vadd.s32 %v960_v39, %v958_v21 }
 0x482   :  { %v3439_v25 = vadd.f32 %v3438_v18, %v11426_v57  ;;  %v973_v62 = vand.u32 65535, %v11531_v13  ;;  %v974_v54 = vshrl.u32 %v11531_v13, 16  ;;  %v11548_v32 = vadd.f32 %v11275_v51, %v3275_v56  ;;  %4188 = vrot.lane.b32.xlu1 %v6770_v29, %s6830_s18 }
 0x483   :  { %v11553_v63 = vsel %vm11502_vm0, 1.0, %v14415_v33  ;;  %v3555_v58 = vsel %vm2790_vm2, %v3503_v15, 0.0  ;;  %v937_v24 = vmul.u32 18, %v936_v35  ;;  %v963_v36 = vadd.s32 %v962_v5, %v952_v6 }
 0x484   :  { %14532 = vst [vmem:[#allocation87_spill] sm:$0xff] %v11553_v63  ;;  %v1287_v57 = vsel %vm11537_vm13, %v1251_v23, %v11481_v3  ;;  %v3441_v16 = vadd.f32 %v10880_v0, %v3439_v25  ;;  %v3556_v21 = vadd.f32 %v3555_v58, %v11447_v52  ;;  %v977_v39 = vmul.u32 58254, %v973_v62  ;;  %v11568_v3 = vpop.permute.xlu1 %4150  ;;  %v11570_v0 = vpop.permute.xlu0 %4148 }
 0x485   :  { %3323 = vst.msk [vmem:[#allocation2 + $0xf8] sm:$0xff] %vm2790_vm2, %v11548_v32  ;;  %v938_v6 = vsub.s32 %v11405_v17, %v937_v24  ;;  %v964_v56 = vadd.s32 %v963_v36, %v954_v45  ;;  %v976_v18 = vmul.u32 14564, %v973_v62  ;;  %v978_v50 = vmul.u32 14564, %v974_v54 }
 0x486   :  { %v3443_v52 = vadd.f32 %v10898_v34, %v3441_v16  ;;  %v3558_v23 = vadd.f32 %v10884_v1, %v3556_v21  ;;  %v979_v15 = vmul.u32 58254, %v974_v54  ;;  %v980_v35 = vshll.u32 %v977_v39, 16  ;;  %v11586_v16 = vld [vmem:[%s13848_s0 + $0x19c] sm:$0xff] }
 0x487   :  { %vm1144_vm14 = vcmp.ne.s32.totalorder %v938_v6, 0  ;;  %vm1180_vm9 = vcmp.lt.s32.totalorder %v938_v6, 0  ;;  %v1252_v5 = vadd.s32 18, %v938_v6  ;;  %v965_v25 = vshrl.u32 %v964_v56, 4  ;;  %4558 = vrot.lane.b32.xlu0 %v11586_v16, %s6833_s19 }
 0x488   :  { %vm11574_vm0 = vcmp.lt.s32.totalorder %v1287_v57, 16  ;;  %v3445_v17 = vadd.f32 %v10904_v10, %v3443_v52  ;;  %v3560_v36 = vadd.f32 %v10901_v60, %v3558_v23  ;;  %vm1216_vm15 = vmand %vm1180_vm9, %vm1144_vm14  ;;  %v982_v45 = vshll.u32 %v978_v50, 16  ;;  %v11590_v10 = vpop.permute.xlu2 %4436 }
 0x489   :  { %v1288_v62 = vsel %vm1216_vm15, %v1252_v5, %v938_v6  ;;  %v966_v34 = vmul.u32 18, %v965_v25  ;;  %vm984_vm10 = vc.u32 %v976_v18, %v980_v35  ;;  %v986_v1 = vadd.s32 %v980_v35, %v976_v18 }
 0x48a   :  { %v3447_v54 = vadd.f32 %v11013_v27, %v3445_v17  ;;  %v3562_v24 = vadd.f32 %v11004_v42, %v3560_v36  ;;  %vm1324_vm12 = vcmp.lt.s32.totalorder %v1288_v62, 16  ;;  %v985_v57 = vsel %vm984_vm10, 1, %v14417_v55  ;;  %v6608_v42 = vld [vmem:[%s13848_s0 + $0x1f4] sm:$0xff] }
 0x48b   :  { %v3395_v60 = vmul.f32 %v11553_v63, %v11187_v22  ;;  %v981_v21 = vshrl.u32 %v977_v39, 16  ;;  %v987_v29 = vadd.s32 %v985_v57, %v979_v15  ;;  %vm988_vm8 = vc.u32 %v986_v1, %v982_v45  ;;  %4474 = vrot.lane.b32.xlu2 %v6608_v42, %s6832_s25  ;;  %v3278_v15 = vpop.f32.mrf.mxu3 }
 0x48c   :  { %v11600_v27 = vsel %vm11574_vm0, 1.0, %v14415_v33  ;;  %v3449_v6 = vadd.f32 %v11110_v26, %v3447_v54  ;;  %v3564_v22 = vadd.f32 %v11039_v47, %v3562_v24  ;;  %v989_v39 = vsel %vm988_vm8, 1, %v14417_v55  ;;  %v11625_v36 = vpop.permute.xlu0 %4154 }
 0x48d   :  { %14535 = vst [vmem:[#allocation88_spill] sm:$0xff] %v11600_v27  ;;  %v11607_v56 = vsel %vm1324_vm12, 1.0, %v14415_v33  ;;  %v11610_v18 = vsub.s32 %v11417_v40, %v966_v34  ;;  %v983_v52 = vshrl.u32 %v978_v50, 16  ;;  %v991_v23 = vadd.s32 %v989_v39, %v987_v29  ;;  %v11623_v50 = vpop.permute.xlu1 %4292  ;;  %v6669_v39 = vld [vmem:[%s13848_s0 + $0x19e] sm:$0xff] }
 0x48e   :  { %14536 = vst [vmem:[#allocation89_spill] sm:$0xff] %v11607_v56  ;;  %v3571_v35 = vsel %vm2790_vm2, %v11468_v28, 0.0  ;;  %v3456_v26 = vsel %vm2790_vm2, %v11414_v20, 0.0  ;;  %v3566_v47 = vadd.f32 %v11221_v41, %v3564_v22  ;;  %v3451_v5 = vadd.f32 %v11230_v9, %v3449_v6  ;;  %4846 = vrot.lane.b32.xlu1 %v6669_v39, %s6835_s22 }
 0x48f   :  { %v3573_v25 = vsel %vm2790_vm2, %v11472_v7, 0.0  ;;  %v3513_v58 = vmul.f32 %v3395_v60, %v3395_v60  ;;  %v992_v17 = vadd.s32 %v991_v23, %v981_v21  ;;  %v11621_v40 = vadd.s32 256, %v9344_v12 }
 0x490   :  { %v3396_v28 = vmul.f32 %v11600_v27, %v11278_v8  ;;  %v3397_v41 = vmul.f32 %v11607_v56, %v11408_v44  ;;  %v3453_v9 = vadd.f32 %v11332_v53, %v3451_v5  ;;  %v3568_v20 = vadd.f32 %v11305_v37, %v3566_v47  ;;  %v11649_v42 = vpop.permute.xlu2 %4834  ;;  %v6646_v47 = vld [vmem:[%s13848_s0 + $0x205] sm:$0xff] }
 0x491   :  { %vm1145_vm11 = vcmp.ne.s32.totalorder %v11610_v18, 0  ;;  %v993_v7 = vadd.s32 %v992_v17, %v983_v52  ;;  %v1002_v45 = vand.u32 65535, %v11621_v40  ;;  %v1003_v62 = vshrl.u32 %v11621_v40, 16 }
 0x492   :  { %v3455_v34 = vadd.f32 %v11465_v49, %v3453_v9  ;;  %v3570_v1 = vadd.f32 %v11462_v48, %v3568_v20  ;;  %vm1181_vm13 = vcmp.lt.s32.totalorder %v11610_v18, 0  ;;  %v11640_v8 = vadd.f32 %v11275_v51, %v3278_v15 }
 0x493   :  { %v994_v44 = vshrl.u32 %v993_v7, 4  ;;  %v1005_v53 = vmul.u32 14564, %v1002_v45  ;;  %v1006_v54 = vmul.u32 58254, %v1002_v45  ;;  %v11642_v37 = vmul.u32 14564, %v1003_v62  ;;  %vm11662_vm14 = vmand %vm1181_vm13, %vm1145_vm11  ;;  %v3281_v17 = vpop.f32.mrf.mxu3  ;;  %4728 = vrot.lane.b32.xlu2 %v6646_v47, %s6834_s10 }
 0x494   :  { %v3458_v24 = vsel %vm2790_vm2, %v3395_v60, 0.0  ;;  %v3514_v57 = vmul.f32 %v3396_v28, %v3396_v28  ;;  %v3457_v21 = vadd.f32 %v3456_v26, %v3455_v34  ;;  %v3572_v29 = vadd.f32 %v3571_v35, %v3570_v1  ;;  %3324 = vst.msk [vmem:[#allocation2 + $0x100] sm:$0xff] %vm2790_vm2, %v11640_v8  ;;  %v6573_v60 = vld [vmem:[%s13848_s0 + $0x1fb] sm:$0xff] }
 0x495   :  { %v3575_v48 = vsel %vm2790_vm2, %v3513_v58, 0.0  ;;  %v1253_v49 = vadd.s32 18, %v11610_v18  ;;  %v1008_v6 = vmul.u32 58254, %v1003_v62  ;;  %v1009_v22 = vshll.u32 %v1006_v54, 16  ;;  %4332 = vrot.lane.b32.xlu0 %v6573_v60, %s6831_s29 }
 0x496   :  { %v3460_v52 = vsel %vm2790_vm2, %v3396_v28, 0.0  ;;  %v3459_v23 = vadd.f32 %v3458_v24, %v3457_v21  ;;  %v3574_v15 = vadd.f32 %v3573_v25, %v3572_v29  ;;  %v1011_v26 = vshll.u32 %v11642_v37, 16  ;;  %v6444_v24 = vld [vmem:[%s13848_s0 + $0x150] sm:$0xff] }
 0x497   :  { %v3515_v5 = vmul.f32 %v3397_v41, %v3397_v41  ;;  %v995_v25 = vmul.u32 18, %v994_v44  ;;  %vm1013_vm9 = vc.u32 %v1005_v53, %v1009_v22  ;;  %v1015_v58 = vadd.s32 %v1009_v22, %v1005_v53  ;;  %v4691_v44 = vpop.permute.xlu1 %4690  ;;  %v4547_v53 = vpop.permute.xlu0 %4546 }
 0x498   :  { %v3577_v28 = vsel %vm2790_vm2, %v3514_v57, 0.0  ;;  %v3461_v9 = vadd.f32 %v3460_v52, %v3459_v23  ;;  %v3576_v20 = vadd.f32 %v3575_v48, %v3574_v15  ;;  %v1014_v7 = vsel %vm1013_vm9, 1, %v14417_v55  ;;  %v11720_v15 = vpop.permute.xlu2 %4548 }
 0x499   :  { %v3462_v45 = vsel %vm2790_vm2, %v3397_v41, 0.0  ;;  %v1289_v62 = vsel %vm11662_vm14, %v1253_v49, %v11610_v18  ;;  %v5014_v34 = vsel %vm2827_vm3, %v10890_v4, %v11570_v0  ;;  %v1016_v1 = vadd.s32 %v1014_v7, %v1008_v6 }
 0x49a   :  { %v11685_v57 = vadd.f32 %v3462_v45, %v3461_v9  ;;  %v3578_v21 = vadd.f32 %v3577_v28, %v3576_v20  ;;  %v1010_v29 = vshrl.u32 %v1006_v54, 16  ;;  %vm1017_vm0 = vc.u32 %v1015_v58, %v1011_v26  ;;  %v11741_v58 = vld [vmem:[%s13848_s0 + $0x20c] sm:$0xff] }
 0x49b   :  { %v3579_v41 = vsel %vm2790_vm2, %v3515_v5, 0.0  ;;  %v11689_v18 = vsub.s32 %v11531_v13, %v995_v25  ;;  %v1018_v48 = vsel %vm1017_vm0, 1, %v14417_v55  ;;  %v11693_v4 = vadd.s32 264, %v9344_v12  ;;  %v3284_v9 = vpop.f32.mrf.mxu3 }
 0x49c   :  { %v11695_v0 = vadd.f32 %v3579_v41, %v3578_v21  ;;  %v1012_v49 = vshrl.u32 %v11642_v37, 16  ;;  %v1020_v6 = vadd.s32 %v1018_v48, %v1016_v1  ;;  %v5050_v22 = vsel %vm2864_vm4, %v5014_v34, %v11623_v50 }
 0x49d   :  { %v4943_v54 = vsel %vm2753_vm1, %v6444_v24, %v9909_v61  ;;  %v1031_v39 = vand.u32 65535, %v11693_v4  ;;  %v1032_v13 = vshrl.u32 %v11693_v4, 16  ;;  %v11705_v60 = vadd.f32 %v11275_v51, %v3281_v17  ;;  %v6771_v61 = vld [vmem:[%s13848_s0 + $0x192] sm:$0xff]  ;;  %4586 = vrot.lane.b32.xlu0 %v11741_v58, %s6833_s19 }
 0x49e   :  { %v4980_v52 = vsel %vm2790_vm2, %v10868_v38, %v10751_v19  ;;  %v4979_v37 = vsel %vm2790_vm2, %v4943_v54, %v10800_v43  ;;  %vm11712_vm15 = vcmp.lt.s32.totalorder %v1289_v62, 16  ;;  %v1021_v50 = vadd.s32 %v1020_v6, %v1010_v29  ;;  %4162 = vrot.lane.b32.xlu1 %v6771_v61, %s6830_s18  ;;  %v6772_v43 = vld [vmem:[%s13848_s0 + $0x18c] sm:$0xff] }
 0x49f   :  { %v1034_v35 = vmul.u32 14564, %v1031_v39  ;;  %v1035_v26 = vmul.u32 58254, %v1031_v39  ;;  %v11722_v47 = vmul.u32 14564, %v1032_v13  ;;  %3325 = vst.msk [vmem:[#allocation2 + $0x108] sm:$0xff] %vm2790_vm2, %v11705_v60  ;;  %v5086_v19 = vsel %vm2901_vm5, %v5050_v22, %v11590_v10  ;;  %4448 = vrot.lane.b32.xlu2 %v6772_v43, %s6832_s25  ;;  %v4295_v24 = vpop.permute.xlu0 %4294  ;;  %v6560_v61 = vld [vmem:[%s13848_s0 + $0x193] sm:$0xff] }
 0x4a0   :  { %v11734_v38 = vsel %vm2827_vm3, %v4980_v52, %v11542_v11  ;;  %vm1146_vm10 = vcmp.ne.s32.totalorder %v11689_v18, 0  ;;  %v1022_v5 = vadd.s32 %v1021_v50, %v1012_v49  ;;  %v5122_v25 = vsel %vm2938_vm6, %v5086_v19, %v4547_v53  ;;  %v4439_v53 = vpop.permute.xlu1 %4438  ;;  %v6683_v50 = vld [vmem:[%s13848_s0 + $0x20e] sm:$0xff] }
 0x4a1   :  { %vm1182_vm12 = vcmp.lt.s32.totalorder %v11689_v18, 0  ;;  %v1037_v10 = vmul.u32 58254, %v1032_v13  ;;  %v1038_v17 = vshll.u32 %v1035_v26, 16  ;;  %v1040_v28 = vshll.u32 %v11722_v47, 16 }
 0x4a2   :  { %v11750_v11 = vsel %vm11712_vm15, 1.0, %v14415_v33  ;;  %v5015_v20 = vsel %vm2827_vm3, %v4979_v37, %v11568_v3  ;;  %v1023_v7 = vshrl.u32 %v1022_v5, 4  ;;  %v5158_v45 = vsel %vm2975_vm7, %v5122_v25, %v4691_v44  ;;  %vm11762_vm13 = vmand %vm1182_vm12, %vm1146_vm10  ;;  %v6633_v5 = vld [vmem:[%s13848_s0 + $0x19d] sm:$0xff] }
 0x4a3   :  { %14541 = vst [vmem:[#allocation90_spill] sm:$0xff] %v11750_v11  ;;  %v1254_v62 = vadd.s32 18, %v11689_v18  ;;  %vm1042_vm8 = vc.u32 %v1034_v35, %v1038_v17  ;;  %v1044_v34 = vadd.s32 %v1038_v17, %v1034_v35  ;;  %vm14542_vm11 = vcmask 261120   ;;  %v4297_v35 = vpop.permute.xlu2 %4296 }
 0x4a4   :  { %v5194_v1 = vsel %vm14542_vm11, %v5158_v45, %v11649_v42  ;;  %v1024_v3 = vmul.u32 18, %v1023_v7  ;;  %v1043_v44 = vsel %vm1042_vm8, 1, %v14417_v55  ;;  %vm14545_vm14 = vcmask 293888  }
 0x4a5   :  { %6700 = vmatmul.msk.f32.vlgmr.msra.gmra.mxu1 %vm14545_vm14, %v5194_v1  ;;  %v11769_v29 = vadd.s32 272, %v9344_v12  ;;  %v11772_v42 = vadd.f32 %v11275_v51, %v3284_v9  ;;  %v1039_v41 = vshrl.u32 %v1035_v26, 16  ;;  %v1045_v48 = vadd.s32 %v1043_v44, %v1037_v10  ;;  %4306 = vrot.lane.b32.xlu0 %v6560_v61, %s6831_s29 }
 0x4a6   :  { %vm1046_vm9 = vc.u32 %v1044_v34, %v1040_v28  ;;  %v11775_v49 = vadd.s32 280, %v9344_v12  ;;  %v1025_v6 = vsub.s32 %v11621_v40, %v1024_v3  ;;  %v1290_v13 = vsel %vm11762_vm13, %v1254_v62, %v11689_v18  ;;  %4874 = vrot.lane.b32.xlu1 %v6683_v50, %s6835_s22  ;;  %v3287_v18 = vpop.f32.mrf.mxu3 }
 0x4a7   :  { %v1047_v22 = vsel %vm1046_vm9, 1, %v14417_v55  ;;  %v1060_v54 = vand.u32 65535, %v11769_v29  ;;  %v1061_v39 = vshrl.u32 %v11769_v29, 16  ;;  %3326 = vst.msk [vmem:[#allocation2 + $0x110] sm:$0xff] %vm2790_vm2, %v11772_v42  ;;  %v1041_v52 = vshrl.u32 %v11722_v47, 16  ;;  %4702 = vrot.lane.b32.xlu2 %v6633_v5, %s6834_s10 }
 0x4a8   :  { %v1049_v37 = vadd.s32 %v1047_v22, %v1045_v48  ;;  %v1089_v12 = vand.u32 65535, %v11775_v49  ;;  %vm1147_vm0 = vcmp.ne.s32.totalorder %v1025_v6, 0  ;;  %vm1183_vm15 = vcmp.lt.s32.totalorder %v1025_v6, 0  ;;  %v4837_v62 = vpop.permute.xlu1 %4836  ;;  %v6647_v22 = vld [vmem:[%s13848_s0 + $0x20d] sm:$0xff] }
 0x4a9   :  { %v1255_v40 = vadd.s32 18, %v1025_v6  ;;  %v1090_v23 = vshrl.u32 %v11775_v49, 16  ;;  %vm11795_vm10 = vmand %vm1183_vm15, %vm1147_vm0  ;;  %v1063_v47 = vmul.u32 14564, %v1060_v54  ;;  %v1064_v19 = vmul.u32 58254, %v1060_v54 }
 0x4aa   :  { %v1050_v26 = vadd.s32 %v1049_v37, %v1039_v41  ;;  %v11799_v43 = vmul.u32 14564, %v1061_v39  ;;  %v11808_v25 = vmul.f32 %v11750_v11, %v11521_v46  ;;  %vm11810_vm12 = vcmp.lt.s32.totalorder %v1290_v13, 16  ;;  %v4693_v46 = vpop.permute.xlu0 %4692 }
 0x4ab   :  { %vm31_vm8 = vcmask 57344   ;;  %v11814_v17 = vmul.u32 58254, %v1089_v12  ;;  %v1066_v9 = vmul.u32 58254, %v1061_v39  ;;  %v1067_v7 = vshll.u32 %v1064_v19, 16 }
 0x4ac   :  { %v1051_v28 = vadd.s32 %v1050_v26, %v1041_v52  ;;  %v5051_v45 = vsel %vm2864_vm4, %v5015_v20, %v4295_v24  ;;  %32 = vst.msk [vmem:[#allocation3] sm:$0x1] %vm31_vm8, %v14415_v33  ;;  %v1291_v34 = vsel %vm11795_vm10, %v1255_v40, %v1025_v6  ;;  %v5052_v1 = vsel %vm2864_vm4, %v11734_v38, %v4297_v35  ;;  %v11846_v40 = vld [vmem:[%s13848_s0 + $0x1a4] sm:$0xff]  ;;  %v6609_v35 = vld [vmem:[%s13848_s0 + $0x1fc] sm:$0xff] }
 0x4ad   :  { %v1069_v21 = vshll.u32 %v11799_v43, 16  ;;  %33 = vst.msk [vmem:[#allocation4] sm:$0x1] %vm31_vm8, %v14415_v33  ;;  %v11827_v3 = vmul.u32 14564, %v1090_v23  ;;  %vm1071_vm11 = vc.u32 %v1063_v47, %v1067_v7  ;;  %v1073_v20 = vadd.s32 %v1067_v7, %v1063_v47  ;;  %4560 = vrot.lane.b32.xlu0 %v11846_v40, %s6833_s19 }
 0x4ae   :  { %v1052_v44 = vshrl.u32 %v1051_v28, 4  ;;  %v1092_v24 = vmul.u32 14564, %v1089_v12  ;;  %v11832_v41 = vsel %vm11810_vm12, 1.0, %v14415_v33  ;;  %v1072_v48 = vsel %vm1071_vm11, 1, %v14417_v55 }
 0x4af   :  { %14550 = vst [vmem:[#allocation91_spill] sm:$0xff] %v11832_v41  ;;  %v5087_v38 = vsel %vm2901_vm5, %v5051_v45, %v4439_v53  ;;  %v1096_v6 = vshll.u32 %v11814_v17, 16  ;;  %vm11837_vm13 = vcmp.lt.s32.totalorder %v1291_v34, 16  ;;  %v1074_v39 = vadd.s32 %v1072_v48, %v1066_v9  ;;  %4476 = vrot.lane.b32.xlu2 %v6609_v35, %s6832_s25  ;;  %v4695_v45 = vpop.permute.xlu2 %4694 }
 0x4b0   :  { %v1053_v54 = vmul.u32 18, %v1052_v44  ;;  %v1095_v13 = vmul.u32 58254, %v1090_v23  ;;  %v1068_v52 = vshrl.u32 %v1064_v19, 16  ;;  %v1070_v37 = vshrl.u32 %v11799_v43, 16  ;;  %v6773_v23 = vld [vmem:[%s13848_s0 + $0x202] sm:$0xff]  ;;  %v4551_v10 = vpop.permute.xlu1 %4550 }
 0x4b1   :  { %vm1075_vm14 = vc.u32 %v1073_v20, %v1069_v21  ;;  %v1098_v12 = vshll.u32 %v11827_v3, 16  ;;  %v1097_v61 = vshrl.u32 %v11814_v17, 16  ;;  %vm1100_vm9 = vc.u32 %v1092_v24, %v1096_v6  ;;  %4190 = vrot.lane.b32.xlu1 %v6773_v23, %s6830_s18 }
 0x4b2   :  { %v1054_v53 = vsub.s32 %v11693_v4, %v1053_v54  ;;  %v1076_v50 = vsel %vm1075_vm14, 1, %v14417_v55  ;;  %v1099_v26 = vshrl.u32 %v11827_v3, 16  ;;  %v1101_v47 = vsel %vm1100_vm9, 1, %v14417_v55  ;;  %v4441_v17 = vpop.permute.xlu0 %4440 }
 0x4b3   :  { %v1078_v4 = vadd.s32 %v1076_v50, %v1074_v39  ;;  %v1102_v19 = vadd.s32 %v1096_v6, %v1092_v24  ;;  %v1103_v5 = vadd.s32 %v1101_v47, %v1095_v13  ;;  %v11864_v9 = vadd.f32 %v11275_v51, %v3287_v18  ;;  %v6574_v6 = vld [vmem:[%s13848_s0 + $0x203] sm:$0xff] }
 0x4b4   :  { %vm1148_vm0 = vcmp.ne.s32.totalorder %v1054_v53, 0  ;;  %vm1184_vm15 = vcmp.lt.s32.totalorder %v1054_v53, 0  ;;  %v1256_v43 = vadd.s32 18, %v1054_v53  ;;  %v5123_v7 = vsel %vm2938_vm6, %v5087_v38, %v11720_v15  ;;  %v6446_v15 = vld [vmem:[%s13848_s0 + $0x160] sm:$0xff] }
 0x4b5   :  { %vm1220_vm10 = vmand %vm1184_vm15, %vm1148_vm0  ;;  %v1079_v28 = vadd.s32 %v1078_v4, %v1068_v52  ;;  %vm1104_vm12 = vc.u32 %v1102_v19, %v1098_v12  ;;  %v5159_v3 = vsel %vm2975_vm7, %v5123_v7, %v4693_v46  ;;  %v5088_v44 = vsel %vm2901_vm5, %v5052_v1, %v4441_v17  ;;  %3327 = vst.msk [vmem:[#allocation2 + $0x118] sm:$0xff] %vm2790_vm2, %v11864_v9 }
 0x4b6   :  { %v1292_v34 = vsel %vm1220_vm10, %v1256_v43, %v1054_v53  ;;  %v1105_v21 = vsel %vm1104_vm12, 1, %v14417_v55  ;;  %vm14553_vm14 = vcmask 261120   ;;  %v3516_v48 = vmul.f32 %v11808_v25, %v11808_v25  ;;  %4334 = vrot.lane.b32.xlu0 %v6574_v6, %s6831_s29 }
 0x4b7   :  { %vm1328_vm11 = vcmp.lt.s32.totalorder %v1292_v34, 16  ;;  %v1080_v20 = vadd.s32 %v1079_v28, %v1070_v37  ;;  %v1107_v24 = vadd.s32 %v1105_v21, %v1103_v5  ;;  %v5195_v51 = vsel %vm14553_vm14, %v5159_v3, %v4837_v62  ;;  %v6670_v62 = vld [vmem:[%s13848_s0 + $0x1a6] sm:$0xff]  ;;  %4730 = vrot.lane.b32.xlu2 %v6647_v22, %s6834_s10  ;;  %v6774_v3 = vld [vmem:[%s13848_s0 + $0x19a] sm:$0xff] }
 0x4b8   :  { %v3399_v55 = vmul.f32 %v11832_v41, %v11548_v32  ;;  %vm14554_vm9 = vcmask 293888   ;;  %v11885_v46 = vsel %vm11837_vm13, 1.0, %v14415_v33  ;;  %v11894_v54 = vsel %vm1328_vm11, 1.0, %v14415_v33  ;;  %v4299_v18 = vpop.permute.xlu1 %4298  ;;  %vm14557_vm13 = vmmov %vm14553_vm14 }
 0x4b9   :  { %6701 = vmatmul.msk.f32.gmra.mxu1 %vm14554_vm9, %v5195_v51  ;;  %14555 = vst [vmem:[#allocation92_spill] sm:$0xff] %v11885_v46  ;;  %v1081_v1 = vshrl.u32 %v1080_v20, 4  ;;  %v1108_v38 = vadd.s32 %v1107_v24, %v1097_v61  ;;  %v5124_v32 = vsel %vm2938_vm6, %v5088_v44, %v4551_v10  ;;  %4848 = vrot.lane.b32.xlu1 %v6670_v62, %s6835_s22  ;;  %v3464_v13 = vsel %vm2790_vm2, %v11808_v25, 0.0  ;;  %vm14558_vm12 = vmmov %vm14554_vm9  ;;  %v6775_v44 = vld [vmem:[%s13848_s0 + $0x194] sm:$0xff] }
 0x4ba   :  { %14556 = vst [vmem:[#allocation94_spill] sm:$0xff] %v11894_v54  ;;  %v4945_v39 = vsel %vm2753_vm1, %v6446_v15, %v10009_v2  ;;  %v3465_v12 = vadd.f32 %v3464_v13, %v11685_v57  ;;  %v3581_v53 = vsel %vm2790_vm2, %v3516_v48, 0.0  ;;  %v3517_v50 = vmul.f32 %v3399_v55, %v3399_v55  ;;  %v4839_v23 = vpop.permute.xlu0 %4838 }
 0x4bb   :  { %v1082_v52 = vmul.u32 18, %v1081_v1  ;;  %v1109_v37 = vadd.s32 %v1108_v38, %v1099_v26  ;;  %v3400_v61 = vmul.f32 %v11885_v46, %v11640_v8  ;;  %v3401_v2 = vmul.f32 %v11894_v54, %v11705_v60  ;;  %v4443_v26 = vpop.permute.xlu2 %4442  ;;  %v11923_v60 = vld [vmem:[%s13848_s0 + $0x214] sm:$0xff] }
 0x4bc   :  { %v5160_v4 = vsel %vm2975_vm7, %v5124_v32, %v4695_v45  ;;  %v4981_v57 = vsel %vm2790_vm2, %v4945_v39, %v10876_v14  ;;  %v3582_v47 = vadd.f32 %v3581_v53, %v11695_v0  ;;  %v3466_v19 = vsel %vm2790_vm2, %v3399_v55, 0.0  ;;  %v6684_v53 = vld [vmem:[%s13848_s0 + $0x216] sm:$0xff] }
 0x4bd   :  { %v1083_v35 = vsub.s32 %v11769_v29, %v1082_v52  ;;  %v1110_v25 = vshrl.u32 %v1109_v37, 4  ;;  %v5196_v8 = vsel %vm14557_vm13, %v5160_v4, %v4839_v23  ;;  %v3467_v29 = vadd.f32 %v3466_v19, %v3465_v12  ;;  %v6447_v23 = vld [vmem:[%s13848_s0 + $0x168] sm:$0xff] }
 0x4be   :  { %v3583_v10 = vsel %vm2790_vm2, %v3517_v50, 0.0  ;;  %v3518_v17 = vmul.f32 %v3400_v61, %v3400_v61  ;;  %v5017_v14 = vsel %vm2827_vm3, %v4981_v57, %v11625_v36  ;;  %v3519_v0 = vmul.f32 %v3401_v2, %v3401_v2  ;;  %4588 = vrot.lane.b32.xlu0 %v11923_v60, %s6833_s19  ;;  %v6561_v50 = vld [vmem:[%s13848_s0 + $0x19b] sm:$0xff] }
 0x4bf   :  { %vm1149_vm0 = vcmp.ne.s32.totalorder %v1083_v35, 0  ;;  %vm1185_vm15 = vcmp.lt.s32.totalorder %v1083_v35, 0  ;;  %v1257_v43 = vadd.s32 18, %v1083_v35  ;;  %v1111_v5 = vmul.u32 18, %v1110_v25  ;;  %4450 = vrot.lane.b32.xlu2 %v6775_v44, %s6832_s25  ;;  %v14564_v44 = vld [vmem:[#allocation86_spill] sm:$0xff] }
 0x4c0   :  { %vm1221_vm10 = vmand %vm1185_vm15, %vm1149_vm0  ;;  %v5053_v45 = vsel %vm2864_vm4, %v5017_v14, %v4299_v18  ;;  %v3584_v34 = vadd.f32 %v3583_v10, %v3582_v47  ;;  %v3468_v21 = vsel %vm2790_vm2, %v3400_v61, 0.0  ;;  %v3585_v20 = vsel %vm2790_vm2, %v3518_v17, 0.0  ;;  %v4697_v48 = vpop.permute.xlu1 %4696 }
 0x4c1   :  { %6702 = vmatmul.msk.f32.gmra.mxu1 %vm14558_vm12, %v5196_v8  ;;  %v1293_v28 = vsel %vm1221_vm10, %v1257_v43, %v1083_v35  ;;  %v1112_v7 = vsub.s32 %v11775_v49, %v1111_v5  ;;  %4164 = vrot.lane.b32.xlu1 %v6774_v3, %s6830_s18  ;;  %v3470_v24 = vsel %vm2790_vm2, %v3401_v2, 0.0  ;;  %v5089_v15 = vsel %vm2901_vm5, %v5053_v45, %v4443_v26  ;;  %vm14562_vm10 = vmmov %vm14558_vm12  ;;  %v14563_v43 = vld [vmem:[#allocation50_spill] sm:$0xff] }
 0x4c2   :  { %vm1329_vm11 = vcmp.lt.s32.totalorder %v1293_v28, 16  ;;  %v4553_v55 = vpop.permute.xlu0 %4552  ;;  %v3469_v1 = vadd.f32 %v3468_v21, %v3467_v29  ;;  %v3587_v38 = vsel %vm2790_vm2, %v3519_v0, 0.0  ;;  %v3586_v52 = vadd.f32 %v3585_v20, %v3584_v34  ;;  %v6776_v21 = vld [vmem:[%s13848_s0 + $0x20a] sm:$0xff] }
 0x4c3   :  { %v11939_v36 = vsel %vm1329_vm11, 1.0, %v14415_v33  ;;  %vm1150_vm14 = vcmp.ne.s32.totalorder %v1112_v7, 0  ;;  %vm1186_vm9 = vcmp.lt.s32.totalorder %v1112_v7, 0  ;;  %v1258_v49 = vadd.s32 18, %v1112_v7  ;;  %v4841_v32 = vpop.permute.xlu2 %4840  ;;  %vm14566_vm11 = vmmov %vm14562_vm10 }
 0x4c4   :  { %14559 = vst [vmem:[#allocation95_spill] sm:$0xff] %v11939_v36  ;;  %v3402_v51 = vmul.f32 %v11939_v36, %v11772_v42  ;;  %vm1222_vm13 = vmand %vm1186_vm9, %vm1150_vm14  ;;  %v5125_v6 = vsel %vm2938_vm6, %v5089_v15, %v4553_v55  ;;  %v3471_v42 = vadd.f32 %v3470_v24, %v3469_v1  ;;  %vm14561_vm15 = vcmask 261120  }
 0x4c5   :  { %v1294_v62 = vsel %vm1222_vm13, %v1258_v49, %v1112_v7  ;;  %v5161_v13 = vsel %vm2975_vm7, %v5125_v6, %v4697_v48  ;;  %v3588_v2 = vadd.f32 %v3587_v38, %v3586_v52  ;;  %v4946_v57 = vsel %vm2753_vm1, %v6447_v23, %v9993_v59  ;;  %v11987_v7 = vld [vmem:[%s13848_s0 + $0x1ac] sm:$0xff]  ;;  %v3404_v38 = vld [vmem:[#allocation3] sm:$0x1]  ;;  %vm14565_vm12 = vmmov %vm14561_vm15 }
 0x4c6   :  { %v3472_v22 = vsel %vm2790_vm2, %v3402_v51, 0.0  ;;  %v3520_v39 = vmul.f32 %v3402_v51, %v3402_v51  ;;  %vm1330_vm0 = vcmp.lt.s32.totalorder %v1294_v62, 16  ;;  %v5197_v12 = vsel %vm14561_vm15, %v5161_v13, %v4841_v32  ;;  %4308 = vrot.lane.b32.xlu0 %v6561_v50, %s6831_s29  ;;  %v6575_v13 = vld [vmem:[%s13848_s0 + $0x20b] sm:$0xff]  ;;  %v3485_v52 = vld [vmem:[#allocation4] sm:$0x1]  ;;  %vm14569_vm14 = vmmov %vm14565_vm12 }
 0x4c7   :  { %v11955_v37 = vsel %vm1330_vm0, 1.0, %v14415_v33  ;;  %v6634_v33 = vld [vmem:[%s13848_s0 + $0x1a5] sm:$0xff]  ;;  %v3473_v35 = vadd.f32 %v3472_v22, %v3471_v42  ;;  %v4982_v5 = vsel %vm2790_vm2, %v4946_v57, %v14563_v43  ;;  %v6648_v42 = vld [vmem:[%s13848_s0 + $0x215] sm:$0xff]  ;;  %vm14570_vm9 = vmmov %vm14562_vm10 }
 0x4c8   :  { %14560 = vst [vmem:[#allocation97_spill] sm:$0xff] %v11955_v37  ;;  %v3589_v61 = vsel %vm2790_vm2, %v3520_v39, 0.0  ;;  %v3403_v18 = vmul.f32 %v11955_v37, %v11864_v9  ;;  %4704 = vrot.lane.b32.xlu2 %v6634_v33, %s6834_s10  ;;  %v4301_v19 = vpop.permute.xlu1 %4300  ;;  %v6671_v39 = vld [vmem:[%s13848_s0 + $0x1ae] sm:$0xff]  ;;  %v6777_v57 = vld [vmem:[%s13848_s0 + $0x1a2] sm:$0xff]  ;;  %vm14573_vm13 = vmmov %vm14565_vm12 }
 0x4c9   :  { %6703 = vmatmul.msk.f32.gmra.mxu1 %vm14562_vm10, %v5197_v12  ;;  %4876 = vrot.lane.b32.xlu1 %v6684_v53, %s6835_s22  ;;  %v3590_v9 = vadd.f32 %v3589_v61, %v3588_v2  ;;  %v6448_v33 = vld [vmem:[%s13848_s0 + $0x170] sm:$0xff]  ;;  %v12023_v2 = vld [vmem:[%s13848_s0 + $0x21c] sm:$0xff]  ;;  %vm14574_vm0 = vmmov %vm14570_vm9 }
 0x4ca   :  { %v3474_v25 = vsel %vm2790_vm2, %v3403_v18, 0.0  ;;  %v3521_v4 = vmul.f32 %v3403_v18, %v3403_v18  ;;  %v4157_v8 = vpop.permute.xlu0 %4156  ;;  %vm14577_vm15 = vmmov %vm14565_vm12 }
 0x4cb   :  { %v3475_v26 = vadd.f32 %v3474_v25, %v3473_v35  ;;  %v4445_v17 = vpop.permute.xlu2 %4444  ;;  %v5018_v14 = vsel %vm2827_vm3, %v4982_v5, %v4157_v8  ;;  %v14567_v35 = vld [vmem:[#allocation10_spill] sm:$0xff]  ;;  %v6685_v5 = vld [vmem:[%s13848_s0 + $0x21e] sm:$0xff]  ;;  %vm14578_vm10 = vmmov %vm14574_vm0 }
 0x4cc   :  { %v3591_v47 = vsel %vm2790_vm2, %v3521_v4, 0.0  ;;  %v5054_v34 = vsel %vm2864_vm4, %v5018_v14, %v4301_v19  ;;  %v4947_v25 = vsel %vm2753_vm1, %v6448_v33, %v14567_v35  ;;  %v14568_v4 = vld [vmem:[#allocation49_spill] sm:$0xff]  ;;  %v14576_v33 = vld [vmem:[#allocation71_spill] sm:$0xff] }
 0x4cd   :  { %v3476_v29 = vrot.slane %v3475_v26, 4  ;;  %v3592_v10 = vadd.f32 %v3591_v47, %v3590_v9  ;;  %v5090_v20 = vsel %vm2901_vm5, %v5054_v34, %v4445_v17  ;;  %v4983_v9 = vsel %vm2790_vm2, %v4947_v25, %v14568_v4  ;;  %v6635_v17 = vld [vmem:[%s13848_s0 + $0x1ad] sm:$0xff]  ;;  %v6462_v34 = vld [vmem:[%s13848_s0 + $0x1e0] sm:$0xff] }
 0x4ce   :  { %4562 = vrot.lane.b32.xlu0 %v11987_v7, %s6833_s19 }
 0x4cf   :  { %v3477_v0 = vadd.f32 %v3476_v29, %v3475_v26  ;;  %v3593_v28 = vrot.slane %v3592_v10, 4  ;;  %v6562_v29 = vld [vmem:[%s13848_s0 + $0x1a3] sm:$0xff] }
 0x4d0   :  { %4478 = vrot.lane.b32.xlu2 %v14564_v44, %s6832_s25  ;;  %v4699_v24 = vpop.permute.xlu1 %4698  ;;  %v6778_v44 = vld [vmem:[%s13848_s0 + $0x212] sm:$0xff] }
 0x4d1   :  { %v3478_v59 = vrot.slane %v3477_v0, 2  ;;  %v3594_v45 = vadd.f32 %v3593_v28, %v3592_v10  ;;  %4192 = vrot.lane.b32.xlu1 %v6776_v21, %s6830_s18  ;;  %v12062_v21 = vld [vmem:[%s13848_s0 + $0x1b4] sm:$0xff] }
 0x4d2   :  { %v4555_v51 = vpop.permute.xlu0 %4554 }
 0x4d3   :  { %v3479_v3 = vadd.f32 %v3478_v59, %v3477_v0  ;;  %v3595_v49 = vrot.slane %v3594_v45, 2  ;;  %v5126_v55 = vsel %vm2938_vm6, %v5090_v20, %v4555_v51  ;;  %v4843_v1 = vpop.permute.xlu2 %4842  ;;  %v14572_v20 = vld [vmem:[#allocation68_spill] sm:$0xff] }
 0x4d4   :  { %v5162_v62 = vsel %vm2975_vm7, %v5126_v55, %v4699_v24 }
 0x4d5   :  { %v3480_v15 = vrot.slane %v3479_v3, 1  ;;  %v3596_v48 = vadd.f32 %v3595_v49, %v3594_v45  ;;  %v5198_v22 = vsel %vm14565_vm12, %v5162_v62, %v4843_v1  ;;  %v6576_v62 = vld [vmem:[%s13848_s0 + $0x213] sm:$0xff] }
 0x4d6   :  { %6704 = vmatmul.msk.f32.gmra.mxu1 %vm14566_vm11, %v5198_v22  ;;  %4336 = vrot.lane.b32.xlu0 %v6575_v13, %s6831_s29  ;;  %vm14581_vm11 = vmmov %vm14574_vm0 }
 0x4d7   :  { %v3481_v6 = vadd.f32 %v3480_v15, %v3479_v3  ;;  %v3597_v32 = vrot.slane %v3596_v48, 1  ;;  %v14571_v3 = vld [vmem:[#allocation29_spill] sm:$0xff] }
 0x4d8   :  { %4732 = vrot.lane.b32.xlu2 %v6648_v42, %s6834_s10  ;;  %v4303_v61 = vpop.permute.xlu1 %4302  ;;  %v4961_v49 = vsel %vm2753_vm1, %v6462_v34, %v14571_v3 }
 0x4d9   :  { %v3482_v12 = vadd.f32 %v3481_v6, %v3404_v38  ;;  %v3598_v53 = vadd.f32 %v3597_v32, %v3596_v48  ;;  %4850 = vrot.lane.b32.xlu1 %v6671_v39, %s6835_s22  ;;  %v4997_v24 = vsel %vm2790_vm2, %v4961_v49, %v14572_v20  ;;  %v6672_v38 = vld [vmem:[%s13848_s0 + $0x1b6] sm:$0xff] }
 0x4da   :  { %v4159_v18 = vpop.permute.xlu0 %4158 }
 0x4db   :  { %3484 = vst.msk [vmem:[#allocation3] sm:$0x1] %vm31_vm8, %v3482_v12  ;;  %v3599_v50 = vadd.f32 %v3598_v53, %v3485_v52  ;;  %v4447_v23 = vpop.permute.xlu2 %4446  ;;  %v5019_v26 = vsel %vm2827_vm3, %v4983_v9, %v4159_v18  ;;  %v6449_v12 = vld [vmem:[%s13848_s0 + $0x178] sm:$0xff]  ;;  %v12101_v53 = vld [vmem:[%s13848_s0 + $0x224] sm:$0xff] }
 0x4dc   :  { %v5055_v8 = vsel %vm2864_vm4, %v5019_v26, %v4303_v61  ;;  %v6779_v18 = vld [vmem:[%s13848_s0 + $0x1aa] sm:$0xff] }
 0x4dd   :  { %3600 = vst.msk [vmem:[#allocation4] sm:$0x1] %vm31_vm8, %v3599_v50  ;;  %v5091_v10 = vsel %vm2901_vm5, %v5055_v8, %v4447_v23  ;;  %v14575_v50 = vld [vmem:[#allocation93_spill] sm:$0xff] }
 0x4de   :  { %4590 = vrot.lane.b32.xlu0 %v12023_v2, %s6833_s19  ;;  %v4948_v61 = vsel %vm2753_vm1, %v6449_v12, %v14575_v50  ;;  %v14583_v12 = vld [vmem:[#allocation54_spill] sm:$0xff] }
 0x4df   :  { %v4984_v23 = vsel %vm2790_vm2, %v4948_v61, %v14576_v33  ;;  %v12194_v61 = vld [vmem:[%s13850_s2] ss:$0 sm:$0xff] }
 0x4e0   :  { %4452 = vrot.lane.b32.xlu2 %v11586_v16, %s6832_s25  ;;  %v4187_v47 = vpop.permute.xlu1 %4186 }
 0x4e1   :  { %4166 = vrot.lane.b32.xlu1 %v6777_v57, %s6830_s18  ;;  %v5033_v51 = vsel %vm2827_vm3, %v4997_v24, %v4187_v47  ;;  %v6686_v57 = vld [vmem:[%s13848_s0 + $0x226] sm:$0xff] }
 0x4e2   :  { %v4557_v19 = vpop.permute.xlu0 %4556  ;;  %v6563_v47 = vld [vmem:[%s13848_s0 + $0x1ab] sm:$0xff] }
 0x4e3   :  { %v4701_v43 = vpop.permute.xlu2 %4700  ;;  %v5127_v16 = vsel %vm2938_vm6, %v5091_v10, %v4557_v19 }
 0x4e4   :  { %v5163_v14 = vsel %vm2975_vm7, %v5127_v16, %v4701_v43  ;;  %v6463_v16 = vld [vmem:[%s13848_s0 + $0x1e8] sm:$0xff] }
 0x4e6   :  { %4310 = vrot.lane.b32.xlu0 %v6562_v29, %s6831_s29 }
 0x4e8   :  { %4706 = vrot.lane.b32.xlu2 %v6635_v17, %s6834_s10  ;;  %v4845_v0 = vpop.permute.xlu1 %4844 }
 0x4e9   :  { %4878 = vrot.lane.b32.xlu1 %v6685_v5, %s6835_s22  ;;  %v5199_v45 = vsel %vm14569_vm14, %v5163_v14, %v4845_v0  ;;  %v12140_v14 = vld [vmem:[%s13848_s0 + $0x1bc] sm:$0xff]  ;;  %v14579_v0 = vld [vmem:[#allocation28_spill] sm:$0xff]  ;;  %vm14584_vm14 = vmmov %vm14565_vm12 }
 0x4ea   :  { %v4331_v28 = vpop.permute.xlu0 %4330  ;;  %6705 = vmatmul.msk.f32.gmra.mxu1 %vm14570_vm9, %v5199_v45  ;;  %v14580_v45 = vld [vmem:[#allocation66_spill] sm:$0xff]  ;;  %vm14585_vm9 = vmmov %vm14574_vm0 }
 0x4eb   :  { %v4475_v59 = vpop.permute.xlu2 %4474  ;;  %v5069_v55 = vsel %vm2864_vm4, %v5033_v51, %v4331_v28  ;;  %v4962_v28 = vsel %vm2753_vm1, %v6463_v16, %v14579_v0  ;;  %v6673_v51 = vld [vmem:[%s13848_s0 + $0x1be] sm:$0xff] }
 0x4ec   :  { %v5105_v6 = vsel %vm2901_vm5, %v5069_v55, %v4475_v59  ;;  %v6780_v59 = vld [vmem:[%s13848_s0 + $0x21a] sm:$0xff]  ;;  %v4998_v34 = vsel %vm2790_vm2, %v4962_v28, %v14580_v45  ;;  %v6783_v0 = vld [vmem:[%s13848_s0 + $0x222] sm:$0xff]  ;;  %v14588_v45 = vld [vmem:[#allocation9_spill] sm:$0xff] }
 0x4ed   :  { %v14587_v28 = vld [vmem:[#allocation74_spill] sm:$0xff] }
 0x4ee   :  { %4564 = vrot.lane.b32.xlu0 %v12062_v21, %s6833_s19 }
 0x4f0   :  { %4480 = vrot.lane.b32.xlu2 %v11741_v58, %s6832_s25  ;;  %v4161_v15 = vpop.permute.xlu1 %4160  ;;  %v6649_v58 = vld [vmem:[%s13848_s0 + $0x21d] sm:$0xff] }
 0x4f1   :  { %4194 = vrot.lane.b32.xlu1 %v6778_v44, %s6830_s18  ;;  %v5020_v35 = vsel %vm2827_vm3, %v4984_v23, %v4161_v15  ;;  %v6577_v15 = vld [vmem:[%s13848_s0 + $0x21b] sm:$0xff] }
 0x4f2   :  { %v4585_v48 = vpop.permute.xlu0 %4584 }
 0x4f3   :  { %v4729_v1 = vpop.permute.xlu2 %4728  ;;  %v5141_v32 = vsel %vm2938_vm6, %v5105_v6, %v4585_v48 }
 0x4f4   :  { %v5177_v22 = vsel %vm2975_vm7, %v5141_v32, %v4729_v1  ;;  %v6450_v32 = vld [vmem:[%s13848_s0 + $0x180] sm:$0xff] }
 0x4f6   :  { %4338 = vrot.lane.b32.xlu0 %v6576_v62, %s6831_s29 }
 0x4f8   :  { %4734 = vrot.lane.b32.xlu2 %v6649_v58, %s6834_s10  ;;  %v4873_v39 = vpop.permute.xlu1 %4872 }
 0x4f9   :  { %4852 = vrot.lane.b32.xlu1 %v6672_v38, %s6835_s22  ;;  %v5213_v42 = vsel %vm14573_vm13, %v5177_v22, %v4873_v39  ;;  %v12179_v22 = vld [vmem:[%s13848_s0 + $0x22c] sm:$0xff]  ;;  %vm14590_vm13 = vmmov %vm14565_vm12 }
 0x4fa   :  { %v4305_v13 = vpop.permute.xlu0 %4304  ;;  %6719 = vmatmul.msk.f32.vlgmr.msra.gmra.mxu2 %vm14574_vm0, %v5213_v42  ;;  %v14582_v39 = vld [vmem:[#allocation13_spill] sm:$0xff] }
 0x4fb   :  { %v4449_v52 = vpop.permute.xlu2 %4448  ;;  %v5056_v9 = vsel %vm2864_vm4, %v5020_v35, %v4305_v13  ;;  %v4949_v13 = vsel %vm2753_vm1, %v6450_v32, %v14582_v39  ;;  %v6781_v42 = vld [vmem:[%s13848_s0 + $0x1b2] sm:$0xff] }
 0x4fc   :  { %v5092_v19 = vsel %vm2901_vm5, %v5056_v9, %v4449_v52  ;;  %v4985_v50 = vsel %vm2790_vm2, %v4949_v13, %v14583_v12  ;;  %v6687_v9 = vld [vmem:[%s13848_s0 + $0x22e] sm:$0xff] }
 0x4fe   :  { %4592 = vrot.lane.b32.xlu0 %v12101_v53, %s6833_s19 }
 0x500   :  { %4454 = vrot.lane.b32.xlu2 %v11846_v40, %s6832_s25  ;;  %v4189_v25 = vpop.permute.xlu1 %4188  ;;  %v6636_v40 = vld [vmem:[%s13848_s0 + $0x1b5] sm:$0xff] }
 0x501   :  { %4168 = vrot.lane.b32.xlu1 %v6779_v18, %s6830_s18  ;;  %v5034_v3 = vsel %vm2827_vm3, %v4998_v34, %v4189_v25 }
 0x502   :  { %v4559_v4 = vpop.permute.xlu0 %4558 }
 0x503   :  { %v4703_v26 = vpop.permute.xlu2 %4702  ;;  %v5128_v8 = vsel %vm2938_vm6, %v5092_v19, %v4559_v4 }
 0x504   :  { %v5164_v43 = vsel %vm2975_vm7, %v5128_v8, %v4703_v26  ;;  %v6564_v26 = vld [vmem:[%s13848_s0 + $0x1b3] sm:$0xff] }
 0x506   :  { %4312 = vrot.lane.b32.xlu0 %v6563_v47, %s6831_s29 }
 0x508   :  { %4708 = vrot.lane.b32.xlu2 %v6636_v40, %s6834_s10  ;;  %v4847_v5 = vpop.permute.xlu1 %4846 }
 0x509   :  { %4880 = vrot.lane.b32.xlu1 %v6686_v57, %s6835_s22  ;;  %v5200_v17 = vsel %vm14577_vm15, %v5164_v43, %v4847_v5  ;;  %vm14595_vm15 = vmmov %vm14565_vm12 }
 0x50a   :  { %v4333_v29 = vpop.permute.xlu0 %4332  ;;  %6706 = vmatmul.msk.f32.gmra.mxu1 %vm14578_vm10, %v5200_v17  ;;  %v14586_v17 = vld [vmem:[#allocation33_spill] sm:$0xff]  ;;  %vm14596_vm10 = vmmov %vm14574_vm0 }
 0x50b   :  { %v4477_v10 = vpop.permute.xlu2 %4476  ;;  %v5070_v20 = vsel %vm2864_vm4, %v5034_v3, %v4333_v29  ;;  %v6464_v29 = vld [vmem:[%s13848_s0 + $0x1f0] sm:$0xff] }
 0x50c   :  { %v5106_v48 = vsel %vm2901_vm5, %v5070_v20, %v4477_v10  ;;  %v12225_v10 = vld [vmem:[%s13848_s0 + $0x1c4] sm:$0xff]  ;;  %v4963_v16 = vsel %vm2753_vm1, %v6464_v29, %v14586_v17 }
 0x50e   :  { %4566 = vrot.lane.b32.xlu0 %v12140_v14, %s6833_s19 }
 0x510   :  { %4482 = vrot.lane.b32.xlu2 %v11923_v60, %s6832_s25  ;;  %v4163_v49 = vpop.permute.xlu1 %4162  ;;  %v6650_v60 = vld [vmem:[%s13848_s0 + $0x225] sm:$0xff] }
 0x511   :  { %4196 = vrot.lane.b32.xlu1 %v6780_v59, %s6830_s18  ;;  %v5021_v33 = vsel %vm2827_vm3, %v4985_v50, %v4163_v49  ;;  %v4999_v59 = vsel %vm2790_vm2, %v4963_v16, %v14587_v28 }
 0x512   :  { %v4587_v44 = vpop.permute.xlu0 %4586 }
 0x513   :  { %v4731_v24 = vpop.permute.xlu2 %4730  ;;  %v5142_v55 = vsel %vm2938_vm6, %v5106_v48, %v4587_v44  ;;  %v6674_v48 = vld [vmem:[%s13848_s0 + $0x1c6] sm:$0xff] }
 0x514   :  { %v5178_v1 = vsel %vm2975_vm7, %v5142_v55, %v4731_v24  ;;  %v14589_v55 = vld [vmem:[#allocation11_spill] sm:$0xff] }
 0x516   :  { %4340 = vrot.lane.b32.xlu0 %v6577_v15, %s6831_s29 }
 0x518   :  { %4736 = vrot.lane.b32.xlu2 %v6650_v60, %s6834_s10  ;;  %v4875_v38 = vpop.permute.xlu1 %4874 }
 0x519   :  { %4854 = vrot.lane.b32.xlu1 %v6673_v51, %s6835_s22  ;;  %v5214_v58 = vsel %vm14565_vm12, %v5178_v1, %v4875_v38 }
 0x51a   :  { %v4307_v62 = vpop.permute.xlu0 %4306  ;;  %6720 = vmatmul.msk.f32.gmra.mxu2 %vm14581_vm11, %v5214_v58  ;;  %vm14600_vm11 = vmmov %vm14574_vm0 }
 0x51b   :  { %v4451_v6 = vpop.permute.xlu2 %4450  ;;  %v5057_v25 = vsel %vm2864_vm4, %v5021_v33, %v4307_v62  ;;  %v6651_v62 = vld [vmem:[%s13848_s0 + $0x22d] sm:$0xff] }
 0x51c   :  { %v5093_v57 = vsel %vm2901_vm5, %v5057_v25, %v4451_v6 }
 0x51e   :  { %4594 = vrot.lane.b32.xlu0 %v12179_v22, %s6833_s19 }
 0x520   :  { %4456 = vrot.lane.b32.xlu2 %v11987_v7, %s6832_s25  ;;  %v6637_v7 = vld [vmem:[%s13848_s0 + $0x1bd] sm:$0xff] }
 0x521   :  { %4170 = vrot.lane.b32.xlu1 %v6781_v42, %s6830_s18 }
 0x522   :  { %v5355_v52 = vpop.f32.mrf.mxu1  ;;  %v4561_v35 = vpop.permute.xlu0 %4560 }
 0x523   :  { %v5356_v18 = vadd.f32 %v12194_v61, %v5355_v52  ;;  %v4191_v23 = vpop.permute.xlu1 %4190  ;;  %v4705_v4 = vpop.permute.xlu2 %4704  ;;  %v5129_v47 = vsel %vm2938_vm6, %v5093_v57, %v4561_v35  ;;  %v14591_v57 = vld [vmem:[#allocation62_spill] sm:$0xff] }
 0x524   :  { %v5165_v19 = vsel %vm2975_vm7, %v5129_v47, %v4705_v4  ;;  %v5035_v3 = vsel %vm2827_vm3, %v4999_v59, %v4191_v23  ;;  %v14592_v47 = vld [vmem:[#allocation12_spill] sm:$0xff] }
 0x525   :  { %5466 = vst.msk [vmem:[#allocation2 + $0x120] sm:$0xff] %vm2790_vm2, %v5356_v18  ;;  %v5542_v34 = vmul.f32 %v14588_v45, %v5356_v18 }
 0x526   :  { %4314 = vrot.lane.b32.xlu0 %v6564_v26, %s6831_s29  ;;  %v12273_v26 = vld [vmem:[%s13848_s0 + $0x234] sm:$0xff] }
 0x527   :  { %v5659_v60 = vmul.f32 %v5542_v34, %v5542_v34  ;;  %v5579_v58 = vsel %vm2790_vm2, %v5542_v34, 0.0 }
 0x528   :  { %4710 = vrot.lane.b32.xlu2 %v6637_v7, %s6834_s10 }
 0x529   :  { %4882 = vrot.lane.b32.xlu1 %v6687_v9, %s6835_s22  ;;  %v5695_v52 = vsel %vm2790_vm2, %v5659_v60, 0.0  ;;  %v6451_v9 = vld [vmem:[%s13848_s0 + $0x188] sm:$0xff] }
 0x52a   :  { %v4335_v8 = vpop.permute.xlu0 %4334 }
 0x52b   :  { %v4849_v40 = vpop.permute.xlu1 %4848  ;;  %v4479_v43 = vpop.permute.xlu2 %4478  ;;  %v5071_v20 = vsel %vm2864_vm4, %v5035_v3, %v4335_v8 }
 0x52c   :  { %v5201_v5 = vsel %vm14584_vm14, %v5165_v19, %v4849_v40  ;;  %v5107_v38 = vsel %vm2901_vm5, %v5071_v20, %v4479_v43  ;;  %v4950_v19 = vsel %vm2753_vm1, %v6451_v9, %v14592_v47  ;;  %v6784_v43 = vld [vmem:[%s13848_s0 + $0x1ba] sm:$0xff]  ;;  %vm14603_vm14 = vmmov %vm14565_vm12 }
 0x52d   :  { %6707 = vmatmul.msk.f32.gmra.mxu1 %vm14585_vm9, %v5201_v5  ;;  %v14593_v5 = vld [vmem:[#allocation51_spill] sm:$0xff]  ;;  %vm14605_vm9 = vmmov %vm14574_vm0 }
 0x52e   :  { %4568 = vrot.lane.b32.xlu0 %v12225_v10, %s6833_s19  ;;  %v4986_v29 = vsel %vm2790_vm2, %v4950_v19, %v14593_v5  ;;  %v6579_v5 = vld [vmem:[%s13848_s0 + $0x22b] sm:$0xff] }
 0x530   :  { %4484 = vrot.lane.b32.xlu2 %v12023_v2, %s6832_s25  ;;  %v6578_v2 = vld [vmem:[%s13848_s0 + $0x223] sm:$0xff] }
 0x531   :  { %4198 = vrot.lane.b32.xlu1 %v6783_v0, %s6830_s18 }
 0x532   :  { %v4589_v44 = vpop.permute.xlu0 %4588 }
 0x533   :  { %v4165_v49 = vpop.permute.xlu1 %4164  ;;  %v4733_v51 = vpop.permute.xlu2 %4732  ;;  %v5143_v6 = vsel %vm2938_vm6, %v5107_v38, %v4589_v44 }
 0x534   :  { %v5179_v12 = vsel %vm2975_vm7, %v5143_v6, %v4733_v51  ;;  %v5022_v16 = vsel %vm2827_vm3, %v4986_v29, %v4165_v49  ;;  %v6688_v51 = vld [vmem:[%s13848_s0 + $0x236] sm:$0xff]  ;;  %v14599_v29 = vld [vmem:[#allocation17_spill] sm:$0xff] }
 0x536   :  { %v5358_v24 = vpop.f32.mrf.mxu1  ;;  %4342 = vrot.lane.b32.xlu0 %v6578_v2, %s6831_s29  ;;  %v6638_v2 = vld [vmem:[%s13848_s0 + $0x1c5] sm:$0xff] }
 0x537   :  { %v5359_v15 = vadd.f32 %v12194_v61, %v5358_v24 }
 0x538   :  { %4738 = vrot.lane.b32.xlu2 %v6651_v62, %s6834_s10 }
 0x539   :  { %5467 = vst.msk [vmem:[#allocation2 + $0x128] sm:$0xff] %vm2790_vm2, %v5359_v15  ;;  %v5543_v1 = vmul.f32 %v14589_v55, %v5359_v15  ;;  %4856 = vrot.lane.b32.xlu1 %v6674_v48, %s6835_s22  ;;  %v14594_v15 = vld [vmem:[#allocation14_spill] sm:$0xff] }
 0x53a   :  { %v4309_v18 = vpop.permute.xlu0 %4308 }
 0x53b   :  { %v5580_v32 = vsel %vm2790_vm2, %v5543_v1, 0.0  ;;  %v5660_v39 = vmul.f32 %v5543_v1, %v5543_v1  ;;  %v4877_v50 = vpop.permute.xlu1 %4876  ;;  %v4453_v35 = vpop.permute.xlu2 %4452  ;;  %v5058_v3 = vsel %vm2864_vm4, %v5022_v16, %v4309_v18  ;;  %v14597_v18 = vld [vmem:[#allocation53_spill] sm:$0xff]  ;;  %v6652_v16 = vld [vmem:[%s13848_s0 + $0x235] sm:$0xff] }
 0x53c   :  { %v5581_v13 = vadd.f32 %v5580_v32, %v5579_v58  ;;  %v5215_v25 = vsel %vm14590_vm13, %v5179_v12, %v4877_v50  ;;  %v5094_v49 = vsel %vm2901_vm5, %v5058_v3, %v4453_v35  ;;  %v6465_v12 = vld [vmem:[%s13848_s0 + $0x1f8] sm:$0xff]  ;;  %v12321_v50 = vld [vmem:[%s13848_s0 + $0x1cc] sm:$0xff]  ;;  %vm14608_vm13 = vmmov %vm14565_vm12 }
 0x53d   :  { %v5696_v42 = vsel %vm2790_vm2, %v5660_v39, 0.0  ;;  %6721 = vmatmul.msk.f32.gmra.mxu2 %vm14574_vm0, %v5215_v25  ;;  %v14598_v35 = vld [vmem:[#allocation73_spill] sm:$0xff] }
 0x53e   :  { %v5697_v33 = vadd.f32 %v5696_v42, %v5695_v52  ;;  %v5361_v23 = vpop.f32.mrf.mxu1  ;;  %4596 = vrot.lane.b32.xlu0 %v12273_v26, %s6833_s19 }
 0x53f   :  { %v5362_v4 = vadd.f32 %v12194_v61, %v5361_v23  ;;  %v6785_v23 = vld [vmem:[%s13848_s0 + $0x22a] sm:$0xff] }
 0x540   :  { %4458 = vrot.lane.b32.xlu2 %v12062_v21, %s6832_s25  ;;  %v6565_v21 = vld [vmem:[%s13848_s0 + $0x1bb] sm:$0xff] }
 0x541   :  { %5468 = vst.msk [vmem:[#allocation2 + $0x130] sm:$0xff] %vm2790_vm2, %v5362_v4  ;;  %v5544_v7 = vmul.f32 %v14591_v57, %v5362_v4  ;;  %4172 = vrot.lane.b32.xlu1 %v6784_v43, %s6830_s18  ;;  %v6675_v43 = vld [vmem:[%s13848_s0 + $0x1ce] sm:$0xff] }
 0x542   :  { %v4563_v59 = vpop.permute.xlu0 %4562 }
 0x543   :  { %v5582_v40 = vsel %vm2790_vm2, %v5544_v7, 0.0  ;;  %v5661_v8 = vmul.f32 %v5544_v7, %v5544_v7  ;;  %v4193_v28 = vpop.permute.xlu1 %4192  ;;  %v4707_v44 = vpop.permute.xlu2 %4706  ;;  %v5130_v60 = vsel %vm2938_vm6, %v5094_v49, %v4563_v59 }
 0x544   :  { %v5583_v17 = vadd.f32 %v5582_v40, %v5581_v13  ;;  %v5166_v6 = vsel %vm2975_vm7, %v5130_v60, %v4707_v44  ;;  %v14601_v60 = vld [vmem:[#allocation18_spill] sm:$0xff] }
 0x545   :  { %v5698_v0 = vsel %vm2790_vm2, %v5661_v8, 0.0 }
 0x546   :  { %v5699_v34 = vadd.f32 %v5698_v0, %v5697_v33  ;;  %v5364_v20 = vpop.f32.mrf.mxu1  ;;  %4316 = vrot.lane.b32.xlu0 %v6565_v21, %s6831_s29  ;;  %v4964_v33 = vsel %vm2753_vm1, %v6465_v12, %v14597_v18  ;;  %v6566_v12 = vld [vmem:[%s13848_s0 + $0x1c3] sm:$0xff] }
 0x547   :  { %v5365_v24 = vadd.f32 %v12194_v61, %v5364_v20  ;;  %v5000_v25 = vsel %vm2790_vm2, %v4964_v33, %v14598_v35 }
 0x548   :  { %4712 = vrot.lane.b32.xlu2 %v6638_v2, %s6834_s10  ;;  %v5036_v4 = vsel %vm2827_vm3, %v5000_v25, %v4193_v28  ;;  %v12365_v2 = vld [vmem:[%s13848_s0 + $0x23c] sm:$0xff] }
 0x549   :  { %5469 = vst.msk [vmem:[#allocation2 + $0x138] sm:$0xff] %vm2790_vm2, %v5365_v24  ;;  %v5545_v48 = vmul.f32 %v14594_v15, %v5365_v24  ;;  %4884 = vrot.lane.b32.xlu1 %v6688_v51, %s6835_s22 }
 0x54a   :  { %v4337_v39 = vpop.permute.xlu0 %4336 }
 0x54b   :  { %v5584_v1 = vsel %vm2790_vm2, %v5545_v48, 0.0  ;;  %v5662_v38 = vmul.f32 %v5545_v48, %v5545_v48  ;;  %v4851_v32 = vpop.permute.xlu1 %4850  ;;  %v4481_v52 = vpop.permute.xlu2 %4480  ;;  %v5072_v47 = vsel %vm2864_vm4, %v5036_v4, %v4337_v39  ;;  %v6452_v48 = vld [vmem:[%s13848_s0 + $0x190] sm:$0xff] }
 0x54c   :  { %v5585_v62 = vadd.f32 %v5584_v1, %v5583_v17  ;;  %v5202_v42 = vsel %vm14595_vm15, %v5166_v6, %v4851_v32  ;;  %v4951_v1 = vsel %vm2753_vm1, %v6452_v48, %v14601_v60  ;;  %v6676_v60 = vld [vmem:[%s13848_s0 + $0x1d6] sm:$0xff]  ;;  %vm14611_vm15 = vmmov %vm14565_vm12 }
 0x54d   :  { %v5700_v58 = vsel %vm2790_vm2, %v5662_v38, 0.0  ;;  %6708 = vmatmul.msk.f32.gmra.mxu1 %vm14596_vm10, %v5202_v42  ;;  %v6786_v38 = vld [vmem:[%s13848_s0 + $0x1c2] sm:$0xff]  ;;  %vm14613_vm10 = vmmov %vm14574_vm0 }
 0x54e   :  { %v5701_v13 = vadd.f32 %v5700_v58, %v5699_v34  ;;  %4570 = vrot.lane.b32.xlu0 %v12321_v50, %s6833_s19  ;;  %v6689_v42 = vld [vmem:[%s13848_s0 + $0x23e] sm:$0xff] }
 0x550   :  { %4486 = vrot.lane.b32.xlu2 %v12101_v53, %s6832_s25  ;;  %v5108_v53 = vsel %vm2901_vm5, %v5072_v47, %v4481_v52 }
 0x551   :  { %4200 = vrot.lane.b32.xlu1 %v6785_v23, %s6830_s18 }
 0x552   :  { %v4591_v7 = vpop.permute.xlu0 %4590 }
 0x553   :  { %v4167_v9 = vpop.permute.xlu1 %4166  ;;  %v4735_v19 = vpop.permute.xlu2 %4734  ;;  %v5144_v0 = vsel %vm2938_vm6, %v5108_v53, %v4591_v7 }
 0x554   :  { %v5367_v40 = vpop.f32.mrf.mxu1  ;;  %v5180_v3 = vsel %vm2975_vm7, %v5144_v0, %v4735_v19  ;;  %v14604_v19 = vld [vmem:[#allocation20_spill] sm:$0xff] }
 0x555   :  { %v5368_v8 = vadd.f32 %v12194_v61, %v5367_v40 }
 0x556   :  { %4344 = vrot.lane.b32.xlu0 %v6579_v5, %s6831_s29 }
 0x557   :  { %5470 = vst.msk [vmem:[#allocation2 + $0x140] sm:$0xff] %vm2790_vm2, %v5368_v8  ;;  %v5546_v17 = vmul.f32 %v14599_v29, %v5368_v8  ;;  %v6466_v8 = vld [vmem:[%s13848_s0 + $0x200] sm:$0xff] }
 0x558   :  { %4740 = vrot.lane.b32.xlu2 %v6652_v16, %s6834_s10  ;;  %v14606_v16 = vld [vmem:[#allocation32_spill] sm:$0xff] }
 0x559   :  { %v5586_v28 = vsel %vm2790_vm2, %v5546_v17, 0.0  ;;  %v5663_v59 = vmul.f32 %v5546_v17, %v5546_v17  ;;  %4858 = vrot.lane.b32.xlu1 %v6675_v43, %s6835_s22  ;;  %v12407_v43 = vld [vmem:[%s13848_s0 + $0x1d4] sm:$0xff]  ;;  %v4965_v0 = vsel %vm2753_vm1, %v6466_v8, %v14606_v16  ;;  %v6567_v8 = vld [vmem:[%s13848_s0 + $0x1cb] sm:$0xff] }
 0x55a   :  { %v5587_v34 = vadd.f32 %v5586_v28, %v5585_v62  ;;  %v4311_v24 = vpop.permute.xlu0 %4310  ;;  %v14602_v62 = vld [vmem:[#allocation114_spill] sm:$0xff] }
 0x55b   :  { %v5702_v44 = vsel %vm2790_vm2, %v5663_v59, 0.0  ;;  %v4879_v20 = vpop.permute.xlu1 %4878  ;;  %v4455_v21 = vpop.permute.xlu2 %4454  ;;  %v4987_v6 = vsel %vm2790_vm2, %v4951_v1, %v14602_v62  ;;  %v6787_v59 = vld [vmem:[%s13848_s0 + $0x232] sm:$0xff] }
 0x55c   :  { %v5703_v51 = vadd.f32 %v5702_v44, %v5701_v13  ;;  %v5216_v49 = vsel %vm14565_vm12, %v5180_v3, %v4879_v20  ;;  %v5023_v58 = vsel %vm2827_vm3, %v4987_v6, %v4167_v9  ;;  %v14607_v3 = vld [vmem:[#allocation70_spill] sm:$0xff] }
 0x55d   :  { %6722 = vmatmul.msk.f32.gmra.mxu2 %vm14600_vm11, %v5216_v49  ;;  %v5059_v13 = vsel %vm2864_vm4, %v5023_v58, %v4311_v24  ;;  %v5001_v44 = vsel %vm2790_vm2, %v4965_v0, %v14607_v3  ;;  %v6580_v1 = vld [vmem:[%s13848_s0 + $0x233] sm:$0xff]  ;;  %vm14616_vm11 = vmmov %vm14574_vm0 }
 0x55e   :  { %4598 = vrot.lane.b32.xlu0 %v12365_v2, %s6833_s19  ;;  %v5095_v18 = vsel %vm2901_vm5, %v5059_v13, %v4455_v21  ;;  %v6453_v13 = vld [vmem:[%s13848_s0 + $0x198] sm:$0xff] }
 0x560   :  { %4460 = vrot.lane.b32.xlu2 %v12140_v14, %s6832_s25  ;;  %v6639_v14 = vld [vmem:[%s13848_s0 + $0x1cd] sm:$0xff] }
 0x561   :  { %4174 = vrot.lane.b32.xlu1 %v6786_v38, %s6830_s18 }
 0x562   :  { %v4565_v39 = vpop.permute.xlu0 %4564 }
 0x563   :  { %v4195_v32 = vpop.permute.xlu1 %4194  ;;  %v4709_v52 = vpop.permute.xlu2 %4708  ;;  %v5131_v33 = vsel %vm2938_vm6, %v5095_v18, %v4565_v39 }
 0x564   :  { %v5167_v35 = vsel %vm2975_vm7, %v5131_v33, %v4709_v52  ;;  %v12452_v52 = vld [vmem:[%s13848_s0 + $0x244] sm:$0xff] }
 0x565   :  { %v6788_v33 = vld [vmem:[%s13848_s0 + $0x1ca] sm:$0xff] }
 0x566   :  { %4318 = vrot.lane.b32.xlu0 %v6566_v12, %s6831_s29  ;;  %v14609_v12 = vld [vmem:[#allocation16_spill] sm:$0xff] }
 0x567   :  { %v5370_v23 = vpop.f32.mrf.mxu1  ;;  %v4952_v18 = vsel %vm2753_vm1, %v6453_v13, %v14609_v12 }
 0x568   :  { %4714 = vrot.lane.b32.xlu2 %v6639_v14, %s6834_s10  ;;  %v5371_v25 = vadd.f32 %v12194_v61, %v5370_v23  ;;  %v14610_v23 = vld [vmem:[#allocation102_spill] sm:$0xff] }
 0x569   :  { %4886 = vrot.lane.b32.xlu1 %v6689_v42, %s6835_s22 }
 0x56a   :  { %v4339_v9 = vpop.permute.xlu0 %4338  ;;  %5471 = vst.msk [vmem:[#allocation2 + $0x148] sm:$0xff] %vm2790_vm2, %v5371_v25  ;;  %v5547_v40 = vmul.f32 %v14604_v19, %v5371_v25 }
 0x56b   :  { %v4853_v4 = vpop.permute.xlu1 %4852  ;;  %v4483_v7 = vpop.permute.xlu2 %4482 }
 0x56c   :  { %v5203_v47 = vsel %vm14603_vm14, %v5167_v35, %v4853_v4  ;;  %v5588_v5 = vsel %vm2790_vm2, %v5547_v40, 0.0  ;;  %v5664_v53 = vmul.f32 %v5547_v40, %v5547_v40  ;;  %v4988_v35 = vsel %vm2790_vm2, %v4952_v18, %v14610_v23  ;;  %v6690_v40 = vld [vmem:[%s13848_s0 + $0x246] sm:$0xff]  ;;  %v6581_v23 = vld [vmem:[%s13848_s0 + $0x23b] sm:$0xff]  ;;  %vm14619_vm14 = vmmov %vm14565_vm12 }
 0x56d   :  { %6709 = vmatmul.msk.f32.gmra.mxu1 %vm14605_vm9, %v5203_v47  ;;  %v12410_v17 = vadd.f32 %v5588_v5, %v5587_v34  ;;  %v5037_v34 = vsel %vm2827_vm3, %v5001_v44, %v4195_v32  ;;  %v6640_v5 = vld [vmem:[%s13848_s0 + $0x1d5] sm:$0xff]  ;;  %vm14621_vm9 = vmmov %vm14574_vm0 }
 0x56e   :  { %v5704_v28 = vsel %vm2790_vm2, %v5664_v53, 0.0  ;;  %4572 = vrot.lane.b32.xlu0 %v12407_v43, %s6833_s19  ;;  %v5073_v49 = vsel %vm2864_vm4, %v5037_v34, %v4339_v9 }
 0x56f   :  { %v12423_v20 = vadd.f32 %v5704_v28, %v5703_v51  ;;  %v5109_v51 = vsel %vm2901_vm5, %v5073_v49, %v4483_v7  ;;  %v6467_v49 = vld [vmem:[%s13848_s0 + $0x208] sm:$0xff] }
 0x570   :  { %4488 = vrot.lane.b32.xlu2 %v12179_v22, %s6832_s25  ;;  %v6653_v22 = vld [vmem:[%s13848_s0 + $0x23d] sm:$0xff] }
 0x571   :  { %4202 = vrot.lane.b32.xlu1 %v6787_v59, %s6830_s18 }
 0x572   :  { %v4593_v21 = vpop.permute.xlu0 %4592 }
 0x573   :  { %v4169_v24 = vpop.permute.xlu1 %4168  ;;  %v4737_v48 = vpop.permute.xlu2 %4736  ;;  %v5145_v38 = vsel %vm2938_vm6, %v5109_v51, %v4593_v21 }
 0x574   :  { %v5181_v62 = vsel %vm2975_vm7, %v5145_v38, %v4737_v48  ;;  %v5024_v25 = vsel %vm2827_vm3, %v4988_v35, %v4169_v24  ;;  %v14612_v24 = vld [vmem:[#allocation23_spill] sm:$0xff] }
 0x575   :  { %v12499_v48 = vld [vmem:[%s13848_s0 + $0x1dc] sm:$0xff] }
 0x576   :  { %4346 = vrot.lane.b32.xlu0 %v6580_v1, %s6831_s29 }
 0x578   :  { %4742 = vrot.lane.b32.xlu2 %v6653_v22, %s6834_s10  ;;  %v14614_v22 = vld [vmem:[#allocation84_spill] sm:$0xff] }
 0x579   :  { %4860 = vrot.lane.b32.xlu1 %v6676_v60, %s6835_s22  ;;  %v4966_v38 = vsel %vm2753_vm1, %v6467_v49, %v14614_v22  ;;  %v6641_v22 = vld [vmem:[%s13848_s0 + $0x1dd] sm:$0xff] }
 0x57a   :  { %v4313_v58 = vpop.permute.xlu0 %4312 }
 0x57b   :  { %v4881_v6 = vpop.permute.xlu1 %4880  ;;  %v4457_v32 = vpop.permute.xlu2 %4456  ;;  %v5060_v7 = vsel %vm2864_vm4, %v5024_v25, %v4313_v58  ;;  %v14615_v58 = vld [vmem:[#allocation96_spill] sm:$0xff] }
 0x57c   :  { %v5217_v39 = vsel %vm14608_vm13, %v5181_v62, %v4881_v6  ;;  %v6789_v6 = vld [vmem:[%s13848_s0 + $0x23a] sm:$0xff]  ;;  %vm14624_vm13 = vmmov %vm14565_vm12 }
 0x57d   :  { %6723 = vmatmul.msk.f32.gmra.mxu2 %vm14574_vm0, %v5217_v39  ;;  %v5412_v42 = vpop.f32.mrf.mxu2 }
 0x57e   :  { %v12457_v14 = vadd.f32 %v12194_v61, %v5412_v42  ;;  %4600 = vrot.lane.b32.xlu0 %v12452_v52, %s6833_s19 }
 0x580   :  { %4462 = vrot.lane.b32.xlu2 %v12225_v10, %s6832_s25  ;;  %5485 = vst.msk [vmem:[#allocation2 + $0x1b8] sm:$0xff] %vm2790_vm2, %v12457_v14  ;;  %v5096_v10 = vsel %vm2901_vm5, %v5060_v7, %v4457_v32  ;;  %v5002_v32 = vsel %vm2790_vm2, %v4966_v38, %v14615_v58 }
 0x581   :  { %4176 = vrot.lane.b32.xlu1 %v6788_v33, %s6830_s18  ;;  %v6677_v33 = vld [vmem:[%s13848_s0 + $0x1de] sm:$0xff] }
 0x582   :  { %v4567_v9 = vpop.permute.xlu0 %4566 }
 0x583   :  { %v4197_v4 = vpop.permute.xlu1 %4196  ;;  %v4711_v47 = vpop.permute.xlu2 %4710  ;;  %v5132_v53 = vsel %vm2938_vm6, %v5096_v10, %v4567_v9 }
 0x584   :  { %v5168_v0 = vsel %vm2975_vm7, %v5132_v53, %v4711_v47  ;;  %v5038_v39 = vsel %vm2827_vm3, %v5002_v32, %v4197_v4 }
 0x586   :  { %4320 = vrot.lane.b32.xlu0 %v6567_v8, %s6831_s29  ;;  %v12546_v8 = vld [vmem:[%s13848_s0 + $0x24c] sm:$0xff] }
 0x587   :  { %v5373_v16 = vpop.f32.mrf.mxu1 }
 0x588   :  { %4716 = vrot.lane.b32.xlu2 %v6640_v5, %s6834_s10  ;;  %v5374_v28 = vadd.f32 %v12194_v61, %v5373_v16  ;;  %v14617_v5 = vld [vmem:[#allocation15_spill] sm:$0xff] }
 0x589   :  { %4888 = vrot.lane.b32.xlu1 %v6690_v40, %s6835_s22  ;;  %v6454_v40 = vld [vmem:[%s13848_s0 + $0x1a0] sm:$0xff] }
 0x58a   :  { %v4341_v3 = vpop.permute.xlu0 %4340  ;;  %5472 = vst.msk [vmem:[#allocation2 + $0x150] sm:$0xff] %vm2790_vm2, %v5374_v28  ;;  %v5548_v21 = vmul.f32 %v14612_v24, %v5374_v28  ;;  %v4953_v53 = vsel %vm2753_vm1, %v6454_v40, %v14617_v5  ;;  %v14618_v28 = vld [vmem:[#allocation55_spill] sm:$0xff] }
 0x58b   :  { %v4855_v59 = vpop.permute.xlu1 %4854  ;;  %v4485_v44 = vpop.permute.xlu2 %4484  ;;  %v5074_v12 = vsel %vm2864_vm4, %v5038_v39, %v4341_v3 }
 0x58c   :  { %v5204_v34 = vsel %vm14611_vm15, %v5168_v0, %v4855_v59  ;;  %v5590_v60 = vsel %vm2790_vm2, %v5548_v21, 0.0  ;;  %v5665_v1 = vmul.f32 %v5548_v21, %v5548_v21  ;;  %v6790_v0 = vld [vmem:[%s13848_s0 + $0x1d2] sm:$0xff]  ;;  %v4989_v59 = vsel %vm2790_vm2, %v4953_v53, %v14618_v28  ;;  %vm14627_vm15 = vmmov %vm14565_vm12 }
 0x58d   :  { %6710 = vmatmul.msk.f32.gmra.mxu1 %vm14613_vm10, %v5204_v34  ;;  %v12503_v51 = vadd.f32 %v5590_v60, %v12410_v17  ;;  %v6691_v60 = vld [vmem:[%s13848_s0 + $0x24e] sm:$0xff]  ;;  %vm14629_vm10 = vmmov %vm14574_vm0 }
 0x58e   :  { %v5706_v62 = vsel %vm2790_vm2, %v5665_v1, 0.0  ;;  %4574 = vrot.lane.b32.xlu0 %v12499_v48, %s6833_s19  ;;  %v6568_v1 = vld [vmem:[%s13848_s0 + $0x1d3] sm:$0xff] }
 0x58f   :  { %v12517_v17 = vadd.f32 %v5706_v62, %v12423_v20  ;;  %v5110_v20 = vsel %vm2901_vm5, %v5074_v12, %v4485_v44  ;;  %v14620_v12 = vld [vmem:[#allocation27_spill] sm:$0xff] }
 0x590   :  { %4490 = vrot.lane.b32.xlu2 %v12273_v26, %s6832_s25  ;;  %v6654_v26 = vld [vmem:[%s13848_s0 + $0x245] sm:$0xff] }
 0x591   :  { %4204 = vrot.lane.b32.xlu1 %v6789_v6, %s6830_s18 }
 0x592   :  { %v4595_v42 = vpop.permute.xlu0 %4594 }
 0x593   :  { %v4171_v13 = vpop.permute.xlu1 %4170  ;;  %v4739_v18 = vpop.permute.xlu2 %4738  ;;  %v5146_v35 = vsel %vm2938_vm6, %v5110_v20, %v4595_v42 }
 0x594   :  { %v5182_v25 = vsel %vm2975_vm7, %v5146_v35, %v4739_v18  ;;  %v5025_v3 = vsel %vm2827_vm3, %v4989_v59, %v4171_v13  ;;  %v6678_v59 = vld [vmem:[%s13848_s0 + $0x1e6] sm:$0xff] }
 0x596   :  { %4348 = vrot.lane.b32.xlu0 %v6581_v23, %s6831_s29  ;;  %v12593_v23 = vld [vmem:[%s13848_s0 + $0x1e4] sm:$0xff] }
 0x598   :  { %4744 = vrot.lane.b32.xlu2 %v6654_v26, %s6834_s10 }
 0x599   :  { %4862 = vrot.lane.b32.xlu1 %v6677_v33, %s6835_s22  ;;  %v6468_v33 = vld [vmem:[%s13848_s0 + $0x210] sm:$0xff] }
 0x59a   :  { %v4315_v9 = vpop.permute.xlu0 %4314 }
 0x59b   :  { %v4883_v4 = vpop.permute.xlu1 %4882  ;;  %v4459_v7 = vpop.permute.xlu2 %4458  ;;  %v5061_v21 = vsel %vm2864_vm4, %v5025_v3, %v4315_v9  ;;  %v6582_v3 = vld [vmem:[%s13848_s0 + $0x243] sm:$0xff] }
 0x59c   :  { %v5218_v47 = vsel %vm14565_vm12, %v5182_v25, %v4883_v4  ;;  %v14622_v25 = vld [vmem:[#allocation72_spill] sm:$0xff] }
 0x59d   :  { %6724 = vmatmul.msk.f32.gmra.mxu2 %vm14616_vm11, %v5218_v47  ;;  %v5415_v10 = vpop.f32.mrf.mxu2  ;;  %v4967_v4 = vsel %vm2753_vm1, %v6468_v33, %v14622_v25  ;;  %v14623_v47 = vld [vmem:[#allocation78_spill] sm:$0xff]  ;;  %vm14632_vm11 = vmmov %vm14574_vm0 }
 0x59e   :  { %v12551_v16 = vadd.f32 %v12194_v61, %v5415_v10  ;;  %4602 = vrot.lane.b32.xlu0 %v12546_v8, %s6833_s19  ;;  %v5003_v40 = vsel %vm2790_vm2, %v4967_v4, %v14623_v47  ;;  %v6692_v25 = vld [vmem:[%s13848_s0 + $0x256] sm:$0xff] }
 0x59f   :  { %v6569_v4 = vld [vmem:[%s13848_s0 + $0x1db] sm:$0xff] }
 0x5a0   :  { %4464 = vrot.lane.b32.xlu2 %v12321_v50, %s6832_s25  ;;  %5486 = vst.msk [vmem:[#allocation2 + $0x1c0] sm:$0xff] %vm2790_vm2, %v12551_v16  ;;  %v5097_v50 = vsel %vm2901_vm5, %v5061_v21, %v4459_v7  ;;  %v6791_v7 = vld [vmem:[%s13848_s0 + $0x242] sm:$0xff] }
 0x5a1   :  { %4178 = vrot.lane.b32.xlu1 %v6790_v0, %s6830_s18 }
 0x5a2   :  { %v4569_v34 = vpop.permute.xlu0 %4568 }
 0x5a3   :  { %v4199_v44 = vpop.permute.xlu1 %4198  ;;  %v4713_v49 = vpop.permute.xlu2 %4712  ;;  %v5133_v38 = vsel %vm2938_vm6, %v5097_v50, %v4569_v34  ;;  %v6455_v50 = vld [vmem:[%s13848_s0 + $0x1a8] sm:$0xff] }
 0x5a4   :  { %v5169_v6 = vsel %vm2975_vm7, %v5133_v38, %v4713_v49  ;;  %v5039_v10 = vsel %vm2827_vm3, %v5003_v40, %v4199_v44 }
 0x5a6   :  { %4322 = vrot.lane.b32.xlu0 %v6568_v1, %s6831_s29 }
 0x5a8   :  { %4718 = vrot.lane.b32.xlu2 %v6641_v22, %s6834_s10  ;;  %v12640_v22 = vld [vmem:[%s13848_s0 + $0x254] sm:$0xff] }
 0x5a9   :  { %4890 = vrot.lane.b32.xlu1 %v6691_v60, %s6835_s22 }
 0x5aa   :  { %v5376_v62 = vpop.f32.mrf.mxu1  ;;  %v4343_v39 = vpop.permute.xlu0 %4342 }
 0x5ab   :  { %v5377_v58 = vadd.f32 %v12194_v61, %v5376_v62  ;;  %v4857_v32 = vpop.permute.xlu1 %4856  ;;  %v4487_v13 = vpop.permute.xlu2 %4486  ;;  %v5075_v0 = vsel %vm2864_vm4, %v5039_v10, %v4343_v39  ;;  %v14625_v62 = vld [vmem:[#allocation22_spill] sm:$0xff]  ;;  %v14626_v39 = vld [vmem:[#allocation59_spill] sm:$0xff] }
 0x5ac   :  { %v5205_v42 = vsel %vm14619_vm14, %v5169_v6, %v4857_v32  ;;  %v4954_v6 = vsel %vm2753_vm1, %v6455_v50, %v14625_v62  ;;  %v6792_v32 = vld [vmem:[%s13848_s0 + $0x1da] sm:$0xff]  ;;  %v6793_v50 = vld [vmem:[%s13848_s0 + $0x24a] sm:$0xff]  ;;  %vm14635_vm14 = vmmov %vm14565_vm12 }
 0x5ad   :  { %5473 = vst.msk [vmem:[#allocation2 + $0x158] sm:$0xff] %vm2790_vm2, %v5377_v58  ;;  %v5549_v18 = vmul.f32 %v14620_v12, %v5377_v58  ;;  %6711 = vmatmul.msk.f32.gmra.mxu1 %vm14621_vm9, %v5205_v42  ;;  %vm14637_vm9 = vmmov %vm14574_vm0 }
 0x5ae   :  { %4576 = vrot.lane.b32.xlu0 %v12593_v23, %s6833_s19 }
 0x5af   :  { %v5592_v20 = vsel %vm2790_vm2, %v5549_v18, 0.0  ;;  %v5666_v26 = vmul.f32 %v5549_v18, %v5549_v18 }
 0x5b0   :  { %v12597_v35 = vadd.f32 %v5592_v20, %v12503_v51  ;;  %4492 = vrot.lane.b32.xlu2 %v12365_v2, %s6832_s25  ;;  %v6655_v2 = vld [vmem:[%s13848_s0 + $0x24d] sm:$0xff] }
 0x5b1   :  { %v5708_v9 = vsel %vm2790_vm2, %v5666_v26, 0.0  ;;  %4206 = vrot.lane.b32.xlu1 %v6791_v7, %s6830_s18 }
 0x5b2   :  { %v12611_v51 = vadd.f32 %v5708_v9, %v12517_v17  ;;  %v4597_v53 = vpop.permute.xlu0 %4596  ;;  %v5111_v17 = vsel %vm2901_vm5, %v5075_v0, %v4487_v13  ;;  %v4990_v13 = vsel %vm2790_vm2, %v4954_v6, %v14626_v39  ;;  %v6642_v9 = vld [vmem:[%s13848_s0 + $0x1e5] sm:$0xff] }
 0x5b3   :  { %v4173_v5 = vpop.permute.xlu1 %4172  ;;  %v4741_v28 = vpop.permute.xlu2 %4740  ;;  %v5147_v44 = vsel %vm2938_vm6, %v5111_v17, %v4597_v53  ;;  %v6469_v17 = vld [vmem:[%s13848_s0 + $0x218] sm:$0xff] }
 0x5b4   :  { %v5183_v34 = vsel %vm2975_vm7, %v5147_v44, %v4741_v28  ;;  %v5026_v42 = vsel %vm2827_vm3, %v4990_v13, %v4173_v5 }
 0x5b6   :  { %4350 = vrot.lane.b32.xlu0 %v6582_v3, %s6831_s29 }
 0x5b8   :  { %4746 = vrot.lane.b32.xlu2 %v6655_v2, %s6834_s10  ;;  %v12687_v2 = vld [vmem:[%s13848_s0 + $0x1ec] sm:$0xff] }
 0x5b9   :  { %4864 = vrot.lane.b32.xlu1 %v6678_v59, %s6835_s22  ;;  %v14628_v59 = vld [vmem:[#allocation41_spill] sm:$0xff] }
 0x5ba   :  { %v4317_v49 = vpop.permute.xlu0 %4316 }
 0x5bb   :  { %v4885_v21 = vpop.permute.xlu1 %4884  ;;  %v4461_v60 = vpop.permute.xlu2 %4460  ;;  %v5062_v20 = vsel %vm2864_vm4, %v5026_v42, %v4317_v49  ;;  %v14630_v49 = vld [vmem:[#allocation34_spill] sm:$0xff] }
 0x5bc   :  { %v5219_v1 = vsel %vm14624_vm13, %v5183_v34, %v4885_v21  ;;  %vm14640_vm13 = vmmov %vm14565_vm12 }
 0x5bd   :  { %6725 = vmatmul.msk.f32.gmra.mxu2 %vm14574_vm0, %v5219_v1 }
 0x5be   :  { %4604 = vrot.lane.b32.xlu0 %v12640_v22, %s6833_s19 }
 0x5c0   :  { %v5418_v38 = vpop.f32.mrf.mxu2  ;;  %4466 = vrot.lane.b32.xlu2 %v12407_v43, %s6832_s25  ;;  %v5098_v43 = vsel %vm2901_vm5, %v5062_v20, %v4461_v60  ;;  %v4968_v60 = vsel %vm2753_vm1, %v6469_v17, %v14630_v49  ;;  %v6583_v20 = vld [vmem:[%s13848_s0 + $0x24b] sm:$0xff] }
 0x5c1   :  { %v12645_v58 = vadd.f32 %v12194_v61, %v5418_v38  ;;  %4180 = vrot.lane.b32.xlu1 %v6792_v32, %s6830_s18  ;;  %v14631_v38 = vld [vmem:[#allocation76_spill] sm:$0xff] }
 0x5c2   :  { %v4571_v33 = vpop.permute.xlu0 %4570  ;;  %v5004_v62 = vsel %vm2790_vm2, %v4968_v60, %v14631_v38  ;;  %v6643_v38 = vld [vmem:[%s13848_s0 + $0x1ed] sm:$0xff] }
 0x5c3   :  { %5487 = vst.msk [vmem:[#allocation2 + $0x1c8] sm:$0xff] %vm2790_vm2, %v12645_v58  ;;  %v4201_v18 = vpop.permute.xlu1 %4200  ;;  %v4715_v26 = vpop.permute.xlu2 %4714  ;;  %v5134_v7 = vsel %vm2938_vm6, %v5098_v43, %v4571_v33  ;;  %v6679_v33 = vld [vmem:[%s13848_s0 + $0x1ee] sm:$0xff] }
 0x5c4   :  { %v5170_v40 = vsel %vm2975_vm7, %v5134_v7, %v4715_v26  ;;  %v5040_v6 = vsel %vm2827_vm3, %v5004_v62, %v4201_v18  ;;  %v6456_v7 = vld [vmem:[%s13848_s0 + $0x1b0] sm:$0xff] }
 0x5c6   :  { %4324 = vrot.lane.b32.xlu0 %v6569_v4, %s6831_s29 }
 0x5c8   :  { %4720 = vrot.lane.b32.xlu2 %v6642_v9, %s6834_s10 }
 0x5c9   :  { %4892 = vrot.lane.b32.xlu1 %v6692_v25, %s6835_s22 }
 0x5ca   :  { %v5379_v47 = vpop.f32.mrf.mxu1  ;;  %v4345_v53 = vpop.permute.xlu0 %4344 }
 0x5cb   :  { %v5380_v10 = vadd.f32 %v12194_v61, %v5379_v47  ;;  %v4859_v5 = vpop.permute.xlu1 %4858  ;;  %v4489_v0 = vpop.permute.xlu2 %4488  ;;  %v5076_v13 = vsel %vm2864_vm4, %v5040_v6, %v4345_v53  ;;  %v12734_v47 = vld [vmem:[%s13848_s0 + $0x25c] sm:$0xff] }
 0x5cc   :  { %v5206_v28 = vsel %vm14627_vm15, %v5170_v40, %v4859_v5  ;;  %vm14643_vm15 = vmmov %vm14565_vm12 }
 0x5cd   :  { %5474 = vst.msk [vmem:[#allocation2 + $0x160] sm:$0xff] %vm2790_vm2, %v5380_v10  ;;  %v5550_v3 = vmul.f32 %v14628_v59, %v5380_v10  ;;  %6712 = vmatmul.msk.f32.gmra.mxu1 %vm14629_vm10, %v5206_v28  ;;  %v14633_v10 = vld [vmem:[#allocation21_spill] sm:$0xff]  ;;  %v14634_v28 = vld [vmem:[#allocation58_spill] sm:$0xff]  ;;  %vm14645_vm10 = vmmov %vm14574_vm0 }
 0x5ce   :  { %4578 = vrot.lane.b32.xlu0 %v12687_v2, %s6833_s19  ;;  %v4955_v5 = vsel %vm2753_vm1, %v6456_v7, %v14633_v10  ;;  %v6796_v10 = vld [vmem:[%s13848_s0 + $0x1f4] sm:$0xff] }
 0x5cf   :  { %v5594_v44 = vsel %vm2790_vm2, %v5550_v3, 0.0  ;;  %v5667_v34 = vmul.f32 %v5550_v3, %v5550_v3  ;;  %v4991_v3 = vsel %vm2790_vm2, %v4955_v5, %v14634_v28  ;;  %v14639_v5 = vld [vmem:[#allocation80_spill] sm:$0xff] }
 0x5d0   :  { %v12691_v21 = vadd.f32 %v5594_v44, %v12597_v35  ;;  %4494 = vrot.lane.b32.xlu2 %v12452_v52, %s6832_s25  ;;  %v6656_v52 = vld [vmem:[%s13848_s0 + $0x255] sm:$0xff] }
 0x5d1   :  { %v5710_v1 = vsel %vm2790_vm2, %v5667_v34, 0.0  ;;  %4208 = vrot.lane.b32.xlu1 %v6793_v50, %s6830_s18  ;;  %v6570_v50 = vld [vmem:[%s13848_s0 + $0x1e3] sm:$0xff] }
 0x5d2   :  { %v12705_v35 = vadd.f32 %v5710_v1, %v12611_v51  ;;  %v4599_v39 = vpop.permute.xlu0 %4598  ;;  %v5112_v51 = vsel %vm2901_vm5, %v5076_v13, %v4489_v0  ;;  %v6794_v0 = vld [vmem:[%s13848_s0 + $0x1e2] sm:$0xff] }
 0x5d3   :  { %v4175_v32 = vpop.permute.xlu1 %4174  ;;  %v4743_v42 = vpop.permute.xlu2 %4742  ;;  %v5148_v18 = vsel %vm2938_vm6, %v5112_v51, %v4599_v39  ;;  %v6693_v1 = vld [vmem:[%s13848_s0 + $0x25e] sm:$0xff] }
 0x5d4   :  { %v5184_v26 = vsel %vm2975_vm7, %v5148_v18, %v4743_v42  ;;  %v5027_v17 = vsel %vm2827_vm3, %v4991_v3, %v4175_v32  ;;  %v14636_v51 = vld [vmem:[#allocation103_spill] sm:$0xff] }
 0x5d5   :  { %v6470_v18 = vld [vmem:[%s13848_s0 + $0x220] sm:$0xff] }
 0x5d6   :  { %4352 = vrot.lane.b32.xlu0 %v6583_v20, %s6831_s29 }
 0x5d8   :  { %4748 = vrot.lane.b32.xlu2 %v6656_v52, %s6834_s10 }
 0x5d9   :  { %4866 = vrot.lane.b32.xlu1 %v6679_v33, %s6835_s22 }
 0x5da   :  { %v4319_v4 = vpop.permute.xlu0 %4318 }
 0x5db   :  { %v4887_v25 = vpop.permute.xlu1 %4886  ;;  %v4463_v43 = vpop.permute.xlu2 %4462  ;;  %v5063_v49 = vsel %vm2864_vm4, %v5027_v17, %v4319_v4 }
 0x5dc   :  { %v5220_v9 = vsel %vm14565_vm12, %v5184_v26, %v4887_v25 }
 0x5dd   :  { %6726 = vmatmul.msk.f32.gmra.mxu2 %vm14632_vm11, %v5220_v9  ;;  %vm14648_vm11 = vmmov %vm14574_vm0 }
 0x5de   :  { %4606 = vrot.lane.b32.xlu0 %v12734_v47, %s6833_s19 }
 0x5e0   :  { %v5421_v40 = vpop.f32.mrf.mxu2  ;;  %4468 = vrot.lane.b32.xlu2 %v12499_v48, %s6832_s25  ;;  %v5099_v48 = vsel %vm2901_vm5, %v5063_v49, %v4463_v43  ;;  %v14638_v43 = vld [vmem:[#allocation36_spill] sm:$0xff] }
 0x5e1   :  { %v12739_v53 = vadd.f32 %v12194_v61, %v5421_v40  ;;  %4182 = vrot.lane.b32.xlu1 %v6794_v0, %s6830_s18  ;;  %v4969_v9 = vsel %vm2753_vm1, %v6470_v18, %v14638_v43  ;;  %v6795_v40 = vld [vmem:[%s13848_s0 + $0x252] sm:$0xff] }
 0x5e2   :  { %v4573_v34 = vpop.permute.xlu0 %4572  ;;  %v14642_v18 = vld [vmem:[#allocation57_spill] sm:$0xff] }
 0x5e3   :  { %5488 = vst.msk [vmem:[#allocation2 + $0x1d0] sm:$0xff] %vm2790_vm2, %v12739_v53  ;;  %v4203_v44 = vpop.permute.xlu1 %4202  ;;  %v4717_v60 = vpop.permute.xlu2 %4716  ;;  %v5135_v62 = vsel %vm2938_vm6, %v5099_v48, %v4573_v34 }
 0x5e4   :  { %v5171_v32 = vsel %vm2975_vm7, %v5135_v62, %v4717_v60  ;;  %v6680_v60 = vld [vmem:[%s13848_s0 + $0x1f6] sm:$0xff] }
 0x5e6   :  { %4326 = vrot.lane.b32.xlu0 %v6570_v50, %s6831_s29 }
 0x5e8   :  { %4722 = vrot.lane.b32.xlu2 %v6643_v38, %s6834_s10 }
 0x5e9   :  { %4894 = vrot.lane.b32.xlu1 %v6693_v1, %s6835_s22  ;;  %v6584_v1 = vld [vmem:[%s13848_s0 + $0x253] sm:$0xff] }
 0x5ea   :  { %v5382_v6 = vpop.f32.mrf.mxu1  ;;  %v4347_v42 = vpop.permute.xlu0 %4346 }
 0x5eb   :  { %v5383_v39 = vadd.f32 %v12194_v61, %v5382_v6  ;;  %v4861_v13 = vpop.permute.xlu1 %4860  ;;  %v4491_v33 = vpop.permute.xlu2 %4490 }
 0x5ec   :  { %v5207_v20 = vsel %vm14635_vm14, %v5171_v32, %v4861_v13  ;;  %v6457_v32 = vld [vmem:[%s13848_s0 + $0x1b8] sm:$0xff]  ;;  %vm14651_vm14 = vmmov %vm14565_vm12 }
 0x5ed   :  { %5475 = vst.msk [vmem:[#allocation2 + $0x168] sm:$0xff] %vm2790_vm2, %v5383_v39  ;;  %v5551_v52 = vmul.f32 %v14636_v51, %v5383_v39  ;;  %6713 = vmatmul.msk.f32.gmra.mxu1 %vm14637_vm9, %v5207_v20  ;;  %v12825_v39 = vld [vmem:[%s13848_s0 + $0x264] sm:$0xff]  ;;  %vm14653_vm9 = vmmov %vm14574_vm0 }
 0x5ee   :  { %4580 = vrot.lane.b32.xlu0 %v6796_v10, %s6833_s19  ;;  %v6694_v10 = vld [vmem:[%s13848_s0 + $0x266] sm:$0xff] }
 0x5ef   :  { %v5596_v26 = vsel %vm2790_vm2, %v5551_v52, 0.0  ;;  %v5668_v25 = vmul.f32 %v5551_v52, %v5551_v52  ;;  %v6797_v52 = vld [vmem:[%s13848_s0 + $0x1ea] sm:$0xff] }
 0x5f0   :  { %v12780_v4 = vadd.f32 %v5596_v26, %v12691_v21  ;;  %v5005_v21 = vsel %vm2790_vm2, %v4969_v9, %v14639_v5  ;;  %4496 = vrot.lane.b32.xlu2 %v12546_v8, %s6832_s25  ;;  %v6657_v8 = vld [vmem:[%s13848_s0 + $0x25d] sm:$0xff]  ;;  %v6571_v5 = vld [vmem:[%s13848_s0 + $0x1eb] sm:$0xff] }
 0x5f1   :  { %v5712_v7 = vsel %vm2790_vm2, %v5668_v25, 0.0  ;;  %4210 = vrot.lane.b32.xlu1 %v6795_v40, %s6830_s18  ;;  %v5041_v28 = vsel %vm2827_vm3, %v5005_v21, %v4203_v44  ;;  %v6644_v21 = vld [vmem:[%s13848_s0 + $0x1f5] sm:$0xff] }
 0x5f2   :  { %v12796_v0 = vadd.f32 %v5712_v7, %v12705_v35  ;;  %v4601_v17 = vpop.permute.xlu0 %4600  ;;  %v5077_v34 = vsel %vm2864_vm4, %v5041_v28, %v4347_v42  ;;  %v14641_v42 = vld [vmem:[#allocation19_spill] sm:$0xff] }
 0x5f3   :  { %v4177_v3 = vpop.permute.xlu1 %4176  ;;  %v4745_v49 = vpop.permute.xlu2 %4744  ;;  %v5113_v35 = vsel %vm2901_vm5, %v5077_v34, %v4491_v33  ;;  %v4956_v33 = vsel %vm2753_vm1, %v6457_v32, %v14641_v42  ;;  %v6799_v42 = vld [vmem:[%s13848_s0 + $0x1fc] sm:$0xff] }
 0x5f4   :  { %v5149_v44 = vsel %vm2938_vm6, %v5113_v35, %v4601_v17  ;;  %v4992_v26 = vsel %vm2790_vm2, %v4956_v33, %v14642_v18  ;;  %v14647_v33 = vld [vmem:[#allocation79_spill] sm:$0xff] }
 0x5f5   :  { %v5185_v50 = vsel %vm2975_vm7, %v5149_v44, %v4745_v49  ;;  %v5028_v25 = vsel %vm2827_vm3, %v4992_v26, %v4177_v3 }
 0x5f6   :  { %4354 = vrot.lane.b32.xlu0 %v6584_v1, %s6831_s29 }
 0x5f8   :  { %4750 = vrot.lane.b32.xlu2 %v6657_v8, %s6834_s10  ;;  %v14644_v8 = vld [vmem:[#allocation43_spill] sm:$0xff] }
 0x5f9   :  { %4868 = vrot.lane.b32.xlu1 %v6680_v60, %s6835_s22 }
 0x5fa   :  { %v4321_v38 = vpop.permute.xlu0 %4320 }
 0x5fb   :  { %v4889_v48 = vpop.permute.xlu1 %4888  ;;  %v4465_v62 = vpop.permute.xlu2 %4464  ;;  %v5064_v7 = vsel %vm2864_vm4, %v5028_v25, %v4321_v38 }
 0x5fc   :  { %v5221_v6 = vsel %vm14640_vm13, %v5185_v50, %v4889_v48  ;;  %v6471_v50 = vld [vmem:[%s13848_s0 + $0x228] sm:$0xff]  ;;  %vm14656_vm13 = vmmov %vm14565_vm12 }
 0x5fd   :  { %6727 = vmatmul.msk.f32.gmra.mxu2 %vm14574_vm0, %v5221_v6 }
 0x5fe   :  { %4608 = vrot.lane.b32.xlu0 %v12825_v39, %s6833_s19 }
 0x600   :  { %v5424_v13 = vpop.f32.mrf.mxu2  ;;  %4470 = vrot.lane.b32.xlu2 %v12593_v23, %s6832_s25  ;;  %v5100_v23 = vsel %vm2901_vm5, %v5064_v7, %v4465_v62  ;;  %v14646_v62 = vld [vmem:[#allocation115_spill] sm:$0xff] }
 0x601   :  { %v12830_v20 = vadd.f32 %v12194_v61, %v5424_v13  ;;  %4184 = vrot.lane.b32.xlu1 %v6797_v52, %s6830_s18  ;;  %v4970_v6 = vsel %vm2753_vm1, %v6471_v50, %v14646_v62  ;;  %v6798_v13 = vld [vmem:[%s13848_s0 + $0x25a] sm:$0xff] }
 0x602   :  { %v4575_v9 = vpop.permute.xlu0 %4574 }
 0x603   :  { %5489 = vst.msk [vmem:[#allocation2 + $0x1d8] sm:$0xff] %vm2790_vm2, %v12830_v20  ;;  %v4205_v43 = vpop.permute.xlu1 %4204  ;;  %v4719_v40 = vpop.permute.xlu2 %4718  ;;  %v5136_v28 = vsel %vm2938_vm6, %v5100_v23, %v4575_v9 }
 0x604   :  { %v5172_v17 = vsel %vm2975_vm7, %v5136_v28, %v4719_v40  ;;  %v6681_v40 = vld [vmem:[%s13848_s0 + $0x1fe] sm:$0xff] }
 0x606   :  { %4328 = vrot.lane.b32.xlu0 %v6571_v5, %s6831_s29 }
 0x608   :  { %4724 = vrot.lane.b32.xlu2 %v6644_v21, %s6834_s10 }
 0x609   :  { %4896 = vrot.lane.b32.xlu1 %v6694_v10, %s6835_s22  ;;  %v6585_v10 = vld [vmem:[%s13848_s0 + $0x25b] sm:$0xff] }
 0x60a   :  { %v5385_v3 = vpop.f32.mrf.mxu1  ;;  %v4349_v60 = vpop.permute.xlu0 %4348 }
 0x60b   :  { %v5386_v34 = vadd.f32 %v12194_v61, %v5385_v3  ;;  %v4863_v49 = vpop.permute.xlu1 %4862  ;;  %v4493_v1 = vpop.permute.xlu2 %4492 }
 0x60c   :  { %v5208_v35 = vsel %vm14643_vm15, %v5172_v17, %v4863_v49  ;;  %v6458_v17 = vld [vmem:[%s13848_s0 + $0x1c0] sm:$0xff]  ;;  %v6659_v49 = vld [vmem:[%s13848_s0 + $0x26d] sm:$0xff]  ;;  %vm14659_vm15 = vmmov %vm14565_vm12 }
 0x60d   :  { %5476 = vst.msk [vmem:[#allocation2 + $0x170] sm:$0xff] %vm2790_vm2, %v5386_v34  ;;  %v5552_v44 = vmul.f32 %v14644_v8, %v5386_v34  ;;  %6714 = vmatmul.msk.f32.gmra.mxu1 %vm14645_vm10, %v5208_v35  ;;  %v12916_v34 = vld [vmem:[%s13848_s0 + $0x26c] sm:$0xff]  ;;  %vm14661_vm10 = vmmov %vm14574_vm0 }
 0x60e   :  { %4582 = vrot.lane.b32.xlu0 %v6799_v42, %s6833_s19 }
 0x60f   :  { %v5598_v48 = vsel %vm2790_vm2, %v5552_v44, 0.0  ;;  %v5669_v38 = vmul.f32 %v5552_v44, %v5552_v44  ;;  %v12926_v44 = vld [vmem:[%s13850_s2] ss:$0 sm:$0xff] }
 0x610   :  { %v12871_v61 = vadd.f32 %v5598_v48, %v12780_v4  ;;  %v5006_v4 = vsel %vm2790_vm2, %v4970_v6, %v14647_v33  ;;  %4498 = vrot.lane.b32.xlu2 %v12640_v22, %s6832_s25  ;;  %v6658_v22 = vld [vmem:[%s13848_s0 + $0x265] sm:$0xff] }
 0x611   :  { %v5714_v32 = vsel %vm2790_vm2, %v5669_v38, 0.0  ;;  %4212 = vrot.lane.b32.xlu1 %v6798_v13, %s6830_s18  ;;  %v5042_v18 = vsel %vm2827_vm3, %v5006_v4, %v4205_v43  ;;  %v14650_v48 = vld [vmem:[#allocation64_spill] sm:$0xff] }
 0x612   :  { %v12887_v52 = vadd.f32 %v5714_v32, %v12796_v0  ;;  %v4603_v25 = vpop.permute.xlu0 %4602  ;;  %v5078_v9 = vsel %vm2864_vm4, %v5042_v18, %v4349_v60  ;;  %v6586_v33 = vld [vmem:[%s13848_s0 + $0x263] sm:$0xff] }
 0x613   :  { %v4179_v26 = vpop.permute.xlu1 %4178  ;;  %v4747_v7 = vpop.permute.xlu2 %4746  ;;  %v5114_v0 = vsel %vm2901_vm5, %v5078_v9, %v4493_v1  ;;  %v14649_v1 = vld [vmem:[#allocation26_spill] sm:$0xff] }
 0x614   :  { %v5150_v43 = vsel %vm2938_vm6, %v5114_v0, %v4603_v25  ;;  %v4957_v35 = vsel %vm2753_vm1, %v6458_v17, %v14649_v1 }
 0x615   :  { %v5186_v5 = vsel %vm2975_vm7, %v5150_v43, %v4747_v7  ;;  %v4993_v38 = vsel %vm2790_vm2, %v4957_v35, %v14650_v48  ;;  %v14652_v43 = vld [vmem:[#allocation48_spill] sm:$0xff] }
 0x616   :  { %4356 = vrot.lane.b32.xlu0 %v6585_v10, %s6831_s29  ;;  %v5029_v62 = vsel %vm2827_vm3, %v4993_v38, %v4179_v26  ;;  %v6801_v26 = vld [vmem:[%s13848_s0 + $0x262] sm:$0xff] }
 0x617   :  { %v14655_v48 = vld [vmem:[#allocation104_spill] sm:$0xff] }
 0x618   :  { %4752 = vrot.lane.b32.xlu2 %v6658_v22, %s6834_s10 }
 0x619   :  { %4870 = vrot.lane.b32.xlu1 %v6681_v40, %s6835_s22 }
 0x61a   :  { %v4323_v21 = vpop.permute.xlu0 %4322 }
 0x61b   :  { %v4891_v23 = vpop.permute.xlu1 %4890  ;;  %v4467_v28 = vpop.permute.xlu2 %4466  ;;  %v5065_v13 = vsel %vm2864_vm4, %v5029_v62, %v4323_v21  ;;  %v12968_v21 = vld [vmem:[%s13848_s0 + $0x274] sm:$0xff] }
 0x61c   :  { %v5222_v3 = vsel %vm14565_vm12, %v5186_v5, %v4891_v23  ;;  %v5101_v4 = vsel %vm2901_vm5, %v5065_v13, %v4467_v28  ;;  %v6472_v23 = vld [vmem:[%s13848_s0 + $0x230] sm:$0xff] }
 0x61d   :  { %6728 = vmatmul.msk.f32.gmra.mxu2 %vm14648_vm11, %v5222_v3  ;;  %v6660_v28 = vld [vmem:[%s13848_s0 + $0x275] sm:$0xff]  ;;  %vm14664_vm11 = vmmov %vm14574_vm0 }
 0x61e   :  { %4610 = vrot.lane.b32.xlu0 %v12916_v34, %s6833_s19 }
 0x620   :  { %v5427_v60 = vpop.f32.mrf.mxu2  ;;  %4472 = vrot.lane.b32.xlu2 %v12687_v2, %s6832_s25  ;;  %v6645_v2 = vld [vmem:[%s13848_s0 + $0x1fd] sm:$0xff] }
 0x621   :  { %v12929_v50 = vadd.f32 %v12926_v44, %v5427_v60  ;;  %4754 = vrot.lane.b32.xlu1 %v6659_v49, %s6834_s10  ;;  %v14654_v60 = vld [vmem:[#allocation35_spill] sm:$0xff] }
 0x622   :  { %v4577_v32 = vpop.permute.xlu0 %4576  ;;  %v4971_v1 = vsel %vm2753_vm1, %v6472_v23, %v14654_v60 }
 0x623   :  { %5490 = vst.msk [vmem:[#allocation2 + $0x1e0] sm:$0xff] %vm2790_vm2, %v12929_v50  ;;  %v4207_v6 = vpop.permute.xlu1 %4206  ;;  %v4721_v42 = vpop.permute.xlu2 %4720  ;;  %v5137_v18 = vsel %vm2938_vm6, %v5101_v4, %v4577_v32  ;;  %v5007_v38 = vsel %vm2790_vm2, %v4971_v1, %v14655_v48  ;;  %v6551_v4 = vld [vmem:[%s13848_s0 + $0x26a] sm:$0xff] }
 0x624   :  { %v5173_v9 = vsel %vm2975_vm7, %v5137_v18, %v4721_v42 }
 0x626   :  { %4214 = vrot.lane.b32.xlu0 %v6801_v26, %s6830_s18 }
 0x628   :  { %4726 = vrot.lane.b32.xlu2 %v6645_v2, %s6834_s10  ;;  %v6587_v2 = vld [vmem:[%s13848_s0 + $0x26b] sm:$0xff] }
 0x629   :  { %4358 = vrot.lane.b32.xlu1 %v6586_v33, %s6831_s29 }
 0x62a   :  { %v5388_v25 = vpop.f32.mrf.mxu1  ;;  %v4351_v10 = vpop.permute.xlu0 %4350 }
 0x62b   :  { %v5389_v7 = vadd.f32 %v12926_v44, %v5388_v25  ;;  %v4865_v40 = vpop.permute.xlu1 %4864  ;;  %v4495_v0 = vpop.permute.xlu2 %4494 }
 0x62c   :  { %v5209_v22 = vsel %vm14651_vm14, %v5173_v9, %v4865_v40  ;;  %v6459_v40 = vld [vmem:[%s13848_s0 + $0x1c8] sm:$0xff]  ;;  %vm14667_vm14 = vmmov %vm14565_vm12 }
 0x62d   :  { %5477 = vst.msk [vmem:[#allocation2 + $0x178] sm:$0xff] %vm2790_vm2, %v5389_v7  ;;  %v5553_v5 = vmul.f32 %v14652_v43, %v5389_v7  ;;  %6715 = vmatmul.msk.f32.gmra.mxu1 %vm14653_vm9, %v5209_v22  ;;  %vm14669_vm9 = vmmov %vm14574_vm0 }
 0x62e   :  { %4612 = vrot.lane.b32.xlu0 %v12968_v21, %s6833_s19 }
 0x62f   :  { %v5600_v3 = vsel %vm2790_vm2, %v5553_v5, 0.0  ;;  %v5670_v17 = vmul.f32 %v5553_v5, %v5553_v5  ;;  %v14657_v5 = vld [vmem:[#allocation25_spill] sm:$0xff] }
 0x630   :  { %v12975_v49 = vadd.f32 %v5600_v3, %v12871_v61  ;;  %4500 = vrot.lane.b32.xlu2 %v12734_v47, %s6832_s25  ;;  %v5043_v61 = vsel %vm2827_vm3, %v5007_v38, %v4207_v6  ;;  %v6695_v47 = vld [vmem:[%s13848_s0 + $0x26e] sm:$0xff]  ;;  %v4958_v23 = vsel %vm2753_vm1, %v6459_v40, %v14657_v5  ;;  %v14658_v3 = vld [vmem:[#allocation63_spill] sm:$0xff]  ;;  %v6662_v40 = vld [vmem:[%s13848_s0 + $0x285] sm:$0xff] }
 0x631   :  { %v5716_v35 = vsel %vm2790_vm2, %v5670_v17, 0.0  ;;  %4756 = vrot.lane.b32.xlu1 %v6660_v28, %s6834_s10  ;;  %v5079_v42 = vsel %vm2864_vm4, %v5043_v61, %v4351_v10  ;;  %v6625_v10 = vld [vmem:[%s13848_s0 + $0x27c] sm:$0xff]  ;;  %v4994_v17 = vsel %vm2790_vm2, %v4958_v23, %v14658_v3  ;;  %v6552_v61 = vld [vmem:[%s13848_s0 + $0x272] sm:$0xff]  ;;  %v14662_v5 = vld [vmem:[#allocation40_spill] sm:$0xff] }
 0x632   :  { %v12986_v62 = vadd.f32 %v5716_v35, %v12887_v52  ;;  %v4605_v13 = vpop.permute.xlu0 %4604  ;;  %v5115_v52 = vsel %vm2901_vm5, %v5079_v42, %v4495_v0  ;;  %v6661_v0 = vld [vmem:[%s13848_s0 + $0x27d] sm:$0xff] }
 0x633   :  { %v4181_v32 = vpop.permute.xlu1 %4180  ;;  %v4749_v33 = vpop.permute.xlu2 %4748  ;;  %v5151_v6 = vsel %vm2938_vm6, %v5115_v52, %v4605_v13  ;;  %v6588_v13 = vld [vmem:[%s13848_s0 + $0x273] sm:$0xff] }
 0x634   :  { %v5187_v18 = vsel %vm2975_vm7, %v5151_v6, %v4749_v33  ;;  %v5030_v60 = vsel %vm2827_vm3, %v4994_v17, %v4181_v32  ;;  %v6696_v32 = vld [vmem:[%s13848_s0 + $0x276] sm:$0xff]  ;;  %v14663_v17 = vld [vmem:[#allocation85_spill] sm:$0xff] }
 0x636   :  { %4216 = vrot.lane.b32.xlu0 %v6551_v4, %s6830_s18 }
 0x638   :  { %4898 = vrot.lane.b32.xlu2 %v6695_v47, %s6835_s22 }
 0x639   :  { %4360 = vrot.lane.b32.xlu1 %v6587_v2, %s6831_s29 }
 0x63a   :  { %v4325_v25 = vpop.permute.xlu0 %4324 }
 0x63b   :  { %v4893_v26 = vpop.permute.xlu1 %4892  ;;  %v4469_v9 = vpop.permute.xlu2 %4468  ;;  %v5066_v48 = vsel %vm2864_vm4, %v5030_v60, %v4325_v25 }
 0x63c   :  { %v5223_v7 = vsel %vm14656_vm13, %v5187_v18, %v4893_v26  ;;  %v14660_v26 = vld [vmem:[#allocation83_spill] sm:$0xff]  ;;  %vm14672_vm13 = vmmov %vm14565_vm12 }
 0x63d   :  { %6729 = vmatmul.msk.f32.gmra.mxu2 %vm14574_vm0, %v5223_v7  ;;  %v6626_v7 = vld [vmem:[%s13848_s0 + $0x284] sm:$0xff] }
 0x63e   :  { %4614 = vrot.lane.b32.xlu0 %v6625_v10, %s6833_s19 }
 0x640   :  { %v5430_v22 = vpop.f32.mrf.mxu2  ;;  %4502 = vrot.lane.b32.xlu2 %v12825_v39, %s6832_s25  ;;  %v5102_v39 = vsel %vm2901_vm5, %v5066_v48, %v4469_v9  ;;  %v6473_v9 = vld [vmem:[%s13848_s0 + $0x238] sm:$0xff] }
 0x641   :  { %v13021_v28 = vadd.f32 %v12926_v44, %v5430_v22  ;;  %4758 = vrot.lane.b32.xlu1 %v6661_v0, %s6834_s10  ;;  %v4972_v23 = vsel %vm2753_vm1, %v6473_v9, %v14662_v5 }
 0x642   :  { %v4579_v35 = vpop.permute.xlu0 %4578  ;;  %v5008_v60 = vsel %vm2790_vm2, %v4972_v23, %v14663_v17 }
 0x643   :  { %5491 = vst.msk [vmem:[#allocation2 + $0x1e8] sm:$0xff] %vm2790_vm2, %v13021_v28  ;;  %v4209_v1 = vpop.permute.xlu1 %4208  ;;  %v4723_v38 = vpop.permute.xlu2 %4722  ;;  %v5138_v42 = vsel %vm2938_vm6, %v5102_v39, %v4579_v35 }
 0x644   :  { %v5174_v4 = vsel %vm2975_vm7, %v5138_v42, %v4723_v38  ;;  %v5044_v48 = vsel %vm2827_vm3, %v5008_v60, %v4209_v1 }
 0x646   :  { %4218 = vrot.lane.b32.xlu0 %v6552_v61, %s6830_s18 }
 0x648   :  { %4900 = vrot.lane.b32.xlu2 %v6696_v32, %s6835_s22  ;;  %v6697_v32 = vld [vmem:[%s13848_s0 + $0x27e] sm:$0xff] }
 0x649   :  { %4362 = vrot.lane.b32.xlu1 %v6588_v13, %s6831_s29 }
 0x64a   :  { %v5391_v33 = vpop.f32.mrf.mxu1  ;;  %v4353_v47 = vpop.permute.xlu0 %4352 }
 0x64b   :  { %v5392_v2 = vadd.f32 %v12926_v44, %v5391_v33  ;;  %v4867_v52 = vpop.permute.xlu1 %4866  ;;  %v4497_v6 = vpop.permute.xlu2 %4496  ;;  %v5080_v61 = vsel %vm2864_vm4, %v5044_v48, %v4353_v47  ;;  %v14665_v47 = vld [vmem:[#allocation24_spill] sm:$0xff] }
 0x64c   :  { %v5210_v18 = vsel %vm14659_vm15, %v5174_v4, %v4867_v52  ;;  %v5116_v39 = vsel %vm2901_vm5, %v5080_v61, %v4497_v6  ;;  %vm14675_vm15 = vmmov %vm14565_vm12 }
 0x64d   :  { %5478 = vst.msk [vmem:[#allocation2 + $0x180] sm:$0xff] %vm2790_vm2, %v5392_v2  ;;  %v5554_v25 = vmul.f32 %v14660_v26, %v5392_v2  ;;  %6716 = vmatmul.msk.f32.gmra.mxu1 %vm14661_vm10, %v5210_v18  ;;  %v6460_v2 = vld [vmem:[%s13848_s0 + $0x1d0] sm:$0xff]  ;;  %vm14678_vm10 = vmmov %vm14574_vm0 }
 0x64e   :  { %4616 = vrot.lane.b32.xlu0 %v6626_v7, %s6833_s19  ;;  %v4959_v6 = vsel %vm2753_vm1, %v6460_v2, %v14665_v47 }
 0x64f   :  { %v5602_v10 = vsel %vm2790_vm2, %v5554_v25, 0.0  ;;  %v5671_v0 = vmul.f32 %v5554_v25, %v5554_v25  ;;  %v14666_v25 = vld [vmem:[#allocation61_spill] sm:$0xff] }
 0x650   :  { %v5603_v22 = vadd.f32 %v5602_v10, %v12975_v49  ;;  %4504 = vrot.lane.b32.xlu2 %v12916_v34, %s6832_s25  ;;  %v4995_v9 = vsel %vm2790_vm2, %v4959_v6, %v14666_v25 }
 0x651   :  { %v5718_v3 = vsel %vm2790_vm2, %v5671_v0, 0.0  ;;  %4760 = vrot.lane.b32.xlu1 %v6662_v40, %s6834_s10 }
 0x652   :  { %v5719_v35 = vadd.f32 %v5718_v3, %v12986_v62  ;;  %v4607_v38 = vpop.permute.xlu0 %4606  ;;  %v6698_v3 = vld [vmem:[%s13848_s0 + $0x286] sm:$0xff] }
 0x653   :  { %v4183_v49 = vpop.permute.xlu1 %4182  ;;  %v4751_v13 = vpop.permute.xlu2 %4750  ;;  %v5152_v42 = vsel %vm2938_vm6, %v5116_v39, %v4607_v38  ;;  %v14668_v39 = vld [vmem:[#allocation60_spill] sm:$0xff] }
 0x654   :  { %v5188_v62 = vsel %vm2975_vm7, %v5152_v42, %v4751_v13  ;;  %v5031_v7 = vsel %vm2827_vm3, %v4995_v9, %v4183_v49  ;;  %v6474_v42 = vld [vmem:[%s13848_s0 + $0x240] sm:$0xff] }
 0x658   :  { %4902 = vrot.lane.b32.xlu2 %v6697_v32, %s6835_s22 }
 0x65a   :  { %v4327_v33 = vpop.permute.xlu0 %4326 }
 0x65b   :  { %v4895_v34 = vpop.permute.xlu1 %4894  ;;  %v4471_v1 = vpop.permute.xlu2 %4470  ;;  %v5067_v0 = vsel %vm2864_vm4, %v5031_v7, %v4327_v33 }
 0x65c   :  { %v5224_v4 = vsel %vm14565_vm12, %v5188_v62, %v4895_v34  ;;  %v5103_v23 = vsel %vm2901_vm5, %v5067_v0, %v4471_v1  ;;  %v14670_v1 = vld [vmem:[#allocation39_spill] sm:$0xff] }
 0x65d   :  { %6730 = vmatmul.msk.f32.gmra.mxu2 %vm14664_vm11, %v5224_v4  ;;  %v4973_v4 = vsel %vm2753_vm1, %v6474_v42, %v14670_v1  ;;  %vm14680_vm11 = vmmov %vm14574_vm0 }
 0x660   :  { %v5433_v52 = vpop.f32.mrf.mxu2  ;;  %4506 = vrot.lane.b32.xlu2 %v12968_v21, %s6832_s25 }
 0x661   :  { %v13091_v18 = vadd.f32 %v12926_v44, %v5433_v52  ;;  %v14671_v52 = vld [vmem:[#allocation157_spill] sm:$0xff] }
 0x662   :  { %v4581_v10 = vpop.permute.xlu0 %4580  ;;  %v5009_v47 = vsel %vm2790_vm2, %v4973_v4, %v14671_v52  ;;  %v6475_v52 = vld [vmem:[%s13848_s0 + $0x248] sm:$0xff] }
 0x663   :  { %5492 = vst.msk [vmem:[#allocation2 + $0x1f0] sm:$0xff] %vm2790_vm2, %v13091_v18  ;;  %v4211_v40 = vpop.permute.xlu1 %4210  ;;  %v4725_v5 = vpop.permute.xlu2 %4724  ;;  %v5139_v17 = vsel %vm2938_vm6, %v5103_v23, %v4581_v10 }
 0x664   :  { %v5175_v21 = vsel %vm2975_vm7, %v5139_v17, %v4725_v5  ;;  %v5045_v25 = vsel %vm2827_vm3, %v5009_v47, %v4211_v40 }
 0x668   :  { %4904 = vrot.lane.b32.xlu2 %v6698_v3, %s6835_s22 }
 0x66a   :  { %v5394_v60 = vpop.f32.mrf.mxu1  ;;  %v4355_v38 = vpop.permute.xlu0 %4354 }
 0x66b   :  { %v5395_v48 = vadd.f32 %v12926_v44, %v5394_v60  ;;  %v4869_v49 = vpop.permute.xlu1 %4868  ;;  %v4499_v61 = vpop.permute.xlu2 %4498  ;;  %v5081_v10 = vsel %vm2864_vm4, %v5045_v25, %v4355_v38 }
 0x66c   :  { %v5211_v13 = vsel %vm14667_vm14, %v5175_v21, %v4869_v49  ;;  %v5117_v5 = vsel %vm2901_vm5, %v5081_v10, %v4499_v61  ;;  %v14674_v61 = vld [vmem:[#allocation69_spill] sm:$0xff]  ;;  %vm14682_vm14 = vmmov %vm14565_vm12 }
 0x66d   :  { %5479 = vst.msk [vmem:[#allocation2 + $0x188] sm:$0xff] %vm2790_vm2, %v5395_v48  ;;  %v5555_v32 = vmul.f32 %v14668_v39, %v5395_v48  ;;  %6717 = vmatmul.msk.f32.gmra.mxu1 %vm14669_vm9, %v5211_v13  ;;  %v14673_v48 = vld [vmem:[#allocation30_spill] sm:$0xff]  ;;  %vm14683_vm9 = vmmov %vm14574_vm0 }
 0x66f   :  { %v5604_v62 = vsel %vm2790_vm2, %v5555_v32, 0.0  ;;  %v5672_v34 = vmul.f32 %v5555_v32, %v5555_v32 }
 0x670   :  { %v5605_v33 = vadd.f32 %v5604_v62, %v5603_v22 }
 0x671   :  { %v5720_v2 = vsel %vm2790_vm2, %v5672_v34, 0.0 }
 0x672   :  { %v5721_v6 = vadd.f32 %v5720_v2, %v5719_v35  ;;  %v4609_v7 = vpop.permute.xlu0 %4608  ;;  %v6461_v35 = vld [vmem:[%s13848_s0 + $0x1d8] sm:$0xff] }
 0x673   :  { %v4185_v9 = vpop.permute.xlu1 %4184  ;;  %v4753_v0 = vpop.permute.xlu2 %4752  ;;  %v5153_v22 = vsel %vm2938_vm6, %v5117_v5, %v4609_v7  ;;  %v4960_v49 = vsel %vm2753_vm1, %v6461_v35, %v14673_v48 }
 0x674   :  { %v5189_v23 = vsel %vm2975_vm7, %v5153_v22, %v4753_v0  ;;  %v4996_v13 = vsel %vm2790_vm2, %v4960_v49, %v14674_v61  ;;  %v14676_v22 = vld [vmem:[#allocation37_spill] sm:$0xff] }
 0x675   :  { %v5032_v32 = vsel %vm2827_vm3, %v4996_v13, %v4185_v9 }
 0x67a   :  { %v4329_v17 = vpop.permute.xlu0 %4328 }
 0x67b   :  { %v4897_v3 = vpop.permute.xlu1 %4896  ;;  %v4473_v60 = vpop.permute.xlu2 %4472  ;;  %v5068_v34 = vsel %vm2864_vm4, %v5032_v32, %v4329_v17 }
 0x67c   :  { %v5225_v21 = vsel %vm14672_vm13, %v5189_v23, %v4897_v3  ;;  %v5104_v4 = vsel %vm2901_vm5, %v5068_v34, %v4473_v60  ;;  %v4974_v23 = vsel %vm2753_vm1, %v6475_v52, %v14676_v22  ;;  %v14677_v3 = vld [vmem:[#allocation67_spill] sm:$0xff]  ;;  %v14679_v60 = vld [vmem:[#allocation82_spill] sm:$0xff]  ;;  %vm14686_vm13 = vmmov %vm14565_vm12 }
 0x67d   :  { %6731 = vmatmul.msk.f32.gmra.mxu2 %vm14574_vm0, %v5225_v21  ;;  %v5010_v21 = vsel %vm2790_vm2, %v4974_v23, %v14679_v60 }
 0x680   :  { %v5436_v40 = vpop.f32.mrf.mxu2 }
 0x681   :  { %v13135_v38 = vadd.f32 %v12926_v44, %v5436_v40 }
 0x682   :  { %v4583_v62 = vpop.permute.xlu0 %4582 }
 0x683   :  { %5493 = vst.msk [vmem:[#allocation2 + $0x1f8] sm:$0xff] %vm2790_vm2, %v13135_v38  ;;  %v4213_v42 = vpop.permute.xlu1 %4212  ;;  %v4727_v1 = vpop.permute.xlu2 %4726  ;;  %v5140_v2 = vsel %vm2938_vm6, %v5104_v4, %v4583_v62 }
 0x684   :  { %v5176_v25 = vsel %vm2975_vm7, %v5140_v2, %v4727_v1  ;;  %v5046_v35 = vsel %vm2827_vm3, %v5010_v21, %v4213_v42 }
 0x68a   :  { %v5397_v47 = vpop.f32.mrf.mxu1  ;;  %v4357_v10 = vpop.permute.xlu0 %4356 }
 0x68b   :  { %v5398_v9 = vadd.f32 %v12926_v44, %v5397_v47  ;;  %v4871_v7 = vpop.permute.xlu1 %4870  ;;  %v4501_v0 = vpop.permute.xlu2 %4500  ;;  %v5082_v61 = vsel %vm2864_vm4, %v5046_v35, %v4357_v10  ;;  %v14681_v47 = vld [vmem:[#allocation45_spill] sm:$0xff] }
 0x68c   :  { %v5212_v5 = vsel %vm14675_vm15, %v5176_v25, %v4871_v7  ;;  %v5118_v62 = vsel %vm2901_vm5, %v5082_v61, %v4501_v0  ;;  %v6477_v61 = vld [vmem:[%s13848_s0 + $0x258] sm:$0xff] }
 0x68d   :  { %5480 = vst.msk [vmem:[#allocation2 + $0x190] sm:$0xff] %vm2790_vm2, %v5398_v9  ;;  %v5556_v17 = vmul.f32 %v14677_v3, %v5398_v9  ;;  %6718 = vmatmul.msk.f32.gmra.mxu1 %vm14678_vm10, %v5212_v5 }
 0x68f   :  { %v5606_v40 = vsel %vm2790_vm2, %v5556_v17, 0.0  ;;  %v5673_v48 = vmul.f32 %v5556_v17, %v5556_v17 }
 0x690   :  { %v5607_v49 = vadd.f32 %v5606_v40, %v5605_v33  ;;  %v6476_v33 = vld [vmem:[%s13848_s0 + $0x250] sm:$0xff] }
 0x691   :  { %v5722_v13 = vsel %vm2790_vm2, %v5673_v48, 0.0 }
 0x692   :  { %v5723_v32 = vadd.f32 %v5722_v13, %v5721_v6  ;;  %v4611_v34 = vpop.permute.xlu0 %4610  ;;  %v4975_v6 = vsel %vm2753_vm1, %v6476_v33, %v14681_v47  ;;  %v14685_v33 = vld [vmem:[#allocation77_spill] sm:$0xff] }
 0x693   :  { %v4755_v1 = vpop.permute.xlu1 %4754  ;;  %v5154_v4 = vsel %vm2938_vm6, %v5118_v62, %v4611_v34  ;;  %v4899_v2 = vpop.permute.xlu2 %4898  ;;  %v5011_v7 = vsel %vm2790_vm2, %v4975_v6, %v11494_v31  ;;  %v14684_v62 = vld [vmem:[#allocation44_spill] sm:$0xff] }
 0x694   :  { %v5190_v52 = vsel %vm2975_vm7, %v5154_v4, %v4755_v1  ;;  %v4976_v34 = vsel %vm2753_vm1, %v6477_v61, %v14684_v62 }
 0x695   :  { %v5226_v42 = vsel %vm14565_vm12, %v5190_v52, %v4899_v2  ;;  %v5012_v52 = vsel %vm2790_vm2, %v4976_v34, %v11492_v30 }
 0x696   :  { %6732 = vmatmul.msk.f32.gmra.mxu2 %vm14680_vm11, %v5226_v42 }
 0x69a   :  { %v4215_v25 = vpop.permute.xlu0 %4214 }
 0x69b   :  { %v4359_v9 = vpop.permute.xlu1 %4358  ;;  %v4503_v10 = vpop.permute.xlu2 %4502  ;;  %v5047_v0 = vsel %vm2827_vm3, %v5011_v7, %v4215_v25 }
 0x69c   :  { %v5083_v5 = vsel %vm2864_vm4, %v5047_v0, %v4359_v9 }
 0x69d   :  { %v5119_v17 = vsel %vm2901_vm5, %v5083_v5, %v4503_v10 }
 0x6a0   :  { %v5439_v22 = vpop.f32.mrf.mxu2 }
 0x6a1   :  { %v13177_v23 = vadd.f32 %v12926_v44, %v5439_v22 }
 0x6a2   :  { %v4613_v60 = vpop.permute.xlu0 %4612 }
 0x6a3   :  { %5494 = vst.msk [vmem:[#allocation2 + $0x200] sm:$0xff] %vm2790_vm2, %v13177_v23  ;;  %v4757_v21 = vpop.permute.xlu1 %4756  ;;  %v5155_v35 = vsel %vm2938_vm6, %v5119_v17, %v4613_v60  ;;  %v4901_v40 = vpop.permute.xlu2 %4900 }
 0x6a4   :  { %v5191_v31 = vsel %vm2975_vm7, %v5155_v35, %v4757_v21 }
 0x6a5   :  { %v5227_v48 = vsel %vm14682_vm14, %v5191_v31, %v4901_v40  ;;  %v14687_v31 = vld [vmem:[#allocation42_spill] sm:$0xff] }
 0x6a6   :  { %6733 = vmatmul.msk.f32.gmra.mxu2 %vm14683_vm9, %v5227_v48 }
 0x6aa   :  { %v5400_v13 = vpop.f32.mrf.mxu1  ;;  %v4217_v4 = vpop.permute.xlu0 %4216 }
 0x6ab   :  { %v5401_v1 = vadd.f32 %v12926_v44, %v5400_v13  ;;  %v4361_v2 = vpop.permute.xlu1 %4360  ;;  %v4505_v42 = vpop.permute.xlu2 %4504  ;;  %v5048_v6 = vsel %vm2827_vm3, %v5012_v52, %v4217_v4  ;;  %v14688_v13 = vld [vmem:[#allocation179_spill] sm:$0xff] }
 0x6ac   :  { %v5084_v10 = vsel %vm2864_vm4, %v5048_v6, %v4361_v2 }
 0x6ad   :  { %5481 = vst.msk [vmem:[#allocation2 + $0x198] sm:$0xff] %vm2790_vm2, %v5401_v1  ;;  %v5557_v47 = vmul.f32 %v14685_v33, %v5401_v1  ;;  %v5120_v22 = vsel %vm2901_vm5, %v5084_v10, %v4505_v42  ;;  %v6073_v33 = vld [vmem:[#allocation2 + $0x168] sm:$0xff] }
 0x6af   :  { %v5608_v25 = vsel %vm2790_vm2, %v5557_v47, 0.0  ;;  %v5674_v9 = vmul.f32 %v5557_v47, %v5557_v47 }
 0x6b0   :  { %v5609_v7 = vadd.f32 %v5608_v25, %v5607_v49  ;;  %v6478_v49 = vld [vmem:[%s13848_s0 + $0x260] sm:$0xff] }
 0x6b1   :  { %v5724_v0 = vsel %vm2790_vm2, %v5674_v9, 0.0 }
 0x6b2   :  { %v5725_v5 = vadd.f32 %v5724_v0, %v5723_v32  ;;  %v4615_v17 = vpop.permute.xlu0 %4614  ;;  %v4977_v32 = vsel %vm2753_vm1, %v6478_v49, %v14687_v31  ;;  %vm14689_vm1 = vmmov %vm14565_vm12 }
 0x6b3   :  { %v4759_v30 = vpop.permute.xlu1 %4758  ;;  %v5156_v60 = vsel %vm2938_vm6, %v5120_v22, %v4615_v17  ;;  %v4903_v21 = vpop.permute.xlu2 %4902  ;;  %v5013_v62 = vsel %vm2790_vm2, %v4977_v32, %v14688_v13 }
 0x6b4   :  { %v5192_v35 = vsel %vm2975_vm7, %v5156_v60, %v4759_v30  ;;  %v14691_v30 = vld [vmem:[#allocation151_spill] sm:$0xff] }
 0x6b5   :  { %v5228_v40 = vsel %vm14686_vm13, %v5192_v35, %v4903_v21 }
 0x6b6   :  { %6734 = vmatmul.msk.f32.gmra.mxu2 %vm14574_vm0, %v5228_v40 }
 0x6ba   :  { %v4219_v48 = vpop.permute.xlu0 %4218 }
 0x6bb   :  { %v4363_v61 = vpop.permute.xlu1 %4362  ;;  %v4507_v34 = vpop.permute.xlu2 %4506  ;;  %v5049_v1 = vsel %vm2827_vm3, %v5013_v62, %v4219_v48  ;;  %vm14690_vm3 = vmmov %vm14574_vm0 }
 0x6bc   :  { %v5085_v4 = vsel %vm2864_vm4, %v5049_v1, %v4363_v61 }
 0x6bd   :  { %v5121_v42 = vsel %vm2901_vm5, %v5085_v4, %v4507_v34 }
 0x6c0   :  { %v5442_v2 = vpop.f32.mrf.mxu2 }
 0x6c1   :  { %v13215_v52 = vadd.f32 %v12926_v44, %v5442_v2  ;;  %v14693_v2 = vld [vmem:[#allocation46_spill] sm:$0xff] }
 0x6c2   :  { %v4617_v47 = vpop.permute.xlu0 %4616 }
 0x6c3   :  { %5495 = vst.msk [vmem:[#allocation2 + $0x208] sm:$0xff] %vm2790_vm2, %v13215_v52  ;;  %v4761_v6 = vpop.permute.xlu1 %4760  ;;  %v5157_v25 = vsel %vm2938_vm6, %v5121_v42, %v4617_v47  ;;  %v4905_v9 = vpop.permute.xlu2 %4904  ;;  %v5561_v42 = vmul.f32 %v14693_v2, %v12457_v14  ;;  %v6064_v2 = vld [vmem:[#allocation2 + $0x120] sm:$0xff] }
 0x6c4   :  { %v5193_v10 = vsel %vm2975_vm7, %v5157_v25, %v4761_v6  ;;  %v14694_v25 = vld [vmem:[#allocation47_spill] sm:$0xff]  ;;  %vm6322_vm7 = vcmask 1040384  }
 0x6c5   :  { %v5229_v0 = vsel %vm14689_vm1, %v5193_v10, %v4905_v9  ;;  %v5562_v9 = vmul.f32 %v14694_v25, %v12551_v16  ;;  %v14697_v16 = vld [vmem:[#allocation56_spill] sm:$0xff] }
 0x6c6   :  { %6735 = vmatmul.msk.f32.gmra.mxu2 %vm14690_vm3, %v5229_v0  ;;  %v14695_v0 = vld [vmem:[#allocation38_spill] sm:$0xff] }
 0x6ca   :  { %v5403_v22 = vpop.f32.mrf.mxu1 }
 0x6cb   :  { %v5404_v17 = vadd.f32 %v12926_v44, %v5403_v22 }
 0x6cd   :  { %5482 = vst.msk [vmem:[#allocation2 + $0x1a0] sm:$0xff] %vm2790_vm2, %v5404_v17  ;;  %v5558_v60 = vmul.f32 %v14691_v30, %v5404_v17 }
 0x6cf   :  { %v5610_v21 = vsel %vm2790_vm2, %v5558_v60, 0.0  ;;  %v5675_v35 = vmul.f32 %v5558_v60, %v5558_v60  ;;  %v5678_v60 = vmul.f32 %v5561_v42, %v5561_v42 }
 0x6d0   :  { %v5611_v40 = vadd.f32 %v5610_v21, %v5609_v7  ;;  %v14692_v7 = vld [vmem:[#allocation187_spill] sm:$0xff]  ;;  %v14696_v21 = vld [vmem:[#allocation52_spill] sm:$0xff] }
 0x6d1   :  { %v5726_v49 = vsel %vm2790_vm2, %v5675_v35, 0.0  ;;  %v5563_v35 = vmul.f32 %v14696_v21, %v12645_v58  ;;  %v5732_v58 = vsel %vm2790_vm2, %v5678_v60, 0.0  ;;  %v5618_v21 = vsel %vm2790_vm2, %v5562_v9, 0.0 }
 0x6d2   :  { %v5727_v31 = vadd.f32 %v5726_v49, %v5725_v5 }
 0x6e0   :  { %v5445_v32 = vpop.f32.mrf.mxu2 }
 0x6e1   :  { %v13230_v48 = vadd.f32 %v12926_v44, %v5445_v32 }
 0x6e3   :  { %5496 = vst.msk [vmem:[#allocation2 + $0x210] sm:$0xff] %vm2790_vm2, %v13230_v48 }
 0x6ea   :  { %v5406_v61 = vpop.f32.mrf.mxu1 }
 0x6eb   :  { %v5407_v13 = vadd.f32 %v12926_v44, %v5406_v61 }
 0x6ed   :  { %5483 = vst.msk [vmem:[#allocation2 + $0x1a8] sm:$0xff] %vm2790_vm2, %v5407_v13  ;;  %v5559_v5 = vmul.f32 %v14692_v7, %v5407_v13  ;;  %v5616_v13 = vsel %vm2790_vm2, %v5561_v42, 0.0  ;;  %v6066_v7 = vld [vmem:[#allocation2 + $0x130] sm:$0xff] }
 0x6ef   :  { %v5676_v1 = vmul.f32 %v5559_v5, %v5559_v5  ;;  %v5612_v47 = vsel %vm2790_vm2, %v5559_v5, 0.0  ;;  %v5564_v5 = vmul.f32 %v14697_v16, %v12739_v53  ;;  %v14699_v53 = vld [vmem:[#allocation75_spill] sm:$0xff] }
 0x6f0   :  { %v5613_v17 = vadd.f32 %v5612_v47, %v5611_v40 }
 0x6f1   :  { %v5728_v10 = vsel %vm2790_vm2, %v5676_v1, 0.0  ;;  %v5622_v60 = vsel %vm2790_vm2, %v5564_v5, 0.0 }
 0x6f2   :  { %v5729_v32 = vadd.f32 %v5728_v10, %v5727_v31 }
 0x700   :  { %v5448_v62 = vpop.f32.mrf.mxu2 }
 0x701   :  { %v13237_v34 = vadd.f32 %v12926_v44, %v5448_v62  ;;  %v5679_v62 = vmul.f32 %v5562_v9, %v5562_v9  ;;  %v14700_v9 = vld [vmem:[#allocation131_spill] sm:$0xff] }
 0x703   :  { %5497 = vst.msk [vmem:[#allocation2 + $0x218] sm:$0xff] %vm2790_vm2, %v13237_v34  ;;  %v5734_v42 = vsel %vm2790_vm2, %v5679_v62, 0.0 }
 0x70a   :  { %v5409_v4 = vpop.f32.mrf.mxu1 }
 0x70b   :  { %v5410_v6 = vadd.f32 %v12926_v44, %v5409_v4  ;;  %v14698_v4 = vld [vmem:[#allocation65_spill] sm:$0xff] }
 0x70c   :  { %v5565_v40 = vmul.f32 %v14698_v4, %v12830_v20  ;;  %v5833_v4 = vld [vmem:[#allocation2 + $0x110] sm:$0xff] }
 0x70d   :  { %5484 = vst.msk [vmem:[#allocation2 + $0x1b0] sm:$0xff] %vm2790_vm2, %v5410_v6  ;;  %v5560_v22 = vmul.f32 %v14695_v0, %v5410_v6  ;;  %v6065_v0 = vld [vmem:[#allocation2 + $0x128] sm:$0xff] }
 0x70e   :  { %v5682_v16 = vmul.f32 %v5565_v40, %v5565_v40 }
 0x70f   :  { %v5614_v14 = vsel %vm2790_vm2, %v5560_v22, 0.0  ;;  %v5677_v49 = vmul.f32 %v5560_v22, %v5560_v22  ;;  %v5680_v22 = vmul.f32 %v5563_v35, %v5563_v35 }
 0x710   :  { %v5615_v61 = vadd.f32 %v5614_v14, %v5613_v17  ;;  %v5620_v17 = vsel %vm2790_vm2, %v5563_v35, 0.0  ;;  %v5681_v14 = vmul.f32 %v5564_v5, %v5564_v5  ;;  %v5624_v35 = vsel %vm2790_vm2, %v5565_v40, 0.0 }
 0x711   :  { %v5730_v1 = vsel %vm2790_vm2, %v5677_v49, 0.0  ;;  %v5566_v49 = vmul.f32 %v14699_v53, %v12929_v50  ;;  %v5832_v53 = vld [vmem:[#allocation2 + $0x108] sm:$0xff] }
 0x712   :  { %v5617_v47 = vadd.f32 %v5616_v13, %v5615_v61  ;;  %v5731_v6 = vadd.f32 %v5730_v1, %v5729_v32  ;;  %v5736_v32 = vsel %vm2790_vm2, %v5680_v22, 0.0  ;;  %v5567_v61 = vmul.f32 %v14700_v9, %v13021_v28  ;;  %v5831_v9 = vld [vmem:[#allocation2 + $0x100] sm:$0xff] }
 0x713   :  { %v5738_v62 = vsel %vm2790_vm2, %v5681_v14, 0.0  ;;  %v5683_v1 = vmul.f32 %v5566_v49, %v5566_v49  ;;  %v5626_v5 = vsel %vm2790_vm2, %v5566_v49, 0.0  ;;  %v5569_v28 = vmul.f32 %v11553_v63, %v13135_v38  ;;  %v5830_v63 = vld [vmem:[#allocation2 + $0xf8] sm:$0xff] }
 0x714   :  { %v5619_v31 = vadd.f32 %v5618_v21, %v5617_v47  ;;  %v5733_v10 = vadd.f32 %v5732_v58, %v5731_v6  ;;  %v14701_v47 = vld [vmem:[#allocation81_spill] sm:$0xff]  ;;  %v5740_v6 = vsel %vm2790_vm2, %v5682_v16, 0.0  ;;  %v5628_v14 = vsel %vm2790_vm2, %v5567_v61, 0.0 }
 0x715   :  { %v5568_v50 = vmul.f32 %v14701_v47, %v13091_v18  ;;  %v5742_v40 = vsel %vm2790_vm2, %v5683_v1, 0.0  ;;  %v5570_v16 = vmul.f32 %v11600_v27, %v13177_v23  ;;  %v5572_v23 = vmul.f32 %v11750_v11, %v13230_v48  ;;  %v5829_v27 = vld [vmem:[#allocation2 + $0xf0] sm:$0xff] }
 0x716   :  { %v5621_v25 = vadd.f32 %v5620_v17, %v5619_v31  ;;  %v5735_v20 = vadd.f32 %v5734_v42, %v5733_v10  ;;  %v5684_v10 = vmul.f32 %v5567_v61, %v5567_v61 }
 0x717   :  { %v5685_v18 = vmul.f32 %v5568_v50, %v5568_v50  ;;  %v5630_v38 = vsel %vm2790_vm2, %v5568_v50, 0.0  ;;  %v5687_v1 = vmul.f32 %v5570_v16, %v5570_v16  ;;  %v5634_v50 = vsel %vm2790_vm2, %v5570_v16, 0.0 }
 0x718   :  { %v5623_v21 = vadd.f32 %v5622_v60, %v5621_v25  ;;  %v5737_v13 = vadd.f32 %v5736_v32, %v5735_v20  ;;  %v5744_v32 = vsel %vm2790_vm2, %v5684_v10, 0.0  ;;  %v5686_v60 = vmul.f32 %v5569_v28, %v5569_v28 }
 0x719   :  { %v5451_v22 = vpop.f32.mrf.mxu2  ;;  %v5746_v61 = vsel %vm2790_vm2, %v5685_v18, 0.0  ;;  %v5638_v18 = vsel %vm2790_vm2, %v5572_v23, 0.0 }
 0x71a   :  { %v5625_v58 = vadd.f32 %v5624_v35, %v5623_v21  ;;  %v5739_v31 = vadd.f32 %v5738_v62, %v5737_v13  ;;  %v5452_v25 = vadd.f32 %v12926_v44, %v5451_v22  ;;  %v5571_v21 = vmul.f32 %v11607_v56, %v13215_v52 }
 0x71b   :  { %v5632_v35 = vsel %vm2790_vm2, %v5569_v28, 0.0  ;;  %v5573_v52 = vmul.f32 %v11832_v41, %v13237_v34  ;;  %v5827_v41 = vld [vmem:[#allocation2 + $0xe0] sm:$0xff] }
 0x71c   :  { %v5627_v42 = vadd.f32 %v5626_v5, %v5625_v58  ;;  %v5741_v17 = vadd.f32 %v5740_v6, %v5739_v31  ;;  %5498 = vst.msk [vmem:[#allocation2 + $0x220] sm:$0xff] %vm2790_vm2, %v5452_v25  ;;  %v5748_v31 = vsel %vm2790_vm2, %v5686_v60, 0.0  ;;  %v5688_v22 = vmul.f32 %v5571_v21, %v5571_v21 }
 0x71d   :  { %v5636_v28 = vsel %vm2790_vm2, %v5571_v21, 0.0  ;;  %v5640_v34 = vsel %vm2790_vm2, %v5573_v52, 0.0 }
 0x71e   :  { %v5743_v20 = vadd.f32 %v5742_v40, %v5741_v17  ;;  %v5629_v49 = vadd.f32 %v5628_v14, %v5627_v42  ;;  %v5750_v42 = vsel %vm2790_vm2, %v5687_v1, 0.0  ;;  %v5689_v17 = vmul.f32 %v5572_v23, %v5572_v23 }
 0x71f   :  { %v5752_v48 = vsel %vm2790_vm2, %v5688_v22, 0.0  ;;  %v5574_v23 = vmul.f32 %v11885_v46, %v5452_v25  ;;  %v5825_v46 = vld [vmem:[#allocation2 + $0xd0] sm:$0xff] }
 0x720   :  { %v5631_v13 = vadd.f32 %v5630_v38, %v5629_v49  ;;  %v5745_v62 = vadd.f32 %v5744_v32, %v5743_v20  ;;  %v5690_v20 = vmul.f32 %v5573_v52, %v5573_v52  ;;  %v5754_v32 = vsel %vm2790_vm2, %v5689_v17, 0.0 }
 0x721   :  { %v5642_v22 = vsel %vm2790_vm2, %v5574_v23, 0.0 }
 0x722   :  { %v5633_v6 = vadd.f32 %v5632_v35, %v5631_v13  ;;  %v5747_v58 = vadd.f32 %v5746_v61, %v5745_v62  ;;  %v5756_v62 = vsel %vm2790_vm2, %v5690_v20, 0.0 }
 0x724   :  { %v5635_v5 = vadd.f32 %v5634_v50, %v5633_v6  ;;  %v5749_v10 = vadd.f32 %v5748_v31, %v5747_v58  ;;  %v5691_v31 = vmul.f32 %v5574_v23, %v5574_v23 }
 0x726   :  { %v5637_v40 = vadd.f32 %v5636_v28, %v5635_v5  ;;  %v5751_v14 = vadd.f32 %v5750_v42, %v5749_v10  ;;  %v5758_v28 = vsel %vm2790_vm2, %v5691_v31, 0.0 }
 0x728   :  { %v5639_v49 = vadd.f32 %v5638_v18, %v5637_v40  ;;  %v5753_v16 = vadd.f32 %v5752_v48, %v5751_v14 }
 0x729   :  { %v5454_v13 = vpop.f32.mrf.mxu2 }
 0x72a   :  { %v5641_v38 = vadd.f32 %v5640_v34, %v5639_v49  ;;  %v5755_v60 = vadd.f32 %v5754_v32, %v5753_v16  ;;  %v5455_v21 = vadd.f32 %v12926_v44, %v5454_v13 }
 0x72c   :  { %v5757_v61 = vadd.f32 %v5756_v62, %v5755_v60  ;;  %5499 = vst.msk [vmem:[#allocation2 + $0x228] sm:$0xff] %vm2790_vm2, %v5455_v21  ;;  %v5575_v6 = vmul.f32 %v11894_v54, %v5455_v21  ;;  %v5643_v10 = vadd.f32 %v5642_v22, %v5641_v38 }
 0x72e   :  { %v5692_v50 = vmul.f32 %v5575_v6, %v5575_v6  ;;  %v5644_v52 = vsel %vm2790_vm2, %v5575_v6, 0.0  ;;  %v5759_v14 = vadd.f32 %v5758_v28, %v5757_v61 }
 0x72f   :  { %v5645_v48 = vadd.f32 %v5644_v52, %v5643_v10  ;;  %v5578_v52 = vld [vmem:[#allocation3] sm:$0x1] }
 0x730   :  { %v5760_v17 = vsel %vm2790_vm2, %v5692_v50, 0.0 }
 0x731   :  { %v5761_v49 = vadd.f32 %v5760_v17, %v5759_v14 }
 0x739   :  { %v5457_v35 = vpop.f32.mrf.mxu2 }
 0x73a   :  { %v5458_v1 = vadd.f32 %v12926_v44, %v5457_v35 }
 0x73c   :  { %5500 = vst.msk [vmem:[#allocation2 + $0x230] sm:$0xff] %vm2790_vm2, %v5458_v1  ;;  %v5576_v58 = vmul.f32 %v11939_v36, %v5458_v1  ;;  %v5824_v36 = vld [vmem:[#allocation2 + $0xc8] sm:$0xff] }
 0x73e   :  { %v5693_v5 = vmul.f32 %v5576_v58, %v5576_v58  ;;  %v5646_v40 = vsel %vm2790_vm2, %v5576_v58, 0.0 }
 0x73f   :  { %v5647_v16 = vadd.f32 %v5646_v40, %v5645_v48 }
 0x740   :  { %v5762_v18 = vsel %vm2790_vm2, %v5693_v5, 0.0 }
 0x741   :  { %v5763_v38 = vadd.f32 %v5762_v18, %v5761_v49 }
 0x749   :  { %v5460_v42 = vpop.f32.mrf.mxu2 }
 0x74a   :  { %v5461_v25 = vadd.f32 %v12926_v44, %v5460_v42  ;;  %v5658_v42 = vld [vmem:[#allocation4] sm:$0x1] }
 0x74c   :  { %5501 = vst.msk [vmem:[#allocation2 + $0x238] sm:$0xff] %vm2790_vm2, %v5461_v25  ;;  %v5577_v20 = vmul.f32 %v11955_v37, %v5461_v25  ;;  %v5822_v37 = vld [vmem:[#allocation2 + $0xb8] sm:$0xff] }
 0x74e   :  { %v5648_v32 = vsel %vm2790_vm2, %v5577_v20, 0.0  ;;  %v5694_v34 = vmul.f32 %v5577_v20, %v5577_v20 }
 0x74f   :  { %v5649_v60 = vadd.f32 %v5648_v32, %v5647_v16 }
 0x750   :  { %v5764_v13 = vsel %vm2790_vm2, %v5694_v34, 0.0 }
 0x751   :  { %v5650_v62 = vrot.slane %v5649_v60, 4  ;;  %v5765_v21 = vadd.f32 %v5764_v13, %v5763_v38  ;;  %v5783_v13 = vld [vmem:[%s13851_s3] sm:$0x1] }
 0x753   :  { %v5651_v44 = vadd.f32 %v5650_v62, %v5649_v60  ;;  %v5766_v61 = vrot.slane %v5765_v21, 4 }
 0x755   :  { %v5652_v35 = vrot.slane %v5651_v44, 2  ;;  %v5767_v1 = vadd.f32 %v5766_v61, %v5765_v21  ;;  %v5796_v61 = vld [vmem:[%s13852_s4] sm:$0x1] }
 0x757   :  { %v5653_v23 = vadd.f32 %v5652_v35, %v5651_v44  ;;  %v5768_v6 = vrot.slane %v5767_v1, 2 }
 0x759   :  { %v5654_v58 = vrot.slane %v5653_v23, 1  ;;  %v5769_v31 = vadd.f32 %v5768_v6, %v5767_v1  ;;  %v5800_v6 = vld [vmem:[#allocation2 + $0x8] sm:$0xff] }
 0x75b   :  { %v5655_v50 = vadd.f32 %v5654_v58, %v5653_v23  ;;  %v5770_v22 = vrot.slane %v5769_v31, 1  ;;  %v5799_v23 = vld [vmem:[#allocation2] sm:$0xff]  ;;  %v5801_v58 = vld [vmem:[#allocation2 + $0x10] sm:$0xff] }
 0x75d   :  { %v5656_v5 = vadd.f32 %v5655_v50, %v5578_v52  ;;  %v5771_v10 = vadd.f32 %v5770_v22, %v5769_v31  ;;  %v5802_v31 = vld [vmem:[#allocation2 + $0x18] sm:$0xff]  ;;  %v5803_v22 = vld [vmem:[#allocation2 + $0x20] sm:$0xff]  ;;  %v5804_v52 = vld [vmem:[#allocation2 + $0x28] sm:$0xff] }
 0x75f   :  { %5657 = vst.msk [vmem:[#allocation3] sm:$0x1] %vm31_vm8, %v5656_v5  ;;  %v5772_v28 = vadd.f32 %v5771_v10, %v5658_v42  ;;  %v5805_v5 = vld [vmem:[#allocation2 + $0x30] sm:$0xff] }
 0x761   :  { %5773 = vst.msk [vmem:[#allocation4] sm:$0x1] %vm31_vm8, %v5772_v28  ;;  %v5806_v28 = vld [vmem:[#allocation2 + $0x38] sm:$0xff] }
 0x766   :  { %v5777_v17 = vld [vmem:[#allocation3] sm:$0x1] }
 0x767   :  { %v5778_v40 = vmul.f32 0.001953125, %v5777_v17  ;;  %v5807_v17 = vld [vmem:[#allocation2 + $0x40] sm:$0xff] }
 0x768   :  { %v5779_v25 = vld [vmem:[#allocation4] sm:$0x1] }
 0x769   :  { %v5780_v14 = vmul.f32 0.001953125, %v5779_v25  ;;  %v5781_v48 = vmul.f32 %v5778_v40, %v5778_v40 }
 0x76b   :  { %v5782_v18 = vsub.f32 %v5780_v14, %v5781_v48 }
 0x76d   :  { %v5784_v20 = vadd.f32 1e-05, %v5782_v18 }
 0x76f   :  { %6760 = vrsqrt.f32 %v5784_v20  ;;  %vm5791_vm5 = vweird.f32 %v5784_v20 }
 0x775   :  { %v6761_v49 = vpop.eup %6760 }
 0x776   :  { %v5786_v16 = vmul.f32 %v6761_v49, %v5784_v20  ;;  %vm5792_vm4 = vweird.f32 %v6761_v49  ;;  %v5817_v20 = vld [vmem:[#allocation2 + $0x90] sm:$0xff] }
 0x777   :  { %vm5793_vm6 = vmor %vm5791_vm5, %vm5792_vm4 }
 0x778   :  { %v5787_v32 = vmul.f32 %v6761_v49, %v5786_v16  ;;  %v5810_v16 = vld [vmem:[#allocation2 + $0x58] sm:$0xff] }
 0x77a   :  { %v5788_v34 = vmul.f32 0.5, %v5787_v32  ;;  %v5811_v32 = vld [vmem:[#allocation2 + $0x60] sm:$0xff] }
 0x77c   :  { %v5789_v38 = vsub.f32 1.5, %v5788_v34 }
 0x77e   :  { %v5790_v60 = vmul.f32 %v6761_v49, %v5789_v38 }
 0x780   :  { %v5794_v62 = vsel %vm5793_vm6, %v6761_v49, %v5790_v60  ;;  %v5809_v49 = vld [vmem:[#allocation2 + $0x50] sm:$0xff] }
 0x781   :  { %v5795_v21 = vmul.f32 %v5794_v62, %v5783_v13  ;;  %v5812_v62 = vld [vmem:[#allocation2 + $0x68] sm:$0xff] }
 0x783   :  { %v5797_v44 = vmul.f32 %v5795_v21, %v5778_v40  ;;  %v13329_v1 = vperm.slane %v5795_v21, 0  ;;  %v5808_v40 = vld [vmem:[#allocation2 + $0x48] sm:$0xff]  ;;  %v5813_v21 = vld [vmem:[#allocation2 + $0x70] sm:$0xff] }
 0x785   :  { %v5798_v35 = vsub.f32 %v5796_v61, %v5797_v44  ;;  %v5838_v10 = vmul.f32 %v13329_v1, %v5799_v23  ;;  %v5839_v42 = vmul.f32 %v13329_v1, %v5800_v6  ;;  %v5840_v25 = vmul.f32 %v13329_v1, %v5801_v58  ;;  %v5814_v44 = vld [vmem:[#allocation2 + $0x78] sm:$0xff] }
 0x786   :  { %v5841_v14 = vmul.f32 %v13329_v1, %v5802_v31  ;;  %v13338_v48 = vmul.f32 %v13329_v1, %v5803_v22  ;;  %v13341_v18 = vmul.f32 %v13329_v1, %v5804_v52  ;;  %v13344_v34 = vmul.f32 %v13329_v1, %v5805_v5  ;;  %v5818_v58 = vld [vmem:[#allocation2 + $0x98] sm:$0xff]  ;;  %v5815_v31 = vld [vmem:[#allocation2 + $0x80] sm:$0xff]  ;;  %v5816_v22 = vld [vmem:[#allocation2 + $0x88] sm:$0xff] }
 0x787   :  { %v13331_v50 = vperm.slane %v5798_v35, 0  ;;  %v13347_v38 = vmul.f32 %v13329_v1, %v5806_v28  ;;  %v13350_v60 = vmul.f32 %v13329_v1, %v5807_v17  ;;  %v13353_v13 = vmul.f32 %v13329_v1, %v5808_v40  ;;  %v5819_v40 = vld [vmem:[#allocation2 + $0xa0] sm:$0xff] }
 0x788   :  { %v13356_v61 = vmul.f32 %v13329_v1, %v5809_v49  ;;  %v13359_v35 = vmul.f32 %v13329_v1, %v5810_v16  ;;  %v13362_v23 = vmul.f32 %v13329_v1, %v5811_v32  ;;  %v13366_v52 = vmul.f32 %v13329_v1, %v5812_v62  ;;  %v5820_v49 = vld [vmem:[#allocation2 + $0xa8] sm:$0xff]  ;;  %v5821_v16 = vld [vmem:[#allocation2 + $0xb0] sm:$0xff] }
 0x789   :  { %v5877_v6 = vadd.f32 %v13331_v50, %v5838_v10  ;;  %v13369_v5 = vmul.f32 %v13329_v1, %v5813_v21  ;;  %v13372_v28 = vmul.f32 %v13329_v1, %v5814_v44  ;;  %v5878_v17 = vadd.f32 %v13331_v50, %v5839_v42  ;;  %v5823_v44 = vld [vmem:[#allocation2 + $0xc0] sm:$0xff] }
 0x78a   :  { %v13376_v32 = vmul.f32 %v13329_v1, %v5815_v31  ;;  %v13379_v10 = vmul.f32 %v13329_v1, %v5816_v22  ;;  %v13382_v62 = vmul.f32 %v13329_v1, %v5817_v20  ;;  %v13385_v21 = vmul.f32 %v13329_v1, %v5818_v58  ;;  %v5826_v20 = vld [vmem:[#allocation2 + $0xd8] sm:$0xff] }
 0x78b   :  { %v13388_v42 = vmul.f32 %v13329_v1, %v5819_v40  ;;  %v13391_v54 = vmul.f32 %v13329_v1, %v5820_v49  ;;  %v13394_v31 = vmul.f32 %v13329_v1, %v5821_v16  ;;  %v5879_v22 = vadd.f32 %v13331_v50, %v5840_v25  ;;  %v5828_v49 = vld [vmem:[#allocation2 + $0xe8] sm:$0xff] }
 0x78c   :  { %v13398_v58 = vmul.f32 %v13329_v1, %v5822_v37  ;;  %v13401_v11 = vmul.f32 %v13329_v1, %v5823_v44  ;;  %v13404_v40 = vmul.f32 %v13329_v1, %v5824_v36  ;;  %v5913_v56 = vmax.f32 %v5877_v6, 0.0 }
 0x78d   :  { %v13407_v16 = vmul.f32 %v13329_v1, %v5825_v46  ;;  %v13410_v25 = vmul.f32 %v13329_v1, %v5826_v20  ;;  %v5880_v47 = vadd.f32 %v13331_v50, %v5841_v14  ;;  %v5914_v37 = vmax.f32 %v5878_v17, 0.0  ;;  %v5834_v20 = vld [vmem:[#allocation2 + $0x118] sm:$0xff] }
 0x78e   :  { %v13414_v44 = vmul.f32 %v13329_v1, %v5827_v41  ;;  %v13417_v36 = vmul.f32 %v13329_v1, %v5828_v49  ;;  %v13420_v6 = vmul.f32 %v13329_v1, %v5829_v27  ;;  %v13423_v46 = vmul.f32 %v13329_v1, %v5830_v63 }
 0x78f   :  { %v13426_v14 = vmul.f32 %v13329_v1, %v5831_v9  ;;  %v13429_v17 = vmul.f32 %v13329_v1, %v5832_v53  ;;  %v5881_v41 = vadd.f32 %v13331_v50, %v13338_v48  ;;  %v5915_v49 = vmax.f32 %v5879_v22, 0.0  ;;  %v6068_v53 = vld [vmem:[#allocation2 + $0x140] sm:$0xff] }
 0x790   :  { %14702 = vst [vmem:[#allocation98_spill] sm:$0xff] %v13423_v46  ;;  %v13434_v27 = vmul.f32 %v13329_v1, %v5833_v4  ;;  %v13437_v63 = vmul.f32 %v13329_v1, %v5834_v20  ;;  %v13440_v46 = vmul.f32 %v6064_v2, %v13329_v1  ;;  %v5949_v9 = vmul.f32 %v14588_v45, %v5913_v56  ;;  %v6072_v45 = vld [vmem:[#allocation2 + $0x160] sm:$0xff] }
 0x791   :  { %14703 = vst [vmem:[#allocation99_spill] sm:$0xff] %v13426_v14  ;;  %v6067_v14 = vld [vmem:[#allocation2 + $0x138] sm:$0xff]  ;;  %v13444_v30 = vmul.f32 %v6065_v0, %v13329_v1  ;;  %v5882_v48 = vadd.f32 %v13331_v50, %v13341_v18  ;;  %v5916_v22 = vmax.f32 %v5880_v47, 0.0  ;;  %v5950_v4 = vmul.f32 %v14589_v55, %v5914_v37 }
 0x792   :  { %14704 = vst [vmem:[#allocation100_spill] sm:$0xff] %v13429_v17  ;;  %v6069_v17 = vld [vmem:[#allocation2 + $0x148] sm:$0xff]  ;;  %v13450_v20 = vmul.f32 %v6066_v7, %v13329_v1  ;;  %v13453_v2 = vmul.f32 %v6067_v14, %v13329_v1  ;;  %v13456_v56 = vmul.f32 %v6068_v53, %v13329_v1  ;;  %v6071_v0 = vld [vmem:[#allocation2 + $0x158] sm:$0xff]  ;;  %v5883_v18 = vadd.f32 %v13331_v50, %v13344_v34 }
 0x793   :  { %14705 = vst [vmem:[#allocation101_spill] sm:$0xff] %v13434_v27  ;;  %v6070_v27 = vld [vmem:[#allocation2 + $0x150] sm:$0xff]  ;;  %v5917_v7 = vmax.f32 %v5881_v41, 0.0  ;;  %v5951_v37 = vmul.f32 %v14591_v57, %v5915_v49  ;;  %v13468_v14 = vmul.f32 %v6071_v0, %v13329_v1  ;;  %v13471_v53 = vmul.f32 %v6072_v45, %v13329_v1  ;;  %v6079_v57 = vld [vmem:[#allocation2 + $0x198] sm:$0xff] }
 0x794   :  { %14706 = vst [vmem:[#allocation106_spill] sm:$0xff] %v13437_v63  ;;  %v13459_v63 = vmul.f32 %v6069_v17, %v13329_v1  ;;  %v13462_v47 = vmul.f32 %v6070_v27, %v13329_v1  ;;  %v13474_v17 = vmul.f32 %v6073_v33, %v13329_v1  ;;  %v5985_v55 = vsel %vm2790_vm2, %v5949_v9, 0.0  ;;  %v6075_v27 = vld [vmem:[#allocation2 + $0x178] sm:$0xff] }
 0x795   :  { %14709 = vst [vmem:[#allocation107_spill] sm:$0xff] %v13468_v14  ;;  %v5884_v34 = vadd.f32 %v13331_v50, %v13347_v38  ;;  %v5918_v41 = vmax.f32 %v5882_v48, 0.0  ;;  %v5952_v49 = vmul.f32 %v14594_v15, %v5916_v22  ;;  %v5986_v0 = vsel %vm2790_vm2, %v5950_v4, 0.0 }
 0x796   :  { %14707 = vst [vmem:[#allocation118_spill] sm:$0xff] %v13459_v63  ;;  %v6074_v63 = vld [vmem:[#allocation2 + $0x170] sm:$0xff]  ;;  %v13485_v45 = vmul.f32 %v6075_v27, %v13329_v1  ;;  %v5987_v9 = vadd.f32 %v5986_v0, %v5985_v55  ;;  %v5885_v38 = vadd.f32 %v13331_v50, %v13350_v60  ;;  %v5919_v48 = vmax.f32 %v5883_v18, 0.0  ;;  %v6080_v0 = vld [vmem:[#allocation2 + $0x1a0] sm:$0xff] }
 0x797   :  { %14708 = vst [vmem:[#allocation105_spill] sm:$0xff] %v13462_v47  ;;  %v6076_v47 = vld [vmem:[#allocation2 + $0x180] sm:$0xff]  ;;  %v13482_v14 = vmul.f32 %v6074_v63, %v13329_v1  ;;  %v5953_v22 = vmul.f32 %v14599_v29, %v5917_v7  ;;  %v5988_v4 = vsel %vm2790_vm2, %v5951_v37, 0.0  ;;  %v5886_v60 = vadd.f32 %v13331_v50, %v13353_v13 }
 0x798   :  { %14710 = vst [vmem:[#allocation133_spill] sm:$0xff] %v13471_v53  ;;  %v13488_v33 = vmul.f32 %v6076_v47, %v13329_v1  ;;  %v6078_v53 = vld [vmem:[#allocation2 + $0x190] sm:$0xff]  ;;  %v13501_v47 = vmul.f32 %v6079_v57, %v13329_v1  ;;  %v5989_v55 = vadd.f32 %v5988_v4, %v5987_v9  ;;  %v5920_v18 = vmax.f32 %v5884_v34, 0.0  ;;  %v6083_v4 = vld [vmem:[#allocation2 + $0x1b8] sm:$0xff] }
 0x799   :  { %14711 = vst [vmem:[#allocation143_spill] sm:$0xff] %v13474_v17  ;;  %v6077_v17 = vld [vmem:[#allocation2 + $0x188] sm:$0xff]  ;;  %v13498_v27 = vmul.f32 %v6078_v53, %v13329_v1  ;;  %v5954_v7 = vmul.f32 %v14604_v19, %v5918_v41  ;;  %v5990_v37 = vsel %vm2790_vm2, %v5952_v49, 0.0  ;;  %v5887_v13 = vadd.f32 %v13331_v50, %v13356_v61 }
 0x79a   :  { %14712 = vst [vmem:[#allocation108_spill] sm:$0xff] %v13485_v45  ;;  %v13495_v63 = vmul.f32 %v6077_v17, %v13329_v1  ;;  %v6082_v45 = vld [vmem:[#allocation2 + $0x1b0] sm:$0xff]  ;;  %v13508_v17 = vmul.f32 %v6080_v0, %v13329_v1  ;;  %v5991_v9 = vadd.f32 %v5990_v37, %v5989_v55  ;;  %v5921_v34 = vmax.f32 %v5885_v38, 0.0 }
 0x79b   :  { %14713 = vst [vmem:[#allocation159_spill] sm:$0xff] %v13488_v33  ;;  %v6081_v33 = vld [vmem:[#allocation2 + $0x1a8] sm:$0xff]  ;;  %v13514_v57 = vmul.f32 %v6082_v45, %v13329_v1  ;;  %v5955_v41 = vmul.f32 %v14612_v24, %v5919_v48  ;;  %v5992_v49 = vsel %vm2790_vm2, %v5953_v22, 0.0  ;;  %v13521_v0 = vmul.f32 %v6083_v4, %v13329_v1  ;;  %v6086_v37 = vld [vmem:[#allocation2 + $0x1d0] sm:$0xff] }
 0x79c   :  { %14714 = vst [vmem:[#allocation169_spill] sm:$0xff] %v13498_v27  ;;  %v13511_v53 = vmul.f32 %v6081_v33, %v13329_v1  ;;  %v6085_v27 = vld [vmem:[#allocation2 + $0x1c8] sm:$0xff]  ;;  %v5993_v55 = vadd.f32 %v5992_v49, %v5991_v9  ;;  %v5888_v61 = vadd.f32 %v13331_v50, %v13359_v35  ;;  %v5922_v38 = vmax.f32 %v5886_v60, 0.0 }
 0x79d   :  { %14715 = vst [vmem:[#allocation109_spill] sm:$0xff] %v13501_v47  ;;  %v6084_v47 = vld [vmem:[#allocation2 + $0x1c0] sm:$0xff]  ;;  %v13527_v45 = vmul.f32 %v6085_v27, %v13329_v1  ;;  %v5956_v48 = vmul.f32 %v14620_v12, %v5920_v18  ;;  %v5994_v22 = vsel %vm2790_vm2, %v5954_v7, 0.0  ;;  %v13534_v4 = vmul.f32 %v6086_v37, %v13329_v1 }
 0x79e   :  { %14716 = vst [vmem:[#allocation110_spill] sm:$0xff] %v13514_v57  ;;  %v13524_v33 = vmul.f32 %v6084_v47, %v13329_v1  ;;  %v6087_v57 = vld [vmem:[#allocation2 + $0x1d8] sm:$0xff]  ;;  %v5889_v27 = vadd.f32 %v13331_v50, %v13362_v23  ;;  %v5995_v9 = vadd.f32 %v5994_v22, %v5993_v55  ;;  %v5890_v49 = vadd.f32 %v13331_v50, %v13366_v52 }
 0x79f   :  { %14717 = vst [vmem:[#allocation183_spill] sm:$0xff] %v13527_v45  ;;  %v13537_v47 = vmul.f32 %v6087_v57, %v13329_v1  ;;  %v5923_v45 = vmax.f32 %v5887_v13, 0.0  ;;  %v5957_v35 = vmul.f32 %v14628_v59, %v5921_v34  ;;  %v5996_v60 = vsel %vm2790_vm2, %v5955_v41, 0.0 }
 0x7a0   :  { %v5891_v18 = vadd.f32 %v13331_v50, %v13369_v5  ;;  %v5892_v7 = vadd.f32 %v13331_v50, %v13372_v28  ;;  %v5893_v57 = vadd.f32 %v13331_v50, %v13376_v32  ;;  %v5997_v37 = vadd.f32 %v5996_v60, %v5995_v9 }
 0x7a1   :  { %14718 = vst [vmem:[#allocation192_spill] sm:$0xff] %v13537_v47  ;;  %v5894_v23 = vadd.f32 %v13331_v50, %v13379_v10  ;;  %v5924_v55 = vmax.f32 %v5888_v61, 0.0  ;;  %v5958_v52 = vmul.f32 %v14636_v51, %v5922_v38  ;;  %v5998_v13 = vsel %vm2790_vm2, %v5956_v48, 0.0 }
 0x7a2   :  { %v13557_v34 = vadd.f32 %v13331_v50, %v13382_v62  ;;  %v13561_v5 = vadd.f32 %v13331_v50, %v13385_v21  ;;  %v13565_v28 = vadd.f32 %v13331_v50, %v13388_v42  ;;  %v5999_v32 = vadd.f32 %v5998_v13, %v5997_v37 }
 0x7a3   :  { %v13569_v10 = vadd.f32 %v13331_v50, %v13391_v54  ;;  %v5925_v41 = vmax.f32 %v5889_v27, 0.0  ;;  %v5959_v61 = vmul.f32 %v14644_v8, %v5923_v45  ;;  %v6000_v38 = vsel %vm2790_vm2, %v5957_v35, 0.0 }
 0x7a4   :  { %v13575_v62 = vadd.f32 %v13331_v50, %v13394_v31  ;;  %v13579_v21 = vadd.f32 %v13331_v50, %v13398_v58  ;;  %v13583_v42 = vadd.f32 %v13331_v50, %v13401_v11  ;;  %v6001_v48 = vadd.f32 %v6000_v38, %v5999_v32 }
 0x7a5   :  { %v13587_v54 = vadd.f32 %v13331_v50, %v13404_v40  ;;  %v5926_v45 = vmax.f32 %v5890_v49, 0.0  ;;  %v5960_v22 = vmul.f32 %v14652_v43, %v5924_v55  ;;  %v6002_v27 = vsel %vm2790_vm2, %v5958_v52, 0.0 }
 0x7a6   :  { %v13593_v31 = vadd.f32 %v13331_v50, %v13407_v16  ;;  %v13597_v58 = vadd.f32 %v13331_v50, %v13410_v25  ;;  %v13601_v11 = vadd.f32 %v13331_v50, %v13414_v44  ;;  %v6003_v9 = vadd.f32 %v6002_v27, %v6001_v48 }
 0x7a7   :  { %v13605_v40 = vadd.f32 %v13331_v50, %v13417_v36  ;;  %v5927_v49 = vmax.f32 %v5891_v18, 0.0  ;;  %v5961_v35 = vmul.f32 %v14660_v26, %v5925_v41  ;;  %v6004_v60 = vsel %vm2790_vm2, %v5959_v61, 0.0 }
 0x7a8   :  { %v13611_v16 = vadd.f32 %v13331_v50, %v13420_v6  ;;  %v5928_v25 = vmax.f32 %v5892_v7, 0.0  ;;  %v5929_v37 = vmax.f32 %v5893_v57, 0.0  ;;  %v6005_v55 = vadd.f32 %v6004_v60, %v6003_v9  ;;  %v14727_v9 = vld [vmem:[#allocation62_spill] sm:$0xff] }
 0x7a9   :  { %v5962_v44 = vmul.f32 %v14668_v39, %v5926_v45  ;;  %v6006_v52 = vsel %vm2790_vm2, %v5960_v22, 0.0  ;;  %v6136_v36 = vadd.f32 %v13440_v46, %v13331_v50  ;;  %v6137_v18 = vadd.f32 %v13444_v30, %v13331_v50  ;;  %v14719_v30 = vld [vmem:[#allocation77_spill] sm:$0xff] }
 0x7aa   :  { %v5930_v13 = vmax.f32 %v5894_v23, 0.0  ;;  %v5931_v32 = vmax.f32 %v13557_v34, 0.0  ;;  %v5932_v41 = vmax.f32 %v13561_v5, 0.0  ;;  %v6007_v6 = vadd.f32 %v6006_v52, %v6005_v55 }
 0x7ab   :  { %v5933_v7 = vmax.f32 %v13565_v28, 0.0  ;;  %v5963_v57 = vmul.f32 %v14677_v3, %v5927_v49  ;;  %v6008_v61 = vsel %vm2790_vm2, %v5961_v35, 0.0  ;;  %v6138_v38 = vadd.f32 %v13450_v20, %v13331_v50 }
 0x7ac   :  { %v5934_v46 = vmax.f32 %v13569_v10, 0.0  ;;  %v5935_v48 = vmax.f32 %v13575_v62, 0.0  ;;  %v5964_v23 = vmul.f32 %v14719_v30, %v5928_v25  ;;  %v6009_v45 = vadd.f32 %v6008_v61, %v6007_v6  ;;  %v14720_v10 = vld [vmem:[#allocation151_spill] sm:$0xff]  ;;  %v14723_v61 = vld [vmem:[#allocation9_spill] sm:$0xff] }
 0x7ad   :  { %v6010_v34 = vsel %vm2790_vm2, %v5962_v44, 0.0  ;;  %v6139_v5 = vadd.f32 %v13453_v2, %v13331_v50  ;;  %v6172_v28 = vmax.f32 %v6136_v36, 0.0  ;;  %v6173_v22 = vmax.f32 %v6137_v18, 0.0  ;;  %v14721_v2 = vld [vmem:[#allocation187_spill] sm:$0xff]  ;;  %v14722_v36 = vld [vmem:[#allocation118_spill] sm:$0xff] }
 0x7ae   :  { %v5936_v27 = vmax.f32 %v13579_v21, 0.0  ;;  %v6011_v49 = vadd.f32 %v6010_v34, %v6009_v45  ;;  %v5965_v35 = vmul.f32 %v14720_v10, %v5929_v37  ;;  %v6012_v62 = vsel %vm2790_vm2, %v5963_v57, 0.0  ;;  %v14724_v37 = vld [vmem:[#allocation11_spill] sm:$0xff] }
 0x7af   :  { %v6140_v60 = vadd.f32 %v13456_v56, %v13331_v50  ;;  %v6174_v25 = vmax.f32 %v6138_v38, 0.0  ;;  %v5966_v44 = vmul.f32 %v14721_v2, %v5930_v13  ;;  %v6014_v21 = vsel %vm2790_vm2, %v5964_v23, 0.0  ;;  %v14725_v38 = vld [vmem:[#allocation38_spill] sm:$0xff] }
 0x7b0   :  { %v6013_v52 = vadd.f32 %v6012_v62, %v6011_v49  ;;  %v6141_v18 = vadd.f32 %v14722_v36, %v13331_v50  ;;  %v6175_v6 = vmax.f32 %v6139_v5, 0.0  ;;  %v6208_v45 = vmul.f32 %v14723_v61, %v6172_v28  ;;  %v14726_v49 = vld [vmem:[#allocation105_spill] sm:$0xff]  ;;  %v14728_v5 = vld [vmem:[#allocation46_spill] sm:$0xff]  ;;  %v14729_v61 = vld [vmem:[#allocation107_spill] sm:$0xff] }
 0x7b1   :  { %v6209_v34 = vmul.f32 %v14724_v37, %v6173_v22  ;;  %v5940_v57 = vmax.f32 %v13597_v58, 0.0  ;;  %v5967_v20 = vmul.f32 %v14725_v38, %v5931_v32  ;;  %v6016_v13 = vsel %vm2790_vm2, %v5965_v35, 0.0 }
 0x7b2   :  { %v6015_v55 = vadd.f32 %v6014_v21, %v6013_v52  ;;  %v6142_v23 = vadd.f32 %v14726_v49, %v13331_v50  ;;  %v6176_v62 = vmax.f32 %v6140_v60, 0.0  ;;  %v6210_v36 = vmul.f32 %v14727_v9, %v6174_v25  ;;  %v14730_v21 = vld [vmem:[#allocation47_spill] sm:$0xff] }
 0x7b3   :  { %v5968_v47 = vmul.f32 %v14728_v5, %v5932_v41  ;;  %v6018_v22 = vsel %vm2790_vm2, %v5966_v44, 0.0  ;;  %v6143_v37 = vadd.f32 %v14729_v61, %v13331_v50  ;;  %v6177_v56 = vmax.f32 %v6141_v18, 0.0  ;;  %v14731_v41 = vld [vmem:[#allocation133_spill] sm:$0xff]  ;;  %v14732_v61 = vld [vmem:[#allocation52_spill] sm:$0xff] }
 0x7b4   :  { %v6017_v28 = vadd.f32 %v6016_v13, %v6015_v55  ;;  %v6211_v32 = vmul.f32 %v14594_v15, %v6175_v6  ;;  %v6244_v52 = vsel %vm2790_vm2, %v6208_v45, 0.0  ;;  %v6245_v35 = vsel %vm2790_vm2, %v6209_v34, 0.0 }
 0x7b5   :  { %v5969_v49 = vmul.f32 %v14730_v21, %v5933_v7  ;;  %v6020_v9 = vsel %vm2790_vm2, %v5967_v20, 0.0  ;;  %v6246_v25 = vadd.f32 %v6245_v35, %v6244_v52  ;;  %v6144_v55 = vadd.f32 %v14731_v41, %v13331_v50  ;;  %v14733_v7 = vld [vmem:[#allocation143_spill] sm:$0xff]  ;;  %v14734_v35 = vld [vmem:[#allocation56_spill] sm:$0xff] }
 0x7b6   :  { %v6019_v60 = vadd.f32 %v6018_v22, %v6017_v28  ;;  %v6178_v44 = vmax.f32 %v6142_v23, 0.0  ;;  %v6212_v13 = vmul.f32 %v14599_v29, %v6176_v62  ;;  %v6247_v18 = vsel %vm2790_vm2, %v6210_v36, 0.0 }
 0x7b7   :  { %v5970_v15 = vmul.f32 %v14732_v61, %v5934_v46  ;;  %v6022_v45 = vsel %vm2790_vm2, %v5968_v47, 0.0  ;;  %v6248_v34 = vadd.f32 %v6247_v18, %v6246_v25  ;;  %v6145_v28 = vadd.f32 %v14733_v7, %v13331_v50  ;;  %v6324_v46 = vld [vmem:[%s13853_s5] sm:$0xff] }
 0x7b8   :  { %v6021_v6 = vadd.f32 %v6020_v9, %v6019_v60  ;;  %v6179_v22 = vmax.f32 %v6143_v37, 0.0  ;;  %v6213_v20 = vmul.f32 %v14604_v19, %v6177_v56  ;;  %v6249_v52 = vsel %vm2790_vm2, %v6211_v32, 0.0  ;;  %6347 = vmatpush.msrb.mxu2 %v6324_v46  ;;  %v14735_v56 = vld [vmem:[#allocation65_spill] sm:$0xff]  ;;  %v14736_v9 = vld [vmem:[#allocation108_spill] sm:$0xff] }
 0x7b9   :  { %v5971_v23 = vmul.f32 %v14734_v35, %v5935_v48  ;;  %v6024_v29 = vsel %vm2790_vm2, %v5969_v49, 0.0  ;;  %v6250_v62 = vadd.f32 %v6249_v52, %v6248_v34  ;;  %v6146_v47 = vadd.f32 %v13482_v14, %v13331_v50  ;;  %v14739_v34 = vld [vmem:[#allocation159_spill] sm:$0xff] }
 0x7ba   :  { %v6023_v41 = vadd.f32 %v6022_v45, %v6021_v6  ;;  %v6180_v36 = vmax.f32 %v6144_v55, 0.0  ;;  %v6214_v37 = vmul.f32 %v14612_v24, %v6178_v44  ;;  %v6251_v19 = vsel %vm2790_vm2, %v6212_v13, 0.0  ;;  %v14738_v24 = vld [vmem:[#allocation75_spill] sm:$0xff] }
 0x7bb   :  { %v5972_v32 = vmul.f32 %v14735_v56, %v5936_v27  ;;  %v6026_v60 = vsel %vm2790_vm2, %v5970_v15, 0.0  ;;  %v6252_v49 = vadd.f32 %v6251_v19, %v6250_v62  ;;  %v6147_v25 = vadd.f32 %v14736_v9, %v13331_v50 }
 0x7bc   :  { %v6025_v48 = vadd.f32 %v6024_v29, %v6023_v41  ;;  %v6181_v18 = vmax.f32 %v6145_v28, 0.0  ;;  %v6215_v6 = vmul.f32 %v14620_v12, %v6179_v22  ;;  %v6253_v14 = vsel %vm2790_vm2, %v6213_v20, 0.0  ;;  %v14741_v22 = vld [vmem:[#allocation131_spill] sm:$0xff] }
 0x7bd   :  { %v14737_v55 = vmax.f32 %v13583_v42, 0.0  ;;  %v6028_v45 = vsel %vm2790_vm2, %v5971_v23, 0.0  ;;  %v6254_v27 = vadd.f32 %v6253_v14, %v6252_v49  ;;  %v6148_v15 = vadd.f32 %v14739_v34, %v13331_v50  ;;  %v14746_v14 = vld [vmem:[#allocation109_spill] sm:$0xff] }
 0x7be   :  { %v6027_v13 = vadd.f32 %v6026_v60, %v6025_v48  ;;  %v6182_v7 = vmax.f32 %v6146_v47, 0.0  ;;  %v6216_v52 = vmul.f32 %v14628_v59, %v6180_v36  ;;  %v6255_v28 = vsel %vm2790_vm2, %v6214_v37, 0.0  ;;  %v14743_v36 = vld [vmem:[#allocation81_spill] sm:$0xff] }
 0x7bf   :  { %v5973_v44 = vmul.f32 %v14738_v24, %v14737_v55  ;;  %v14740_v12 = vmax.f32 %v13587_v54, 0.0  ;;  %v6030_v42 = vsel %vm2790_vm2, %v5972_v32, 0.0  ;;  %v6256_v29 = vadd.f32 %v6255_v28, %v6254_v27  ;;  %v14744_v60 = vld [vmem:[#allocation169_spill] sm:$0xff] }
 0x7c0   :  { %v6029_v41 = vadd.f32 %v6028_v45, %v6027_v13  ;;  %v6149_v23 = vadd.f32 %v13495_v63, %v13331_v50  ;;  %v6183_v62 = vmax.f32 %v6147_v25, 0.0  ;;  %v6217_v46 = vmul.f32 %v14636_v51, %v6181_v18  ;;  %v14745_v51 = vld [vmem:[#allocation87_spill] sm:$0xff] }
 0x7c1   :  { %v5974_v20 = vmul.f32 %v14741_v22, %v14740_v12  ;;  %v6257_v47 = vsel %vm2790_vm2, %v6215_v6, 0.0  ;;  %v14742_v59 = vmax.f32 %v13593_v31, 0.0  ;;  %v6032_v54 = vsel %vm2790_vm2, %v5973_v44, 0.0  ;;  %v14748_v12 = vld [vmem:[#allocation88_spill] sm:$0xff] }
 0x7c2   :  { %v6031_v19 = vadd.f32 %v6030_v42, %v6029_v41  ;;  %v6258_v48 = vadd.f32 %v6257_v47, %v6256_v29  ;;  %v6150_v32 = vadd.f32 %v14744_v60, %v13331_v50  ;;  %v6184_v49 = vmax.f32 %v6148_v15, 0.0  ;;  %v6088_v42 = vld [vmem:[#allocation2 + $0x1e0] sm:$0xff] }
 0x7c3   :  { %v5975_v37 = vmul.f32 %v14743_v36, %v14742_v59  ;;  %v6218_v9 = vmul.f32 %v14644_v8, %v6182_v7  ;;  %v6259_v63 = vsel %vm2790_vm2, %v6216_v52, 0.0  ;;  %v5976_v25 = vmul.f32 %v14745_v51, %v5940_v57 }
 0x7c4   :  { %v6033_v18 = vadd.f32 %v6032_v54, %v6031_v19  ;;  %v6034_v31 = vsel %vm2790_vm2, %v5974_v20, 0.0  ;;  %v6260_v6 = vadd.f32 %v6259_v63, %v6258_v48  ;;  %v6151_v55 = vadd.f32 %v14746_v14, %v13331_v50  ;;  %v6089_v63 = vld [vmem:[#allocation2 + $0x1e8] sm:$0xff]  ;;  %v14752_v14 = vld [vmem:[#allocation99_spill] sm:$0xff] }
 0x7c5   :  { %v6185_v44 = vmax.f32 %v6149_v23, 0.0  ;;  %v6219_v13 = vmul.f32 %v14652_v43, %v6183_v62  ;;  %v6261_v45 = vsel %vm2790_vm2, %v6217_v46, 0.0  ;;  %v5942_v8 = vmax.f32 %v13605_v40, 0.0  ;;  %v14749_v46 = vld [vmem:[#allocation98_spill] sm:$0xff] }
 0x7c6   :  { %v6035_v27 = vadd.f32 %v6034_v31, %v6033_v18  ;;  %v6036_v34 = vsel %vm2790_vm2, %v5975_v37, 0.0  ;;  %v6262_v58 = vadd.f32 %v6261_v45, %v6260_v6  ;;  %v6152_v57 = vadd.f32 %v13508_v17, %v13331_v50  ;;  %v14750_v37 = vld [vmem:[#allocation110_spill] sm:$0xff] }
 0x7c7   :  { %v6186_v15 = vmax.f32 %v6150_v32, 0.0  ;;  %v6220_v7 = vmul.f32 %v14660_v26, %v6184_v49  ;;  %v6263_v52 = vsel %vm2790_vm2, %v6218_v9, 0.0  ;;  %v14747_v28 = vmax.f32 %v13601_v11, 0.0 }
 0x7c8   :  { %v6037_v20 = vadd.f32 %v6036_v34, %v6035_v27  ;;  %v6038_v41 = vsel %vm2790_vm2, %v5976_v25, 0.0  ;;  %v6264_v40 = vadd.f32 %v6263_v52, %v6262_v58  ;;  %v6153_v29 = vadd.f32 %v13511_v53, %v13331_v50  ;;  %v14753_v34 = vld [vmem:[#allocation90_spill] sm:$0xff] }
 0x7c9   :  { %v5977_v43 = vmul.f32 %v14748_v12, %v14747_v28  ;;  %v6187_v23 = vmax.f32 %v6151_v55, 0.0  ;;  %v6221_v17 = vmul.f32 %v14668_v39, %v6185_v44  ;;  %v6265_v62 = vsel %vm2790_vm2, %v6219_v13, 0.0  ;;  %v14751_v39 = vld [vmem:[#allocation89_spill] sm:$0xff] }
 0x7ca   :  { %v6124_v26 = vmul.f32 %v6088_v42, %v13329_v1  ;;  %v5908_v11 = vadd.f32 %v13331_v50, %v14749_v46  ;;  %v6039_v47 = vadd.f32 %v6038_v41, %v6037_v20  ;;  %v6266_v59 = vadd.f32 %v6265_v62, %v6264_v40 }
 0x7cb   :  { %v6154_v19 = vadd.f32 %v14750_v37, %v13331_v50  ;;  %v6188_v54 = vmax.f32 %v6152_v57, 0.0  ;;  %v6222_v48 = vmul.f32 %v14677_v3, %v6186_v15  ;;  %v6267_v53 = vsel %vm2790_vm2, %v6220_v7, 0.0  ;;  %v6090_v15 = vld [vmem:[#allocation2 + $0x1f0] sm:$0xff]  ;;  %v14754_v7 = vld [vmem:[#allocation183_spill] sm:$0xff] }
 0x7cc   :  { %v5943_v60 = vmax.f32 %v13611_v16, 0.0  ;;  %v5978_v32 = vmul.f32 %v14751_v39, %v5942_v8  ;;  %v6040_v49 = vsel %vm2790_vm2, %v5977_v43, 0.0  ;;  %v6268_v9 = vadd.f32 %v6267_v53, %v6266_v59  ;;  %v6091_v37 = vld [vmem:[#allocation2 + $0x1f8] sm:$0xff] }
 0x7cd   :  { %v6155_v25 = vadd.f32 %v13521_v0, %v13331_v50  ;;  %v6189_v18 = vmax.f32 %v6153_v29, 0.0  ;;  %v6223_v31 = vmul.f32 %v14719_v30, %v6187_v23  ;;  %v6269_v6 = vsel %vm2790_vm2, %v6221_v17, 0.0 }
 0x7ce   :  { %v6125_v3 = vmul.f32 %v6089_v63, %v13329_v1  ;;  %v5909_v55 = vadd.f32 %v13331_v50, %v14752_v14  ;;  %v6041_v16 = vadd.f32 %v6040_v49, %v6039_v47  ;;  %v6270_v44 = vadd.f32 %v6269_v6, %v6268_v9  ;;  %v14759_v14 = vld [vmem:[#allocation92_spill] sm:$0xff] }
 0x7cf   :  { %v6156_v13 = vadd.f32 %v13524_v33, %v13331_v50  ;;  %v6190_v45 = vmax.f32 %v6154_v19, 0.0  ;;  %v6224_v8 = vmul.f32 %v14720_v10, %v6188_v54  ;;  %v6271_v0 = vsel %vm2790_vm2, %v6222_v48, 0.0  ;;  %v14755_v10 = vld [vmem:[#allocation100_spill] sm:$0xff] }
 0x7d0   :  { %v5944_v27 = vmax.f32 %v5908_v11, 0.0  ;;  %v5979_v30 = vmul.f32 %v14753_v34, %v5943_v60  ;;  %v6042_v58 = vsel %vm2790_vm2, %v5978_v32, 0.0  ;;  %v6272_v57 = vadd.f32 %v6271_v0, %v6270_v44  ;;  %v14756_v11 = vld [vmem:[#allocation91_spill] sm:$0xff]  ;;  %v14757_v19 = vld [vmem:[#allocation192_spill] sm:$0xff] }
 0x7d1   :  { %v6157_v52 = vadd.f32 %v14754_v7, %v13331_v50  ;;  %v6191_v28 = vmax.f32 %v6155_v25, 0.0  ;;  %v6225_v43 = vmul.f32 %v14721_v2, %v6189_v18  ;;  %v6273_v33 = vsel %vm2790_vm2, %v6223_v31, 0.0  ;;  %v6092_v44 = vld [vmem:[#allocation2 + $0x200] sm:$0xff] }
 0x7d2   :  { %v6126_v20 = vmul.f32 %v6090_v15, %v13329_v1  ;;  %v5910_v41 = vadd.f32 %v13331_v50, %v14755_v10  ;;  %v6043_v40 = vadd.f32 %v6042_v58, %v6041_v16  ;;  %v6274_v42 = vadd.f32 %v6273_v33, %v6272_v57  ;;  %v6093_v10 = vld [vmem:[#allocation2 + $0x208] sm:$0xff] }
 0x7d3   :  { %v6158_v29 = vadd.f32 %v13534_v4, %v13331_v50  ;;  %v6192_v23 = vmax.f32 %v6156_v13, 0.0  ;;  %v6226_v17 = vmul.f32 %v14725_v38, %v6190_v45  ;;  %v6275_v62 = vsel %vm2790_vm2, %v6224_v8, 0.0  ;;  %v14758_v38 = vld [vmem:[#allocation101_spill] sm:$0xff] }
 0x7d4   :  { %v5945_v46 = vmax.f32 %v5909_v55, 0.0  ;;  %v5980_v2 = vmul.f32 %v14756_v11, %v5944_v27  ;;  %v6044_v47 = vsel %vm2790_vm2, %v5979_v30, 0.0  ;;  %v6276_v59 = vadd.f32 %v6275_v62, %v6274_v42  ;;  %v14760_v27 = vld [vmem:[#allocation106_spill] sm:$0xff] }
 0x7d5   :  { %v6159_v54 = vadd.f32 %v14757_v19, %v13331_v50  ;;  %v6193_v48 = vmax.f32 %v6157_v52, 0.0  ;;  %v6227_v53 = vmul.f32 %v14728_v5, %v6191_v28  ;;  %v6277_v4 = vsel %vm2790_vm2, %v6225_v43, 0.0  ;;  %v14761_v28 = vld [vmem:[#allocation94_spill] sm:$0xff] }
 0x7d6   :  { %v6127_v60 = vmul.f32 %v6091_v37, %v13329_v1  ;;  %v5911_v32 = vadd.f32 %v13331_v50, %v14758_v38  ;;  %v6045_v49 = vadd.f32 %v6044_v47, %v6043_v40  ;;  %v6278_v9 = vadd.f32 %v6277_v4, %v6276_v59  ;;  %v6094_v62 = vld [vmem:[#allocation2 + $0x210] sm:$0xff]  ;;  %v14762_v37 = vld [vmem:[#allocation95_spill] sm:$0xff] }
 0x7d7   :  { %v6160_v63 = vadd.f32 %v6124_v26, %v13331_v50  ;;  %v6194_v25 = vmax.f32 %v6158_v29, 0.0  ;;  %v6228_v18 = vmul.f32 %v14730_v21, %v6192_v23  ;;  %v6279_v31 = vsel %vm2790_vm2, %v6226_v17, 0.0 }
 0x7d8   :  { %v5946_v6 = vmax.f32 %v5910_v41, 0.0  ;;  %v5981_v55 = vmul.f32 %v14759_v14, %v5945_v46  ;;  %v6046_v5 = vsel %vm2790_vm2, %v5980_v2, 0.0  ;;  %v6280_v16 = vadd.f32 %v6279_v31, %v6278_v9 }
 0x7d9   :  { %v6161_v13 = vadd.f32 %v6125_v3, %v13331_v50  ;;  %v6195_v45 = vmax.f32 %v6159_v54, 0.0  ;;  %v6229_v8 = vmul.f32 %v14732_v61, %v6193_v48  ;;  %v6281_v0 = vsel %vm2790_vm2, %v6227_v53, 0.0  ;;  %v6095_v53 = vld [vmem:[#allocation2 + $0x218] sm:$0xff] }
 0x7da   :  { %v6128_v26 = vmul.f32 %v6092_v44, %v13329_v1  ;;  %v5912_v21 = vadd.f32 %v13331_v50, %v14760_v27  ;;  %v6047_v30 = vadd.f32 %v6046_v5, %v6045_v49  ;;  %v6282_v58 = vadd.f32 %v6281_v0, %v6280_v16 }
 0x7db   :  { %v6162_v57 = vadd.f32 %v6126_v20, %v13331_v50  ;;  %v6196_v15 = vmax.f32 %v6160_v63, 0.0  ;;  %v6230_v7 = vmul.f32 %v14734_v35, %v6194_v25  ;;  %v6283_v52 = vsel %vm2790_vm2, %v6228_v18, 0.0  ;;  %v6096_v63 = vld [vmem:[#allocation2 + $0x220] sm:$0xff] }
 0x7dc   :  { %v5947_v3 = vmax.f32 %v5911_v32, 0.0  ;;  %v5982_v43 = vmul.f32 %v14761_v28, %v5946_v6  ;;  %v6048_v61 = vsel %vm2790_vm2, %v5981_v55, 0.0  ;;  %v6284_v33 = vadd.f32 %v6283_v52, %v6282_v58  ;;  %v14763_v55 = vld [vmem:[#allocation97_spill] sm:$0xff] }
 0x7dd   :  { %v6197_v41 = vmax.f32 %v6161_v13, 0.0  ;;  %v6231_v40 = vmul.f32 %v14735_v56, %v6195_v45  ;;  %v6285_v42 = vsel %vm2790_vm2, %v6229_v8, 0.0  ;;  %v6163_v29 = vadd.f32 %v6127_v60, %v13331_v50  ;;  %v6097_v13 = vld [vmem:[#allocation2 + $0x228] sm:$0xff] }
 0x7de   :  { %v5948_v20 = vmax.f32 %v5912_v21, 0.0  ;;  %v6049_v23 = vadd.f32 %v6048_v61, %v6047_v30  ;;  %v6129_v35 = vmul.f32 %v6093_v10, %v13329_v1  ;;  %v6286_v17 = vadd.f32 %v6285_v42, %v6284_v33  ;;  %v6098_v30 = vld [vmem:[#allocation2 + $0x230] sm:$0xff] }
 0x7df   :  { %v6164_v46 = vadd.f32 %v6128_v26, %v13331_v50  ;;  %v6198_v2 = vmax.f32 %v6162_v57, 0.0  ;;  %v6232_v47 = vmul.f32 %v14738_v24, %v6196_v15  ;;  %v6287_v59 = vsel %vm2790_vm2, %v6230_v7, 0.0 }
 0x7e0   :  { %v5983_v19 = vmul.f32 %v14762_v37, %v5947_v3  ;;  %v6050_v56 = vsel %vm2790_vm2, %v5982_v43, 0.0  ;;  %v6130_v54 = vmul.f32 %v6094_v62, %v13329_v1  ;;  %v6288_v48 = vadd.f32 %v6287_v59, %v6286_v17 }
 0x7e1   :  { %v6165_v4 = vadd.f32 %v6129_v35, %v13331_v50  ;;  %v6199_v60 = vmax.f32 %v6163_v29, 0.0  ;;  %v6233_v38 = vmul.f32 %v14741_v22, %v6197_v41  ;;  %v6289_v32 = vsel %vm2790_vm2, %v6231_v40, 0.0 }
 0x7e2   :  { %v6051_v49 = vadd.f32 %v6050_v56, %v6049_v23  ;;  %v6131_v24 = vmul.f32 %v6095_v53, %v13329_v1  ;;  %v6290_v9 = vadd.f32 %v6289_v32, %v6288_v48  ;;  %v6166_v25 = vadd.f32 %v6130_v54, %v13331_v50 }
 0x7e3   :  { %v6200_v18 = vmax.f32 %v6164_v46, 0.0  ;;  %v6234_v31 = vmul.f32 %v14743_v36, %v6198_v2  ;;  %v6291_v6 = vsel %vm2790_vm2, %v6232_v47, 0.0  ;;  %v5984_v5 = vmul.f32 %v14763_v55, %v5948_v20 }
 0x7e4   :  { %v6052_v16 = vsel %vm2790_vm2, %v5983_v19, 0.0  ;;  %v6132_v22 = vmul.f32 %v6096_v63, %v13329_v1  ;;  %v6292_v44 = vadd.f32 %v6291_v6, %v6290_v9  ;;  %v6167_v45 = vadd.f32 %v6131_v24, %v13331_v50 }
 0x7e5   :  { %v6201_v8 = vmax.f32 %v6165_v4, 0.0  ;;  %v6235_v0 = vmul.f32 %v14745_v51, %v6199_v60  ;;  %v6293_v26 = vsel %vm2790_vm2, %v6233_v38, 0.0  ;;  %v6053_v27 = vadd.f32 %v6052_v16, %v6051_v49  ;;  %v6099_v51 = vld [vmem:[#allocation2 + $0x238] sm:$0xff] }
 0x7e6   :  { %v6133_v36 = vmul.f32 %v6097_v13, %v13329_v1  ;;  %v6294_v21 = vadd.f32 %v6293_v26, %v6292_v44  ;;  %v6168_v58 = vadd.f32 %v6132_v22, %v13331_v50  ;;  %v6202_v57 = vmax.f32 %v6166_v25, 0.0 }
 0x7e7   :  { %v6236_v15 = vmul.f32 %v14748_v12, %v6200_v18  ;;  %v6295_v7 = vsel %vm2790_vm2, %v6234_v31, 0.0  ;;  %v6054_v52 = vsel %vm2790_vm2, %v5984_v5, 0.0  ;;  %v6134_v3 = vmul.f32 %v6098_v30, %v13329_v1 }
 0x7e8   :  { %v6296_v43 = vadd.f32 %v6295_v7, %v6294_v21  ;;  %v6169_v61 = vadd.f32 %v6133_v36, %v13331_v50  ;;  %v6203_v33 = vmax.f32 %v6167_v45, 0.0  ;;  %v6237_v10 = vmul.f32 %v14751_v39, %v6201_v8 }
 0x7e9   :  { %v6297_v41 = vsel %vm2790_vm2, %v6235_v0, 0.0  ;;  %v6055_v40 = vadd.f32 %v6054_v52, %v6053_v27  ;;  %v6135_v42 = vmul.f32 %v6099_v51, %v13329_v1  ;;  %v6170_v12 = vadd.f32 %v6134_v3, %v13331_v50  ;;  %v6759_v0 = vld [vmem:[%s13854_s6] ss:$0 sm:$0xff] }
 0x7ea   :  { %v6298_v29 = vadd.f32 %v6297_v41, %v6296_v43  ;;  %v6204_v20 = vmax.f32 %v6168_v58, 0.0  ;;  %v6238_v23 = vmul.f32 %v14753_v34, %v6202_v57  ;;  %v6299_v35 = vsel %vm2790_vm2, %v6236_v15, 0.0 }
 0x7eb   :  { %v6171_v62 = vadd.f32 %v6135_v42, %v13331_v50  ;;  %v6205_v46 = vmax.f32 %v6169_v61, 0.0  ;;  %v6239_v2 = vmul.f32 %v14756_v11, %v6203_v33  ;;  %v6301_v39 = vsel %vm2790_vm2, %v6237_v10, 0.0 }
 0x7ec   :  { %v6300_v17 = vadd.f32 %v6299_v35, %v6298_v29  ;;  %v6056_v47 = vrot.slane %v6055_v40, 4  ;;  %v6206_v19 = vmax.f32 %v6170_v12, 0.0  ;;  %v6240_v1 = vmul.f32 %v14759_v14, %v6204_v20 }
 0x7ed   :  { %v6303_v56 = vsel %vm2790_vm2, %v6238_v23, 0.0  ;;  %v6207_v48 = vmax.f32 %v6171_v62, 0.0  ;;  %v6241_v34 = vmul.f32 %v14761_v28, %v6205_v46  ;;  %v6305_v53 = vsel %vm2790_vm2, %v6239_v2, 0.0 }
 0x7ee   :  { %v6302_v59 = vadd.f32 %v6301_v39, %v6300_v17  ;;  %v6057_v4 = vadd.f32 %v6056_v47, %v6055_v40  ;;  %v6242_v60 = vmul.f32 %v14762_v37, %v6206_v19  ;;  %v6307_v11 = vsel %vm2790_vm2, %v6240_v1, 0.0 }
 0x7ef   :  { %v6243_v32 = vmul.f32 %v14763_v55, %v6207_v48  ;;  %v6309_v49 = vsel %vm2790_vm2, %v6241_v34, 0.0 }
 0x7f0   :  { %v6304_v54 = vadd.f32 %v6303_v56, %v6302_v59  ;;  %v6058_v14 = vrot.slane %v6057_v4, 2  ;;  %v6311_v9 = vsel %vm2790_vm2, %v6242_v60, 0.0 }
 0x7f1   :  { %v6313_v28 = vsel %vm2790_vm2, %v6243_v32, 0.0 }
 0x7f2   :  { %v6306_v50 = vadd.f32 %v6305_v53, %v6304_v54  ;;  %v6059_v25 = vadd.f32 %v6058_v14, %v6057_v4 }
 0x7f4   :  { %v6308_v38 = vadd.f32 %v6307_v11, %v6306_v50  ;;  %v6060_v6 = vrot.slane %v6059_v25, 1 }
 0x7f6   :  { %v6310_v24 = vadd.f32 %v6309_v49, %v6308_v38  ;;  %v6061_v16 = vadd.f32 %v6060_v6, %v6059_v25 }
 0x7f8   :  { %v6312_v63 = vadd.f32 %v6311_v9, %v6310_v24  ;;  %v6062_v13 = vmul.f32 0.00390625, %v6061_v16 }
 0x7fa   :  { %v6314_v18 = vadd.f32 %v6313_v28, %v6312_v63 }
 0x7fc   :  { %v6315_v31 = vrot.slane %v6314_v18, 4 }
 0x7fe   :  { %v6316_v5 = vadd.f32 %v6315_v31, %v6314_v18 }
 0x800   :  { %v6317_v37 = vrot.slane %v6316_v5, 2 }
 0x802   :  { %v6318_v22 = vadd.f32 %v6317_v37, %v6316_v5 }
 0x804   :  { %v6319_v44 = vrot.slane %v6318_v22, 1 }
 0x806   :  { %v6320_v55 = vadd.f32 %v6319_v44, %v6318_v22 }
 0x808   :  { %v6321_v45 = vmul.f32 0.00390625, %v6320_v55 }
 0x80a   :  { %v6323_v8 = vsel %vm6322_vm7, %v6062_v13, %v6321_v45 }
 0x80b   :  { %6736 = vmatmul.msk.f32.vlgmr.msrb.gmra.mxu2 %vm2790_vm2, %v6323_v8 }
 0x88e   :  { %v6349_v26 = vpop.f32.mrf.mxu2 }
 0x88f   :  { %v6350_v27 = vadd.f32 %v6759_v0, %v6349_v26 }
 0x891   :  { %6352 = vst [vmem:[#allocation5] sm:$0x3] %v6350_v27 }
 0x892   :  { %6363 = dma.vmem_to_hbm [thread:$0]  %s6359_s21, 32, %s6361_s30, [#allocation6]  }
 0x893   :  { %6826 = dma.done.wait [#allocation6], 32  }
 0x894   :  { %6827 = vsyncadd [#allocation6], 4294967264 }
 0x895   :  { %6368 = vsyncpa [#allocation6], 1 }

</bundles_post_ra>
